<compile_context>
chip_gen: v7x
topology: tpu7x:2x2x1
jax: 0.10.0
libtpu: 0.0.40
codegen_flags: <defaults>
</compile_context>

<pallas_src>
import functools
import numpy as np

import jax
import jax.numpy as jnp
from jax.experimental import pallas as pl
from jax.experimental.pallas import tpu as pltpu

# ----------------------------- config (scaled-down Swin) -----------------------------
IMG = 56
PATCH = 4
IN_CHANS = 3
EMBED_DIM = 32
DEPTHS = (2, 2)
HEADS = (2, 4)
WINDOW = 7
MLP_RATIO = 4
CLASS_NUM = 10

NEG_INF = -1e9


# ----------------------------- in-kernel helpers -----------------------------
def _ln_f32(x, g, b):
    mean = jnp.mean(x, axis=-1, keepdims=True)
    xc = x - mean
    var = jnp.mean(xc * xc, axis=-1, keepdims=True)
    return xc * jax.lax.rsqrt(var + 1e-5) * g + b


def _gelu_tanh(x):
    # TODO(synk): PyTorch nn.GELU defaults to the exact erf form; tanh approximation used here.
    c = jnp.float32(np.sqrt(2.0 / np.pi))
    return 0.5 * x * (1.0 + jnp.tanh(c * (x + 0.044715 * x * x * x)))


# ----------------------------- Pallas kernels -----------------------------
def _patch_embed_kernel(p_ref, w_ref, b_ref, g_ref, beta_ref, o_ref):
    h = jnp.dot(p_ref[0].astype(jnp.bfloat16), w_ref[...],
                preferred_element_type=jnp.float32) + b_ref[...]
    o_ref[0] = _ln_f32(h, g_ref[...], beta_ref[...]).astype(o_ref.dtype)


def pallas_patch_embed(patches, pe):
    B, L, K = patches.shape
    E = pe["w"].shape[1]
    return pl.pallas_call(
        _patch_embed_kernel,
        out_shape=jax.ShapeDtypeStruct((B, L, E), jnp.float32),
        grid=(B,),
        in_specs=[
            pl.BlockSpec((1, L, K), lambda i: (i, 0, 0)),
            pl.BlockSpec((K, E), lambda i: (0, 0)),
            pl.BlockSpec((1, E), lambda i: (0, 0)),
            pl.BlockSpec((1, E), lambda i: (0, 0)),
            pl.BlockSpec((1, E), lambda i: (0, 0)),
        ],
        out_specs=pl.BlockSpec((1, L, E), lambda i: (i, 0, 0)),
        compiler_params=pltpu.CompilerParams(dimension_semantics=("parallel",)),
    )(patches, pe["w"], pe["b"], pe["norm_g"], pe["norm_b"])


def _swin_block_kernel(x_ref, ln1g_ref, ln1b_ref, qkvw_ref, qkvb_ref,
                       projw_ref, projb_ref, bias_ref,
                       ln2g_ref, ln2b_ref, fc1w_ref, fc1b_ref, fc2w_ref, fc2b_ref,
                       o_ref, *, heads, head_dim):
    # x: (L, C) tokens of one image, already shifted + window-ordered (window-major rows).
    x = x_ref[0].astype(jnp.float32)
    C = x.shape[-1]

    # ---- LN1 + fused QKV projection ----
    h = _ln_f32(x, ln1g_ref[...], ln1b_ref[...])
    qkv = jnp.dot(h.astype(jnp.bfloat16), qkvw_ref[...],
                  preferred_element_type=jnp.float32) + qkvb_ref[...]       # (L, 3C)

    projw = projw_ref[...]                                                  # (C, C) bf16
    scale = head_dim ** -0.5

    # ---- multi-head window attention via block-diagonal bias (off-diag = -1e9) ----
    attn_proj = jnp.zeros_like(x)                                           # (L, C) lane-dense
    for hi in range(heads):
        lo = hi * head_dim
        q = qkv[:, lo:lo + head_dim] * scale
        k = qkv[:, C + lo:C + lo + head_dim]
        v = qkv[:, 2 * C + lo:2 * C + lo + head_dim]
        s = jax.lax.dot_general(q.astype(jnp.bfloat16), k.astype(jnp.bfloat16),
                                (((1,), (1,)), ((), ())),
                                preferred_element_type=jnp.float32)          # (L, L)
        s = s + bias_ref[hi]
        s = s - jnp.max(s, axis=-1, keepdims=True)
        p = jnp.exp(s)
        p = p * pl.reciprocal(jnp.sum(p, axis=-1, keepdims=True), approx=True)
        oh = jnp.dot(p.astype(jnp.bfloat16), v.astype(jnp.bfloat16),
                     preferred_element_type=jnp.float32)                     # (L, d)
        # fold the head-concat + output projection into a per-head matmul accumulation
        attn_proj = attn_proj + jnp.dot(oh.astype(jnp.bfloat16),
                                        projw[lo:lo + head_dim, :],
                                        preferred_element_type=jnp.float32)
    y = x + attn_proj + projb_ref[...]

    # ---- LN2 + MLP (fc1 + GELU + fc2) + residual ----
    h2 = _ln_f32(y, ln2g_ref[...], ln2b_ref[...])
    h2 = jnp.dot(h2.astype(jnp.bfloat16), fc1w_ref[...],
                 preferred_element_type=jnp.float32) + fc1b_ref[...]
    h2 = _gelu_tanh(h2)
    h2 = jnp.dot(h2.astype(jnp.bfloat16), fc2w_ref[...],
                 preferred_element_type=jnp.float32) + fc2b_ref[...]
    o_ref[0] = (y + h2).astype(o_ref.dtype)


def pallas_swin_block(xw, p):
    # xw: (B, L, C) window-ordered (already shifted) tokens; one grid step per image.
    B, L, C = xw.shape
    heads = p["heads"]
    d = C // heads
    kernel = functools.partial(_swin_block_kernel, heads=heads, head_dim=d)

    def full(shape):
        return pl.BlockSpec(shape, lambda i, _n=len(shape): (0,) * _n)

    return pl.pallas_call(
        kernel,
        out_shape=jax.ShapeDtypeStruct((B, L, C), xw.dtype),
        grid=(B,),
        in_specs=[
            pl.BlockSpec((1, L, C), lambda i: (i, 0, 0)),
            full((1, C)), full((1, C)),                      # ln1 gamma/beta
            full((C, 3 * C)), full((1, 3 * C)),              # qkv
            full((C, C)), full((1, C)),                      # proj
            full((heads, L, L)),                             # block-diag bias (+mask)
            full((1, C)), full((1, C)),                      # ln2 gamma/beta
            full((C, MLP_RATIO * C)), full((1, MLP_RATIO * C)),
            full((MLP_RATIO * C, C)), full((1, C)),
        ],
        out_specs=pl.BlockSpec((1, L, C), lambda i: (i, 0, 0)),
        compiler_params=pltpu.CompilerParams(dimension_semantics=("parallel",)),
    )(xw, p["norm1_g"], p["norm1_b"], p["qkv_w"], p["qkv_b"], p["proj_w"], p["proj_b"],
      p["bias"], p["norm2_g"], p["norm2_b"], p["fc1_w"], p["fc1_b"], p["fc2_w"], p["fc2_b"])


def _patch_merge_kernel(x_ref, g_ref, b_ref, w_ref, o_ref):
    h = _ln_f32(x_ref[0].astype(jnp.float32), g_ref[...], b_ref[...])
    o_ref[0] = jnp.dot(h.astype(jnp.bfloat16), w_ref[...],
                       preferred_element_type=jnp.float32).astype(o_ref.dtype)


def pallas_patch_merge(x, p):
    B, L, C4 = x.shape
    C2 = p["red_w"].shape[1]
    return pl.pallas_call(
        _patch_merge_kernel,
        out_shape=jax.ShapeDtypeStruct((B, L, C2), jnp.float32),
        grid=(B,),
        in_specs=[
            pl.BlockSpec((1, L, C4), lambda i: (i, 0, 0)),
            pl.BlockSpec((1, C4), lambda i: (0, 0)),
            pl.BlockSpec((1, C4), lambda i: (0, 0)),
            pl.BlockSpec((C4, C2), lambda i: (0, 0)),
        ],
        out_specs=pl.BlockSpec((1, L, C2), lambda i: (i, 0, 0)),
        compiler_params=pltpu.CompilerParams(dimension_semantics=("parallel",)),
    )(x, p["norm_g"], p["norm_b"], p["red_w"])


def _head_kernel(x_ref, g_ref, b_ref, w_ref, hb_ref, o_ref):
    h = _ln_f32(x_ref[0].astype(jnp.float32), g_ref[...], b_ref[...])   # (L, C)
    pooled = jnp.mean(h, axis=0, keepdims=True)                         # (1, C)
    o_ref[0] = (jnp.dot(pooled.astype(jnp.bfloat16), w_ref[...],
                        preferred_element_type=jnp.float32) + hb_ref[...]).astype(o_ref.dtype)


def pallas_head(x, g, b, w, hb):
    B, L, C = x.shape
    NCLS = w.shape[1]
    out = pl.pallas_call(
        _head_kernel,
        out_shape=jax.ShapeDtypeStruct((B, 1, NCLS), jnp.float32),
        grid=(B,),
        in_specs=[
            pl.BlockSpec((1, L, C), lambda i: (i, 0, 0)),
            pl.BlockSpec((1, C), lambda i: (0, 0)),
            pl.BlockSpec((1, C), lambda i: (0, 0)),
            pl.BlockSpec((C, NCLS), lambda i: (0, 0)),
            pl.BlockSpec((1, NCLS), lambda i: (0, 0)),
        ],
        out_specs=pl.BlockSpec((1, 1, NCLS), lambda i: (i, 0, 0)),
        compiler_params=pltpu.CompilerParams(dimension_semantics=("parallel",)),
    )(x, g, b, w, hb)
    return out.reshape(B, NCLS)


# ----------------------------- static helpers (glue / init-time precompute) -----------------------------
def rel_pos_index(ws):
    coords = np.stack(np.meshgrid(np.arange(ws), np.arange(ws), indexing="ij"))
    cf = coords.reshape(2, -1)
    rel = cf[:, :, None] - cf[:, None, :]
    rel = rel.transpose(1, 2, 0).astype(np.int64)
    rel[:, :, 0] += ws - 1
    rel[:, :, 1] += ws - 1
    rel[:, :, 0] *= 2 * ws - 1
    return rel.sum(-1)  # (N, N)


def make_attn_mask_np(H, W, ws, shift):
    if shift == 0:
        return None
    img_mask = np.zeros((1, H, W, 1), dtype=np.float32)
    cnt = 0
    for hs in (slice(0, -ws), slice(-ws, -shift), slice(-shift, None)):
        for wsl in (slice(0, -ws), slice(-ws, -shift), slice(-shift, None)):
            img_mask[:, hs, wsl, :] = cnt
            cnt += 1
    mw = (img_mask.reshape(1, H // ws, ws, W // ws, ws, 1)
          .transpose(0, 1, 3, 2, 4, 5).reshape(-1, ws * ws))
    am = mw[:, None, :] - mw[:, :, None]
    return np.where(am != 0, -100.0, 0.0).astype(np.float32)  # (nW, N, N)


def build_block_bias(res, ws, shift, heads, rpb_table_np):
    """Precompute block-diagonal (heads, L, L) bias = rel-pos bias (+ shift mask), -1e9 off-diag."""
    N = ws * ws
    nW = (res // ws) ** 2
    L = nW * N
    rel = rel_pos_index(ws)
    rpb = rpb_table_np[rel.reshape(-1)].reshape(N, N, heads).transpose(2, 0, 1)  # (heads, N, N)
    mask = make_attn_mask_np(res, res, ws, shift)                                # (nW, N, N) or None
    full = np.full((heads, L, L), NEG_INF, dtype=np.float32)
    for w in range(nW):
        blk = rpb if mask is None else rpb + mask[w][None]
        full[:, w * N:(w + 1) * N, w * N:(w + 1) * N] = blk
    return jnp.asarray(full)


def window_partition(x, ws):
    B, H, W, C = x.shape
    x = x.reshape(B, H // ws, ws, W // ws, ws, C)
    return x.transpose(0, 1, 3, 2, 4, 5).reshape(-1, ws * ws, C)


def window_reverse(xw, ws, B, H, W):
    C = xw.shape[-1]
    x = xw.reshape(B, H // ws, W // ws, ws, ws, C)
    return x.transpose(0, 1, 3, 2, 4, 5).reshape(B, H, W, C)


# ----------------------------- parameter init -----------------------------
class KeyGen:
    def __init__(self, seed):
        self.key = jax.random.PRNGKey(seed)
        self.i = 0

    def __call__(self):
        self.i += 1
        return jax.random.fold_in(self.key, self.i)


def trunc_normal(key, shape, std=0.02):
    return (std * jax.random.truncated_normal(key, -2.0, 2.0, shape)).astype(jnp.float32)


def init_params(seed=42):
    kg = KeyGen(seed)
    params = {}
    patch_dim = IN_CHANS * PATCH * PATCH
    # patch-embed conv (E, C, 4, 4) expressed as its im2col matrix (C*4*4, E)
    params["patch_embed"] = {
        "w": trunc_normal(kg(), (patch_dim, EMBED_DIM)).astype(jnp.bfloat16),
        "b": jnp.zeros((1, EMBED_DIM), jnp.float32),
        "norm_g": jnp.ones((1, EMBED_DIM), jnp.float32),
        "norm_b": jnp.zeros((1, EMBED_DIM), jnp.float32),
    }
    res = IMG // PATCH
    dim = EMBED_DIM
    stages = []
    for si, depth in enumerate(DEPTHS):
        heads = HEADS[si]
        ws = min(WINDOW, res)
        blocks = []
        for bi in range(depth):
            shift = 0 if (bi % 2 == 0 or res <= WINDOW) else WINDOW // 2
            rpb_table = np.asarray(trunc_normal(kg(), ((2 * ws - 1) * (2 * ws - 1), heads)))
            blocks.append({
                "ws": ws, "shift": shift, "heads": heads,
                "norm1_g": jnp.ones((1, dim), jnp.float32),
                "norm1_b": jnp.zeros((1, dim), jnp.float32),
                "qkv_w": trunc_normal(kg(), (dim, 3 * dim)).astype(jnp.bfloat16),
                "qkv_b": jnp.zeros((1, 3 * dim), jnp.float32),
                "proj_w": trunc_normal(kg(), (dim, dim)).astype(jnp.bfloat16),
                "proj_b": jnp.zeros((1, dim), jnp.float32),
                "bias": build_block_bias(res, ws, shift, heads, rpb_table),
                "norm2_g": jnp.ones((1, dim), jnp.float32),
                "norm2_b": jnp.zeros((1, dim), jnp.float32),
                "fc1_w": trunc_normal(kg(), (dim, MLP_RATIO * dim)).astype(jnp.bfloat16),
                "fc1_b": jnp.zeros((1, MLP_RATIO * dim), jnp.float32),
                "fc2_w": trunc_normal(kg(), (MLP_RATIO * dim, dim)).astype(jnp.bfloat16),
                "fc2_b": jnp.zeros((1, dim), jnp.float32),
            })
        downsample = None
        if si < len(DEPTHS) - 1:
            downsample = {
                "norm_g": jnp.ones((1, 4 * dim), jnp.float32),
                "norm_b": jnp.zeros((1, 4 * dim), jnp.float32),
                "red_w": trunc_normal(kg(), (4 * dim, 2 * dim)).astype(jnp.bfloat16),  # Linear(4C,2C,bias=False)
            }
        stages.append({"blocks": blocks, "downsample": downsample})
        if si < len(DEPTHS) - 1:
            dim *= 2
            res //= 2
    params["stages"] = stages
    params["norm_g"] = jnp.ones((1, dim), jnp.float32)
    params["norm_b"] = jnp.zeros((1, dim), jnp.float32)
    params["head_w"] = trunc_normal(kg(), (dim, CLASS_NUM)).astype(jnp.bfloat16)
    params["head_b"] = jnp.zeros((1, CLASS_NUM), jnp.float32)
    return params


# ----------------------------- forward pass -----------------------------
def swin_block(x, p, H, W):
    B, L, C = x.shape
    ws, shift = p["ws"], p["shift"]
    x_img = x.reshape(B, H, W, C)
    if shift > 0:
        x_img = jnp.roll(x_img, shift=(-shift, -shift), axis=(1, 2))
    # window-ordered tokens per image: row = window_idx * N + token_idx
    xw = window_partition(x_img, ws).reshape(B, L, C)
    out = pallas_swin_block(xw, p)                                   # full block fused in one kernel
    out = window_reverse(out.reshape(-1, ws * ws, C), ws, B, H, W)
    if shift > 0:
        out = jnp.roll(out, shift=(shift, shift), axis=(1, 2))
    return out.reshape(B, L, C)


def patch_merging(x, p, H, W):
    B, L, C = x.shape
    xi = x.reshape(B, H, W, C)
    x0 = xi[:, 0::2, 0::2]
    x1 = xi[:, 1::2, 0::2]
    x2 = xi[:, 0::2, 1::2]
    x3 = xi[:, 1::2, 1::2]
    xc = jnp.concatenate([x0, x1, x2, x3], axis=-1).reshape(B, (H // 2) * (W // 2), 4 * C)
    return pallas_patch_merge(xc, p)


def swin_forward(params, x_nchw):
    B = x_nchw.shape[0]
    Hp = IMG // PATCH
    # patch embed: conv(k=4, s=4) == im2col (c, kh, kw ordering) + fused matmul+LN (in Pallas)
    patches = x_nchw.reshape(B, IN_CHANS, Hp, PATCH, Hp, PATCH)
    patches = patches.transpose(0, 2, 4, 1, 3, 5).reshape(B, Hp * Hp, IN_CHANS * PATCH * PATCH)
    x = pallas_patch_embed(patches, params["patch_embed"])           # (B, 196, 32)

    H = W = Hp
    for stage in params["stages"]:
        for blk in stage["blocks"]:
            x = swin_block(x, blk, H, W)
        if stage["downsample"] is not None:
            x = patch_merging(x, stage["downsample"], H, W)
            H //= 2
            W //= 2

    # final LN + global token mean-pool + classification head, fused per image
    logits = pallas_head(x, params["norm_g"], params["norm_b"],
                         params["head_w"], params["head_b"])
    return logits


if __name__ == "__main__":
    params = init_params(seed=42)
    x = jax.random.normal(jax.random.PRNGKey(0), (2, IN_CHANS, IMG, IMG), dtype=jnp.float32)
    fwd = jax.jit(lambda inp: swin_forward(params, inp))
    out = fwd(x)
    out = jax.block_until_ready(out)
    assert out.shape == (2, CLASS_NUM), out.shape
    assert bool(jnp.all(jnp.isfinite(out)))
    print("KERNEL_OK")
</pallas_src>

<mosaic_0001>
module attributes {stable_mosaic.version = 11 : i64} {
  func.func @_patch_embed_kernel(%arg0: i32, %arg1: memref<1x196x48xf32, #tpu.memory_space<vmem>>, %arg2: memref<48x32xbf16, #tpu.memory_space<vmem>>, %arg3: memref<1x32xf32, #tpu.memory_space<vmem>>, %arg4: memref<1x32xf32, #tpu.memory_space<vmem>>, %arg5: memref<1x32xf32, #tpu.memory_space<vmem>>, %arg6: memref<1x196x32xf32, #tpu.memory_space<vmem>>) attributes {dimension_semantics = [#tpu.dimension_semantics<parallel>], iteration_bounds = array<i64: 2>, scalar_prefetch = 0 : i64, scratch_operands = 0 : i64, tpu.core_type = #tpu.core_type<tc>, window_params = [{transform_indices = @transform_0, window_bounds = array<i64: 1, 196, 48>}, {pipeline_mode = #tpu.pipeline_mode<synchronous>, transform_indices = @transform_1, window_bounds = array<i64: 48, 32>}, {pipeline_mode = #tpu.pipeline_mode<synchronous>, transform_indices = @transform_2, window_bounds = array<i64: 1, 32>}, {pipeline_mode = #tpu.pipeline_mode<synchronous>, transform_indices = @transform_3, window_bounds = array<i64: 1, 32>}, {pipeline_mode = #tpu.pipeline_mode<synchronous>, transform_indices = @transform_4, window_bounds = array<i64: 1, 32>}, {transform_indices = @transform_5, window_bounds = array<i64: 1, 196, 32>}]} {
    %c0 = arith.constant 0 : index
    %c0_0 = arith.constant 0 : index
    %c0_1 = arith.constant 0 : index
    %0 = vector.load %arg1[%c0, %c0_0, %c0_1] : memref<1x196x48xf32, #tpu.memory_space<vmem>>, vector<1x196x48xf32>
    %1 = vector.shape_cast %0 : vector<1x196x48xf32> to vector<196x48xf32>
    %2 = arith.truncf %1 : vector<196x48xf32> to vector<196x48xbf16>
    %c0_2 = arith.constant 0 : index
    %c0_3 = arith.constant 0 : index
    %3 = vector.load %arg2[%c0_2, %c0_3] : memref<48x32xbf16, #tpu.memory_space<vmem>>, vector<48x32xbf16>
    %cst = arith.constant dense<0.000000e+00> : vector<196x32xf32>
    %4 = tpu.matmul %2, %3, %cst {dimension_numbers = #tpu.dot_dimension_numbers<[1], [0], [0], [1], [0, 0, 1, 1], [], []>} : vector<196x48xbf16>, vector<48x32xbf16>, vector<196x32xf32> -> vector<196x32xf32>
    %c0_4 = arith.constant 0 : index
    %c0_5 = arith.constant 0 : index
    %5 = vector.load %arg3[%c0_4, %c0_5] : memref<1x32xf32, #tpu.memory_space<vmem>>, vector<1x32xf32>
    %6 = vector.broadcast %5 : vector<1x32xf32> to vector<196x32xf32>
    %7 = arith.addf %4, %6 : vector<196x32xf32>
    %c0_6 = arith.constant 0 : index
    %c0_7 = arith.constant 0 : index
    %8 = vector.load %arg4[%c0_6, %c0_7] : memref<1x32xf32, #tpu.memory_space<vmem>>, vector<1x32xf32>
    %c0_8 = arith.constant 0 : index
    %c0_9 = arith.constant 0 : index
    %9 = vector.load %arg5[%c0_8, %c0_9] : memref<1x32xf32, #tpu.memory_space<vmem>>, vector<1x32xf32>
    %cst_10 = arith.constant dense<0.000000e+00> : vector<196xf32>
    %10 = vector.multi_reduction <add>, %7, %cst_10 [1] : vector<196x32xf32> to vector<196xf32>
    %11 = vector.shape_cast %10 : vector<196xf32> to vector<196x1xf32>
    %cst_11 = arith.constant 3.200000e+01 : f32
    %12 = vector.broadcast %cst_11 : f32 to vector<196x1xf32>
    %13 = arith.divf %11, %12 : vector<196x1xf32>
    %14 = vector.broadcast %13 : vector<196x1xf32> to vector<196x32xf32>
    %15 = arith.subf %7, %14 : vector<196x32xf32>
    %16 = arith.mulf %15, %15 : vector<196x32xf32>
    %cst_12 = arith.constant dense<0.000000e+00> : vector<196xf32>
    %17 = vector.multi_reduction <add>, %16, %cst_12 [1] : vector<196x32xf32> to vector<196xf32>
    %18 = vector.shape_cast %17 : vector<196xf32> to vector<196x1xf32>
    %cst_13 = arith.constant 3.200000e+01 : f32
    %19 = vector.broadcast %cst_13 : f32 to vector<196x1xf32>
    %20 = arith.divf %18, %19 : vector<196x1xf32>
    %cst_14 = arith.constant 9.99999974E-6 : f32
    %21 = vector.broadcast %cst_14 : f32 to vector<196x1xf32>
    %22 = arith.addf %20, %21 : vector<196x1xf32>
    %23 = math.rsqrt %22 : vector<196x1xf32>
    %24 = vector.broadcast %23 : vector<196x1xf32> to vector<196x32xf32>
    %25 = arith.mulf %15, %24 : vector<196x32xf32>
    %26 = vector.broadcast %8 : vector<1x32xf32> to vector<196x32xf32>
    %27 = arith.mulf %25, %26 : vector<196x32xf32>
    %28 = vector.broadcast %9 : vector<1x32xf32> to vector<196x32xf32>
    %29 = arith.addf %27, %28 : vector<196x32xf32>
    %c0_15 = arith.constant 0 : index
    %c0_16 = arith.constant 0 : index
    %c0_17 = arith.constant 0 : index
    %30 = vector.load %arg6[%c0_15, %c0_16, %c0_17] : memref<1x196x32xf32, #tpu.memory_space<vmem>>, vector<1x196x32xf32>
    %31 = vector.shape_cast %30 : vector<1x196x32xf32> to vector<196x32xf32>
    %32 = vector.shape_cast %29 : vector<196x32xf32> to vector<1x196x32xf32>
    tpu.vector_store %arg6[%c0_15, %c0_16, %c0_17], %32 {strides = array<i32>} : memref<1x196x32xf32, #tpu.memory_space<vmem>>, vector<1x196x32xf32>,
    return
  }
  func.func @transform_0(%arg0: i32) -> (i32, i32, i32) {
    %c0_i32 = arith.constant 0 : i32
    %c0_i32_0 = arith.constant 0 : i32
    %c0_i32_1 = arith.constant 0 : i32
    return %arg0, %c0_i32, %c0_i32_0 : i32, i32, i32
  }
  func.func @transform_1(%arg0: i32) -> (i32, i32) {
    %c0_i32 = arith.constant 0 : i32
    %c0_i32_0 = arith.constant 0 : i32
    %c0_i32_1 = arith.constant 0 : i32
    return %c0_i32, %c0_i32_0 : i32, i32
  }
  func.func @transform_2(%arg0: i32) -> (i32, i32) {
    %c0_i32 = arith.constant 0 : i32
    %c0_i32_0 = arith.constant 0 : i32
    %c0_i32_1 = arith.constant 0 : i32
    return %c0_i32, %c0_i32_0 : i32, i32
  }
  func.func @transform_3(%arg0: i32) -> (i32, i32) {
    %c0_i32 = arith.constant 0 : i32
    %c0_i32_0 = arith.constant 0 : i32
    %c0_i32_1 = arith.constant 0 : i32
    return %c0_i32, %c0_i32_0 : i32, i32
  }
  func.func @transform_4(%arg0: i32) -> (i32, i32) {
    %c0_i32 = arith.constant 0 : i32
    %c0_i32_0 = arith.constant 0 : i32
    %c0_i32_1 = arith.constant 0 : i32
    return %c0_i32, %c0_i32_0 : i32, i32
  }
  func.func @transform_5(%arg0: i32) -> (i32, i32, i32) {
    %c0_i32 = arith.constant 0 : i32
    %c0_i32_0 = arith.constant 0 : i32
    %c0_i32_1 = arith.constant 0 : i32
    return %arg0, %c0_i32, %c0_i32_0 : i32, i32, i32
  }
}

module attributes {stable_mosaic.version = 11 : i64} {
  func.func @_swin_block_kernel(%arg0: i32, %arg1: memref<1x196x32xf32, #tpu.memory_space<vmem>>, %arg2: memref<1x32xf32, #tpu.memory_space<vmem>>, %arg3: memref<1x32xf32, #tpu.memory_space<vmem>>, %arg4: memref<32x96xbf16, #tpu.memory_space<vmem>>, %arg5: memref<1x96xf32, #tpu.memory_space<vmem>>, %arg6: memref<32x32xbf16, #tpu.memory_space<vmem>>, %arg7: memref<1x32xf32, #tpu.memory_space<vmem>>, %arg8: memref<2x196x196xf32, #tpu.memory_space<vmem>>, %arg9: memref<1x32xf32, #tpu.memory_space<vmem>>, %arg10: memref<1x32xf32, #tpu.memory_space<vmem>>, %arg11: memref<32x128xbf16, #tpu.memory_space<vmem>>, %arg12: memref<1x128xf32, #tpu.memory_space<vmem>>, %arg13: memref<128x32xbf16, #tpu.memory_space<vmem>>, %arg14: memref<1x32xf32, #tpu.memory_space<vmem>>, %arg15: memref<1x196x32xf32, #tpu.memory_space<vmem>>) attributes {dimension_semantics = [#tpu.dimension_semantics<parallel>], iteration_bounds = array<i64: 2>, scalar_prefetch = 0 : i64, scratch_operands = 0 : i64, tpu.core_type = #tpu.core_type<tc>, window_params = [{transform_indices = @transform_0, window_bounds = array<i64: 1, 196, 32>}, {pipeline_mode = #tpu.pipeline_mode<synchronous>, transform_indices = @transform_1, window_bounds = array<i64: 1, 32>}, {pipeline_mode = #tpu.pipeline_mode<synchronous>, transform_indices = @transform_2, window_bounds = array<i64: 1, 32>}, {pipeline_mode = #tpu.pipeline_mode<synchronous>, transform_indices = @transform_3, window_bounds = array<i64: 32, 96>}, {pipeline_mode = #tpu.pipeline_mode<synchronous>, transform_indices = @transform_4, window_bounds = array<i64: 1, 96>}, {pipeline_mode = #tpu.pipeline_mode<synchronous>, transform_indices = @transform_5, window_bounds = array<i64: 32, 32>}, {pipeline_mode = #tpu.pipeline_mode<synchronous>, transform_indices = @transform_6, window_bounds = array<i64: 1, 32>}, {pipeline_mode = #tpu.pipeline_mode<synchronous>, transform_indices = @transform_7, window_bounds = array<i64: 2, 196, 196>}, {pipeline_mode = #tpu.pipeline_mode<synchronous>, transform_indices = @transform_8, window_bounds = array<i64: 1, 32>}, {pipeline_mode = #tpu.pipeline_mode<synchronous>, transform_indices = @transform_9, window_bounds = array<i64: 1, 32>}, {pipeline_mode = #tpu.pipeline_mode<synchronous>, transform_indices = @transform_10, window_bounds = array<i64: 32, 128>}, {pipeline_mode = #tpu.pipeline_mode<synchronous>, transform_indices = @transform_11, window_bounds = array<i64: 1, 128>}, {pipeline_mode = #tpu.pipeline_mode<synchronous>, transform_indices = @transform_12, window_bounds = array<i64: 128, 32>}, {pipeline_mode = #tpu.pipeline_mode<synchronous>, transform_indices = @transform_13, window_bounds = array<i64: 1, 32>}, {transform_indices = @transform_14, window_bounds = array<i64: 1, 196, 32>}]} {
    %c0 = arith.constant 0 : index
    %c0_0 = arith.constant 0 : index
    %c0_1 = arith.constant 0 : index
    %0 = vector.load %arg1[%c0, %c0_0, %c0_1] : memref<1x196x32xf32, #tpu.memory_space<vmem>>, vector<1x196x32xf32>
    %1 = vector.shape_cast %0 : vector<1x196x32xf32> to vector<196x32xf32>
    %c0_2 = arith.constant 0 : index
    %c0_3 = arith.constant 0 : index
    %2 = vector.load %arg2[%c0_2, %c0_3] : memref<1x32xf32, #tpu.memory_space<vmem>>, vector<1x32xf32>
    %c0_4 = arith.constant 0 : index
    %c0_5 = arith.constant 0 : index
    %3 = vector.load %arg3[%c0_4, %c0_5] : memref<1x32xf32, #tpu.memory_space<vmem>>, vector<1x32xf32>
    %cst = arith.constant dense<0.000000e+00> : vector<196xf32>
    %4 = vector.multi_reduction <add>, %1, %cst [1] : vector<196x32xf32> to vector<196xf32>
    %5 = vector.shape_cast %4 : vector<196xf32> to vector<196x1xf32>
    %cst_6 = arith.constant 3.200000e+01 : f32
    %6 = vector.broadcast %cst_6 : f32 to vector<196x1xf32>
    %7 = arith.divf %5, %6 : vector<196x1xf32>
    %8 = vector.broadcast %7 : vector<196x1xf32> to vector<196x32xf32>
    %9 = arith.subf %1, %8 : vector<196x32xf32>
    %10 = arith.mulf %9, %9 : vector<196x32xf32>
    %cst_7 = arith.constant dense<0.000000e+00> : vector<196xf32>
    %11 = vector.multi_reduction <add>, %10, %cst_7 [1] : vector<196x32xf32> to vector<196xf32>
    %12 = vector.shape_cast %11 : vector<196xf32> to vector<196x1xf32>
    %cst_8 = arith.constant 3.200000e+01 : f32
    %13 = vector.broadcast %cst_8 : f32 to vector<196x1xf32>
    %14 = arith.divf %12, %13 : vector<196x1xf32>
    %cst_9 = arith.constant 9.99999974E-6 : f32
    %15 = vector.broadcast %cst_9 : f32 to vector<196x1xf32>
    %16 = arith.addf %14, %15 : vector<196x1xf32>
    %17 = math.rsqrt %16 : vector<196x1xf32>
    %18 = vector.broadcast %17 : vector<196x1xf32> to vector<196x32xf32>
    %19 = arith.mulf %9, %18 : vector<196x32xf32>
    %20 = vector.broadcast %2 : vector<1x32xf32> to vector<196x32xf32>
    %21 = arith.mulf %19, %20 : vector<196x32xf32>
    %22 = vector.broadcast %3 : vector<1x32xf32> to vector<196x32xf32>
    %23 = arith.addf %21, %22 : vector<196x32xf32>
    %24 = arith.truncf %23 : vector<196x32xf32> to vector<196x32xbf16>
    %c0_10 = arith.constant 0 : index
    %c0_11 = arith.constant 0 : index
    %25 = vector.load %arg4[%c0_10, %c0_11] : memref<32x96xbf16, #tpu.memory_space<vmem>>, vector<32x96xbf16>
    %cst_12 = arith.constant dense<0.000000e+00> : vector<196x96xf32>
    %26 = tpu.matmul %24, %25, %cst_12 {dimension_numbers = #tpu.dot_dimension_numbers<[1], [0], [0], [1], [0, 0, 1, 1], [], []>} : vector<196x32xbf16>, vector<32x96xbf16>, vector<196x96xf32> -> vector<196x96xf32>
    %c0_13 = arith.constant 0 : index
    %c0_14 = arith.constant 0 : index
    %27 = vector.load %arg5[%c0_13, %c0_14] : memref<1x96xf32, #tpu.memory_space<vmem>>, vector<1x96xf32>
    %28 = vector.broadcast %27 : vector<1x96xf32> to vector<196x96xf32>
    %29 = arith.addf %26, %28 : vector<196x96xf32>
    %c0_15 = arith.constant 0 : index
    %c0_16 = arith.constant 0 : index
    %30 = vector.load %arg6[%c0_15, %c0_16] : memref<32x32xbf16, #tpu.memory_space<vmem>>, vector<32x32xbf16>
    %cst_17 = arith.constant 0.000000e+00 : f32
    %31 = vector.broadcast %cst_17 : f32 to vector<196x32xf32>
    %32 = vector.extract_strided_slice %29 {offsets = [0, 0], sizes = [196, 16], strides = [1, 1]} : vector<196x96xf32> to vector<196x16xf32>
    %cst_18 = arith.constant 2.500000e-01 : f32
    %33 = vector.broadcast %cst_18 : f32 to vector<196x16xf32>
    %34 = arith.mulf %32, %33 : vector<196x16xf32>
    %35 = vector.extract_strided_slice %29 {offsets = [0, 32], sizes = [196, 16], strides = [1, 1]} : vector<196x96xf32> to vector<196x16xf32>
    %36 = vector.extract_strided_slice %29 {offsets = [0, 64], sizes = [196, 16], strides = [1, 1]} : vector<196x96xf32> to vector<196x16xf32>
    %37 = arith.truncf %34 : vector<196x16xf32> to vector<196x16xbf16>
    %38 = arith.truncf %35 : vector<196x16xf32> to vector<196x16xbf16>
    %cst_19 = arith.constant dense<0.000000e+00> : vector<196x196xf32>
    %39 = tpu.matmul %37, %38, %cst_19 {dimension_numbers = #tpu.dot_dimension_numbers<[1], [1], [0], [0], [0, 0, 1, 0], [], []>} : vector<196x16xbf16>, vector<196x16xbf16>, vector<196x196xf32> -> vector<196x196xf32>
    %c0_20 = arith.constant 0 : index
    %c0_21 = arith.constant 0 : index
    %c0_22 = arith.constant 0 : index
    %40 = vector.load %arg8[%c0_20, %c0_21, %c0_22] : memref<2x196x196xf32, #tpu.memory_space<vmem>>, vector<1x196x196xf32>
    %41 = vector.shape_cast %40 : vector<1x196x196xf32> to vector<196x196xf32>
    %42 = arith.addf %39, %41 : vector<196x196xf32>
    %cst_23 = arith.constant dense<0xFF800000> : vector<196xf32>
    %43 = vector.multi_reduction <maximumf>, %42, %cst_23 [1] : vector<196x196xf32> to vector<196xf32>
    %44 = vector.shape_cast %43 : vector<196xf32> to vector<196x1xf32>
    %45 = vector.broadcast %44 : vector<196x1xf32> to vector<196x196xf32>
    %46 = arith.subf %42, %45 : vector<196x196xf32>
    %47 = math.exp %46 : vector<196x196xf32>
    %cst_24 = arith.constant dense<0.000000e+00> : vector<196xf32>
    %48 = vector.multi_reduction <add>, %47, %cst_24 [1] : vector<196x196xf32> to vector<196xf32>
    %49 = vector.shape_cast %48 : vector<196xf32> to vector<196x1xf32>
    %50 = tpu.reciprocal %49 {approx = true} : vector<196x1xf32> -> vector<196x1xf32>
    %51 = vector.broadcast %50 : vector<196x1xf32> to vector<196x196xf32>
    %52 = arith.mulf %47, %51 : vector<196x196xf32>
    %53 = arith.truncf %52 : vector<196x196xf32> to vector<196x196xbf16>
    %54 = arith.truncf %36 : vector<196x16xf32> to vector<196x16xbf16>
    %cst_25 = arith.constant dense<0.000000e+00> : vector<196x16xf32>
    %55 = tpu.matmul %53, %54, %cst_25 {dimension_numbers = #tpu.dot_dimension_numbers<[1], [0], [0], [1], [0, 0, 1, 1], [], []>} : vector<196x196xbf16>, vector<196x16xbf16>, vector<196x16xf32> -> vector<196x16xf32>
    %56 = arith.truncf %55 : vector<196x16xf32> to vector<196x16xbf16>
    %57 = vector.extract_strided_slice %30 {offsets = [0, 0], sizes = [16, 32], strides = [1, 1]} : vector<32x32xbf16> to vector<16x32xbf16>
    %cst_26 = arith.constant dense<0.000000e+00> : vector<196x32xf32>
    %58 = tpu.matmul %56, %57, %cst_26 {dimension_numbers = #tpu.dot_dimension_numbers<[1], [0], [0], [1], [0, 0, 1, 1], [], []>} : vector<196x16xbf16>, vector<16x32xbf16>, vector<196x32xf32> -> vector<196x32xf32>
    %59 = arith.addf %31, %58 : vector<196x32xf32>
    %60 = vector.extract_strided_slice %29 {offsets = [0, 16], sizes = [196, 16], strides = [1, 1]} : vector<196x96xf32> to vector<196x16xf32>
    %cst_27 = arith.constant 2.500000e-01 : f32
    %61 = vector.broadcast %cst_27 : f32 to vector<196x16xf32>
    %62 = arith.mulf %60, %61 : vector<196x16xf32>
    %63 = vector.extract_strided_slice %29 {offsets = [0, 48], sizes = [196, 16], strides = [1, 1]} : vector<196x96xf32> to vector<196x16xf32>
    %64 = vector.extract_strided_slice %29 {offsets = [0, 80], sizes = [196, 16], strides = [1, 1]} : vector<196x96xf32> to vector<196x16xf32>
    %65 = arith.truncf %62 : vector<196x16xf32> to vector<196x16xbf16>
    %66 = arith.truncf %63 : vector<196x16xf32> to vector<196x16xbf16>
    %cst_28 = arith.constant dense<0.000000e+00> : vector<196x196xf32>
    %67 = tpu.matmul %65, %66, %cst_28 {dimension_numbers = #tpu.dot_dimension_numbers<[1], [1], [0], [0], [0, 0, 1, 0], [], []>} : vector<196x16xbf16>, vector<196x16xbf16>, vector<196x196xf32> -> vector<196x196xf32>
    %c1 = arith.constant 1 : index
    %c0_29 = arith.constant 0 : index
    %c0_30 = arith.constant 0 : index
    %68 = vector.load %arg8[%c1, %c0_29, %c0_30] : memref<2x196x196xf32, #tpu.memory_space<vmem>>, vector<1x196x196xf32>
    %69 = vector.shape_cast %68 : vector<1x196x196xf32> to vector<196x196xf32>
    %70 = arith.addf %67, %69 : vector<196x196xf32>
    %cst_31 = arith.constant dense<0xFF800000> : vector<196xf32>
    %71 = vector.multi_reduction <maximumf>, %70, %cst_31 [1] : vector<196x196xf32> to vector<196xf32>
    %72 = vector.shape_cast %71 : vector<196xf32> to vector<196x1xf32>
    %73 = vector.broadcast %72 : vector<196x1xf32> to vector<196x196xf32>
    %74 = arith.subf %70, %73 : vector<196x196xf32>
    %75 = math.exp %74 : vector<196x196xf32>
    %cst_32 = arith.constant dense<0.000000e+00> : vector<196xf32>
    %76 = vector.multi_reduction <add>, %75, %cst_32 [1] : vector<196x196xf32> to vector<196xf32>
    %77 = vector.shape_cast %76 : vector<196xf32> to vector<196x1xf32>
    %78 = tpu.reciprocal %77 {approx = true} : vector<196x1xf32> -> vector<196x1xf32>
    %79 = vector.broadcast %78 : vector<196x1xf32> to vector<196x196xf32>
    %80 = arith.mulf %75, %79 : vector<196x196xf32>
    %81 = arith.truncf %80 : vector<196x196xf32> to vector<196x196xbf16>
    %82 = arith.truncf %64 : vector<196x16xf32> to vector<196x16xbf16>
    %cst_33 = arith.constant dense<0.000000e+00> : vector<196x16xf32>
    %83 = tpu.matmul %81, %82, %cst_33 {dimension_numbers = #tpu.dot_dimension_numbers<[1], [0], [0], [1], [0, 0, 1, 1], [], []>} : vector<196x196xbf16>, vector<196x16xbf16>, vector<196x16xf32> -> vector<196x16xf32>
    %84 = arith.truncf %83 : vector<196x16xf32> to vector<196x16xbf16>
    %85 = vector.extract_strided_slice %30 {offsets = [16, 0], sizes = [16, 32], strides = [1, 1]} : vector<32x32xbf16> to vector<16x32xbf16>
    %cst_34 = arith.constant dense<0.000000e+00> : vector<196x32xf32>
    %86 = tpu.matmul %84, %85, %cst_34 {dimension_numbers = #tpu.dot_dimension_numbers<[1], [0], [0], [1], [0, 0, 1, 1], [], []>} : vector<196x16xbf16>, vector<16x32xbf16>, vector<196x32xf32> -> vector<196x32xf32>
    %87 = arith.addf %59, %86 : vector<196x32xf32>
    %88 = arith.addf %1, %87 : vector<196x32xf32>
    %c0_35 = arith.constant 0 : index
    %c0_36 = arith.constant 0 : index
    %89 = vector.load %arg7[%c0_35, %c0_36] : memref<1x32xf32, #tpu.memory_space<vmem>>, vector<1x32xf32>
    %90 = vector.broadcast %89 : vector<1x32xf32> to vector<196x32xf32>
    %91 = arith.addf %88, %90 : vector<196x32xf32>
    %c0_37 = arith.constant 0 : index
    %c0_38 = arith.constant 0 : index
    %92 = vector.load %arg9[%c0_37, %c0_38] : memref<1x32xf32, #tpu.memory_space<vmem>>, vector<1x32xf32>
    %c0_39 = arith.constant 0 : index
    %c0_40 = arith.constant 0 : index
    %93 = vector.load %arg10[%c0_39, %c0_40] : memref<1x32xf32, #tpu.memory_space<vmem>>, vector<1x32xf32>
    %cst_41 = arith.constant dense<0.000000e+00> : vector<196xf32>
    %94 = vector.multi_reduction <add>, %91, %cst_41 [1] : vector<196x32xf32> to vector<196xf32>
    %95 = vector.shape_cast %94 : vector<196xf32> to vector<196x1xf32>
    %cst_42 = arith.constant 3.200000e+01 : f32
    %96 = vector.broadcast %cst_42 : f32 to vector<196x1xf32>
    %97 = arith.divf %95, %96 : vector<196x1xf32>
    %98 = vector.broadcast %97 : vector<196x1xf32> to vector<196x32xf32>
    %99 = arith.subf %91, %98 : vector<196x32xf32>
    %100 = arith.mulf %99, %99 : vector<196x32xf32>
    %cst_43 = arith.constant dense<0.000000e+00> : vector<196xf32>
    %101 = vector.multi_reduction <add>, %100, %cst_43 [1] : vector<196x32xf32> to vector<196xf32>
    %102 = vector.shape_cast %101 : vector<196xf32> to vector<196x1xf32>
    %cst_44 = arith.constant 3.200000e+01 : f32
    %103 = vector.broadcast %cst_44 : f32 to vector<196x1xf32>
    %104 = arith.divf %102, %103 : vector<196x1xf32>
    %cst_45 = arith.constant 9.99999974E-6 : f32
    %105 = vector.broadcast %cst_45 : f32 to vector<196x1xf32>
    %106 = arith.addf %104, %105 : vector<196x1xf32>
    %107 = math.rsqrt %106 : vector<196x1xf32>
    %108 = vector.broadcast %107 : vector<196x1xf32> to vector<196x32xf32>
    %109 = arith.mulf %99, %108 : vector<196x32xf32>
    %110 = vector.broadcast %92 : vector<1x32xf32> to vector<196x32xf32>
    %111 = arith.mulf %109, %110 : vector<196x32xf32>
    %112 = vector.broadcast %93 : vector<1x32xf32> to vector<196x32xf32>
    %113 = arith.addf %111, %112 : vector<196x32xf32>
    %114 = arith.truncf %113 : vector<196x32xf32> to vector<196x32xbf16>
    %c0_46 = arith.constant 0 : index
    %c0_47 = arith.constant 0 : index
    %115 = vector.load %arg11[%c0_46, %c0_47] : memref<32x128xbf16, #tpu.memory_space<vmem>>, vector<32x128xbf16>
    %cst_48 = arith.constant dense<0.000000e+00> : vector<196x128xf32>
    %116 = tpu.matmul %114, %115, %cst_48 {dimension_numbers = #tpu.dot_dimension_numbers<[1], [0], [0], [1], [0, 0, 1, 1], [], []>} : vector<196x32xbf16>, vector<32x128xbf16>, vector<196x128xf32> -> vector<196x128xf32>
    %c0_49 = arith.constant 0 : index
    %c0_50 = arith.constant 0 : index
    %117 = vector.load %arg12[%c0_49, %c0_50] : memref<1x128xf32, #tpu.memory_space<vmem>>, vector<1x128xf32>
    %118 = vector.broadcast %117 : vector<1x128xf32> to vector<196x128xf32>
    %119 = arith.addf %116, %118 : vector<196x128xf32>
    %cst_51 = arith.constant 5.000000e-01 : f32
    %120 = vector.broadcast %cst_51 : f32 to vector<196x128xf32>
    %121 = arith.mulf %120, %119 : vector<196x128xf32>
    %cst_52 = arith.constant 4.471500e-02 : f32
    %122 = vector.broadcast %cst_52 : f32 to vector<196x128xf32>
    %123 = arith.mulf %122, %119 : vector<196x128xf32>
    %124 = arith.mulf %123, %119 : vector<196x128xf32>
    %125 = arith.mulf %124, %119 : vector<196x128xf32>
    %126 = arith.addf %119, %125 : vector<196x128xf32>
    %cst_53 = arith.constant 0.797884583 : f32
    %127 = vector.broadcast %cst_53 : f32 to vector<196x128xf32>
    %128 = arith.mulf %127, %126 : vector<196x128xf32>
    %129 = math.tanh %128 : vector<196x128xf32>
    %cst_54 = arith.constant 1.000000e+00 : f32
    %130 = vector.broadcast %cst_54 : f32 to vector<196x128xf32>
    %131 = arith.addf %130, %129 : vector<196x128xf32>
    %132 = arith.mulf %121, %131 : vector<196x128xf32>
    %133 = arith.truncf %132 : vector<196x128xf32> to vector<196x128xbf16>
    %c0_55 = arith.constant 0 : index
    %c0_56 = arith.constant 0 : index
    %134 = vector.load %arg13[%c0_55, %c0_56] : memref<128x32xbf16, #tpu.memory_space<vmem>>, vector<128x32xbf16>
    %cst_57 = arith.constant dense<0.000000e+00> : vector<196x32xf32>
    %135 = tpu.matmul %133, %134, %cst_57 {dimension_numbers = #tpu.dot_dimension_numbers<[1], [0], [0], [1], [0, 0, 1, 1], [], []>} : vector<196x128xbf16>, vector<128x32xbf16>, vector<196x32xf32> -> vector<196x32xf32>
    %c0_58 = arith.constant 0 : index
    %c0_59 = arith.constant 0 : index
    %136 = vector.load %arg14[%c0_58, %c0_59] : memref<1x32xf32, #tpu.memory_space<vmem>>, vector<1x32xf32>
    %137 = vector.broadcast %136 : vector<1x32xf32> to vector<196x32xf32>
    %138 = arith.addf %135, %137 : vector<196x32xf32>
    %139 = arith.addf %91, %138 : vector<196x32xf32>
    %c0_60 = arith.constant 0 : index
    %c0_61 = arith.constant 0 : index
    %c0_62 = arith.constant 0 : index
    %140 = vector.load %arg15[%c0_60, %c0_61, %c0_62] : memref<1x196x32xf32, #tpu.memory_space<vmem>>, vector<1x196x32xf32>
    %141 = vector.shape_cast %140 : vector<1x196x32xf32> to vector<196x32xf32>
    %142 = vector.shape_cast %139 : vector<196x32xf32> to vector<1x196x32xf32>
    tpu.vector_store %arg15[%c0_60, %c0_61, %c0_62], %142 {strides = array<i32>} : memref<1x196x32xf32, #tpu.memory_space<vmem>>, vector<1x196x32xf32>,
    return
  }
  func.func @transform_0(%arg0: i32) -> (i32, i32, i32) {
    %c0_i32 = arith.constant 0 : i32
    %c0_i32_0 = arith.constant 0 : i32
    %c0_i32_1 = arith.constant 0 : i32
    return %arg0, %c0_i32, %c0_i32_0 : i32, i32, i32
  }
  func.func @transform_1(%arg0: i32) -> (i32, i32) {
    %c0_i32 = arith.constant 0 : i32
    %c0_i32_0 = arith.constant 0 : i32
    %c0_i32_1 = arith.constant 0 : i32
    return %c0_i32, %c0_i32_0 : i32, i32
  }
  func.func @transform_2(%arg0: i32) -> (i32, i32) {
    %c0_i32 = arith.constant 0 : i32
    %c0_i32_0 = arith.constant 0 : i32
    %c0_i32_1 = arith.constant 0 : i32
    return %c0_i32, %c0_i32_0 : i32, i32
  }
  func.func @transform_3(%arg0: i32) -> (i32, i32) {
    %c0_i32 = arith.constant 0 : i32
    %c0_i32_0 = arith.constant 0 : i32
    %c0_i32_1 = arith.constant 0 : i32
    return %c0_i32, %c0_i32_0 : i32, i32
  }
  func.func @transform_4(%arg0: i32) -> (i32, i32) {
    %c0_i32 = arith.constant 0 : i32
    %c0_i32_0 = arith.constant 0 : i32
    %c0_i32_1 = arith.constant 0 : i32
    return %c0_i32, %c0_i32_0 : i32, i32
  }
  func.func @transform_5(%arg0: i32) -> (i32, i32) {
    %c0_i32 = arith.constant 0 : i32
    %c0_i32_0 = arith.constant 0 : i32
    %c0_i32_1 = arith.constant 0 : i32
    return %c0_i32, %c0_i32_0 : i32, i32
  }
  func.func @transform_6(%arg0: i32) -> (i32, i32) {
    %c0_i32 = arith.constant 0 : i32
    %c0_i32_0 = arith.constant 0 : i32
    %c0_i32_1 = arith.constant 0 : i32
    return %c0_i32, %c0_i32_0 : i32, i32
  }
  func.func @transform_7(%arg0: i32) -> (i32, i32, i32) {
    %c0_i32 = arith.constant 0 : i32
    %c0_i32_0 = arith.constant 0 : i32
    %c0_i32_1 = arith.constant 0 : i32
    %c0_i32_2 = arith.constant 0 : i32
    return %c0_i32, %c0_i32_0, %c0_i32_1 : i32, i32, i32
  }
  func.func @transform_8(%arg0: i32) -> (i32, i32) {
    %c0_i32 = arith.constant 0 : i32
    %c0_i32_0 = arith.constant 0 : i32
    %c0_i32_1 = arith.constant 0 : i32
    return %c0_i32, %c0_i32_0 : i32, i32
  }
  func.func @transform_9(%arg0: i32) -> (i32, i32) {
    %c0_i32 = arith.constant 0 : i32
    %c0_i32_0 = arith.constant 0 : i32
    %c0_i32_1 = arith.constant 0 : i32
    return %c0_i32, %c0_i32_0 : i32, i32
  }
  func.func @transform_10(%arg0: i32) -> (i32, i32) {
    %c0_i32 = arith.constant 0 : i32
    %c0_i32_0 = arith.constant 0 : i32
    %c0_i32_1 = arith.constant 0 : i32
    return %c0_i32, %c0_i32_0 : i32, i32
  }
  func.func @transform_11(%arg0: i32) -> (i32, i32) {
    %c0_i32 = arith.constant 0 : i32
    %c0_i32_0 = arith.constant 0 : i32
    %c0_i32_1 = arith.constant 0 : i32
    return %c0_i32, %c0_i32_0 : i32, i32
  }
  func.func @transform_12(%arg0: i32) -> (i32, i32) {
    %c0_i32 = arith.constant 0 : i32
    %c0_i32_0 = arith.constant 0 : i32
    %c0_i32_1 = arith.constant 0 : i32
    return %c0_i32, %c0_i32_0 : i32, i32
  }
  func.func @transform_13(%arg0: i32) -> (i32, i32) {
    %c0_i32 = arith.constant 0 : i32
    %c0_i32_0 = arith.constant 0 : i32
    %c0_i32_1 = arith.constant 0 : i32
    return %c0_i32, %c0_i32_0 : i32, i32
  }
  func.func @transform_14(%arg0: i32) -> (i32, i32, i32) {
    %c0_i32 = arith.constant 0 : i32
    %c0_i32_0 = arith.constant 0 : i32
    %c0_i32_1 = arith.constant 0 : i32
    return %arg0, %c0_i32, %c0_i32_0 : i32, i32, i32
  }
}

module attributes {stable_mosaic.version = 11 : i64} {
  func.func @_patch_merge_kernel(%arg0: i32, %arg1: memref<1x49x128xf32, #tpu.memory_space<vmem>>, %arg2: memref<1x128xf32, #tpu.memory_space<vmem>>, %arg3: memref<1x128xf32, #tpu.memory_space<vmem>>, %arg4: memref<128x64xbf16, #tpu.memory_space<vmem>>, %arg5: memref<1x49x64xf32, #tpu.memory_space<vmem>>) attributes {dimension_semantics = [#tpu.dimension_semantics<parallel>], iteration_bounds = array<i64: 2>, scalar_prefetch = 0 : i64, scratch_operands = 0 : i64, tpu.core_type = #tpu.core_type<tc>, window_params = [{transform_indices = @transform_0, window_bounds = array<i64: 1, 49, 128>}, {pipeline_mode = #tpu.pipeline_mode<synchronous>, transform_indices = @transform_1, window_bounds = array<i64: 1, 128>}, {pipeline_mode = #tpu.pipeline_mode<synchronous>, transform_indices = @transform_2, window_bounds = array<i64: 1, 128>}, {pipeline_mode = #tpu.pipeline_mode<synchronous>, transform_indices = @transform_3, window_bounds = array<i64: 128, 64>}, {transform_indices = @transform_4, window_bounds = array<i64: 1, 49, 64>}]} {
    %c0 = arith.constant 0 : index
    %c0_0 = arith.constant 0 : index
    %c0_1 = arith.constant 0 : index
    %0 = vector.load %arg1[%c0, %c0_0, %c0_1] : memref<1x49x128xf32, #tpu.memory_space<vmem>>, vector<1x49x128xf32>
    %1 = vector.shape_cast %0 : vector<1x49x128xf32> to vector<49x128xf32>
    %c0_2 = arith.constant 0 : index
    %c0_3 = arith.constant 0 : index
    %2 = vector.load %arg2[%c0_2, %c0_3] : memref<1x128xf32, #tpu.memory_space<vmem>>, vector<1x128xf32>
    %c0_4 = arith.constant 0 : index
    %c0_5 = arith.constant 0 : index
    %3 = vector.load %arg3[%c0_4, %c0_5] : memref<1x128xf32, #tpu.memory_space<vmem>>, vector<1x128xf32>
    %cst = arith.constant dense<0.000000e+00> : vector<49xf32>
    %4 = vector.multi_reduction <add>, %1, %cst [1] : vector<49x128xf32> to vector<49xf32>
    %5 = vector.shape_cast %4 : vector<49xf32> to vector<49x1xf32>
    %cst_6 = arith.constant 1.280000e+02 : f32
    %6 = vector.broadcast %cst_6 : f32 to vector<49x1xf32>
    %7 = arith.divf %5, %6 : vector<49x1xf32>
    %8 = vector.broadcast %7 : vector<49x1xf32> to vector<49x128xf32>
    %9 = arith.subf %1, %8 : vector<49x128xf32>
    %10 = arith.mulf %9, %9 : vector<49x128xf32>
    %cst_7 = arith.constant dense<0.000000e+00> : vector<49xf32>
    %11 = vector.multi_reduction <add>, %10, %cst_7 [1] : vector<49x128xf32> to vector<49xf32>
    %12 = vector.shape_cast %11 : vector<49xf32> to vector<49x1xf32>
    %cst_8 = arith.constant 1.280000e+02 : f32
    %13 = vector.broadcast %cst_8 : f32 to vector<49x1xf32>
    %14 = arith.divf %12, %13 : vector<49x1xf32>
    %cst_9 = arith.constant 9.99999974E-6 : f32
    %15 = vector.broadcast %cst_9 : f32 to vector<49x1xf32>
    %16 = arith.addf %14, %15 : vector<49x1xf32>
    %17 = math.rsqrt %16 : vector<49x1xf32>
    %18 = vector.broadcast %17 : vector<49x1xf32> to vector<49x128xf32>
    %19 = arith.mulf %9, %18 : vector<49x128xf32>
    %20 = vector.broadcast %2 : vector<1x128xf32> to vector<49x128xf32>
    %21 = arith.mulf %19, %20 : vector<49x128xf32>
    %22 = vector.broadcast %3 : vector<1x128xf32> to vector<49x128xf32>
    %23 = arith.addf %21, %22 : vector<49x128xf32>
    %24 = arith.truncf %23 : vector<49x128xf32> to vector<49x128xbf16>
    %c0_10 = arith.constant 0 : index
    %c0_11 = arith.constant 0 : index
    %25 = vector.load %arg4[%c0_10, %c0_11] : memref<128x64xbf16, #tpu.memory_space<vmem>>, vector<128x64xbf16>
    %cst_12 = arith.constant dense<0.000000e+00> : vector<49x64xf32>
    %26 = tpu.matmul %24, %25, %cst_12 {dimension_numbers = #tpu.dot_dimension_numbers<[1], [0], [0], [1], [0, 0, 1, 1], [], []>} : vector<49x128xbf16>, vector<128x64xbf16>, vector<49x64xf32> -> vector<49x64xf32>
    %c0_13 = arith.constant 0 : index
    %c0_14 = arith.constant 0 : index
    %c0_15 = arith.constant 0 : index
    %27 = vector.load %arg5[%c0_13, %c0_14, %c0_15] : memref<1x49x64xf32, #tpu.memory_space<vmem>>, vector<1x49x64xf32>
    %28 = vector.shape_cast %27 : vector<1x49x64xf32> to vector<49x64xf32>
    %29 = vector.shape_cast %26 : vector<49x64xf32> to vector<1x49x64xf32>
    tpu.vector_store %arg5[%c0_13, %c0_14, %c0_15], %29 {strides = array<i32>} : memref<1x49x64xf32, #tpu.memory_space<vmem>>, vector<1x49x64xf32>,
    return
  }
  func.func @transform_0(%arg0: i32) -> (i32, i32, i32) {
    %c0_i32 = arith.constant 0 : i32
    %c0_i32_0 = arith.constant 0 : i32
    %c0_i32_1 = arith.constant 0 : i32
    return %arg0, %c0_i32, %c0_i32_0 : i32, i32, i32
  }
  func.func @transform_1(%arg0: i32) -> (i32, i32) {
    %c0_i32 = arith.constant 0 : i32
    %c0_i32_0 = arith.constant 0 : i32
    %c0_i32_1 = arith.constant 0 : i32
    return %c0_i32, %c0_i32_0 : i32, i32
  }
  func.func @transform_2(%arg0: i32) -> (i32, i32) {
    %c0_i32 = arith.constant 0 : i32
    %c0_i32_0 = arith.constant 0 : i32
    %c0_i32_1 = arith.constant 0 : i32
    return %c0_i32, %c0_i32_0 : i32, i32
  }
  func.func @transform_3(%arg0: i32) -> (i32, i32) {
    %c0_i32 = arith.constant 0 : i32
    %c0_i32_0 = arith.constant 0 : i32
    %c0_i32_1 = arith.constant 0 : i32
    return %c0_i32, %c0_i32_0 : i32, i32
  }
  func.func @transform_4(%arg0: i32) -> (i32, i32, i32) {
    %c0_i32 = arith.constant 0 : i32
    %c0_i32_0 = arith.constant 0 : i32
    %c0_i32_1 = arith.constant 0 : i32
    return %arg0, %c0_i32, %c0_i32_0 : i32, i32, i32
  }
}

module attributes {stable_mosaic.version = 11 : i64} {
  func.func @_swin_block_kernel(%arg0: i32, %arg1: memref<1x49x64xf32, #tpu.memory_space<vmem>>, %arg2: memref<1x64xf32, #tpu.memory_space<vmem>>, %arg3: memref<1x64xf32, #tpu.memory_space<vmem>>, %arg4: memref<64x192xbf16, #tpu.memory_space<vmem>>, %arg5: memref<1x192xf32, #tpu.memory_space<vmem>>, %arg6: memref<64x64xbf16, #tpu.memory_space<vmem>>, %arg7: memref<1x64xf32, #tpu.memory_space<vmem>>, %arg8: memref<4x49x49xf32, #tpu.memory_space<vmem>>, %arg9: memref<1x64xf32, #tpu.memory_space<vmem>>, %arg10: memref<1x64xf32, #tpu.memory_space<vmem>>, %arg11: memref<64x256xbf16, #tpu.memory_space<vmem>>, %arg12: memref<1x256xf32, #tpu.memory_space<vmem>>, %arg13: memref<256x64xbf16, #tpu.memory_space<vmem>>, %arg14: memref<1x64xf32, #tpu.memory_space<vmem>>, %arg15: memref<1x49x64xf32, #tpu.memory_space<vmem>>) attributes {dimension_semantics = [#tpu.dimension_semantics<parallel>], iteration_bounds = array<i64: 2>, scalar_prefetch = 0 : i64, scratch_operands = 0 : i64, tpu.core_type = #tpu.core_type<tc>, window_params = [{transform_indices = @transform_0, window_bounds = array<i64: 1, 49, 64>}, {pipeline_mode = #tpu.pipeline_mode<synchronous>, transform_indices = @transform_1, window_bounds = array<i64: 1, 64>}, {pipeline_mode = #tpu.pipeline_mode<synchronous>, transform_indices = @transform_2, window_bounds = array<i64: 1, 64>}, {pipeline_mode = #tpu.pipeline_mode<synchronous>, transform_indices = @transform_3, window_bounds = array<i64: 64, 192>}, {pipeline_mode = #tpu.pipeline_mode<synchronous>, transform_indices = @transform_4, window_bounds = array<i64: 1, 192>}, {pipeline_mode = #tpu.pipeline_mode<synchronous>, transform_indices = @transform_5, window_bounds = array<i64: 64, 64>}, {pipeline_mode = #tpu.pipeline_mode<synchronous>, transform_indices = @transform_6, window_bounds = array<i64: 1, 64>}, {pipeline_mode = #tpu.pipeline_mode<synchronous>, transform_indices = @transform_7, window_bounds = array<i64: 4, 49, 49>}, {pipeline_mode = #tpu.pipeline_mode<synchronous>, transform_indices = @transform_8, window_bounds = array<i64: 1, 64>}, {pipeline_mode = #tpu.pipeline_mode<synchronous>, transform_indices = @transform_9, window_bounds = array<i64: 1, 64>}, {pipeline_mode = #tpu.pipeline_mode<synchronous>, transform_indices = @transform_10, window_bounds = array<i64: 64, 256>}, {pipeline_mode = #tpu.pipeline_mode<synchronous>, transform_indices = @transform_11, window_bounds = array<i64: 1, 256>}, {pipeline_mode = #tpu.pipeline_mode<synchronous>, transform_indices = @transform_12, window_bounds = array<i64: 256, 64>}, {pipeline_mode = #tpu.pipeline_mode<synchronous>, transform_indices = @transform_13, window_bounds = array<i64: 1, 64>}, {transform_indices = @transform_14, window_bounds = array<i64: 1, 49, 64>}]} {
    %c0 = arith.constant 0 : index
    %c0_0 = arith.constant 0 : index
    %c0_1 = arith.constant 0 : index
    %0 = vector.load %arg1[%c0, %c0_0, %c0_1] : memref<1x49x64xf32, #tpu.memory_space<vmem>>, vector<1x49x64xf32>
    %1 = vector.shape_cast %0 : vector<1x49x64xf32> to vector<49x64xf32>
    %c0_2 = arith.constant 0 : index
    %c0_3 = arith.constant 0 : index
    %2 = vector.load %arg2[%c0_2, %c0_3] : memref<1x64xf32, #tpu.memory_space<vmem>>, vector<1x64xf32>
    %c0_4 = arith.constant 0 : index
    %c0_5 = arith.constant 0 : index
    %3 = vector.load %arg3[%c0_4, %c0_5] : memref<1x64xf32, #tpu.memory_space<vmem>>, vector<1x64xf32>
    %cst = arith.constant dense<0.000000e+00> : vector<49xf32>
    %4 = vector.multi_reduction <add>, %1, %cst [1] : vector<49x64xf32> to vector<49xf32>
    %5 = vector.shape_cast %4 : vector<49xf32> to vector<49x1xf32>
    %cst_6 = arith.constant 6.400000e+01 : f32
    %6 = vector.broadcast %cst_6 : f32 to vector<49x1xf32>
    %7 = arith.divf %5, %6 : vector<49x1xf32>
    %8 = vector.broadcast %7 : vector<49x1xf32> to vector<49x64xf32>
    %9 = arith.subf %1, %8 : vector<49x64xf32>
    %10 = arith.mulf %9, %9 : vector<49x64xf32>
    %cst_7 = arith.constant dense<0.000000e+00> : vector<49xf32>
    %11 = vector.multi_reduction <add>, %10, %cst_7 [1] : vector<49x64xf32> to vector<49xf32>
    %12 = vector.shape_cast %11 : vector<49xf32> to vector<49x1xf32>
    %cst_8 = arith.constant 6.400000e+01 : f32
    %13 = vector.broadcast %cst_8 : f32 to vector<49x1xf32>
    %14 = arith.divf %12, %13 : vector<49x1xf32>
    %cst_9 = arith.constant 9.99999974E-6 : f32
    %15 = vector.broadcast %cst_9 : f32 to vector<49x1xf32>
    %16 = arith.addf %14, %15 : vector<49x1xf32>
    %17 = math.rsqrt %16 : vector<49x1xf32>
    %18 = vector.broadcast %17 : vector<49x1xf32> to vector<49x64xf32>
    %19 = arith.mulf %9, %18 : vector<49x64xf32>
    %20 = vector.broadcast %2 : vector<1x64xf32> to vector<49x64xf32>
    %21 = arith.mulf %19, %20 : vector<49x64xf32>
    %22 = vector.broadcast %3 : vector<1x64xf32> to vector<49x64xf32>
    %23 = arith.addf %21, %22 : vector<49x64xf32>
    %24 = arith.truncf %23 : vector<49x64xf32> to vector<49x64xbf16>
    %c0_10 = arith.constant 0 : index
    %c0_11 = arith.constant 0 : index
    %25 = vector.load %arg4[%c0_10, %c0_11] : memref<64x192xbf16, #tpu.memory_space<vmem>>, vector<64x192xbf16>
    %cst_12 = arith.constant dense<0.000000e+00> : vector<49x192xf32>
    %26 = tpu.matmul %24, %25, %cst_12 {dimension_numbers = #tpu.dot_dimension_numbers<[1], [0], [0], [1], [0, 0, 1, 1], [], []>} : vector<49x64xbf16>, vector<64x192xbf16>, vector<49x192xf32> -> vector<49x192xf32>
    %c0_13 = arith.constant 0 : index
    %c0_14 = arith.constant 0 : index
    %27 = vector.load %arg5[%c0_13, %c0_14] : memref<1x192xf32, #tpu.memory_space<vmem>>, vector<1x192xf32>
    %28 = vector.broadcast %27 : vector<1x192xf32> to vector<49x192xf32>
    %29 = arith.addf %26, %28 : vector<49x192xf32>
    %c0_15 = arith.constant 0 : index
    %c0_16 = arith.constant 0 : index
    %30 = vector.load %arg6[%c0_15, %c0_16] : memref<64x64xbf16, #tpu.memory_space<vmem>>, vector<64x64xbf16>
    %cst_17 = arith.constant 0.000000e+00 : f32
    %31 = vector.broadcast %cst_17 : f32 to vector<49x64xf32>
    %32 = vector.extract_strided_slice %29 {offsets = [0, 0], sizes = [49, 16], strides = [1, 1]} : vector<49x192xf32> to vector<49x16xf32>
    %cst_18 = arith.constant 2.500000e-01 : f32
    %33 = vector.broadcast %cst_18 : f32 to vector<49x16xf32>
    %34 = arith.mulf %32, %33 : vector<49x16xf32>
    %35 = vector.extract_strided_slice %29 {offsets = [0, 64], sizes = [49, 16], strides = [1, 1]} : vector<49x192xf32> to vector<49x16xf32>
    %36 = vector.extract_strided_slice %29 {offsets = [0, 128], sizes = [49, 16], strides = [1, 1]} : vector<49x192xf32> to vector<49x16xf32>
    %37 = arith.truncf %34 : vector<49x16xf32> to vector<49x16xbf16>
    %38 = arith.truncf %35 : vector<49x16xf32> to vector<49x16xbf16>
    %cst_19 = arith.constant dense<0.000000e+00> : vector<49x49xf32>
    %39 = tpu.matmul %37, %38, %cst_19 {dimension_numbers = #tpu.dot_dimension_numbers<[1], [1], [0], [0], [0, 0, 1, 0], [], []>} : vector<49x16xbf16>, vector<49x16xbf16>, vector<49x49xf32> -> vector<49x49xf32>
    %c0_20 = arith.constant 0 : index
    %c0_21 = arith.constant 0 : index
    %c0_22 = arith.constant 0 : index
    %40 = vector.load %arg8[%c0_20, %c0_21, %c0_22] : memref<4x49x49xf32, #tpu.memory_space<vmem>>, vector<1x49x49xf32>
    %41 = vector.shape_cast %40 : vector<1x49x49xf32> to vector<49x49xf32>
    %42 = arith.addf %39, %41 : vector<49x49xf32>
    %cst_23 = arith.constant dense<0xFF800000> : vector<49xf32>
    %43 = vector.multi_reduction <maximumf>, %42, %cst_23 [1] : vector<49x49xf32> to vector<49xf32>
    %44 = vector.shape_cast %43 : vector<49xf32> to vector<49x1xf32>
    %45 = vector.broadcast %44 : vector<49x1xf32> to vector<49x49xf32>
    %46 = arith.subf %42, %45 : vector<49x49xf32>
    %47 = math.exp %46 : vector<49x49xf32>
    %cst_24 = arith.constant dense<0.000000e+00> : vector<49xf32>
    %48 = vector.multi_reduction <add>, %47, %cst_24 [1] : vector<49x49xf32> to vector<49xf32>
    %49 = vector.shape_cast %48 : vector<49xf32> to vector<49x1xf32>
    %50 = tpu.reciprocal %49 {approx = true} : vector<49x1xf32> -> vector<49x1xf32>
    %51 = vector.broadcast %50 : vector<49x1xf32> to vector<49x49xf32>
    %52 = arith.mulf %47, %51 : vector<49x49xf32>
    %53 = arith.truncf %52 : vector<49x49xf32> to vector<49x49xbf16>
    %54 = arith.truncf %36 : vector<49x16xf32> to vector<49x16xbf16>
    %cst_25 = arith.constant dense<0.000000e+00> : vector<49x16xf32>
    %55 = tpu.matmul %53, %54, %cst_25 {dimension_numbers = #tpu.dot_dimension_numbers<[1], [0], [0], [1], [0, 0, 1, 1], [], []>} : vector<49x49xbf16>, vector<49x16xbf16>, vector<49x16xf32> -> vector<49x16xf32>
    %56 = arith.truncf %55 : vector<49x16xf32> to vector<49x16xbf16>
    %57 = vector.extract_strided_slice %30 {offsets = [0, 0], sizes = [16, 64], strides = [1, 1]} : vector<64x64xbf16> to vector<16x64xbf16>
    %cst_26 = arith.constant dense<0.000000e+00> : vector<49x64xf32>
    %58 = tpu.matmul %56, %57, %cst_26 {dimension_numbers = #tpu.dot_dimension_numbers<[1], [0], [0], [1], [0, 0, 1, 1], [], []>} : vector<49x16xbf16>, vector<16x64xbf16>, vector<49x64xf32> -> vector<49x64xf32>
    %59 = arith.addf %31, %58 : vector<49x64xf32>
    %60 = vector.extract_strided_slice %29 {offsets = [0, 16], sizes = [49, 16], strides = [1, 1]} : vector<49x192xf32> to vector<49x16xf32>
    %cst_27 = arith.constant 2.500000e-01 : f32
    %61 = vector.broadcast %cst_27 : f32 to vector<49x16xf32>
    %62 = arith.mulf %60, %61 : vector<49x16xf32>
    %63 = vector.extract_strided_slice %29 {offsets = [0, 80], sizes = [49, 16], strides = [1, 1]} : vector<49x192xf32> to vector<49x16xf32>
    %64 = vector.extract_strided_slice %29 {offsets = [0, 144], sizes = [49, 16], strides = [1, 1]} : vector<49x192xf32> to vector<49x16xf32>
    %65 = arith.truncf %62 : vector<49x16xf32> to vector<49x16xbf16>
    %66 = arith.truncf %63 : vector<49x16xf32> to vector<49x16xbf16>
    %cst_28 = arith.constant dense<0.000000e+00> : vector<49x49xf32>
    %67 = tpu.matmul %65, %66, %cst_28 {dimension_numbers = #tpu.dot_dimension_numbers<[1], [1], [0], [0], [0, 0, 1, 0], [], []>} : vector<49x16xbf16>, vector<49x16xbf16>, vector<49x49xf32> -> vector<49x49xf32>
    %c1 = arith.constant 1 : index
    %c0_29 = arith.constant 0 : index
    %c0_30 = arith.constant 0 : index
    %68 = vector.load %arg8[%c1, %c0_29, %c0_30] : memref<4x49x49xf32, #tpu.memory_space<vmem>>, vector<1x49x49xf32>
    %69 = vector.shape_cast %68 : vector<1x49x49xf32> to vector<49x49xf32>
    %70 = arith.addf %67, %69 : vector<49x49xf32>
    %cst_31 = arith.constant dense<0xFF800000> : vector<49xf32>
    %71 = vector.multi_reduction <maximumf>, %70, %cst_31 [1] : vector<49x49xf32> to vector<49xf32>
    %72 = vector.shape_cast %71 : vector<49xf32> to vector<49x1xf32>
    %73 = vector.broadcast %72 : vector<49x1xf32> to vector<49x49xf32>
    %74 = arith.subf %70, %73 : vector<49x49xf32>
    %75 = math.exp %74 : vector<49x49xf32>
    %cst_32 = arith.constant dense<0.000000e+00> : vector<49xf32>
    %76 = vector.multi_reduction <add>, %75, %cst_32 [1] : vector<49x49xf32> to vector<49xf32>
    %77 = vector.shape_cast %76 : vector<49xf32> to vector<49x1xf32>
    %78 = tpu.reciprocal %77 {approx = true} : vector<49x1xf32> -> vector<49x1xf32>
    %79 = vector.broadcast %78 : vector<49x1xf32> to vector<49x49xf32>
    %80 = arith.mulf %75, %79 : vector<49x49xf32>
    %81 = arith.truncf %80 : vector<49x49xf32> to vector<49x49xbf16>
    %82 = arith.truncf %64 : vector<49x16xf32> to vector<49x16xbf16>
    %cst_33 = arith.constant dense<0.000000e+00> : vector<49x16xf32>
    %83 = tpu.matmul %81, %82, %cst_33 {dimension_numbers = #tpu.dot_dimension_numbers<[1], [0], [0], [1], [0, 0, 1, 1], [], []>} : vector<49x49xbf16>, vector<49x16xbf16>, vector<49x16xf32> -> vector<49x16xf32>
    %84 = arith.truncf %83 : vector<49x16xf32> to vector<49x16xbf16>
    %85 = vector.extract_strided_slice %30 {offsets = [16, 0], sizes = [16, 64], strides = [1, 1]} : vector<64x64xbf16> to vector<16x64xbf16>
    %cst_34 = arith.constant dense<0.000000e+00> : vector<49x64xf32>
    %86 = tpu.matmul %84, %85, %cst_34 {dimension_numbers = #tpu.dot_dimension_numbers<[1], [0], [0], [1], [0, 0, 1, 1], [], []>} : vector<49x16xbf16>, vector<16x64xbf16>, vector<49x64xf32> -> vector<49x64xf32>
    %87 = arith.addf %59, %86 : vector<49x64xf32>
    %88 = vector.extract_strided_slice %29 {offsets = [0, 32], sizes = [49, 16], strides = [1, 1]} : vector<49x192xf32> to vector<49x16xf32>
    %cst_35 = arith.constant 2.500000e-01 : f32
    %89 = vector.broadcast %cst_35 : f32 to vector<49x16xf32>
    %90 = arith.mulf %88, %89 : vector<49x16xf32>
    %91 = vector.extract_strided_slice %29 {offsets = [0, 96], sizes = [49, 16], strides = [1, 1]} : vector<49x192xf32> to vector<49x16xf32>
    %92 = vector.extract_strided_slice %29 {offsets = [0, 160], sizes = [49, 16], strides = [1, 1]} : vector<49x192xf32> to vector<49x16xf32>
    %93 = arith.truncf %90 : vector<49x16xf32> to vector<49x16xbf16>
    %94 = arith.truncf %91 : vector<49x16xf32> to vector<49x16xbf16>
    %cst_36 = arith.constant dense<0.000000e+00> : vector<49x49xf32>
    %95 = tpu.matmul %93, %94, %cst_36 {dimension_numbers = #tpu.dot_dimension_numbers<[1], [1], [0], [0], [0, 0, 1, 0], [], []>} : vector<49x16xbf16>, vector<49x16xbf16>, vector<49x49xf32> -> vector<49x49xf32>
    %c2 = arith.constant 2 : index
    %c0_37 = arith.constant 0 : index
    %c0_38 = arith.constant 0 : index
    %96 = vector.load %arg8[%c2, %c0_37, %c0_38] : memref<4x49x49xf32, #tpu.memory_space<vmem>>, vector<1x49x49xf32>
    %97 = vector.shape_cast %96 : vector<1x49x49xf32> to vector<49x49xf32>
    %98 = arith.addf %95, %97 : vector<49x49xf32>
    %cst_39 = arith.constant dense<0xFF800000> : vector<49xf32>
    %99 = vector.multi_reduction <maximumf>, %98, %cst_39 [1] : vector<49x49xf32> to vector<49xf32>
    %100 = vector.shape_cast %99 : vector<49xf32> to vector<49x1xf32>
    %101 = vector.broadcast %100 : vector<49x1xf32> to vector<49x49xf32>
    %102 = arith.subf %98, %101 : vector<49x49xf32>
    %103 = math.exp %102 : vector<49x49xf32>
    %cst_40 = arith.constant dense<0.000000e+00> : vector<49xf32>
    %104 = vector.multi_reduction <add>, %103, %cst_40 [1] : vector<49x49xf32> to vector<49xf32>
    %105 = vector.shape_cast %104 : vector<49xf32> to vector<49x1xf32>
    %106 = tpu.reciprocal %105 {approx = true} : vector<49x1xf32> -> vector<49x1xf32>
    %107 = vector.broadcast %106 : vector<49x1xf32> to vector<49x49xf32>
    %108 = arith.mulf %103, %107 : vector<49x49xf32>
    %109 = arith.truncf %108 : vector<49x49xf32> to vector<49x49xbf16>
    %110 = arith.truncf %92 : vector<49x16xf32> to vector<49x16xbf16>
    %cst_41 = arith.constant dense<0.000000e+00> : vector<49x16xf32>
    %111 = tpu.matmul %109, %110, %cst_41 {dimension_numbers = #tpu.dot_dimension_numbers<[1], [0], [0], [1], [0, 0, 1, 1], [], []>} : vector<49x49xbf16>, vector<49x16xbf16>, vector<49x16xf32> -> vector<49x16xf32>
    %112 = arith.truncf %111 : vector<49x16xf32> to vector<49x16xbf16>
    %113 = vector.extract_strided_slice %30 {offsets = [32, 0], sizes = [16, 64], strides = [1, 1]} : vector<64x64xbf16> to vector<16x64xbf16>
    %cst_42 = arith.constant dense<0.000000e+00> : vector<49x64xf32>
    %114 = tpu.matmul %112, %113, %cst_42 {dimension_numbers = #tpu.dot_dimension_numbers<[1], [0], [0], [1], [0, 0, 1, 1], [], []>} : vector<49x16xbf16>, vector<16x64xbf16>, vector<49x64xf32> -> vector<49x64xf32>
    %115 = arith.addf %87, %114 : vector<49x64xf32>
    %116 = vector.extract_strided_slice %29 {offsets = [0, 48], sizes = [49, 16], strides = [1, 1]} : vector<49x192xf32> to vector<49x16xf32>
    %cst_43 = arith.constant 2.500000e-01 : f32
    %117 = vector.broadcast %cst_43 : f32 to vector<49x16xf32>
    %118 = arith.mulf %116, %117 : vector<49x16xf32>
    %119 = vector.extract_strided_slice %29 {offsets = [0, 112], sizes = [49, 16], strides = [1, 1]} : vector<49x192xf32> to vector<49x16xf32>
    %120 = vector.extract_strided_slice %29 {offsets = [0, 176], sizes = [49, 16], strides = [1, 1]} : vector<49x192xf32> to vector<49x16xf32>
    %121 = arith.truncf %118 : vector<49x16xf32> to vector<49x16xbf16>
    %122 = arith.truncf %119 : vector<49x16xf32> to vector<49x16xbf16>
    %cst_44 = arith.constant dense<0.000000e+00> : vector<49x49xf32>
    %123 = tpu.matmul %121, %122, %cst_44 {dimension_numbers = #tpu.dot_dimension_numbers<[1], [1], [0], [0], [0, 0, 1, 0], [], []>} : vector<49x16xbf16>, vector<49x16xbf16>, vector<49x49xf32> -> vector<49x49xf32>
    %c3 = arith.constant 3 : index
    %c0_45 = arith.constant 0 : index
    %c0_46 = arith.constant 0 : index
    %124 = vector.load %arg8[%c3, %c0_45, %c0_46] : memref<4x49x49xf32, #tpu.memory_space<vmem>>, vector<1x49x49xf32>
    %125 = vector.shape_cast %124 : vector<1x49x49xf32> to vector<49x49xf32>
    %126 = arith.addf %123, %125 : vector<49x49xf32>
    %cst_47 = arith.constant dense<0xFF800000> : vector<49xf32>
    %127 = vector.multi_reduction <maximumf>, %126, %cst_47 [1] : vector<49x49xf32> to vector<49xf32>
    %128 = vector.shape_cast %127 : vector<49xf32> to vector<49x1xf32>
    %129 = vector.broadcast %128 : vector<49x1xf32> to vector<49x49xf32>
    %130 = arith.subf %126, %129 : vector<49x49xf32>
    %131 = math.exp %130 : vector<49x49xf32>
    %cst_48 = arith.constant dense<0.000000e+00> : vector<49xf32>
    %132 = vector.multi_reduction <add>, %131, %cst_48 [1] : vector<49x49xf32> to vector<49xf32>
    %133 = vector.shape_cast %132 : vector<49xf32> to vector<49x1xf32>
    %134 = tpu.reciprocal %133 {approx = true} : vector<49x1xf32> -> vector<49x1xf32>
    %135 = vector.broadcast %134 : vector<49x1xf32> to vector<49x49xf32>
    %136 = arith.mulf %131, %135 : vector<49x49xf32>
    %137 = arith.truncf %136 : vector<49x49xf32> to vector<49x49xbf16>
    %138 = arith.truncf %120 : vector<49x16xf32> to vector<49x16xbf16>
    %cst_49 = arith.constant dense<0.000000e+00> : vector<49x16xf32>
    %139 = tpu.matmul %137, %138, %cst_49 {dimension_numbers = #tpu.dot_dimension_numbers<[1], [0], [0], [1], [0, 0, 1, 1], [], []>} : vector<49x49xbf16>, vector<49x16xbf16>, vector<49x16xf32> -> vector<49x16xf32>
    %140 = arith.truncf %139 : vector<49x16xf32> to vector<49x16xbf16>
    %141 = vector.extract_strided_slice %30 {offsets = [48, 0], sizes = [16, 64], strides = [1, 1]} : vector<64x64xbf16> to vector<16x64xbf16>
    %cst_50 = arith.constant dense<0.000000e+00> : vector<49x64xf32>
    %142 = tpu.matmul %140, %141, %cst_50 {dimension_numbers = #tpu.dot_dimension_numbers<[1], [0], [0], [1], [0, 0, 1, 1], [], []>} : vector<49x16xbf16>, vector<16x64xbf16>, vector<49x64xf32> -> vector<49x64xf32>
    %143 = arith.addf %115, %142 : vector<49x64xf32>
    %144 = arith.addf %1, %143 : vector<49x64xf32>
    %c0_51 = arith.constant 0 : index
    %c0_52 = arith.constant 0 : index
    %145 = vector.load %arg7[%c0_51, %c0_52] : memref<1x64xf32, #tpu.memory_space<vmem>>, vector<1x64xf32>
    %146 = vector.broadcast %145 : vector<1x64xf32> to vector<49x64xf32>
    %147 = arith.addf %144, %146 : vector<49x64xf32>
    %c0_53 = arith.constant 0 : index
    %c0_54 = arith.constant 0 : index
    %148 = vector.load %arg9[%c0_53, %c0_54] : memref<1x64xf32, #tpu.memory_space<vmem>>, vector<1x64xf32>
    %c0_55 = arith.constant 0 : index
    %c0_56 = arith.constant 0 : index
    %149 = vector.load %arg10[%c0_55, %c0_56] : memref<1x64xf32, #tpu.memory_space<vmem>>, vector<1x64xf32>
    %cst_57 = arith.constant dense<0.000000e+00> : vector<49xf32>
    %150 = vector.multi_reduction <add>, %147, %cst_57 [1] : vector<49x64xf32> to vector<49xf32>
    %151 = vector.shape_cast %150 : vector<49xf32> to vector<49x1xf32>
    %cst_58 = arith.constant 6.400000e+01 : f32
    %152 = vector.broadcast %cst_58 : f32 to vector<49x1xf32>
    %153 = arith.divf %151, %152 : vector<49x1xf32>
    %154 = vector.broadcast %153 : vector<49x1xf32> to vector<49x64xf32>
    %155 = arith.subf %147, %154 : vector<49x64xf32>
    %156 = arith.mulf %155, %155 : vector<49x64xf32>
    %cst_59 = arith.constant dense<0.000000e+00> : vector<49xf32>
    %157 = vector.multi_reduction <add>, %156, %cst_59 [1] : vector<49x64xf32> to vector<49xf32>
    %158 = vector.shape_cast %157 : vector<49xf32> to vector<49x1xf32>
    %cst_60 = arith.constant 6.400000e+01 : f32
    %159 = vector.broadcast %cst_60 : f32 to vector<49x1xf32>
    %160 = arith.divf %158, %159 : vector<49x1xf32>
    %cst_61 = arith.constant 9.99999974E-6 : f32
    %161 = vector.broadcast %cst_61 : f32 to vector<49x1xf32>
    %162 = arith.addf %160, %161 : vector<49x1xf32>
    %163 = math.rsqrt %162 : vector<49x1xf32>
    %164 = vector.broadcast %163 : vector<49x1xf32> to vector<49x64xf32>
    %165 = arith.mulf %155, %164 : vector<49x64xf32>
    %166 = vector.broadcast %148 : vector<1x64xf32> to vector<49x64xf32>
    %167 = arith.mulf %165, %166 : vector<49x64xf32>
    %168 = vector.broadcast %149 : vector<1x64xf32> to vector<49x64xf32>
    %169 = arith.addf %167, %168 : vector<49x64xf32>
    %170 = arith.truncf %169 : vector<49x64xf32> to vector<49x64xbf16>
    %c0_62 = arith.constant 0 : index
    %c0_63 = arith.constant 0 : index
    %171 = vector.load %arg11[%c0_62, %c0_63] : memref<64x256xbf16, #tpu.memory_space<vmem>>, vector<64x256xbf16>
    %cst_64 = arith.constant dense<0.000000e+00> : vector<49x256xf32>
    %172 = tpu.matmul %170, %171, %cst_64 {dimension_numbers = #tpu.dot_dimension_numbers<[1], [0], [0], [1], [0, 0, 1, 1], [], []>} : vector<49x64xbf16>, vector<64x256xbf16>, vector<49x256xf32> -> vector<49x256xf32>
    %c0_65 = arith.constant 0 : index
    %c0_66 = arith.constant 0 : index
    %173 = vector.load %arg12[%c0_65, %c0_66] : memref<1x256xf32, #tpu.memory_space<vmem>>, vector<1x256xf32>
    %174 = vector.broadcast %173 : vector<1x256xf32> to vector<49x256xf32>
    %175 = arith.addf %172, %174 : vector<49x256xf32>
    %cst_67 = arith.constant 5.000000e-01 : f32
    %176 = vector.broadcast %cst_67 : f32 to vector<49x256xf32>
    %177 = arith.mulf %176, %175 : vector<49x256xf32>
    %cst_68 = arith.constant 4.471500e-02 : f32
    %178 = vector.broadcast %cst_68 : f32 to vector<49x256xf32>
    %179 = arith.mulf %178, %175 : vector<49x256xf32>
    %180 = arith.mulf %179, %175 : vector<49x256xf32>
    %181 = arith.mulf %180, %175 : vector<49x256xf32>
    %182 = arith.addf %175, %181 : vector<49x256xf32>
    %cst_69 = arith.constant 0.797884583 : f32
    %183 = vector.broadcast %cst_69 : f32 to vector<49x256xf32>
    %184 = arith.mulf %183, %182 : vector<49x256xf32>
    %185 = math.tanh %184 : vector<49x256xf32>
    %cst_70 = arith.constant 1.000000e+00 : f32
    %186 = vector.broadcast %cst_70 : f32 to vector<49x256xf32>
    %187 = arith.addf %186, %185 : vector<49x256xf32>
    %188 = arith.mulf %177, %187 : vector<49x256xf32>
    %189 = arith.truncf %188 : vector<49x256xf32> to vector<49x256xbf16>
    %c0_71 = arith.constant 0 : index
    %c0_72 = arith.constant 0 : index
    %190 = vector.load %arg13[%c0_71, %c0_72] : memref<256x64xbf16, #tpu.memory_space<vmem>>, vector<256x64xbf16>
    %cst_73 = arith.constant dense<0.000000e+00> : vector<49x64xf32>
    %191 = tpu.matmul %189, %190, %cst_73 {dimension_numbers = #tpu.dot_dimension_numbers<[1], [0], [0], [1], [0, 0, 1, 1], [], []>} : vector<49x256xbf16>, vector<256x64xbf16>, vector<49x64xf32> -> vector<49x64xf32>
    %c0_74 = arith.constant 0 : index
    %c0_75 = arith.constant 0 : index
    %192 = vector.load %arg14[%c0_74, %c0_75] : memref<1x64xf32, #tpu.memory_space<vmem>>, vector<1x64xf32>
    %193 = vector.broadcast %192 : vector<1x64xf32> to vector<49x64xf32>
    %194 = arith.addf %191, %193 : vector<49x64xf32>
    %195 = arith.addf %147, %194 : vector<49x64xf32>
    %c0_76 = arith.constant 0 : index
    %c0_77 = arith.constant 0 : index
    %c0_78 = arith.constant 0 : index
    %196 = vector.load %arg15[%c0_76, %c0_77, %c0_78] : memref<1x49x64xf32, #tpu.memory_space<vmem>>, vector<1x49x64xf32>
    %197 = vector.shape_cast %196 : vector<1x49x64xf32> to vector<49x64xf32>
    %198 = vector.shape_cast %195 : vector<49x64xf32> to vector<1x49x64xf32>
    tpu.vector_store %arg15[%c0_76, %c0_77, %c0_78], %198 {strides = array<i32>} : memref<1x49x64xf32, #tpu.memory_space<vmem>>, vector<1x49x64xf32>,
    return
  }
  func.func @transform_0(%arg0: i32) -> (i32, i32, i32) {
    %c0_i32 = arith.constant 0 : i32
    %c0_i32_0 = arith.constant 0 : i32
    %c0_i32_1 = arith.constant 0 : i32
    return %arg0, %c0_i32, %c0_i32_0 : i32, i32, i32
  }
  func.func @transform_1(%arg0: i32) -> (i32, i32) {
    %c0_i32 = arith.constant 0 : i32
    %c0_i32_0 = arith.constant 0 : i32
    %c0_i32_1 = arith.constant 0 : i32
    return %c0_i32, %c0_i32_0 : i32, i32
  }
  func.func @transform_2(%arg0: i32) -> (i32, i32) {
    %c0_i32 = arith.constant 0 : i32
    %c0_i32_0 = arith.constant 0 : i32
    %c0_i32_1 = arith.constant 0 : i32
    return %c0_i32, %c0_i32_0 : i32, i32
  }
  func.func @transform_3(%arg0: i32) -> (i32, i32) {
    %c0_i32 = arith.constant 0 : i32
    %c0_i32_0 = arith.constant 0 : i32
    %c0_i32_1 = arith.constant 0 : i32
    return %c0_i32, %c0_i32_0 : i32, i32
  }
  func.func @transform_4(%arg0: i32) -> (i32, i32) {
    %c0_i32 = arith.constant 0 : i32
    %c0_i32_0 = arith.constant 0 : i32
    %c0_i32_1 = arith.constant 0 : i32
    return %c0_i32, %c0_i32_0 : i32, i32
  }
  func.func @transform_5(%arg0: i32) -> (i32, i32) {
    %c0_i32 = arith.constant 0 : i32
    %c0_i32_0 = arith.constant 0 : i32
    %c0_i32_1 = arith.constant 0 : i32
    return %c0_i32, %c0_i32_0 : i32, i32
  }
  func.func @transform_6(%arg0: i32) -> (i32, i32) {
    %c0_i32 = arith.constant 0 : i32
    %c0_i32_0 = arith.constant 0 : i32
    %c0_i32_1 = arith.constant 0 : i32
    return %c0_i32, %c0_i32_0 : i32, i32
  }
  func.func @transform_7(%arg0: i32) -> (i32, i32, i32) {
    %c0_i32 = arith.constant 0 : i32
    %c0_i32_0 = arith.constant 0 : i32
    %c0_i32_1 = arith.constant 0 : i32
    %c0_i32_2 = arith.constant 0 : i32
    return %c0_i32, %c0_i32_0, %c0_i32_1 : i32, i32, i32
  }
  func.func @transform_8(%arg0: i32) -> (i32, i32) {
    %c0_i32 = arith.constant 0 : i32
    %c0_i32_0 = arith.constant 0 : i32
    %c0_i32_1 = arith.constant 0 : i32
    return %c0_i32, %c0_i32_0 : i32, i32
  }
  func.func @transform_9(%arg0: i32) -> (i32, i32) {
    %c0_i32 = arith.constant 0 : i32
    %c0_i32_0 = arith.constant 0 : i32
    %c0_i32_1 = arith.constant 0 : i32
    return %c0_i32, %c0_i32_0 : i32, i32
  }
  func.func @transform_10(%arg0: i32) -> (i32, i32) {
    %c0_i32 = arith.constant 0 : i32
    %c0_i32_0 = arith.constant 0 : i32
    %c0_i32_1 = arith.constant 0 : i32
    return %c0_i32, %c0_i32_0 : i32, i32
  }
  func.func @transform_11(%arg0: i32) -> (i32, i32) {
    %c0_i32 = arith.constant 0 : i32
    %c0_i32_0 = arith.constant 0 : i32
    %c0_i32_1 = arith.constant 0 : i32
    return %c0_i32, %c0_i32_0 : i32, i32
  }
  func.func @transform_12(%arg0: i32) -> (i32, i32) {
    %c0_i32 = arith.constant 0 : i32
    %c0_i32_0 = arith.constant 0 : i32
    %c0_i32_1 = arith.constant 0 : i32
    return %c0_i32, %c0_i32_0 : i32, i32
  }
  func.func @transform_13(%arg0: i32) -> (i32, i32) {
    %c0_i32 = arith.constant 0 : i32
    %c0_i32_0 = arith.constant 0 : i32
    %c0_i32_1 = arith.constant 0 : i32
    return %c0_i32, %c0_i32_0 : i32, i32
  }
  func.func @transform_14(%arg0: i32) -> (i32, i32, i32) {
    %c0_i32 = arith.constant 0 : i32
    %c0_i32_0 = arith.constant 0 : i32
    %c0_i32_1 = arith.constant 0 : i32
    return %arg0, %c0_i32, %c0_i32_0 : i32, i32, i32
  }
}

module attributes {stable_mosaic.version = 11 : i64} {
  func.func @_head_kernel(%arg0: i32, %arg1: memref<1x49x64xf32, #tpu.memory_space<vmem>>, %arg2: memref<1x64xf32, #tpu.memory_space<vmem>>, %arg3: memref<1x64xf32, #tpu.memory_space<vmem>>, %arg4: memref<64x10xbf16, #tpu.memory_space<vmem>>, %arg5: memref<1x10xf32, #tpu.memory_space<vmem>>, %arg6: memref<1x1x10xf32, #tpu.memory_space<vmem>>) attributes {dimension_semantics = [#tpu.dimension_semantics<parallel>], iteration_bounds = array<i64: 2>, scalar_prefetch = 0 : i64, scratch_operands = 0 : i64, tpu.core_type = #tpu.core_type<tc>, window_params = [{transform_indices = @transform_0, window_bounds = array<i64: 1, 49, 64>}, {pipeline_mode = #tpu.pipeline_mode<synchronous>, transform_indices = @transform_1, window_bounds = array<i64: 1, 64>}, {pipeline_mode = #tpu.pipeline_mode<synchronous>, transform_indices = @transform_2, window_bounds = array<i64: 1, 64>}, {pipeline_mode = #tpu.pipeline_mode<synchronous>, transform_indices = @transform_3, window_bounds = array<i64: 64, 10>}, {pipeline_mode = #tpu.pipeline_mode<synchronous>, transform_indices = @transform_4, window_bounds = array<i64: 1, 10>}, {transform_indices = @transform_5, window_bounds = array<i64: 1, 1, 10>}]} {
    %c0 = arith.constant 0 : index
    %c0_0 = arith.constant 0 : index
    %c0_1 = arith.constant 0 : index
    %0 = vector.load %arg1[%c0, %c0_0, %c0_1] : memref<1x49x64xf32, #tpu.memory_space<vmem>>, vector<1x49x64xf32>
    %1 = vector.shape_cast %0 : vector<1x49x64xf32> to vector<49x64xf32>
    %c0_2 = arith.constant 0 : index
    %c0_3 = arith.constant 0 : index
    %2 = vector.load %arg2[%c0_2, %c0_3] : memref<1x64xf32, #tpu.memory_space<vmem>>, vector<1x64xf32>
    %c0_4 = arith.constant 0 : index
    %c0_5 = arith.constant 0 : index
    %3 = vector.load %arg3[%c0_4, %c0_5] : memref<1x64xf32, #tpu.memory_space<vmem>>, vector<1x64xf32>
    %cst = arith.constant dense<0.000000e+00> : vector<49xf32>
    %4 = vector.multi_reduction <add>, %1, %cst [1] : vector<49x64xf32> to vector<49xf32>
    %5 = vector.shape_cast %4 : vector<49xf32> to vector<49x1xf32>
    %cst_6 = arith.constant 6.400000e+01 : f32
    %6 = vector.broadcast %cst_6 : f32 to vector<49x1xf32>
    %7 = arith.divf %5, %6 : vector<49x1xf32>
    %8 = vector.broadcast %7 : vector<49x1xf32> to vector<49x64xf32>
    %9 = arith.subf %1, %8 : vector<49x64xf32>
    %10 = arith.mulf %9, %9 : vector<49x64xf32>
    %cst_7 = arith.constant dense<0.000000e+00> : vector<49xf32>
    %11 = vector.multi_reduction <add>, %10, %cst_7 [1] : vector<49x64xf32> to vector<49xf32>
    %12 = vector.shape_cast %11 : vector<49xf32> to vector<49x1xf32>
    %cst_8 = arith.constant 6.400000e+01 : f32
    %13 = vector.broadcast %cst_8 : f32 to vector<49x1xf32>
    %14 = arith.divf %12, %13 : vector<49x1xf32>
    %cst_9 = arith.constant 9.99999974E-6 : f32
    %15 = vector.broadcast %cst_9 : f32 to vector<49x1xf32>
    %16 = arith.addf %14, %15 : vector<49x1xf32>
    %17 = math.rsqrt %16 : vector<49x1xf32>
    %18 = vector.broadcast %17 : vector<49x1xf32> to vector<49x64xf32>
    %19 = arith.mulf %9, %18 : vector<49x64xf32>
    %20 = vector.broadcast %2 : vector<1x64xf32> to vector<49x64xf32>
    %21 = arith.mulf %19, %20 : vector<49x64xf32>
    %22 = vector.broadcast %3 : vector<1x64xf32> to vector<49x64xf32>
    %23 = arith.addf %21, %22 : vector<49x64xf32>
    %cst_10 = arith.constant dense<0.000000e+00> : vector<64xf32>
    %24 = vector.multi_reduction <add>, %23, %cst_10 [0] : vector<49x64xf32> to vector<64xf32>
    %25 = vector.shape_cast %24 : vector<64xf32> to vector<1x64xf32>
    %cst_11 = arith.constant 4.900000e+01 : f32
    %26 = vector.broadcast %cst_11 : f32 to vector<1x64xf32>
    %27 = arith.divf %25, %26 : vector<1x64xf32>
    %28 = arith.truncf %27 : vector<1x64xf32> to vector<1x64xbf16>
    %c0_12 = arith.constant 0 : index
    %c0_13 = arith.constant 0 : index
    %29 = vector.load %arg4[%c0_12, %c0_13] : memref<64x10xbf16, #tpu.memory_space<vmem>>, vector<64x10xbf16>
    %cst_14 = arith.constant dense<0.000000e+00> : vector<1x10xf32>
    %30 = tpu.matmul %28, %29, %cst_14 {dimension_numbers = #tpu.dot_dimension_numbers<[1], [0], [0], [1], [0, 0, 1, 1], [], []>} : vector<1x64xbf16>, vector<64x10xbf16>, vector<1x10xf32> -> vector<1x10xf32>
    %c0_15 = arith.constant 0 : index
    %c0_16 = arith.constant 0 : index
    %31 = vector.load %arg5[%c0_15, %c0_16] : memref<1x10xf32, #tpu.memory_space<vmem>>, vector<1x10xf32>
    %32 = arith.addf %30, %31 : vector<1x10xf32>
    %c0_17 = arith.constant 0 : index
    %c0_18 = arith.constant 0 : index
    %c0_19 = arith.constant 0 : index
    %33 = vector.load %arg6[%c0_17, %c0_18, %c0_19] : memref<1x1x10xf32, #tpu.memory_space<vmem>>, vector<1x1x10xf32>
    %34 = vector.shape_cast %33 : vector<1x1x10xf32> to vector<1x10xf32>
    %35 = vector.shape_cast %32 : vector<1x10xf32> to vector<1x1x10xf32>
    tpu.vector_store %arg6[%c0_17, %c0_18, %c0_19], %35 {strides = array<i32>} : memref<1x1x10xf32, #tpu.memory_space<vmem>>, vector<1x1x10xf32>,
    return
  }
  func.func @transform_0(%arg0: i32) -> (i32, i32, i32) {
    %c0_i32 = arith.constant 0 : i32
    %c0_i32_0 = arith.constant 0 : i32
    %c0_i32_1 = arith.constant 0 : i32
    return %arg0, %c0_i32, %c0_i32_0 : i32, i32, i32
  }
  func.func @transform_1(%arg0: i32) -> (i32, i32) {
    %c0_i32 = arith.constant 0 : i32
    %c0_i32_0 = arith.constant 0 : i32
    %c0_i32_1 = arith.constant 0 : i32
    return %c0_i32, %c0_i32_0 : i32, i32
  }
  func.func @transform_2(%arg0: i32) -> (i32, i32) {
    %c0_i32 = arith.constant 0 : i32
    %c0_i32_0 = arith.constant 0 : i32
    %c0_i32_1 = arith.constant 0 : i32
    return %c0_i32, %c0_i32_0 : i32, i32
  }
  func.func @transform_3(%arg0: i32) -> (i32, i32) {
    %c0_i32 = arith.constant 0 : i32
    %c0_i32_0 = arith.constant 0 : i32
    %c0_i32_1 = arith.constant 0 : i32
    return %c0_i32, %c0_i32_0 : i32, i32
  }
  func.func @transform_4(%arg0: i32) -> (i32, i32) {
    %c0_i32 = arith.constant 0 : i32
    %c0_i32_0 = arith.constant 0 : i32
    %c0_i32_1 = arith.constant 0 : i32
    return %c0_i32, %c0_i32_0 : i32, i32
  }
  func.func @transform_5(%arg0: i32) -> (i32, i32, i32) {
    %c0_i32 = arith.constant 0 : i32
    %c0_i32_0 = arith.constant 0 : i32
    %c0_i32_1 = arith.constant 0 : i32
    return %arg0, %c0_i32, %c0_i32_0 : i32, i32, i32
  }
}

</mosaic_0001>

<bundles_post_ra>
// kernel: _lambda_.7
= control target key start
LH: loop header
LB: loop body
LE: loop exit
PB: predicated region body
PF: predicated region fallthrough
CT: control target
= control target key end

     0   :  { %s1155_s18 = smov 0   ;;  %s1677_s0 = inlined_call_operand.vmem [shape: f32[2,196,48], index: 0, kind: input, shape index: {}]   ;;  %s1678_s1 = inlined_call_operand.vmem [shape: bf16[48,32], index: 1, kind: input, shape index: {}]   ;;  %s1679_s2 = inlined_call_operand.vmem [shape: f32[1,32], index: 2, kind: input, shape index: {}, may-alias: {2,4}]   ;;  %s1680_s3 = inlined_call_operand.vmem [shape: f32[1,32], index: 3, kind: input, shape index: {}]   ;;  %s1681_s4 = inlined_call_operand.vmem [shape: f32[1,32], index: 4, kind: input, shape index: {}, may-alias: {2,4}]   ;;  %s1682_s5 = inlined_call_operand.vmem [shape: f32[2,196,32], index: 5, kind: output, shape index: {}]  }
   0x1 LB: > { %s943_s19 = sadd.s32 4294967295, %s1121_s18   ;;  %p947_p0 = scmp.ge.s32.totalorder %s1121_s18, 1  ;;  %s1121_s18 = sphi %s1155_s18, %s15_s18  }
   0x2   : > { %p187_p1 = scmp.lt.s32.totalorder %s1121_s18, 3 }
   0x4   : > { %p188_p2 = pnand %p947_p0, %p187_p1 }
   0x5   : > { %v1062_v0 = vld [vmem:[%s1678_s1] sm:$0xff] (!%p188_p2)   ;;  %v1123_v1 = vmov (!%p188_p2), 0.0   ;;  %v1063_v2 = vld [vmem:[%s1678_s1 + $0x8] sm:$0xff] (!%p188_p2)   ;;  %p215_p3 = scmp.lt.s32.totalorder (!%p188_p2), %s943_s19, 1  ;;  %vm1124_vm0 = vmmov (!%p188_p2), 0   ;;  %v1064_v3 = vld [vmem:[%s1678_s1 + $0x10] sm:$0xff] (!%p188_p2)  }
   0x6   : > { %191 = sbr.rel (%p188_p2) target bundleno = 602 (0x25a), region = 40  ;;  %987 = vmatprep.subr.bf16.mxu0 (!%p188_p2), %v1123_v1  ;;  %1045 = vmatprep.subr.bf16.mxu1 (!%p188_p2), %v1123_v1  ;;  %vm295_vm1 = vcmask (!%p188_p2), 392192   ;;  %v1255_v42 = vld [vmem:[%s1679_s2] ss:$0 sm:$0xff] (!%p188_p2)  ;;  %vm473_vm2 = vcmask (!%p188_p2), 261120   ;;  %vm546_vm3 = vcmask (!%p188_p2), 257024  }
   0x7   : > { %988 = vmatpush3.bf16.msra.mxu0 (!%p188_p2), %v1062_v0  ;;  %1048 = vmatpush3.bf16.msra.mxu1 (!%p188_p2), %v1062_v0 }
   0x8   : > { %989 = vmatprep.subr.bf16.mxu0 (!%p188_p2), %v1123_v1  ;;  %1046 = vmatprep.subr.bf16.mxu1 (!%p188_p2), %v1123_v1 }
   0x9   : > { %993 = vmatprep.mubr.msk.bf16.mxu0 (!%p188_p2), %vm1124_vm0, %v1123_v1  ;;  %1021 = vmatprep.mubr.msk.bf16.mxu1 (!%p188_p2), %vm1124_vm0, %v1123_v1 }
   0xb   : > { %990 = vmatpush3.bf16.msra.mxu0 (!%p188_p2), %v1063_v2  ;;  %1049 = vmatpush3.bf16.msra.mxu1 (!%p188_p2), %v1063_v2 }
   0xc   : > { %991 = vmatprep.subr.bf16.mxu0 (!%p188_p2), %v1123_v1  ;;  %1047 = vmatprep.subr.bf16.mxu1 (!%p188_p2), %v1123_v1 }
   0xd   : > { %s1684_s19 = smov (!%p215_p3, %s943_s19), 1 }
   0xe   : > { %s1051_s26 = smul.u32 200, %s1684_s19 }
   0xf   : > { %992 = vmatpush3.bf16.msra.mxu0 %v1064_v3  ;;  %1050 = vmatpush3.bf16.msra.mxu1 %v1064_v3 }
  0x10   : > { %s1190_s29 = scalar_lea.vmem %s1677_s0, %s1051_s26  ;;  %s1549_s13 = scalar_lea.vmem %s1682_s5, %s1051_s26 }
  0x11   : > { %v226_v4 = vld [vmem:[%s1190_s29] sm:$0xff]  ;;  %v227_v5 = vld [vmem:[%s1190_s29 + $0x8] sm:$0xff]  ;;  %v240_v6 = vld [vmem:[%s1190_s29 + $0x70] sm:$0xff] }
  0x12   : > { %v251_v7 = vpack.c.bf16 %v227_v5, %v226_v4  ;;  %v241_v8 = vld [vmem:[%s1190_s29 + $0x78] sm:$0xff]  ;;  %v228_v10 = vld [vmem:[%s1190_s29 + $0x10] sm:$0xff]  ;;  %v242_v12 = vld [vmem:[%s1190_s29 + $0x80] sm:$0xff] }
  0x13   : > { %v258_v9 = vpack.c.bf16 %v241_v8, %v240_v6  ;;  %v229_v11 = vld [vmem:[%s1190_s29 + $0x18] sm:$0xff]  ;;  %v243_v13 = vld [vmem:[%s1190_s29 + $0x88] sm:$0xff]  ;;  %v230_v16 = vld [vmem:[%s1190_s29 + $0x20] sm:$0xff] }
  0x14   : > { %994 = vmatmul.mubr.msk.bf16.vlgmr.msra.gmra.mrb[0].mxu0 %vm295_vm1, %v251_v7  ;;  %v252_v14 = vpack.c.bf16 %v229_v11, %v228_v10  ;;  %v259_v15 = vpack.c.bf16 %v243_v13, %v242_v12  ;;  %v231_v17 = vld [vmem:[%s1190_s29 + $0x28] sm:$0xff]  ;;  %v244_v18 = vld [vmem:[%s1190_s29 + $0x90] sm:$0xff]  ;;  %v245_v19 = vld [vmem:[%s1190_s29 + $0x98] sm:$0xff] }
  0x15   : > { %1022 = vmatmul.mubr.msk.bf16.vlgmr.msra.gmra.mrb[0].mxu1 %vm295_vm1, %v258_v9  ;;  %997 = vmatprep.mubr.msk.bf16.mxu0 %vm1124_vm0, %v1123_v1  ;;  %v253_v20 = vpack.c.bf16 %v231_v17, %v230_v16  ;;  %v260_v21 = vpack.c.bf16 %v245_v19, %v244_v18  ;;  %v232_v22 = vld [vmem:[%s1190_s29 + $0x30] sm:$0xff]  ;;  %v233_v23 = vld [vmem:[%s1190_s29 + $0x38] sm:$0xff]  ;;  %v246_v24 = vld [vmem:[%s1190_s29 + $0xa0] sm:$0xff] }
  0x16   : > { %1025 = vmatprep.mubr.msk.bf16.mxu1 %vm1124_vm0, %v1123_v1  ;;  %v247_v25 = vld [vmem:[%s1190_s29 + $0xa8] sm:$0xff]  ;;  %v254_v26 = vpack.c.bf16 %v233_v23, %v232_v22  ;;  %v234_v28 = vld [vmem:[%s1190_s29 + $0x40] sm:$0xff]  ;;  %v248_v30 = vld [vmem:[%s1190_s29 + $0xb0] sm:$0xff] }
  0x17   : > { %v261_v27 = vpack.c.bf16 %v247_v25, %v246_v24  ;;  %v235_v29 = vld [vmem:[%s1190_s29 + $0x48] sm:$0xff]  ;;  %v249_v31 = vld [vmem:[%s1190_s29 + $0xb8] sm:$0xff]  ;;  %v236_v34 = vld [vmem:[%s1190_s29 + $0x50] sm:$0xff] }
  0x18   : > { %v255_v32 = vpack.c.bf16 %v235_v29, %v234_v28  ;;  %v262_v33 = vpack.c.bf16 %v249_v31, %v248_v30  ;;  %v237_v35 = vld [vmem:[%s1190_s29 + $0x58] sm:$0xff]  ;;  %v250_v36 = vld [vmem:[%s1190_s29 + $0xc0] sm:$0xf]  ;;  %v239_v40 = vld [vmem:[%s1190_s29 + $0x68] sm:$0xff] }
  0x19   : > { %v256_v37 = vpack.c.bf16 %v237_v35, %v236_v34  ;;  %v263_v38 = vpack.c.bf16 %v250_v36, %v250_v36  ;;  %v238_v39 = vld [vmem:[%s1190_s29 + $0x60] sm:$0xff] }
  0x1a   : > { %v257_v41 = vpack.c.bf16 %v239_v40, %v238_v39 }
  0x1c   : > { %998 = vmatmul.mubr.msk.bf16.gmra.mrb[4].mxu0 %vm295_vm1, %v252_v14 }
  0x1d   : > { %1026 = vmatmul.mubr.msk.bf16.gmra.mrb[4].mxu1 %vm295_vm1, %v259_v15  ;;  %1001 = vmatprep.mubr.msk.bf16.mxu0 %vm1124_vm0, %v1123_v1 }
  0x1e   : > { %1029 = vmatprep.mubr.msk.bf16.mxu1 %vm1124_vm0, %v1123_v1 }
  0x24   : > { %1002 = vmatmul.mubr.msk.bf16.gmra.mrb[8].mxu0 %vm295_vm1, %v253_v20 }
  0x25   : > { %1030 = vmatmul.mubr.msk.bf16.gmra.mrb[8].mxu1 %vm295_vm1, %v260_v21  ;;  %1005 = vmatprep.mubr.msk.bf16.mxu0 %vm1124_vm0, %v1123_v1 }
  0x26   : > { %1033 = vmatprep.mubr.msk.bf16.mxu1 %vm1124_vm0, %v1123_v1 }
  0x2c   : > { %1006 = vmatmul.mubr.msk.bf16.gmra.mrb[12].mxu0 %vm295_vm1, %v254_v26 }
  0x2d   : > { %1034 = vmatmul.mubr.msk.bf16.gmra.mrb[12].mxu1 %vm295_vm1, %v261_v27  ;;  %1009 = vmatprep.mubr.msk.bf16.mxu0 %vm1124_vm0, %v1123_v1 }
  0x2e   : > { %1037 = vmatprep.mubr.msk.bf16.mxu1 %vm1124_vm0, %v1123_v1 }
  0x34   : > { %1010 = vmatmul.mubr.msk.bf16.gmra.mrb[16].mxu0 %vm295_vm1, %v255_v32 }
  0x35   : > { %1038 = vmatmul.mubr.msk.bf16.gmra.mrb[16].mxu1 %vm295_vm1, %v262_v33  ;;  %1013 = vmatprep.mubr.msk.bf16.mxu0 %vm1124_vm0, %v1123_v1 }
  0x36   : > { %1041 = vmatprep.mubr.msk.bf16.mxu1 %vm1124_vm0, %v1123_v1 }
  0x3c   : > { %1014 = vmatmul.mubr.msk.bf16.gmra.mrb[20].mxu0 %vm295_vm1, %v256_v37 }
  0x3d   : > { %1042 = vmatmul.mubr.msk.bf16.gmra.mrb[20].mxu1 %vm295_vm1, %v263_v38  ;;  %1017 = vmatprep.mubr.msk.bf16.mxu0 %vm1124_vm0, %v1123_v1 }
  0x44   : > { %1018 = vmatmul.mubr.msk.bf16.gmra.mrb[24].mxu0 %vm295_vm1, %v257_v41 }
  0xe7   : > { %v369_v43 = vpop.f32.mrb[0].mxu0 }
  0xe8   : > { %v425_v44 = vpop.f32.mrb[0].mxu1  ;;  %v1258_v45 = vadd.f32 %v1255_v42, %v369_v43  ;;  %v995_v47 = vpop.f32.mrb[1].mxu0 }
  0xe9   : > { %v1261_v46 = vadd.f32 %v1255_v42, %v425_v44  ;;  %v1023_v48 = vpop.f32.mrb[1].mxu1  ;;  %v372_v49 = vpop.f32.mrb[2].mxu0 }
  0xea   : > { %v428_v50 = vpop.f32.mrb[2].mxu1  ;;  %v996_v52 = vpop.f32.mrb[3].mxu0  ;;  %v474_v53 = vsel %vm473_vm2, %v1258_v45, 0.0  ;;  %v1273_v57 = vadd.f32 %v1255_v42, %v372_v49 }
  0xeb   : > { %v1264_v51 = vadd.f32 %v1255_v42, %v428_v50  ;;  %v1024_v54 = vpop.f32.mrb[3].mxu1  ;;  %475 = vadd.xlane.f32.xlu0 %v474_v53  ;;  %v516_v56 = vsel %vm473_vm2, %v1261_v46, 0.0 }
  0xec   : > { %v477_v4 = vsel %vm473_vm2, %v1273_v57, 0.0 }
  0xed   : > { %v519_v55 = vsel %vm473_vm2, %v1264_v51, 0.0 }
  0xee   : > { %520 = vadd.xlane.f32.xlu1 %v519_v55 }
  0xef   : > { %517 = vadd.xlane.f32.xlu0 %v516_v56  ;;  %v377_v58 = vpop.f32.mrb[4].mxu0 }
  0xf0   : > { %v433_v59 = vpop.f32.mrb[4].mxu1  ;;  %v1276_v60 = vadd.f32 %v1255_v42, %v377_v58  ;;  %v999_v61 = vpop.f32.mrb[5].mxu0 }
  0xf1   : > { %v1279_v62 = vadd.f32 %v1255_v42, %v433_v59  ;;  %v1027_v63 = vpop.f32.mrb[5].mxu1  ;;  %v380_v0 = vpop.f32.mrb[6].mxu0 }
  0xf2   : > { %v436_v1 = vpop.f32.mrb[6].mxu1  ;;  %v1282_v2 = vadd.f32 %v1255_v42, %v380_v0  ;;  %v1000_v3 = vpop.f32.mrb[7].mxu0  ;;  %v480_v5 = vsel %vm473_vm2, %v1276_v60, 0.0 }
  0xf3   : > { %v1028_v6 = vpop.f32.mrb[7].mxu1  ;;  %478 = vadd.xlane.f32.xlu0 %v477_v4  ;;  %481 = vadd.xlane.f32.xlu1 %v480_v5  ;;  %v1289_v7 = vadd.f32 %v1255_v42, %v436_v1  ;;  %v522_v8 = vsel %vm473_vm2, %v1279_v62, 0.0 }
  0xf4   : > { %v483_v9 = vsel %vm473_vm2, %v1282_v2, 0.0 }
  0xf5   : > { %v525_v15 = vsel %vm473_vm2, %v1289_v7, 0.0 }
  0xf7   : > { %523 = vadd.xlane.f32.xlu0 %v522_v8  ;;  %484 = vadd.xlane.f32.xlu1 %v483_v9  ;;  %v385_v10 = vpop.f32.mrb[8].mxu0 }
  0xf8   : > { %v441_v11 = vpop.f32.mrb[8].mxu1  ;;  %v1296_v12 = vadd.f32 %v1255_v42, %v385_v10  ;;  %v1003_v13 = vpop.f32.mrb[9].mxu0 }
  0xf9   : > { %v1299_v14 = vadd.f32 %v1255_v42, %v441_v11  ;;  %v1031_v16 = vpop.f32.mrb[9].mxu1  ;;  %v388_v17 = vpop.f32.mrb[10].mxu0 }
  0xfa   : > { %v444_v18 = vpop.f32.mrb[10].mxu1  ;;  %v1304_v19 = vadd.f32 %v1255_v42, %v388_v17  ;;  %v1004_v20 = vpop.f32.mrb[11].mxu0  ;;  %v486_v21 = vsel %vm473_vm2, %v1296_v12, 0.0 }
  0xfb   : > { %v1032_v22 = vpop.f32.mrb[11].mxu1  ;;  %526 = vadd.xlane.f32.xlu1 %v525_v15  ;;  %487 = vadd.xlane.f32.xlu0 %v486_v21  ;;  %v1309_v23 = vadd.f32 %v1255_v42, %v444_v18  ;;  %v528_v24 = vsel %vm473_vm2, %v1299_v14, 0.0 }
  0xfc   : > { %v489_v25 = vsel %vm473_vm2, %v1304_v19, 0.0 }
  0xfd   : > { %v531_v31 = vsel %vm473_vm2, %v1309_v23, 0.0 }
  0xff   : > { %529 = vadd.xlane.f32.xlu0 %v528_v24  ;;  %490 = vadd.xlane.f32.xlu1 %v489_v25  ;;  %v393_v26 = vpop.f32.mrb[12].mxu0 }
 0x100   : > { %v449_v27 = vpop.f32.mrb[12].mxu1  ;;  %v1316_v28 = vadd.f32 %v1255_v42, %v393_v26  ;;  %v1007_v29 = vpop.f32.mrb[13].mxu0 }
 0x101   : > { %v1319_v30 = vadd.f32 %v1255_v42, %v449_v27  ;;  %v1035_v32 = vpop.f32.mrb[13].mxu1  ;;  %v396_v33 = vpop.f32.mrb[14].mxu0 }
 0x102   : > { %v452_v34 = vpop.f32.mrb[14].mxu1  ;;  %v1324_v35 = vadd.f32 %v1255_v42, %v396_v33  ;;  %v1008_v36 = vpop.f32.mrb[15].mxu0  ;;  %v492_v37 = vsel %vm473_vm2, %v1316_v28, 0.0 }
 0x103   : > { %v1036_v38 = vpop.f32.mrb[15].mxu1  ;;  %532 = vadd.xlane.f32.xlu1 %v531_v31  ;;  %493 = vadd.xlane.f32.xlu0 %v492_v37  ;;  %v1329_v39 = vadd.f32 %v1255_v42, %v452_v34  ;;  %v534_v40 = vsel %vm473_vm2, %v1319_v30, 0.0 }
 0x104   : > { %v495_v41 = vsel %vm473_vm2, %v1324_v35, 0.0 }
 0x105   : > { %v537_v50 = vsel %vm473_vm2, %v1329_v39, 0.0 }
 0x107   : > { %535 = vadd.xlane.f32.xlu0 %v534_v40  ;;  %496 = vadd.xlane.f32.xlu1 %v495_v41  ;;  %v401_v43 = vpop.f32.mrb[16].mxu0 }
 0x108   : > { %v457_v44 = vpop.f32.mrb[16].mxu1  ;;  %v1336_v47 = vadd.f32 %v1255_v42, %v401_v43  ;;  %v1011_v48 = vpop.f32.mrb[17].mxu0 }
 0x109   : > { %v1339_v49 = vadd.f32 %v1255_v42, %v457_v44  ;;  %v1039_v52 = vpop.f32.mrb[17].mxu1  ;;  %v404_v53 = vpop.f32.mrb[18].mxu0 }
 0x10a   : > { %v460_v54 = vpop.f32.mrb[18].mxu1  ;;  %v1344_v55 = vadd.f32 %v1255_v42, %v404_v53  ;;  %v1012_v56 = vpop.f32.mrb[19].mxu0  ;;  %v498_v58 = vsel %vm473_vm2, %v1336_v47, 0.0 }
 0x10b   : > { %v1040_v59 = vpop.f32.mrb[19].mxu1  ;;  %538 = vadd.xlane.f32.xlu1 %v537_v50  ;;  %499 = vadd.xlane.f32.xlu0 %v498_v58  ;;  %v540_v61 = vsel %vm473_vm2, %v1339_v49, 0.0  ;;  %v1374_v26 = vadd.f32 %v1255_v42, %v460_v54 }
 0x10c   : > { %v501_v63 = vsel %vm473_vm2, %v1344_v55, 0.0 }
 0x10d   : > { %v543_v31 = vsel %vm473_vm2, %v1374_v26, 0.0 }
 0x10f   : > { %541 = vadd.xlane.f32.xlu0 %v540_v61  ;;  %502 = vadd.xlane.f32.xlu1 %v501_v63  ;;  %v409_v0 = vpop.f32.mrb[20].mxu0 }
 0x110   : > { %v465_v1 = vpop.f32.mrb[20].mxu1  ;;  %v1353_v3 = vadd.f32 %v1255_v42, %v409_v0  ;;  %v1015_v4 = vpop.f32.mrb[21].mxu0 }
 0x111   : > { %v1043_v5 = vpop.f32.mrb[21].mxu1  ;;  %v412_v6 = vpop.f32.mrb[22].mxu0  ;;  %v1366_v20 = vadd.f32 %v1255_v42, %v465_v1 }
 0x112   : > { %v468_v8 = vpop.f32.mrb[22].mxu1  ;;  %v1356_v9 = vadd.f32 %v1255_v42, %v412_v6  ;;  %v1016_v10 = vpop.f32.mrb[23].mxu0  ;;  %v504_v11 = vsel %vm473_vm2, %v1353_v3, 0.0 }
 0x113   : > { %v1044_v13 = vpop.f32.mrb[23].mxu1  ;;  %505 = vadd.xlane.f32.xlu0 %v504_v11  ;;  %v547_v29 = vsel %vm546_vm3, %v1366_v20, 0.0 }
 0x114   : > { %v507_v15 = vsel %vm473_vm2, %v1356_v9, 0.0 }
 0x115   : > { %508 = vadd.xlane.f32.xlu1 %v507_v15 }
 0x117   : > { %v417_v16 = vpop.f32.mrb[24].mxu0 }
 0x118   : > { %v1363_v17 = vadd.f32 %v1255_v42, %v417_v16  ;;  %v1019_v18 = vpop.f32.mrb[25].mxu0 }
 0x119   : > { %v420_v21 = vpop.f32.mrb[26].mxu0 }
 0x11a   : > { %v1369_v22 = vadd.f32 %v1255_v42, %v420_v21  ;;  %v1020_v24 = vpop.f32.mrb[27].mxu0  ;;  %v510_v25 = vsel %vm473_vm2, %v1363_v17, 0.0 }
 0x11b   : > { %511 = vadd.xlane.f32.xlu0 %v510_v25 }
 0x11c   : > { %v513_v27 = vsel %vm473_vm2, %v1369_v22, 0.0 }
 0x11d   : > { %514 = vadd.xlane.f32.xlu1 %v513_v27 }
 0x11f   : > { %548 = vadd.xlane.f32.xlu0 %v547_v29 }
 0x121   : > { %544 = vadd.xlane.f32.xlu1 %v543_v31 }
 0x178   : > { %v476_v32 = vpop.xlane.xlu0 %475 }
 0x179   : > { %v551_v33 = vmul.f32 0.03125, %v476_v32 }
 0x17b   : > { %v1383_v34 = vsub.f32 %v1258_v45, %v551_v33  ;;  %v521_v36 = vpop.xlane.xlu1 %520 }
 0x17c   : > { %v518_v42 = vpop.xlane.xlu0 %517  ;;  %v566_v40 = vmul.f32 0.03125, %v521_v36 }
 0x17d   : > { %v565_v37 = vmul.f32 0.03125, %v518_v42  ;;  %v601_v38 = vmul.f32 %v1383_v34, %v1383_v34 }
 0x17e   : > { %v1394_v53 = vsub.f32 %v1264_v51, %v566_v40 }
 0x17f   : > { %v1388_v41 = vsub.f32 %v1261_v46, %v565_v37  ;;  %v626_v43 = vsel %vm473_vm2, %v601_v38, 0.0 }
 0x180   : > { %v479_v44 = vpop.xlane.xlu0 %478  ;;  %v482_v48 = vpop.xlane.xlu1 %481  ;;  %627 = vadd.xlane.f32.xlu1 %v626_v43 }
 0x181   : > { %v552_v50 = vmul.f32 0.03125, %v479_v44  ;;  %v553_v52 = vmul.f32 0.03125, %v482_v48  ;;  %v615_v45 = vmul.f32 %v1388_v41, %v1388_v41 }
 0x183   : > { %v1397_v54 = vsub.f32 %v1273_v57, %v552_v50  ;;  %v1400_v56 = vsub.f32 %v1276_v60, %v553_v52  ;;  %v668_v46 = vsel %vm473_vm2, %v615_v45, 0.0  ;;  %v616_v57 = vmul.f32 %v1394_v53, %v1394_v53 }
 0x184   : > { %v524_v58 = vpop.xlane.xlu0 %523  ;;  %v485_v59 = vpop.xlane.xlu1 %484  ;;  %669 = vadd.xlane.f32.xlu1 %v668_v46 }
 0x185   : > { %v567_v61 = vmul.f32 0.03125, %v524_v58  ;;  %v554_v63 = vmul.f32 0.03125, %v485_v59  ;;  %v602_v0 = vmul.f32 %v1397_v54, %v1397_v54  ;;  %v603_v51 = vmul.f32 %v1400_v56, %v1400_v56 }
 0x186   : > { %v671_v15 = vsel %vm473_vm2, %v616_v57, 0.0 }
 0x187   : > { %v1410_v1 = vsub.f32 %v1279_v62, %v567_v61  ;;  %v1413_v60 = vsub.f32 %v1282_v2, %v554_v63  ;;  %v629_v4 = vsel %vm473_vm2, %v602_v0, 0.0  ;;  %v632_v5 = vsel %vm473_vm2, %v603_v51, 0.0 }
 0x188   : > { %v527_v6 = vpop.xlane.xlu1 %526  ;;  %v488_v8 = vpop.xlane.xlu0 %487  ;;  %630 = vadd.xlane.f32.xlu0 %v629_v4  ;;  %633 = vadd.xlane.f32.xlu1 %v632_v5 }
 0x189   : > { %v568_v10 = vmul.f32 0.03125, %v527_v6  ;;  %v555_v11 = vmul.f32 0.03125, %v488_v8  ;;  %v617_v13 = vmul.f32 %v1410_v1, %v1410_v1  ;;  %v604_v18 = vmul.f32 %v1413_v60, %v1413_v60 }
 0x18b   : > { %v1421_v62 = vsub.f32 %v1289_v7, %v568_v10  ;;  %v1424_v2 = vsub.f32 %v1296_v12, %v555_v11  ;;  %v674_v16 = vsel %vm473_vm2, %v617_v13, 0.0  ;;  %v635_v32 = vsel %vm473_vm2, %v604_v18, 0.0 }
 0x18c   : > { %v530_v21 = vpop.xlane.xlu0 %529  ;;  %v491_v24 = vpop.xlane.xlu1 %490  ;;  %672 = vadd.xlane.f32.xlu0 %v671_v15  ;;  %675 = vadd.xlane.f32.xlu1 %v674_v16 }
 0x18d   : > { %v569_v25 = vmul.f32 0.03125, %v530_v21  ;;  %v556_v27 = vmul.f32 0.03125, %v491_v24  ;;  %v605_v29 = vmul.f32 %v1424_v2, %v1424_v2  ;;  %v618_v7 = vmul.f32 %v1421_v62, %v1421_v62 }
 0x18f   : > { %v1434_v12 = vsub.f32 %v1299_v14, %v569_v25  ;;  %v1437_v31 = vsub.f32 %v1304_v19, %v556_v27  ;;  %v638_v33 = vsel %vm473_vm2, %v605_v29, 0.0  ;;  %v677_v43 = vsel %vm473_vm2, %v618_v7, 0.0 }
 0x190   : > { %v533_v36 = vpop.xlane.xlu1 %532  ;;  %v494_v42 = vpop.xlane.xlu0 %493  ;;  %636 = vadd.xlane.f32.xlu0 %v635_v32  ;;  %639 = vadd.xlane.f32.xlu1 %v638_v33 }
 0x191   : > { %v570_v37 = vmul.f32 0.03125, %v533_v36  ;;  %v557_v38 = vmul.f32 0.03125, %v494_v42  ;;  %v619_v40 = vmul.f32 %v1434_v12, %v1434_v12  ;;  %v606_v48 = vmul.f32 %v1437_v31, %v1437_v31 }
 0x193   : > { %v1445_v14 = vsub.f32 %v1309_v23, %v570_v37  ;;  %v1448_v19 = vsub.f32 %v1316_v28, %v557_v38  ;;  %v680_v44 = vsel %vm473_vm2, %v619_v40, 0.0  ;;  %v641_v61 = vsel %vm473_vm2, %v606_v48, 0.0 }
 0x194   : > { %v536_v50 = vpop.xlane.xlu0 %535  ;;  %v497_v52 = vpop.xlane.xlu1 %496  ;;  %678 = vadd.xlane.f32.xlu0 %v677_v43  ;;  %681 = vadd.xlane.f32.xlu1 %v680_v44 }
 0x195   : > { %v571_v45 = vmul.f32 0.03125, %v536_v50  ;;  %v558_v46 = vmul.f32 0.03125, %v497_v52  ;;  %v607_v58 = vmul.f32 %v1448_v19, %v1448_v19  ;;  %v620_v23 = vmul.f32 %v1445_v14, %v1445_v14 }
 0x197   : > { %v1458_v28 = vsub.f32 %v1319_v30, %v571_v45  ;;  %v1461_v59 = vsub.f32 %v1324_v35, %v558_v46  ;;  %v644_v63 = vsel %vm473_vm2, %v607_v58, 0.0  ;;  %v683_v6 = vsel %vm473_vm2, %v620_v23, 0.0 }
 0x198   : > { %v539_v0 = vpop.xlane.xlu1 %538  ;;  %v500_v51 = vpop.xlane.xlu0 %499  ;;  %642 = vadd.xlane.f32.xlu0 %v641_v61  ;;  %645 = vadd.xlane.f32.xlu1 %v644_v63 }
 0x199   : > { %v572_v57 = vmul.f32 0.03125, %v539_v0  ;;  %v559_v4 = vmul.f32 0.03125, %v500_v51  ;;  %v621_v5 = vmul.f32 %v1458_v28, %v1458_v28  ;;  %v608_v10 = vmul.f32 %v1461_v59, %v1461_v59 }
 0x19b   : > { %v1469_v30 = vsub.f32 %v1329_v39, %v572_v57  ;;  %v1472_v35 = vsub.f32 %v1336_v47, %v559_v4  ;;  %v686_v8 = vsel %vm473_vm2, %v621_v5, 0.0  ;;  %v647_v24 = vsel %vm473_vm2, %v608_v10, 0.0 }
 0x19c   : > { %v542_v11 = vpop.xlane.xlu0 %541  ;;  %v503_v13 = vpop.xlane.xlu1 %502  ;;  %684 = vadd.xlane.f32.xlu0 %v683_v6  ;;  %687 = vadd.xlane.f32.xlu1 %v686_v8 }
 0x19d   : > { %v573_v15 = vmul.f32 0.03125, %v542_v11  ;;  %v560_v16 = vmul.f32 0.03125, %v503_v13  ;;  %v609_v18 = vmul.f32 %v1472_v35, %v1472_v35  ;;  %v622_v39 = vmul.f32 %v1469_v30, %v1469_v30 }
 0x19f   : > { %v1482_v47 = vsub.f32 %v1339_v49, %v573_v15  ;;  %v1485_v21 = vsub.f32 %v1344_v55, %v560_v16  ;;  %v650_v25 = vsel %vm473_vm2, %v609_v18, 0.0  ;;  %v689_v33 = vsel %vm473_vm2, %v622_v39, 0.0 }
 0x1a0   : > { %v506_v27 = vpop.xlane.xlu0 %505  ;;  %648 = vadd.xlane.f32.xlu0 %v647_v24  ;;  %651 = vadd.xlane.f32.xlu1 %v650_v25 }
 0x1a1   : > { %v561_v29 = vmul.f32 0.03125, %v506_v27  ;;  %v623_v7 = vmul.f32 %v1482_v47, %v1482_v47  ;;  %v610_v42 = vmul.f32 %v1485_v21, %v1485_v21 }
 0x1a2   : > { %v509_v32 = vpop.xlane.xlu1 %508 }
 0x1a3   : > { %v1493_v49 = vsub.f32 %v1353_v3, %v561_v29  ;;  %v562_v36 = vmul.f32 0.03125, %v509_v32  ;;  %v692_v55 = vsel %vm473_vm2, %v623_v7, 0.0  ;;  %v653_v40 = vsel %vm473_vm2, %v610_v42, 0.0  ;;  %v1535_v42 = vld [vmem:[%s1680_s3] ss:$0 sm:$0xff] }
 0x1a4   : > { %690 = vadd.xlane.f32.xlu0 %v689_v33  ;;  %693 = vadd.xlane.f32.xlu1 %v692_v55 }
 0x1a5   : > { %v1499_v37 = vsub.f32 %v1356_v9, %v562_v36  ;;  %v611_v38 = vmul.f32 %v1493_v49, %v1493_v49 }
 0x1a7   : > { %v656_v43 = vsel %vm473_vm2, %v611_v38, 0.0  ;;  %v612_v3 = vmul.f32 %v1499_v37, %v1499_v37 }
 0x1a8   : > { %654 = vadd.xlane.f32.xlu0 %v653_v40  ;;  %v512_v44 = vpop.xlane.xlu0 %511  ;;  %657 = vadd.xlane.f32.xlu1 %v656_v43 }
 0x1a9   : > { %v563_v48 = vmul.f32 0.03125, %v512_v44  ;;  %v659_v45 = vsel %vm473_vm2, %v612_v3, 0.0 }
 0x1aa   : > { %v515_v50 = vpop.xlane.xlu1 %514 }
 0x1ab   : > { %v1508_v52 = vsub.f32 %v1363_v17, %v563_v48  ;;  %v564_v9 = vmul.f32 0.03125, %v515_v50  ;;  %v1541_v48 = vld [vmem:[%s1681_s4] ss:$0 sm:$0xff] }
 0x1ac   : > { %660 = vadd.xlane.f32.xlu0 %v659_v45  ;;  %v549_v46 = vpop.xlane.xlu0 %548 }
 0x1ad   : > { %v1512_v58 = vsub.f32 %v1369_v22, %v564_v9  ;;  %v575_v23 = vmul.f32 0.03125, %v549_v46  ;;  %v613_v61 = vmul.f32 %v1508_v52, %v1508_v52 }
 0x1ae   : > { %v545_v63 = vpop.xlane.xlu1 %544 }
 0x1af   : > { %v1517_v0 = vsub.f32 %v1366_v20, %v575_v23  ;;  %v574_v51 = vmul.f32 0.03125, %v545_v63  ;;  %v662_v17 = vsel %vm473_vm2, %v613_v61, 0.0  ;;  %v614_v57 = vmul.f32 %v1512_v58, %v1512_v58 }
 0x1b0   : > { %663 = vadd.xlane.f32.xlu1 %v662_v17 }
 0x1b1   : > { %v1523_v4 = vsub.f32 %v1374_v26, %v574_v51  ;;  %v665_v22 = vsel %vm473_vm2, %v614_v57, 0.0  ;;  %v625_v5 = vmul.f32 %v1517_v0, %v1517_v0 }
 0x1b2   : > { %666 = vadd.xlane.f32.xlu0 %v665_v22 }
 0x1b3   : > { %v698_v6 = vsel %vm546_vm3, %v625_v5, 0.0  ;;  %v624_v20 = vmul.f32 %v1523_v4, %v1523_v4 }
 0x1b4   : > { %699 = vadd.xlane.f32.xlu1 %v698_v6 }
 0x1b5   : > { %v695_v8 = vsel %vm473_vm2, %v624_v20, 0.0 }
 0x1b6   : > { %696 = vadd.xlane.f32.xlu0 %v695_v8 }
 0x20d   : > { %v628_v10 = vpop.xlane.xlu1 %627 }
 0x20e   : > { %v701_v11 = vmul.f32 0.03125, %v628_v10 }
 0x210   : > { %v726_v13 = vadd.f32 1e-05, %v701_v11 }
 0x211   : > { %v670_v26 = vpop.xlane.xlu1 %669 }
 0x212   : > { %1065 = vrsqrt.f32 %v726_v13  ;;  %v715_v15 = vmul.f32 0.03125, %v670_v26 }
 0x214   : > { %v740_v16 = vadd.f32 1e-05, %v715_v15 }
 0x215   : > { %v631_v18 = vpop.xlane.xlu0 %630  ;;  %v634_v39 = vpop.xlane.xlu1 %633 }
 0x216   : > { %1067 = vrsqrt.f32 %v740_v16  ;;  %v702_v24 = vmul.f32 0.03125, %v631_v18  ;;  %v703_v25 = vmul.f32 0.03125, %v634_v39 }
 0x218   : > { %v727_v27 = vadd.f32 1e-05, %v702_v24  ;;  %v728_v29 = vadd.f32 1e-05, %v703_v25 }
 0x219   : > { %v673_v7 = vpop.xlane.xlu0 %672  ;;  %v676_v32 = vpop.xlane.xlu1 %675 }
 0x21a   : > { %1069 = vrsqrt.f32 %v727_v27  ;;  %v716_v33 = vmul.f32 0.03125, %v673_v7  ;;  %v717_v36 = vmul.f32 0.03125, %v676_v32 }
 0x21b   : > { %1071 = vrsqrt.f32 %v728_v29 }
 0x21c   : > { %v1066_v55 = vpop.eup %1065  ;;  %v741_v38 = vadd.f32 1e-05, %v716_v33  ;;  %v742_v40 = vadd.f32 1e-05, %v717_v36 }
 0x21d   : > { %v776_v43 = vmul.f32 %v1066_v55, %v1383_v34  ;;  %v637_v3 = vpop.xlane.xlu0 %636  ;;  %v640_v44 = vpop.xlane.xlu1 %639 }
 0x21e   : > { %1073 = vrsqrt.f32 %v741_v38  ;;  %v704_v50 = vmul.f32 0.03125, %v637_v3  ;;  %v705_v9 = vmul.f32 0.03125, %v640_v44 }
 0x21f   : > { %v807_v45 = vmul.f32 %v1535_v42, %v776_v43  ;;  %1075 = vrsqrt.f32 %v742_v40 }
 0x220   : > { %v1068_v46 = vpop.eup %1067  ;;  %v729_v34 = vadd.f32 1e-05, %v704_v50  ;;  %v730_v23 = vadd.f32 1e-05, %v705_v9 }
 0x221   : > { %v838_v61 = vadd.f32 %v1541_v48, %v807_v45  ;;  %v790_v63 = vmul.f32 %v1068_v46, %v1388_v41  ;;  %v679_v51 = vpop.xlane.xlu0 %678  ;;  %v682_v17 = vpop.xlane.xlu1 %681 }
 0x222   : > { %1077 = vrsqrt.f32 %v729_v34  ;;  %v718_v57 = vmul.f32 0.03125, %v679_v51  ;;  %v719_v22 = vmul.f32 0.03125, %v682_v17 }
 0x223   : > { %863 = vst.msk [vmem:[%s1549_s13] sm:$0xff] %vm473_vm2, %v838_v61  ;;  %v821_v5 = vmul.f32 %v1535_v42, %v790_v63  ;;  %1079 = vrsqrt.f32 %v730_v23 }
 0x224   : > { %v1070_v6 = vpop.eup %1069  ;;  %v743_v20 = vadd.f32 1e-05, %v718_v57  ;;  %v744_v8 = vadd.f32 1e-05, %v719_v22 }
 0x225   : > { %v1072_v10 = vpop.eup %1071  ;;  %v852_v11 = vadd.f32 %v1541_v48, %v821_v5  ;;  %v777_v13 = vmul.f32 %v1070_v6, %v1397_v54  ;;  %v643_v41 = vpop.xlane.xlu0 %642 }
 0x226   : > { %v646_v26 = vpop.xlane.xlu1 %645  ;;  %v778_v15 = vmul.f32 %v1072_v10, %v1400_v56  ;;  %1081 = vrsqrt.f32 %v743_v20  ;;  %v706_v16 = vmul.f32 0.03125, %v643_v41 }
 0x227   : > { %v707_v18 = vmul.f32 0.03125, %v646_v26  ;;  %877 = vst.msk [vmem:[%s1549_s13 + $0x70] sm:$0xff] %vm473_vm2, %v852_v11  ;;  %v808_v39 = vmul.f32 %v1535_v42, %v777_v13  ;;  %1083 = vrsqrt.f32 %v744_v8 }
 0x228   : > { %v1074_v24 = vpop.eup %1073  ;;  %v809_v25 = vmul.f32 %v1535_v42, %v778_v15  ;;  %v731_v27 = vadd.f32 1e-05, %v706_v16 }
 0x229   : > { %v732_v29 = vadd.f32 1e-05, %v707_v18  ;;  %v1076_v54 = vpop.eup %1075  ;;  %v839_v7 = vadd.f32 %v1541_v48, %v808_v39  ;;  %v791_v56 = vmul.f32 %v1074_v24, %v1394_v53  ;;  %v685_v32 = vpop.xlane.xlu0 %684 }
 0x22a   : > { %v688_v33 = vpop.xlane.xlu1 %687  ;;  %v840_v36 = vadd.f32 %v1541_v48, %v809_v25  ;;  %v792_v55 = vmul.f32 %v1076_v54, %v1410_v1  ;;  %1085 = vrsqrt.f32 %v731_v27  ;;  %v720_v38 = vmul.f32 0.03125, %v685_v32 }
 0x22b   : > { %864 = vst.msk [vmem:[%s1549_s13 + $0x8] sm:$0xff] %vm473_vm2, %v839_v7  ;;  %v822_v40 = vmul.f32 %v1535_v42, %v791_v56  ;;  %1087 = vrsqrt.f32 %v732_v29  ;;  %v721_v43 = vmul.f32 0.03125, %v688_v33 }
 0x22c   : > { %v1078_v3 = vpop.eup %1077  ;;  %865 = vst.msk [vmem:[%s1549_s13 + $0x10] sm:$0xff] %vm473_vm2, %v840_v36  ;;  %v823_v53 = vmul.f32 %v1535_v42, %v792_v55  ;;  %v745_v44 = vadd.f32 1e-05, %v720_v38 }
 0x22d   : > { %v1080_v50 = vpop.eup %1079  ;;  %v853_v9 = vadd.f32 %v1541_v48, %v822_v40  ;;  %v779_v1 = vmul.f32 %v1078_v3, %v1413_v60  ;;  %v746_v45 = vadd.f32 1e-05, %v721_v43  ;;  %v649_v46 = vpop.xlane.xlu0 %648 }
 0x22e   : > { %v652_v34 = vpop.xlane.xlu1 %651  ;;  %v854_v23 = vadd.f32 %v1541_v48, %v823_v53  ;;  %v780_v61 = vmul.f32 %v1080_v50, %v1424_v2  ;;  %1089 = vrsqrt.f32 %v745_v44  ;;  %v708_v63 = vmul.f32 0.03125, %v649_v46 }
 0x22f   : > { %878 = vst.msk [vmem:[%s1549_s13 + $0x78] sm:$0xff] %vm473_vm2, %v853_v9  ;;  %v810_v51 = vmul.f32 %v1535_v42, %v779_v1  ;;  %1091 = vrsqrt.f32 %v746_v45  ;;  %v709_v17 = vmul.f32 0.03125, %v652_v34 }
 0x230   : > { %v1082_v57 = vpop.eup %1081  ;;  %879 = vst.msk [vmem:[%s1549_s13 + $0x80] sm:$0xff] %vm473_vm2, %v854_v23  ;;  %v811_v60 = vmul.f32 %v1535_v42, %v780_v61  ;;  %v733_v22 = vadd.f32 1e-05, %v708_v63 }
 0x231   : > { %v1084_v5 = vpop.eup %1083  ;;  %v841_v6 = vadd.f32 %v1541_v48, %v810_v51  ;;  %v793_v2 = vmul.f32 %v1082_v57, %v1421_v62  ;;  %v734_v20 = vadd.f32 1e-05, %v709_v17  ;;  %v691_v8 = vpop.xlane.xlu0 %690 }
 0x232   : > { %v694_v10 = vpop.xlane.xlu1 %693  ;;  %v842_v11 = vadd.f32 %v1541_v48, %v811_v60  ;;  %v794_v13 = vmul.f32 %v1084_v5, %v1434_v12  ;;  %1093 = vrsqrt.f32 %v733_v22  ;;  %v722_v41 = vmul.f32 0.03125, %v691_v8 }
 0x233   : > { %866 = vst.msk [vmem:[%s1549_s13 + $0x18] sm:$0xff] %vm473_vm2, %v841_v6  ;;  %v824_v26 = vmul.f32 %v1535_v42, %v793_v2  ;;  %1095 = vrsqrt.f32 %v734_v20  ;;  %v723_v15 = vmul.f32 0.03125, %v694_v10 }
 0x234   : > { %v1086_v16 = vpop.eup %1085  ;;  %867 = vst.msk [vmem:[%s1549_s13 + $0x20] sm:$0xff] %vm473_vm2, %v842_v11  ;;  %v825_v62 = vmul.f32 %v1535_v42, %v794_v13  ;;  %v747_v18 = vadd.f32 1e-05, %v722_v41 }
 0x235   : > { %v1088_v39 = vpop.eup %1087  ;;  %v855_v24 = vadd.f32 %v1541_v48, %v824_v26  ;;  %v781_v12 = vmul.f32 %v1086_v16, %v1437_v31  ;;  %v748_v25 = vadd.f32 1e-05, %v723_v15  ;;  %v655_v27 = vpop.xlane.xlu0 %654 }
 0x236   : > { %v658_v29 = vpop.xlane.xlu1 %657  ;;  %v856_v54 = vadd.f32 %v1541_v48, %v825_v62  ;;  %v782_v7 = vmul.f32 %v1088_v39, %v1448_v19  ;;  %1097 = vrsqrt.f32 %v747_v18  ;;  %v710_v56 = vmul.f32 0.03125, %v655_v27 }
 0x237   : > { %880 = vst.msk [vmem:[%s1549_s13 + $0x88] sm:$0xff] %vm473_vm2, %v855_v24  ;;  %v812_v32 = vmul.f32 %v1535_v42, %v781_v12  ;;  %1099 = vrsqrt.f32 %v748_v25  ;;  %v711_v33 = vmul.f32 0.03125, %v658_v29 }
 0x238   : > { %v1090_v36 = vpop.eup %1089  ;;  %881 = vst.msk [vmem:[%s1549_s13 + $0x90] sm:$0xff] %vm473_vm2, %v856_v54  ;;  %v813_v31 = vmul.f32 %v1535_v42, %v782_v7  ;;  %v735_v55 = vadd.f32 1e-05, %v710_v56 }
 0x239   : > { %v1092_v38 = vpop.eup %1091  ;;  %v843_v40 = vadd.f32 %v1541_v48, %v812_v32  ;;  %v795_v19 = vmul.f32 %v1090_v36, %v1445_v14  ;;  %v736_v43 = vadd.f32 1e-05, %v711_v33  ;;  %v661_v3 = vpop.xlane.xlu0 %660 }
 0x23a   : > { %v844_v53 = vadd.f32 %v1541_v48, %v813_v31  ;;  %v796_v44 = vmul.f32 %v1092_v38, %v1458_v28  ;;  %1101 = vrsqrt.f32 %v735_v55  ;;  %v712_v50 = vmul.f32 0.03125, %v661_v3 }
 0x23b   : > { %868 = vst.msk [vmem:[%s1549_s13 + $0x28] sm:$0xff] %vm473_vm2, %v843_v40  ;;  %v826_v9 = vmul.f32 %v1535_v42, %v795_v19  ;;  %1103 = vrsqrt.f32 %v736_v43 }
 0x23c   : > { %v1094_v1 = vpop.eup %1093  ;;  %869 = vst.msk [vmem:[%s1549_s13 + $0x30] sm:$0xff] %vm473_vm2, %v844_v53  ;;  %v827_v14 = vmul.f32 %v1535_v42, %v796_v44  ;;  %v737_v45 = vadd.f32 1e-05, %v712_v50 }
 0x23d   : > { %v1096_v46 = vpop.eup %1095  ;;  %v857_v34 = vadd.f32 %v1541_v48, %v826_v9  ;;  %v783_v28 = vmul.f32 %v1094_v1, %v1461_v59  ;;  %v664_v23 = vpop.xlane.xlu1 %663 }
 0x23e   : > { %v858_v61 = vadd.f32 %v1541_v48, %v827_v14  ;;  %v784_v63 = vmul.f32 %v1096_v46, %v1472_v35  ;;  %1105 = vrsqrt.f32 %v737_v45  ;;  %v713_v51 = vmul.f32 0.03125, %v664_v23 }
 0x23f   : > { %882 = vst.msk [vmem:[%s1549_s13 + $0x98] sm:$0xff] %vm473_vm2, %v857_v34  ;;  %v814_v17 = vmul.f32 %v1535_v42, %v783_v28  ;;  %v667_v57 = vpop.xlane.xlu0 %666 }
 0x240   : > { %v1098_v60 = vpop.eup %1097  ;;  %883 = vst.msk [vmem:[%s1549_s13 + $0xa0] sm:$0xff] %vm473_vm2, %v858_v61  ;;  %v815_v22 = vmul.f32 %v1535_v42, %v784_v63  ;;  %v738_v59 = vadd.f32 1e-05, %v713_v51  ;;  %v714_v5 = vmul.f32 0.03125, %v667_v57 }
 0x241   : > { %v1100_v6 = vpop.eup %1099  ;;  %v845_v2 = vadd.f32 %v1541_v48, %v814_v17  ;;  %v797_v35 = vmul.f32 %v1098_v60, %v1469_v30  ;;  %v700_v20 = vpop.xlane.xlu1 %699 }
 0x242   : > { %v846_v8 = vadd.f32 %v1541_v48, %v815_v22  ;;  %v798_v10 = vmul.f32 %v1100_v6, %v1482_v47  ;;  %1107 = vrsqrt.f32 %v738_v59  ;;  %v739_v11 = vadd.f32 1e-05, %v714_v5 }
 0x243   : > { %870 = vst.msk [vmem:[%s1549_s13 + $0x38] sm:$0xff] %vm473_vm2, %v845_v2  ;;  %v828_v13 = vmul.f32 %v1535_v42, %v797_v35  ;;  %v725_v41 = vmul.f32 0.03125, %v700_v20  ;;  %v697_v26 = vpop.xlane.xlu0 %696 }
 0x244   : > { %v1102_v15 = vpop.eup %1101  ;;  %871 = vst.msk [vmem:[%s1549_s13 + $0x40] sm:$0xff] %vm473_vm2, %v846_v8  ;;  %v829_v30 = vmul.f32 %v1535_v42, %v798_v10  ;;  %1109 = vrsqrt.f32 %v739_v11  ;;  %v724_v16 = vmul.f32 0.03125, %v697_v26 }
 0x245   : > { %v1104_v62 = vpop.eup %1103  ;;  %v859_v47 = vadd.f32 %v1541_v48, %v828_v13  ;;  %v785_v18 = vmul.f32 %v1102_v15, %v1485_v21  ;;  %v750_v39 = vadd.f32 1e-05, %v725_v41 }
 0x246   : > { %v860_v24 = vadd.f32 %v1541_v48, %v829_v30  ;;  %v786_v12 = vmul.f32 %v1104_v62, %v1493_v49  ;;  %v749_v25 = vadd.f32 1e-05, %v724_v16 }
 0x247   : > { %884 = vst.msk [vmem:[%s1549_s13 + $0xa8] sm:$0xff] %vm473_vm2, %v859_v47  ;;  %v816_v27 = vmul.f32 %v1535_v42, %v785_v18  ;;  %1111 = vrsqrt.f32 %v750_v39 }
 0x248   : > { %v1106_v29 = vpop.eup %1105  ;;  %885 = vst.msk [vmem:[%s1549_s13 + $0xb0] sm:$0xff] %vm473_vm2, %v860_v24  ;;  %v817_v54 = vmul.f32 %v1535_v42, %v786_v12  ;;  %1113 = vrsqrt.f32 %v749_v25 }
 0x249   : > { %v847_v21 = vadd.f32 %v1541_v48, %v816_v27  ;;  %v787_v7 = vmul.f32 %v1106_v29, %v1499_v37 }
 0x24a   : > { %v848_v56 = vadd.f32 %v1541_v48, %v817_v54 }
 0x24b   : > { %872 = vst.msk [vmem:[%s1549_s13 + $0x48] sm:$0xff] %vm473_vm2, %v847_v21  ;;  %v818_v49 = vmul.f32 %v1535_v42, %v787_v7 }
 0x24c   : > { %v1108_v32 = vpop.eup %1107  ;;  %873 = vst.msk [vmem:[%s1549_s13 + $0x50] sm:$0xff] %vm473_vm2, %v848_v56 }
 0x24d   : > { %v849_v33 = vadd.f32 %v1541_v48, %v818_v49  ;;  %v788_v36 = vmul.f32 %v1108_v32, %v1508_v52 }
 0x24e   : > { %v1110_v31 = vpop.eup %1109 }
 0x24f   : > { %874 = vst.msk [vmem:[%s1549_s13 + $0x58] sm:$0xff] %vm473_vm2, %v849_v33  ;;  %v819_v37 = vmul.f32 %v1535_v42, %v788_v36  ;;  %v789_v55 = vmul.f32 %v1110_v31, %v1512_v58 }
 0x251   : > { %v1112_v38 = vpop.eup %1111  ;;  %v850_v40 = vadd.f32 %v1541_v48, %v819_v37  ;;  %v820_v19 = vmul.f32 %v1535_v42, %v789_v55 }
 0x252   : > { %v1114_v43 = vpop.eup %1113  ;;  %v800_v3 = vmul.f32 %v1112_v38, %v1517_v0 }
 0x253   : > { %875 = vst.msk [vmem:[%s1549_s13 + $0x60] sm:$0xff] %vm473_vm2, %v850_v40  ;;  %v851_v52 = vadd.f32 %v1541_v48, %v820_v19  ;;  %v799_v53 = vmul.f32 %v1114_v43, %v1523_v4 }
 0x254   : > { %v831_v44 = vmul.f32 %v1535_v42, %v800_v3 }
 0x255   : > { %876 = vst.msk [vmem:[%s1549_s13 + $0x68] sm:$0xff] %vm473_vm2, %v851_v52  ;;  %v830_v58 = vmul.f32 %v1535_v42, %v799_v53 }
 0x256   : > { %v862_v50 = vadd.f32 %v1541_v48, %v831_v44 }
 0x257   : > { %v861_v9 = vadd.f32 %v1541_v48, %v830_v58 }
 0x258   : > { %887 = vst.msk [vmem:[%s1549_s13 + $0xc0] sm:$0xf] %vm546_vm3, %v862_v50 }
 0x259   : > { %886 = vst.msk [vmem:[%s1549_s13 + $0xb8] sm:$0xff] %vm473_vm2, %v861_v9 }
 0x25a PF: > { %s15_s18 = sadd.s32 1, %s1121_s18  }
 0x25b   : > { %p12_p4 = scmp.ge.s32.totalorder %s15_s18, 4  }
 0x25d   :  { %14 = sbr.rel (!%p12_p4) target bundleno = 1 (0x1), region = 70 }

// kernel: _lambda_.10
= control target key start
LH: loop header
LB: loop body
LE: loop exit
PB: predicated region body
PF: predicated region fallthrough
CT: control target
= control target key end

     0   :  { %s646_s15 = smov 0   ;;  %s737_s0 = inlined_call_operand.vmem [shape: f32[2,49,128], index: 0, kind: input, shape index: {}]   ;;  %s738_s1 = inlined_call_operand.vmem [shape: f32[1,128], index: 1, kind: input, shape index: {}]   ;;  %s739_s2 = inlined_call_operand.vmem [shape: f32[1,128], index: 2, kind: input, shape index: {}]   ;;  %s740_s3 = inlined_call_operand.vmem [shape: bf16[128,64], index: 3, kind: input, shape index: {}]   ;;  %s741_s4 = inlined_call_operand.vmem [shape: f32[2,49,64], index: 4, kind: output, shape index: {}]  }
   0x1 LB: > { %s511_s16 = sadd.s32 4294967295, %s619_s15   ;;  %p515_p0 = scmp.ge.s32.totalorder %s619_s15, 1  ;;  %s619_s15 = sphi %s646_s15, %s14_s15  }
   0x2   : > { %p162_p1 = scmp.lt.s32.totalorder %s619_s15, 3 }
   0x4   : > { %p163_p2 = pnand %p515_p0, %p162_p1 }
   0x5   : > { %p188_p3 = scmp.lt.s32.totalorder (!%p163_p2), %s511_s16, 1  ;;  %vm220_vm0 = vcmask (!%p163_p2), 1040384   ;;  %v591_v37 = vld [vmem:[%s740_s3] sm:$0xff] (!%p163_p2)   ;;  %v592_v38 = vld [vmem:[%s740_s3 + $0x8] sm:$0xff] (!%p163_p2)   ;;  %v593_v39 = vld [vmem:[%s740_s3 + $0x10] sm:$0xff] (!%p163_p2)   ;;  %vm454_vm1 = vcmask (!%p163_p2), 516096  }
   0x6   : > { %166 = sbr.rel (%p163_p2) target bundleno = 561 (0x231), region = 36  ;;  %542 = vmatprep.subr.bf16.mxu0 (!%p163_p2), %v591_v37  ;;  %566 = vmatprep.subr.bf16.mxu1 (!%p163_p2), %v591_v37  ;;  %v594_v40 = vld [vmem:[%s740_s3 + $0x18] sm:$0xff] (!%p163_p2)   ;;  %v595_v41 = vld [vmem:[%s740_s3 + $0x20] sm:$0xff] (!%p163_p2)   ;;  %v596_v42 = vld [vmem:[%s740_s3 + $0x28] sm:$0xff] (!%p163_p2)   ;;  %vm447_vm2 = vcmask (!%p163_p2), 523264  }
   0x7   : > { %543 = vmatpush3.bf16.msra.mxu0 (!%p163_p2), %v591_v37  ;;  %574 = vmatpush3.bf16.msra.mxu1 (!%p163_p2), %v591_v37  ;;  %v597_v43 = vld [vmem:[%s740_s3 + $0x30] sm:$0xff] (!%p163_p2)   ;;  %v598_v44 = vld [vmem:[%s740_s3 + $0x38] sm:$0xff] (!%p163_p2)  }
   0x8   : > { %544 = vmatprep.subr.bf16.mxu0 (!%p163_p2), %v592_v38  ;;  %567 = vmatprep.subr.bf16.mxu1 (!%p163_p2), %v592_v38 }
   0xb   : > { %545 = vmatpush3.bf16.msra.mxu0 (!%p163_p2), %v592_v38  ;;  %575 = vmatpush3.bf16.msra.mxu1 (!%p163_p2), %v592_v38 }
   0xc   : > { %546 = vmatprep.subr.bf16.mxu0 (!%p163_p2), %v593_v39  ;;  %568 = vmatprep.subr.bf16.mxu1 (!%p163_p2), %v593_v39 }
   0xd   : > { %s743_s16 = smov (!%p188_p3, %s511_s16), 1 }
   0xe   : > { %s582_s17 = smul.u32 56, %s743_s16 }
   0xf   : > { %547 = vmatpush3.bf16.msra.mxu0 %v593_v39  ;;  %576 = vmatpush3.bf16.msra.mxu1 %v593_v39 }
  0x10   : > { %s192_s20 = scalar_lea.vmem %s737_s0, %s582_s17  ;;  %548 = vmatprep.subr.bf16.mxu0 %v594_v40  ;;  %569 = vmatprep.subr.bf16.mxu1 %v594_v40 }
  0x11   : > { %v203_v0 = vld [vmem:[%s192_s20 + $0x20] sm:$0xff]  ;;  %v204_v2 = vld [vmem:[%s192_s20 + $0x28] sm:$0xff]  ;;  %v205_v4 = vld [vmem:[%s192_s20 + $0x30] sm:$0x1] }
  0x12   : > { %v199_v1 = vld [vmem:[%s192_s20] sm:$0xff]  ;;  %216 = vadd.xlane.f32.xlu1 %v203_v0  ;;  %v200_v3 = vld [vmem:[%s192_s20 + $0x8] sm:$0xff]  ;;  %v201_v5 = vld [vmem:[%s192_s20 + $0x10] sm:$0xff]  ;;  %v221_v6 = vsel %vm220_vm0, %v205_v4, 0.0 }
  0x13   : > { %208 = vadd.xlane.f32.xlu0 %v199_v1  ;;  %v202_v7 = vld [vmem:[%s192_s20 + $0x18] sm:$0xff]  ;;  %549 = vmatpush3.bf16.msra.mxu0 %v594_v40  ;;  %s197_s20 = scalar_lea.vmem %s741_s4, %s582_s17 }
  0x14   : > { %577 = vmatpush3.bf16.msra.mxu1 %v594_v40  ;;  %550 = vmatprep.subr.bf16.mxu0 %v595_v41 }
  0x15   : > { %570 = vmatprep.subr.bf16.mxu1 %v595_v41 }
  0x16   : > { %218 = vadd.xlane.f32.xlu1 %v204_v2 }
  0x17   : > { %210 = vadd.xlane.f32.xlu0 %v200_v3  ;;  %551 = vmatpush3.bf16.msra.mxu0 %v595_v41 }
  0x18   : > { %578 = vmatpush3.bf16.msra.mxu1 %v595_v41  ;;  %552 = vmatprep.subr.bf16.mxu0 %v596_v42 }
  0x19   : > { %571 = vmatprep.subr.bf16.mxu1 %v596_v42 }
  0x1a   : > { %212 = vadd.xlane.f32.xlu1 %v201_v5 }
  0x1b   : > { %222 = vadd.xlane.f32.xlu0 %v221_v6  ;;  %553 = vmatpush3.bf16.msra.mxu0 %v596_v42 }
  0x1c   : > { %579 = vmatpush3.bf16.msra.mxu1 %v596_v42  ;;  %554 = vmatprep.subr.bf16.mxu0 %v597_v43 }
  0x1d   : > { %572 = vmatprep.subr.bf16.mxu1 %v597_v43 }
  0x1f   : > { %214 = vadd.xlane.f32.xlu0 %v202_v7  ;;  %555 = vmatpush3.bf16.msra.mxu0 %v597_v43 }
  0x20   : > { %580 = vmatpush3.bf16.msra.mxu1 %v597_v43  ;;  %556 = vmatprep.subr.bf16.mxu0 %v598_v44 }
  0x21   : > { %573 = vmatprep.subr.bf16.mxu1 %v598_v44 }
  0x23   : > { %557 = vmatpush3.bf16.msra.mxu0 %v598_v44 }
  0x24   : > { %581 = vmatpush3.bf16.msra.mxu1 %v598_v44 }
  0x9f   : > { %v217_v8 = vpop.xlane.xlu1 %216 }
  0xa0   : > { %v209_v9 = vpop.xlane.xlu0 %208  ;;  %v229_v10 = vmul.f32 0.0078125, %v217_v8  ;;  %v519_v8 = vld [vmem:[%s739_s2] ss:$0 sm:$0xff] }
  0xa1   : > { %v225_v11 = vmul.f32 0.0078125, %v209_v9 }
  0xa2   : > { %v665_v13 = vsub.f32 %v203_v0, %v229_v10 }
  0xa3   : > { %v663_v12 = vsub.f32 %v199_v1, %v225_v11  ;;  %v219_v14 = vpop.xlane.xlu1 %218 }
  0xa4   : > { %v211_v15 = vpop.xlane.xlu0 %210  ;;  %v230_v16 = vmul.f32 0.0078125, %v219_v14  ;;  %v243_v22 = vmul.f32 %v665_v13, %v665_v13 }
  0xa5   : > { %v226_v17 = vmul.f32 0.0078125, %v211_v15  ;;  %v239_v18 = vmul.f32 %v663_v12, %v663_v12 }
  0xa6   : > { %v673_v23 = vsub.f32 %v204_v2, %v230_v16 }
  0xa7   : > { %v669_v19 = vsub.f32 %v200_v3, %v226_v17  ;;  %246 = vadd.xlane.f32.xlu1 %v239_v18  ;;  %v213_v20 = vpop.xlane.xlu1 %212 }
  0xa8   : > { %v223_v21 = vpop.xlane.xlu0 %222  ;;  %v227_v24 = vmul.f32 0.0078125, %v213_v20  ;;  %v244_v32 = vmul.f32 %v673_v23, %v673_v23 }
  0xa9   : > { %v231_v25 = vmul.f32 0.0078125, %v223_v21  ;;  %v240_v26 = vmul.f32 %v669_v19, %v669_v19 }
  0xaa   : > { %v677_v27 = vsub.f32 %v201_v5, %v227_v24 }
  0xab   : > { %v679_v28 = vsub.f32 %v205_v4, %v231_v25  ;;  %254 = vadd.xlane.f32.xlu1 %v243_v22  ;;  %248 = vadd.xlane.f32.xlu0 %v240_v26  ;;  %v518_v4 = vld [vmem:[%s738_s1] ss:$0 sm:$0xff] }
  0xac   : > { %v215_v29 = vpop.xlane.xlu0 %214  ;;  %v241_v31 = vmul.f32 %v677_v27, %v677_v27 }
  0xad   : > { %v228_v30 = vmul.f32 0.0078125, %v215_v29  ;;  %v245_v33 = vmul.f32 %v679_v28, %v679_v28 }
  0xaf   : > { %v687_v34 = vsub.f32 %v202_v7, %v228_v30  ;;  %250 = vadd.xlane.f32.xlu1 %v241_v31  ;;  %256 = vadd.xlane.f32.xlu0 %v244_v32  ;;  %v258_v36 = vsel %vm220_vm0, %v245_v33, 0.0 }
  0xb1   : > { %v242_v35 = vmul.f32 %v687_v34, %v687_v34 }
  0xb3   : > { %259 = vadd.xlane.f32.xlu1 %v258_v36  ;;  %252 = vadd.xlane.f32.xlu0 %v242_v35 }
 0x134   : > { %v247_v45 = vpop.xlane.xlu1 %246 }
 0x135   : > { %v261_v46 = vmul.f32 0.0078125, %v247_v45 }
 0x137   : > { %v268_v47 = vadd.f32 1e-05, %v261_v46 }
 0x138   : > { %v255_v48 = vpop.xlane.xlu1 %254  ;;  %v249_v49 = vpop.xlane.xlu0 %248 }
 0x139   : > { %599 = vrsqrt.f32 %v268_v47  ;;  %v265_v50 = vmul.f32 0.0078125, %v255_v48  ;;  %v262_v51 = vmul.f32 0.0078125, %v249_v49 }
 0x13b   : > { %v272_v52 = vadd.f32 1e-05, %v265_v50  ;;  %v269_v53 = vadd.f32 1e-05, %v262_v51 }
 0x13c   : > { %v251_v54 = vpop.xlane.xlu1 %250  ;;  %v257_v55 = vpop.xlane.xlu0 %256 }
 0x13d   : > { %601 = vrsqrt.f32 %v272_v52  ;;  %v263_v56 = vmul.f32 0.0078125, %v251_v54  ;;  %v266_v57 = vmul.f32 0.0078125, %v257_v55 }
 0x13e   : > { %603 = vrsqrt.f32 %v269_v53 }
 0x13f   : > { %v270_v58 = vadd.f32 1e-05, %v263_v56  ;;  %v273_v59 = vadd.f32 1e-05, %v266_v57 }
 0x140   : > { %v260_v60 = vpop.xlane.xlu1 %259  ;;  %v253_v61 = vpop.xlane.xlu0 %252 }
 0x141   : > { %605 = vrsqrt.f32 %v270_v58  ;;  %v267_v62 = vmul.f32 0.0078125, %v260_v60  ;;  %v264_v63 = vmul.f32 0.0078125, %v253_v61 }
 0x142   : > { %607 = vrsqrt.f32 %v273_v59 }
 0x143   : > { %v600_v0 = vpop.eup %599  ;;  %v274_v1 = vadd.f32 1e-05, %v267_v62  ;;  %v271_v2 = vadd.f32 1e-05, %v264_v63 }
 0x144   : > { %v282_v3 = vmul.f32 %v600_v0, %v663_v12 }
 0x145   : > { %609 = vrsqrt.f32 %v274_v1 }
 0x146   : > { %611 = vrsqrt.f32 %v271_v2  ;;  %v295_v7 = vmul.f32 %v518_v4, %v282_v3 }
 0x147   : > { %v602_v5 = vpop.eup %601 }
 0x148   : > { %v604_v6 = vpop.eup %603  ;;  %v286_v10 = vmul.f32 %v602_v5, %v665_v13  ;;  %v308_v15 = vadd.f32 %v519_v8, %v295_v7 }
 0x149   : > { %v283_v9 = vmul.f32 %v604_v6, %v669_v19 }
 0x14a   : > { %v299_v18 = vmul.f32 %v518_v4, %v286_v10 }
 0x14b   : > { %v606_v11 = vpop.eup %605  ;;  %v296_v14 = vmul.f32 %v518_v4, %v283_v9 }
 0x14c   : > { %v608_v12 = vpop.eup %607  ;;  %v284_v20 = vmul.f32 %v606_v11, %v677_v27  ;;  %v312_v19 = vadd.f32 %v519_v8, %v299_v18 }
 0x14d   : > { %v309_v16 = vadd.f32 %v519_v8, %v296_v14  ;;  %v287_v17 = vmul.f32 %v608_v12, %v673_v23 }
 0x14e   : > { %v297_v30 = vmul.f32 %v518_v4, %v284_v20 }
 0x14f   : > { %v610_v21 = vpop.eup %609  ;;  %v315_v22 = vpack.c.bf16 %v309_v16, %v308_v15  ;;  %v300_v24 = vmul.f32 %v518_v4, %v287_v17 }
 0x150   : > { %v612_v25 = vpop.eup %611  ;;  %v288_v26 = vmul.f32 %v610_v21, %v679_v28  ;;  %v310_v35 = vadd.f32 %v519_v8, %v297_v30 }
 0x151   : > { %558 = vmatprep.mubr.bf16.mxu0 %v315_v22  ;;  %v313_v13 = vadd.f32 %v519_v8, %v300_v24  ;;  %v285_v29 = vmul.f32 %v612_v25, %v687_v34 }
 0x152   : > { %v301_v31 = vmul.f32 %v518_v4, %v288_v26 }
 0x153   : > { %v317_v32 = vpack.c.bf16 %v313_v13, %v312_v19  ;;  %v298_v33 = vmul.f32 %v518_v4, %v285_v29 }
 0x154   : > { %v314_v23 = vadd.f32 %v519_v8, %v301_v31 }
 0x155   : > { %562 = vmatprep.mubr.bf16.mxu1 %v317_v32  ;;  %v311_v27 = vadd.f32 %v519_v8, %v298_v33 }
 0x156   : > { %v318_v36 = vpack.c.bf16 %v314_v23, %v314_v23 }
 0x157   : > { %v316_v37 = vpack.c.bf16 %v311_v27, %v310_v35 }
 0x158   : > { %563 = vmatmul.mubr.bf16.vlgmr.msra.gmra.mrb[0].mxu1 %v318_v36 }
 0x159   : > { %559 = vmatmul.mubr.bf16.vlgmr.msra.gmra.mrb[0].mxu0 %v316_v37 }
 0x22b   : > { %v564_v28 = vpop.f32.mrb[0].mxu1 }
 0x22c   : > { %v560_v34 = vpop.f32.mrb[0].mxu0  ;;  %455 = vst.msk [vmem:[%s197_s20 + $0x30] sm:$0x1] %vm454_vm1, %v564_v28  ;;  %v433_v38 = vpop.f32.mrb[1].mxu1 }
 0x22d   : > { %450 = vst.msk [vmem:[%s197_s20 + $0x10] sm:$0xff] %vm447_vm2, %v560_v34  ;;  %v417_v39 = vpop.f32.mrb[1].mxu0  ;;  %452 = vst.msk [vmem:[%s197_s20 + $0x20] sm:$0xff] %vm447_vm2, %v433_v38  ;;  %v565_v40 = vpop.f32.mrb[2].mxu1 }
 0x22e   : > { %448 = vst.msk [vmem:[%s197_s20] sm:$0xff] %vm447_vm2, %v417_v39  ;;  %v561_v41 = vpop.f32.mrb[2].mxu0  ;;  %v436_v42 = vpop.f32.mrb[3].mxu1 }
 0x22f   : > { %451 = vst.msk [vmem:[%s197_s20 + $0x18] sm:$0xff] %vm447_vm2, %v561_v41  ;;  %v420_v43 = vpop.f32.mrb[3].mxu0  ;;  %453 = vst.msk [vmem:[%s197_s20 + $0x28] sm:$0xff] %vm447_vm2, %v436_v42 }
 0x230   : > { %449 = vst.msk [vmem:[%s197_s20 + $0x8] sm:$0xff] %vm447_vm2, %v420_v43 }
 0x231 PF: > { %s14_s15 = sadd.s32 1, %s619_s15  }
 0x232   : > { %p11_p4 = scmp.ge.s32.totalorder %s14_s15, 4  }
 0x234   :  { %13 = sbr.rel (!%p11_p4) target bundleno = 1 (0x1), region = 66 }

// kernel: _lambda_.13
= control target key start
LH: loop header
LB: loop body
LE: loop exit
PB: predicated region body
PF: predicated region fallthrough
CT: control target
= control target key end

     0   :  { %10 = vsyncpa [#allocation3], 0  ;;  %s887_s0 = inlined_call_operand.vmem [shape: f32[2,49,64], index: 0, kind: input, shape index: {}]   ;;  %s888_s1 = inlined_call_operand.vmem [shape: f32[1,64], index: 1, kind: input, shape index: {}]   ;;  %s889_s2 = inlined_call_operand.vmem [shape: f32[1,64], index: 2, kind: input, shape index: {}]   ;;  %s890_s3 = inlined_call_operand.vmem [shape: bf16[64,10], index: 3, kind: input, shape index: {}]   ;;  %s891_s4 = inlined_call_operand.vmem [shape: f32[1,10], index: 4, kind: input, shape index: {}]   ;;  %s892_s5 = inlined_call_operand.hbm [shape: f32[2,1,10], index: 5, kind: output, shape index: {}]  }
   0x1   :  { %12 = vsyncpa [#allocation3 + $0x1], 0  ;;  %s709_s18 = smov 0   ;;  %s711_s19 = smov 0  }
   0x2   :  { %s713_s20 = smov 0   ;;  %s715_s21 = smov 0  }
   0x3 LB: > { %s730_s22 = sadd.s32 4294967295, %s674_s21   ;;  %s520_s23 = sadd.s32 4294967294, %s674_s21   ;;  %s674_s21 = sphi %s715_s21, %s898_s21   ;;  %s670_s20 = sphi %s713_s20, %s897_s20   ;;  %s666_s19 = sphi %s711_s19, %s896_s19   ;;  %s662_s18 = sphi %s709_s18, %s895_s18  }
   0x4   : > { %s734_s24 = sadd.s32 1, %s674_s21   ;;  %s135_s25 = sadd.s32 1, %s670_s20 }
   0x5   : > { %s132_s26 = ssub.s32 %s674_s21, %s734_s24  ;;  %p145_p0 = scmp.ne.s32.totalorder %s670_s20, %s666_s19 }
   0x6   : > { %p133_p1 = scmp.eq.s32.totalorder %s132_s26, 0  ;;  %p146_p2 = scmp.eq.s32.totalorder %s730_s22, 1 }
   0x7   : > { %p151_p3 = scmp.ne.s32.totalorder %s666_s19, %s662_s18  ;;  %p152_p4 = scmp.eq.s32.totalorder %s520_s23, 1 }
   0x8   : > { %s745_s27 = scalar_select %p133_p1, %s670_s20, %s135_s25  }
   0x9   : > { %p747_p5 = por %p146_p2, %p145_p0  ;;  %p751_p6 = por %p152_p4, %p151_p3 }
   0xa   : > { %p523_p7 = scmp.ge.s32.totalorder %s674_s21, 1  ;;  %p190_p8 = scmp.lt.s32.totalorder %s674_s21, 3 }
   0xc   : > { %p191_p9 = pnand %p523_p7, %p190_p8 }
   0xd   : > { %p217_p10 = scmp.lt.s32.totalorder (!%p191_p9), %s730_s22, 1  ;;  %vm232_vm0 = vcmask (!%p191_p9), 523264   ;;  %vm251_vm1 = vcmask (!%p191_p9), 516096   ;;  %v594_v49 = vld [vmem:[%s890_s3] sm:$0xff] (!%p191_p9)   ;;  %v676_v50 = vmov (!%p191_p9), 0.0   ;;  %vm677_vm2 = vmmov (!%p191_p9), 0  }
   0xe   : > { %194 = sbr.rel (%p191_p9) target bundleno = 602 (0x25a), region = 40  ;;  %540 = vmatprep.subr.bf16.mxu0 (!%p191_p9), %v676_v50  ;;  %548 = vmatprep.mubr.msk.bf16.mxu0 (!%p191_p9), %vm677_vm2, %v676_v50  ;;  %v595_v51 = vld [vmem:[%s890_s3 + $0x8] sm:$0xff] (!%p191_p9)   ;;  %v596_v52 = vld [vmem:[%s890_s3 + $0x10] sm:$0xff] (!%p191_p9)   ;;  %v597_v53 = vld [vmem:[%s890_s3 + $0x18] sm:$0xff] (!%p191_p9)   ;;  %vm450_vm3 = vcmask (!%p191_p9), 73728   ;;  %s678_s16 = smov (!%p191_p9), [#allocation2]  }
   0xf   : > { %541 = vmatpush3.bf16.msra.mxu0 (!%p191_p9), %v594_v49  ;;  %s616_s17 = sshll.u32 (!%p191_p9), %s678_s16, 4  ;;  %s617_s17 = int_to_ptr.vmem [resolvable:$false] %s616_s17 }
  0x10   : > { %542 = vmatprep.subr.bf16.mxu0 (!%p191_p9), %v676_v50  ;;  %s618_s23 = scalar_lea.vmem (!%p191_p9), %s617_s17, 32 }
  0x13   : > { %543 = vmatpush3.bf16.msra.mxu0 (!%p191_p9), %v595_v51 }
  0x14   : > { %544 = vmatprep.subr.bf16.mxu0 (!%p191_p9), %v676_v50 }
  0x15   : > { %s218_s30 = scalar_select %p217_p10, %s730_s22, 1 }
  0x17   : > { %s552_s6 = smul.u32 56, %s218_s30  ;;  %545 = vmatpush3.bf16.msra.mxu0 %v596_v52 }
  0x18   : > { %546 = vmatprep.subr.bf16.mxu0 %v676_v50 }
  0x19   : > { %s221_s9 = scalar_lea.vmem %s887_s0, %s552_s6  ;;  %s215_s6 = sand.u32 1, %s666_s19  }
  0x1a   : > { %v223_v0 = vld [vmem:[%s221_s9] sm:$0xff]  ;;  %v225_v1 = vld [vmem:[%s221_s9 + $0x10] sm:$0xff]  ;;  %v224_v2 = vld [vmem:[%s221_s9 + $0x8] sm:$0xff]  ;;  %s216_s10 = scalar_lea.vmem [#allocation2], %s215_s6 }
  0x1b   : > { %v233_v3 = vsel %vm232_vm0, %v223_v0, 0.0  ;;  %v239_v4 = vsel %vm232_vm0, %v225_v1, 0.0  ;;  %v226_v5 = vld [vmem:[%s221_s9 + $0x18] sm:$0xff]  ;;  %v236_v6 = vsel %vm232_vm0, %v224_v2, 0.0  ;;  %v227_v8 = vld [vmem:[%s221_s9 + $0x20] sm:$0xff]  ;;  %v228_v9 = vld [vmem:[%s221_s9 + $0x28] sm:$0xff]  ;;  %547 = vmatpush3.bf16.msra.mxu0 %v597_v53 }
  0x1c   : > { %234 = vadd.xlane.f32.xlu0 %v233_v3  ;;  %240 = vadd.xlane.f32.xlu1 %v239_v4  ;;  %v242_v7 = vsel %vm232_vm0, %v226_v5, 0.0  ;;  %v245_v10 = vsel %vm232_vm0, %v227_v8, 0.0  ;;  %v248_v11 = vsel %vm232_vm0, %v228_v9, 0.0  ;;  %v229_v12 = vld [vmem:[%s221_s9 + $0x30] sm:$0x1]  ;;  %s532_s9 = sshll.u32 %s730_s22, 4 }
  0x1d   : > { %v252_v13 = vsel %vm251_vm1, %v229_v12, 0.0  ;;  %s465_s11 = sshll.u32 %s216_s10, 4  ;;  %s845_s14 = scalar_lea.hbm %s892_s5, %s532_s9  ;;  %s847_s11 = int_to_ptr.vmem [resolvable:$true] %s465_s11 }
  0x1e   : > { %s453_s22 = scalar_lea.sflag [#allocation3], %s215_s6  ;;  %s612_s15 = scalar_lea.vmem %s847_s11, 16 }
  0x1f   : > { %p613_p11 = scmp.ne.s32.totalorder %s847_s11, %s612_s15  ;;  %p619_p0 = scmp.lt.s32.totalorder %s847_s11, %s617_s17 }
  0x20   : > { %237 = vadd.xlane.f32.xlu0 %v236_v6  ;;  %243 = vadd.xlane.f32.xlu1 %v242_v7  ;;  %p620_p1 = scmp.lt.s32.totalorder %s618_s23, %s612_s15 }
  0x21   : > { %p614_p12 = pnand %p613_p11, %p747_p5 }
  0x22   : > { %p621_p2 = por %p620_p1, %p619_p0 }
  0x23   : > { %p615_p13 = pneg %p614_p12 }
  0x24   : > { %246 = vadd.xlane.f32.xlu0 %v245_v10  ;;  %249 = vadd.xlane.f32.xlu1 %v248_v11 }
  0x25   : > { %p622_p3 = pnand %p621_p2, %p615_p13 }
  0x28   : > { %253 = vadd.xlane.f32.xlu0 %v252_v13 }
  0xa9   : > { %v235_v14 = vpop.xlane.xlu0 %234  ;;  %v241_v15 = vpop.xlane.xlu1 %240 }
  0xaa   : > { %v256_v16 = vmul.f32 0.015625, %v235_v14  ;;  %v258_v17 = vmul.f32 0.015625, %v241_v15 }
  0xac   : > { %v769_v18 = vsub.f32 %v223_v0, %v256_v16  ;;  %v771_v19 = vsub.f32 %v225_v1, %v258_v17  ;;  %v526_v17 = vld [vmem:[%s889_s2] ss:$0 sm:$0xff] }
  0xad   : > { %v238_v20 = vpop.xlane.xlu0 %237  ;;  %v244_v21 = vpop.xlane.xlu1 %243 }
  0xae   : > { %v257_v22 = vmul.f32 0.015625, %v238_v20  ;;  %v259_v23 = vmul.f32 0.015625, %v244_v21  ;;  %v270_v24 = vmul.f32 %v769_v18, %v769_v18  ;;  %v272_v25 = vmul.f32 %v771_v19, %v771_v19 }
  0xb0   : > { %v777_v26 = vsub.f32 %v224_v2, %v257_v22  ;;  %v779_v27 = vsub.f32 %v226_v5, %v259_v23  ;;  %v277_v28 = vsel %vm232_vm0, %v270_v24, 0.0  ;;  %v283_v31 = vsel %vm232_vm0, %v272_v25, 0.0 }
  0xb1   : > { %278 = vadd.xlane.f32.xlu1 %v277_v28  ;;  %v247_v29 = vpop.xlane.xlu0 %246  ;;  %v250_v30 = vpop.xlane.xlu1 %249 }
  0xb2   : > { %v260_v32 = vmul.f32 0.015625, %v247_v29  ;;  %v261_v33 = vmul.f32 0.015625, %v250_v30  ;;  %v271_v34 = vmul.f32 %v777_v26, %v777_v26  ;;  %v273_v35 = vmul.f32 %v779_v27, %v779_v27 }
  0xb4   : > { %v787_v36 = vsub.f32 %v227_v8, %v260_v32  ;;  %v789_v37 = vsub.f32 %v228_v9, %v261_v33  ;;  %v280_v38 = vsel %vm232_vm0, %v271_v34, 0.0  ;;  %v286_v41 = vsel %vm232_vm0, %v273_v35, 0.0 }
  0xb5   : > { %284 = vadd.xlane.f32.xlu1 %v283_v31  ;;  %281 = vadd.xlane.f32.xlu0 %v280_v38  ;;  %v254_v39 = vpop.xlane.xlu0 %253 }
  0xb6   : > { %v262_v40 = vmul.f32 0.015625, %v254_v39  ;;  %v274_v42 = vmul.f32 %v787_v36, %v787_v36  ;;  %v275_v43 = vmul.f32 %v789_v37, %v789_v37 }
  0xb8   : > { %v797_v44 = vsub.f32 %v229_v12, %v262_v40  ;;  %v289_v45 = vsel %vm232_vm0, %v274_v42, 0.0  ;;  %v292_v46 = vsel %vm232_vm0, %v275_v43, 0.0  ;;  %v525_v12 = vld [vmem:[%s888_s1] ss:$0 sm:$0xff] }
  0xb9   : > { %287 = vadd.xlane.f32.xlu0 %v286_v41  ;;  %290 = vadd.xlane.f32.xlu1 %v289_v45 }
  0xba   : > { %v276_v47 = vmul.f32 %v797_v44, %v797_v44 }
  0xbc   : > { %v295_v48 = vsel %vm251_vm1, %v276_v47, 0.0 }
  0xbd   : > { %293 = vadd.xlane.f32.xlu0 %v292_v46  ;;  %296 = vadd.xlane.f32.xlu1 %v295_v48 }
 0x13e   : > { %v279_v54 = vpop.xlane.xlu1 %278 }
 0x13f   : > { %v298_v55 = vmul.f32 0.015625, %v279_v54 }
 0x141   : > { %v305_v56 = vadd.f32 1e-05, %v298_v55 }
 0x142   : > { %v285_v57 = vpop.xlane.xlu1 %284  ;;  %v282_v58 = vpop.xlane.xlu0 %281 }
 0x143   : > { %598 = vrsqrt.f32 %v305_v56  ;;  %v300_v59 = vmul.f32 0.015625, %v285_v57  ;;  %v299_v60 = vmul.f32 0.015625, %v282_v58 }
 0x145   : > { %v307_v61 = vadd.f32 1e-05, %v300_v59  ;;  %v306_v62 = vadd.f32 1e-05, %v299_v60 }
 0x146   : > { %v291_v63 = vpop.xlane.xlu1 %290  ;;  %v288_v0 = vpop.xlane.xlu0 %287 }
 0x147   : > { %600 = vrsqrt.f32 %v307_v61  ;;  %v302_v1 = vmul.f32 0.015625, %v291_v63  ;;  %v301_v2 = vmul.f32 0.015625, %v288_v0 }
 0x148   : > { %602 = vrsqrt.f32 %v306_v62  ;;  %v382_v62 = vld [vmem:[%s891_s4] sm:$0x1] }
 0x149   : > { %v309_v3 = vadd.f32 1e-05, %v302_v1  ;;  %v308_v4 = vadd.f32 1e-05, %v301_v2 }
 0x14a   : > { %v297_v5 = vpop.xlane.xlu1 %296  ;;  %v294_v6 = vpop.xlane.xlu0 %293 }
 0x14b   : > { %604 = vrsqrt.f32 %v309_v3  ;;  %v304_v7 = vmul.f32 0.015625, %v297_v5  ;;  %v303_v8 = vmul.f32 0.015625, %v294_v6 }
 0x14c   : > { %606 = vrsqrt.f32 %v308_v4 }
 0x14d   : > { %v599_v9 = vpop.eup %598  ;;  %v311_v10 = vadd.f32 1e-05, %v304_v7  ;;  %v310_v11 = vadd.f32 1e-05, %v303_v8 }
 0x14e   : > { %v319_v13 = vmul.f32 %v599_v9, %v769_v18 }
 0x14f   : > { %608 = vrsqrt.f32 %v311_v10 }
 0x150   : > { %610 = vrsqrt.f32 %v310_v11  ;;  %v332_v15 = vmul.f32 %v525_v12, %v319_v13 }
 0x151   : > { %v601_v14 = vpop.eup %600 }
 0x152   : > { %v603_v16 = vpop.eup %602  ;;  %v321_v20 = vmul.f32 %v601_v14, %v771_v19  ;;  %v345_v24 = vadd.f32 %v526_v17, %v332_v15 }
 0x153   : > { %v320_v21 = vmul.f32 %v603_v16, %v777_v26 }
 0x154   : > { %v334_v22 = vmul.f32 %v525_v12, %v321_v20  ;;  %v352_v34 = vsel %vm232_vm0, %v345_v24, 0.0 }
 0x155   : > { %v605_v23 = vpop.eup %604  ;;  %v333_v25 = vmul.f32 %v525_v12, %v320_v21 }
 0x156   : > { %v607_v28 = vpop.eup %606  ;;  %v323_v18 = vmul.f32 %v605_v23, %v787_v36  ;;  %v347_v29 = vadd.f32 %v526_v17, %v334_v22 }
 0x157   : > { %v346_v30 = vadd.f32 %v526_v17, %v333_v25  ;;  %v322_v31 = vmul.f32 %v607_v28, %v779_v27 }
 0x158   : > { %v336_v32 = vmul.f32 %v525_v12, %v323_v18  ;;  %v355_v40 = vsel %vm232_vm0, %v347_v29, 0.0 }
 0x159   : > { %v609_v33 = vpop.eup %608  ;;  %v353_v35 = vsel %vm232_vm0, %v346_v30, 0.0  ;;  %v335_v19 = vmul.f32 %v525_v12, %v322_v31 }
 0x15a   : > { %v611_v38 = vpop.eup %610  ;;  %v354_v26 = vadd.f32 %v353_v35, %v352_v34  ;;  %v325_v39 = vmul.f32 %v609_v33, %v797_v44  ;;  %v349_v41 = vadd.f32 %v526_v17, %v336_v32 }
 0x15b   : > { %v348_v42 = vadd.f32 %v526_v17, %v335_v19  ;;  %v324_v36 = vmul.f32 %v611_v38, %v789_v37 }
 0x15c   : > { %v356_v43 = vadd.f32 %v355_v40, %v354_v26  ;;  %v338_v45 = vmul.f32 %v525_v12, %v325_v39  ;;  %v359_v48 = vsel %vm232_vm0, %v349_v41, 0.0 }
 0x15d   : > { %v357_v27 = vsel %vm232_vm0, %v348_v42, 0.0  ;;  %v337_v46 = vmul.f32 %v525_v12, %v324_v36 }
 0x15e   : > { %v358_v47 = vadd.f32 %v357_v27, %v356_v43  ;;  %v351_v49 = vadd.f32 %v526_v17, %v338_v45 }
 0x15f   : > { %v350_v50 = vadd.f32 %v526_v17, %v337_v46 }
 0x160   : > { %v360_v51 = vadd.f32 %v359_v48, %v358_v47  ;;  %v363_v53 = vsel %vm251_vm1, %v351_v49, 0.0 }
 0x161   : > { %v361_v44 = vsel %vm232_vm0, %v350_v50, 0.0 }
 0x162   : > { %v362_v52 = vadd.f32 %v361_v44, %v360_v51 }
 0x164   : > { %v364_v54 = vadd.f32 %v363_v53, %v362_v52 }
 0x166   : > { %v365_v37 = vrot.slane %v364_v54, 4 }
 0x168   : > { %v366_v55 = vadd.f32 %v365_v37, %v364_v54 }
 0x16a   : > { %v367_v56 = vrot.slane %v366_v55, 2 }
 0x16c   : > { %v368_v57 = vadd.f32 %v367_v56, %v366_v55 }
 0x16e   : > { %v369_v58 = vrot.slane %v368_v57, 1 }
 0x170   : > { %v370_v59 = vadd.f32 %v369_v58, %v368_v57 }
 0x172   : > { %v372_v60 = vmul.f32 0.020408163, %v370_v59 }
 0x174   : > { %v373_v61 = vpack.c.bf16 %v372_v60, %v372_v60 }
 0x176   : > { %549 = vmatmul.mubr.msk.bf16.vlgmr.msra.gmra.mrb[0].mxu0 %vm232_vm0, %v373_v61 }
 0x249   : > { %v444_v63 = vpop.f32.mrb[0].mxu0 }
 0x24a   : > { %v445_v0 = vadd.f32 %v444_v63, %v382_v62  ;;  %v550_v1 = vpop.f32.mrb[1].mxu0 }
 0x24b   : > { %v447_v2 = vpop.f32.mrb[2].mxu0 }
 0x24c   : > { %v551_v3 = vpop.f32.mrb[3].mxu0  ;;  %451 = vst.msk [vmem:[%s216_s10] sm:$0x1] %vm450_vm3, %v445_v0 }
 0x24d   : > { %625 = shalt.err (!%p622_p3)
}
 0x24e   : > { %s626_s25 = scalar_lea.hbm %s845_s14, 16  ;;  %s630_s6 = scalar_lea.hbm %s892_s5, 32 }
 0x24f   : > { %p627_p4 = scmp.ne.s32.totalorder %s845_s14, %s626_s25  ;;  %p631_p9 = scmp.lt.u32.totalorder %s845_s14, %s892_s5 }
 0x250   : > { %p632_p10 = scmp.lt.u32.totalorder %s630_s6, %s626_s25  ;;  %p634_p12 = scmp.lt.u32.totalorder %s626_s25, %s845_s14 }
 0x251   : > { %p628_p7 = pnand %p627_p4, %p747_p5 }
 0x252   : > { %p633_p11 = por %p632_p10, %p631_p9 }
 0x253   : > { %p629_p8 = pneg %p628_p7 }
 0x254   : > { %p635_p13 = por %p634_p12, %p633_p11 }
 0x256   : > { %p636_p0 = pnand %p635_p13, %p629_p8 }
 0x258   : > { %639 = shalt.err (!%p636_p0)
}
 0x259   : > { %553 = dma.vmem_to_hbm [thread:$0]  (%p747_p5), %s847_s11, 16, %s845_s14, %s453_s22  }
 0x25a PF: > { %p559_p1 = scmp.ge.s32.totalorder %s674_s21, 2  ;;  %s477_s9 = sand.u32 1, %s662_s18  }
 0x25b   : > { %s478_s10 = scalar_lea.sflag [#allocation3], %s477_s9 }
 0x25c   : > { %p556_p2 = pnand %p559_p1, %p751_p6 }
 0x25e   : > { %657 = dma.done.wait (!%p556_p2), %s478_s10, 16  }
 0x25f   : > { %659 = vsyncadd (!%p556_p2), %s478_s10, 4294967280  ;;  %p15_p3 = scmp.ge.s32.totalorder %s734_s24, 4   ;;  %s895_s18 = smov %s666_s19 }
 0x260   : > { %s896_s19 = smov %s670_s20  ;;  %s897_s20 = smov %s745_s27 }
 0x261   : > { %s898_s21 = smov %s734_s24  ;;  %17 = sbr.rel (!%p15_p3) target bundleno = 3 (0x3), region = 75 }
 0x268   :  { %482 = vsyncpa [#allocation3], 1 }
 0x269   :  { %484 = vsyncpa [#allocation3 + $0x1], 1 }

// kernel: _lambda_.8
= control target key start
LH: loop header
LB: loop body
LE: loop exit
PB: predicated region body
PF: predicated region fallthrough
CT: control target
= control target key end

     0   :  { %s5922_s29 = smov 0   ;;  %s8954_s0 = inlined_call_operand.vmem [shape: f32[2,196,32], index: 0, kind: input, shape index: {}]   ;;  %s8955_s1 = inlined_call_operand.vmem [shape: f32[1,32], index: 1, kind: input, shape index: {}, may-alias: {1,8}]   ;;  %s8956_s2 = inlined_call_operand.vmem [shape: f32[1,32], index: 2, kind: input, shape index: {}, may-alias: {2,6,9,13}]   ;;  %s8957_s3 = inlined_call_operand.vmem [shape: bf16[32,96], index: 3, kind: input, shape index: {}]   ;;  %s8958_s4 = inlined_call_operand.vmem [shape: f32[1,96], index: 4, kind: input, shape index: {}]   ;;  %s8959_s5 = inlined_call_operand.vmem [shape: bf16[32,32], index: 5, kind: input, shape index: {}]   ;;  %s8960_s6 = inlined_call_operand.vmem [shape: f32[1,32], index: 6, kind: input, shape index: {}, may-alias: {2,6,9,13}]   ;;  %s8961_s7 = inlined_call_operand.vmem [shape: f32[2,196,196], index: 7, kind: input, shape index: {}]   ;;  %s8962_s8 = inlined_call_operand.vmem [shape: f32[1,32], index: 8, kind: input, shape index: {}, may-alias: {1,8}]   ;;  %s8963_s9 = inlined_call_operand.vmem [shape: f32[1,32], index: 9, kind: input, shape index: {}, may-alias: {2,6,9,13}]   ;;  %s8964_s10 = inlined_call_operand.vmem [shape: bf16[32,128], index: 10, kind: input, shape index: {}]   ;;  %s8965_s11 = inlined_call_operand.vmem [shape: f32[1,128], index: 11, kind: input, shape index: {}]   ;;  %s8966_s12 = inlined_call_operand.vmem [shape: bf16[128,32], index: 12, kind: input, shape index: {}]   ;;  %s8967_s13 = inlined_call_operand.vmem [shape: f32[1,32], index: 13, kind: input, shape index: {}, may-alias: {2,6,9,13}]   ;;  %s8968_s14 = inlined_call_operand.vmem [shape: f32[2,196,32], index: 14, kind: output, shape index: {}]  }
   0x1 LB: > { %s4773_s30 = sadd.s32 4294967295, %s5837_s29   ;;  %p4777_p0 = scmp.ge.s32.totalorder %s5837_s29, 1  ;;  %s5837_s29 = sphi %s5922_s29, %s24_s29  }
   0x2   : > { %p412_p1 = scmp.lt.s32.totalorder %s5837_s29, 3 }
   0x4   : > { %p413_p2 = pnand %p4777_p0, %p412_p1 }
   0x6   : > { %416 = sbr.rel (%p413_p2) target bundleno = 2924 (0xb6c), region = 76 }
   0xd   : > { %p458_p3 = scmp.lt.s32.totalorder %s4773_s30, 1  ;;  %vm496_vm0 = vcmask 261120   ;;  %vm569_vm1 = vcmask 257024   ;;  %vm5840_vm2 = vmmov 0   ;;  %s5842_s16 = smov 96   ;;  %vm1241_vm3 = vcmask 130048  }
   0xe   : > { %s5843_s17 = smov 80   ;;  %s5844_s19 = smov 112   ;;  %vm2014_vm4 = vcmask 1041408   ;;  %vm1481_vm5 = vcmask 556032   ;;  %vm1578_vm6 = vcmask 1043456   ;;  %vm1580_vm7 = vcmask 551936  }
   0xf   : > { %s9264_s30 = smov (!%p458_p3, %s4773_s30), 1  ;;  %s5845_s20 = smov 64  }
  0x10   : > { %s5325_s15 = smul.u32 200, %s9264_s30  ;;  %s5846_s21 = smov 48  }
  0x12   : > { %s5938_s18 = scalar_lea.vmem %s8954_s0, %s5325_s15 }
  0x13   : > { %v5941_v0 = vld [vmem:[%s5938_s18] sm:$0xff]  ;;  %v5944_v1 = vld [vmem:[%s5938_s18 + $0x8] sm:$0xff]  ;;  %v5947_v2 = vld [vmem:[%s5938_s18 + $0x10] sm:$0xff] }
  0x14   : > { %v497_v3 = vsel %vm496_vm0, %v5941_v0, 0.0  ;;  %v503_v4 = vsel %vm496_vm0, %v5947_v2, 0.0  ;;  %v5954_v5 = vld [vmem:[%s5938_s18 + $0x18] sm:$0xff]  ;;  %v500_v6 = vsel %vm496_vm0, %v5944_v1, 0.0  ;;  %v5961_v8 = vld [vmem:[%s5938_s18 + $0x20] sm:$0xff]  ;;  %v5964_v9 = vld [vmem:[%s5938_s18 + $0x28] sm:$0xff] }
  0x15   : > { %498 = vadd.xlane.f32.xlu0 %v497_v3  ;;  %504 = vadd.xlane.f32.xlu1 %v503_v4  ;;  %v506_v7 = vsel %vm496_vm0, %v5954_v5, 0.0  ;;  %v509_v10 = vsel %vm496_vm0, %v5961_v8, 0.0  ;;  %v5969_v11 = vld [vmem:[%s5938_s18 + $0x38] sm:$0xff]  ;;  %v512_v12 = vsel %vm496_vm0, %v5964_v9, 0.0  ;;  %v5974_v13 = vld [vmem:[%s5938_s18 + $0x30] sm:$0xff]  ;;  %v5981_v16 = vld [vmem:[%s5938_s18 + $0x48] sm:$0xff] }
  0x16   : > { %v518_v14 = vsel %vm496_vm0, %v5969_v11, 0.0  ;;  %v515_v15 = vsel %vm496_vm0, %v5974_v13, 0.0  ;;  %v5984_v17 = vld [vmem:[%s5938_s18 + $0x40] sm:$0xff]  ;;  %v524_v18 = vsel %vm496_vm0, %v5981_v16, 0.0  ;;  %v5991_v20 = vld [vmem:[%s5938_s18 + $0x58] sm:$0xff]  ;;  %v5994_v21 = vld [vmem:[%s5938_s18 + $0x50] sm:$0xff] }
  0x17   : > { %v521_v19 = vsel %vm496_vm0, %v5984_v17, 0.0  ;;  %v530_v22 = vsel %vm496_vm0, %v5991_v20, 0.0  ;;  %v527_v23 = vsel %vm496_vm0, %v5994_v21, 0.0  ;;  %v6001_v24 = vld [vmem:[%s5938_s18 + $0x68] sm:$0xff]  ;;  %v6004_v25 = vld [vmem:[%s5938_s18 + $0x60] sm:$0xff]  ;;  %v6011_v28 = vld [vmem:[%s5938_s18 + $0x78] sm:$0xff] }
  0x18   : > { %v536_v26 = vsel %vm496_vm0, %v6001_v24, 0.0  ;;  %v533_v27 = vsel %vm496_vm0, %v6004_v25, 0.0  ;;  %v6014_v29 = vld [vmem:[%s5938_s18 + $0x70] sm:$0xff]  ;;  %v542_v30 = vsel %vm496_vm0, %v6011_v28, 0.0  ;;  %v6021_v32 = vld [vmem:[%s5938_s18 + $0x88] sm:$0xff]  ;;  %v6024_v33 = vld [vmem:[%s5938_s18 + $0x80] sm:$0xff] }
  0x19   : > { %501 = vadd.xlane.f32.xlu0 %v500_v6  ;;  %507 = vadd.xlane.f32.xlu1 %v506_v7  ;;  %v539_v31 = vsel %vm496_vm0, %v6014_v29, 0.0  ;;  %v548_v34 = vsel %vm496_vm0, %v6021_v32, 0.0  ;;  %v545_v35 = vsel %vm496_vm0, %v6024_v33, 0.0  ;;  %v6031_v36 = vld [vmem:[%s5938_s18 + $0x98] sm:$0xff]  ;;  %v6034_v37 = vld [vmem:[%s5938_s18 + $0x90] sm:$0xff]  ;;  %v6049_v51 = vld [vmem:[%s5938_s18 + $0xa0] sm:$0xff] }
  0x1a   : > { %v554_v38 = vsel %vm496_vm0, %v6031_v36, 0.0  ;;  %v551_v39 = vsel %vm496_vm0, %v6034_v37, 0.0  ;;  %v557_v54 = vsel %vm496_vm0, %v6049_v51, 0.0  ;;  %v6065_v61 = vld [vmem:[%s5938_s18 + $0xa8] sm:$0xff]  ;;  %v6077_v6 = vld [vmem:[%s5938_s18 + $0xb0] sm:$0xff] }
  0x1b   : > { %v560_v3 = vsel %vm496_vm0, %v6065_v61, 0.0 }
  0x1d   : > { %510 = vadd.xlane.f32.xlu0 %v509_v10  ;;  %513 = vadd.xlane.f32.xlu1 %v512_v12 }
  0x21   : > { %519 = vadd.xlane.f32.xlu1 %v518_v14  ;;  %516 = vadd.xlane.f32.xlu0 %v515_v15 }
  0x25   : > { %525 = vadd.xlane.f32.xlu1 %v524_v18  ;;  %522 = vadd.xlane.f32.xlu0 %v521_v19  ;;  %v563_v18 = vsel %vm496_vm0, %v6077_v6, 0.0  ;;  %v6086_v19 = vld [vmem:[%s5938_s18 + $0xb8] sm:$0xff] }
  0x29   : > { %531 = vadd.xlane.f32.xlu1 %v530_v22  ;;  %528 = vadd.xlane.f32.xlu0 %v527_v23  ;;  %v566_v23 = vsel %vm496_vm0, %v6086_v19, 0.0 }
  0x2d   : > { %537 = vadd.xlane.f32.xlu1 %v536_v26  ;;  %534 = vadd.xlane.f32.xlu0 %v533_v27 }
  0x31   : > { %543 = vadd.xlane.f32.xlu1 %v542_v30  ;;  %540 = vadd.xlane.f32.xlu0 %v539_v31 }
  0x35   : > { %549 = vadd.xlane.f32.xlu1 %v548_v34  ;;  %546 = vadd.xlane.f32.xlu0 %v545_v35 }
  0x39   : > { %555 = vadd.xlane.f32.xlu1 %v554_v38  ;;  %552 = vadd.xlane.f32.xlu0 %v551_v39  ;;  %v6102_v38 = vld [vmem:[%s5938_s18 + $0xc0] sm:$0xf] }
  0xa2   : > { %v499_v40 = vpop.xlane.xlu0 %498  ;;  %v505_v41 = vpop.xlane.xlu1 %504 }
  0xa3   : > { %v574_v42 = vmul.f32 0.03125, %v499_v40  ;;  %v576_v43 = vmul.f32 0.03125, %v505_v41 }
  0xa5   : > { %v6041_v44 = vsub.f32 %v5941_v0, %v574_v42  ;;  %v6044_v48 = vsub.f32 %v5947_v2, %v576_v43 }
  0xa6   : > { %v502_v45 = vpop.xlane.xlu0 %501  ;;  %v508_v46 = vpop.xlane.xlu1 %507 }
  0xa7   : > { %v575_v47 = vmul.f32 0.03125, %v502_v45  ;;  %v624_v49 = vmul.f32 %v6041_v44, %v6041_v44  ;;  %v577_v50 = vmul.f32 0.03125, %v508_v46  ;;  %v626_v59 = vmul.f32 %v6044_v48, %v6044_v48 }
  0xa9   : > { %v6052_v52 = vsub.f32 %v5944_v1, %v575_v47  ;;  %v649_v53 = vsel %vm496_vm0, %v624_v49, 0.0  ;;  %v6058_v57 = vsub.f32 %v5954_v5, %v577_v50  ;;  %v655_v2 = vsel %vm496_vm0, %v626_v59, 0.0 }
  0xaa   : > { %650 = vadd.xlane.f32.xlu0 %v649_v53  ;;  %v511_v55 = vpop.xlane.xlu0 %510  ;;  %v514_v56 = vpop.xlane.xlu1 %513 }
  0xab   : > { %v625_v58 = vmul.f32 %v6052_v52, %v6052_v52  ;;  %v578_v60 = vmul.f32 0.03125, %v511_v55  ;;  %v579_v63 = vmul.f32 0.03125, %v514_v56  ;;  %v627_v5 = vmul.f32 %v6058_v57, %v6058_v57 }
  0xad   : > { %v652_v62 = vsel %vm496_vm0, %v625_v58, 0.0  ;;  %v6072_v4 = vsub.f32 %v5961_v8, %v578_v60  ;;  %v6080_v7 = vsub.f32 %v5964_v9, %v579_v63  ;;  %v658_v8 = vsel %vm496_vm0, %v627_v5, 0.0 }
  0xae   : > { %558 = vadd.xlane.f32.xlu0 %v557_v54  ;;  %653 = vadd.xlane.f32.xlu1 %v652_v62  ;;  %v520_v0 = vpop.xlane.xlu1 %519  ;;  %v517_v1 = vpop.xlane.xlu0 %516 }
  0xaf   : > { %v581_v10 = vmul.f32 0.03125, %v520_v0  ;;  %v580_v12 = vmul.f32 0.03125, %v517_v1  ;;  %v628_v22 = vmul.f32 %v6072_v4, %v6072_v4  ;;  %v629_v27 = vmul.f32 %v6080_v7, %v6080_v7 }
  0xb1   : > { %v6091_v9 = vsub.f32 %v5969_v11, %v581_v10  ;;  %v6096_v26 = vsub.f32 %v5974_v13, %v580_v12  ;;  %v661_v34 = vsel %vm496_vm0, %v628_v22, 0.0  ;;  %v664_v11 = vsel %vm496_vm0, %v629_v27, 0.0 }
  0xb2   : > { %656 = vadd.xlane.f32.xlu0 %v655_v2  ;;  %561 = vadd.xlane.f32.xlu1 %v560_v3  ;;  %v526_v14 = vpop.xlane.xlu1 %525  ;;  %v523_v15 = vpop.xlane.xlu0 %522  ;;  %v570_v13 = vsel %vm569_vm1, %v6102_v38, 0.0 }
  0xb3   : > { %v583_v35 = vmul.f32 0.03125, %v526_v14  ;;  %v582_v39 = vmul.f32 0.03125, %v523_v15  ;;  %v631_v40 = vmul.f32 %v6091_v9, %v6091_v9  ;;  %v630_v41 = vmul.f32 %v6096_v26, %v6096_v26 }
  0xb5   : > { %v6112_v45 = vsub.f32 %v5981_v16, %v583_v35  ;;  %v6115_v46 = vsub.f32 %v5984_v17, %v582_v39  ;;  %v670_v53 = vsel %vm496_vm0, %v631_v40, 0.0  ;;  %v667_v54 = vsel %vm496_vm0, %v630_v41, 0.0 }
  0xb6   : > { %564 = vadd.xlane.f32.xlu0 %v563_v18  ;;  %659 = vadd.xlane.f32.xlu1 %v658_v8  ;;  %v532_v30 = vpop.xlane.xlu1 %531  ;;  %v529_v31 = vpop.xlane.xlu0 %528  ;;  %v8969_v40 = vmov 0.0  }
  0xb7   : > { %v585_v47 = vmul.f32 0.03125, %v532_v30  ;;  %v584_v49 = vmul.f32 0.03125, %v529_v31  ;;  %v633_v17 = vmul.f32 %v6112_v45, %v6112_v45  ;;  %v632_v60 = vmul.f32 %v6115_v46, %v6115_v46  ;;  %5037 = vmatprep.subr.bf16.mxu0 %v8969_v40  ;;  %5041 = vmatprep.mubr.msk.bf16.mxu0 %vm5840_vm2, %v8969_v40 }
  0xb9   : > { %v6120_v59 = vsub.f32 %v5991_v20, %v585_v47  ;;  %v6123_v16 = vsub.f32 %v5994_v21, %v584_v49  ;;  %v676_v21 = vsel %vm496_vm0, %v633_v17, 0.0  ;;  %v673_v3 = vsel %vm496_vm0, %v632_v60, 0.0  ;;  %v5343_v49 = vld [vmem:[%s8957_s3 + $0x8] sm:$0xff]  }
  0xba   : > { %567 = vadd.xlane.f32.xlu1 %v566_v23  ;;  %662 = vadd.xlane.f32.xlu0 %v661_v34  ;;  %v538_v42 = vpop.xlane.xlu1 %537  ;;  %v535_v43 = vpop.xlane.xlu0 %534  ;;  %v5342_v34 = vld [vmem:[%s8957_s3] sm:$0xff]  }
  0xbb   : > { %v587_v50 = vmul.f32 0.03125, %v538_v42  ;;  %v586_v55 = vmul.f32 0.03125, %v535_v43  ;;  %v635_v5 = vmul.f32 %v6120_v59, %v6120_v59  ;;  %5038 = vmatpush3.bf16.msra.mxu0 %v5342_v34 }
  0xbc   : > { %5039 = vmatprep.subr.bf16.mxu0 %v8969_v40 }
  0xbd   : > { %v6130_v62 = vsub.f32 %v6001_v24, %v587_v50  ;;  %v6133_v63 = vsub.f32 %v6004_v25, %v586_v55  ;;  %v634_v24 = vmul.f32 %v6123_v16, %v6123_v16  ;;  %v682_v15 = vsel %vm496_vm0, %v635_v5, 0.0 }
  0xbe   : > { %665 = vadd.xlane.f32.xlu1 %v664_v11  ;;  %571 = vadd.xlane.f32.xlu0 %v570_v13  ;;  %v544_v56 = vpop.xlane.xlu1 %543  ;;  %v541_v58 = vpop.xlane.xlu0 %540 }
  0xbf   : > { %v589_v0 = vmul.f32 0.03125, %v544_v56  ;;  %v588_v20 = vmul.f32 0.03125, %v541_v58  ;;  %v637_v10 = vmul.f32 %v6130_v62, %v6130_v62  ;;  %v636_v14 = vmul.f32 %v6133_v63, %v6133_v63  ;;  %5040 = vmatpush3.bf16.msra.mxu0 %v5343_v49 }
  0xc0   : > { %v679_v18 = vsel %vm496_vm0, %v634_v24, 0.0 }
  0xc1   : > { %v6144_v25 = vsub.f32 %v6011_v28, %v589_v0  ;;  %v6147_v12 = vsub.f32 %v6014_v29, %v588_v20  ;;  %v688_v30 = vsel %vm496_vm0, %v637_v10, 0.0  ;;  %v685_v28 = vsel %vm496_vm0, %v636_v14, 0.0 }
  0xc2   : > { %671 = vadd.xlane.f32.xlu0 %v670_v53  ;;  %668 = vadd.xlane.f32.xlu1 %v667_v54  ;;  %v550_v1 = vpop.xlane.xlu1 %549  ;;  %v547_v2 = vpop.xlane.xlu0 %546 }
  0xc3   : > { %v591_v8 = vmul.f32 0.03125, %v550_v1  ;;  %v590_v22 = vmul.f32 0.03125, %v547_v2  ;;  %v639_v29 = vmul.f32 %v6144_v25, %v6144_v25  ;;  %v638_v31 = vmul.f32 %v6147_v12, %v6147_v12 }
  0xc5   : > { %v6163_v35 = vsub.f32 %v6021_v32, %v591_v8  ;;  %v6166_v39 = vsub.f32 %v6024_v33, %v590_v22  ;;  %v694_v41 = vsel %vm496_vm0, %v639_v29, 0.0  ;;  %v691_v42 = vsel %vm496_vm0, %v638_v31, 0.0 }
  0xc6   : > { %677 = vadd.xlane.f32.xlu0 %v676_v21  ;;  %674 = vadd.xlane.f32.xlu1 %v673_v3  ;;  %v556_v23 = vpop.xlane.xlu1 %555  ;;  %v553_v27 = vpop.xlane.xlu0 %552 }
  0xc7   : > { %v593_v11 = vmul.f32 0.03125, %v556_v23  ;;  %v592_v13 = vmul.f32 0.03125, %v553_v27  ;;  %v641_v43 = vmul.f32 %v6163_v35, %v6163_v35  ;;  %v640_v47 = vmul.f32 %v6166_v39, %v6166_v39 }
  0xc9   : > { %v6173_v32 = vsub.f32 %v6031_v36, %v593_v11  ;;  %v6176_v33 = vsub.f32 %v6034_v37, %v592_v13  ;;  %v700_v50 = vsel %vm496_vm0, %v641_v43, 0.0  ;;  %v697_v36 = vsel %vm496_vm0, %v640_v47, 0.0  ;;  %v6216_v47 = vld [vmem:[%s8955_s1] ss:$0 sm:$0xff] }
  0xca   : > { %683 = vadd.xlane.f32.xlu0 %v682_v15  ;;  %680 = vadd.xlane.f32.xlu1 %v679_v18 }
  0xcb   : > { %v643_v37 = vmul.f32 %v6173_v32, %v6173_v32  ;;  %v642_v53 = vmul.f32 %v6176_v33, %v6176_v33 }
  0xcd   : > { %v706_v54 = vsel %vm496_vm0, %v643_v37, 0.0  ;;  %v703_v55 = vsel %vm496_vm0, %v642_v53, 0.0 }
  0xce   : > { %689 = vadd.xlane.f32.xlu0 %v688_v30  ;;  %686 = vadd.xlane.f32.xlu1 %v685_v28 }
  0xd2   : > { %695 = vadd.xlane.f32.xlu0 %v694_v41  ;;  %692 = vadd.xlane.f32.xlu1 %v691_v42 }
  0xd6   : > { %701 = vadd.xlane.f32.xlu0 %v700_v50  ;;  %698 = vadd.xlane.f32.xlu1 %v697_v36 }
  0xda   : > { %707 = vadd.xlane.f32.xlu0 %v706_v54  ;;  %704 = vadd.xlane.f32.xlu1 %v703_v55 }
 0x137   : > { %v651_v56 = vpop.xlane.xlu0 %650 }
 0x138   : > { %v724_v58 = vmul.f32 0.03125, %v651_v56 }
 0x13a   : > { %v749_v17 = vadd.f32 1e-05, %v724_v58 }
 0x13b   : > { %v654_v60 = vpop.xlane.xlu1 %653  ;;  %v559_v0 = vpop.xlane.xlu0 %558 }
 0x13c   : > { %5356 = vrsqrt.f32 %v749_v17  ;;  %v725_v20 = vmul.f32 0.03125, %v654_v60  ;;  %v594_v1 = vmul.f32 0.03125, %v559_v0 }
 0x13e   : > { %v750_v2 = vadd.f32 1e-05, %v725_v20  ;;  %v6196_v21 = vsub.f32 %v6049_v51, %v594_v1 }
 0x13f   : > { %v562_v3 = vpop.xlane.xlu1 %561  ;;  %v657_v5 = vpop.xlane.xlu0 %656 }
 0x140   : > { %5358 = vrsqrt.f32 %v750_v2  ;;  %v595_v24 = vmul.f32 0.03125, %v562_v3  ;;  %v726_v10 = vmul.f32 0.03125, %v657_v5  ;;  %v644_v14 = vmul.f32 %v6196_v21, %v6196_v21 }
 0x142   : > { %v6201_v15 = vsub.f32 %v6065_v61, %v595_v24  ;;  %v751_v18 = vadd.f32 1e-05, %v726_v10  ;;  %v709_v8 = vsel %vm496_vm0, %v644_v14, 0.0 }
 0x143   : > { %v660_v22 = vpop.xlane.xlu1 %659  ;;  %710 = vadd.xlane.f32.xlu1 %v709_v8  ;;  %v565_v23 = vpop.xlane.xlu0 %564 }
 0x144   : > { %5360 = vrsqrt.f32 %v751_v18  ;;  %v727_v51 = vmul.f32 0.03125, %v660_v22  ;;  %v596_v27 = vmul.f32 0.03125, %v565_v23  ;;  %v645_v30 = vmul.f32 %v6201_v15, %v6201_v15 }
 0x146   : > { %v5357_v28 = vpop.eup %5356  ;;  %v752_v29 = vadd.f32 1e-05, %v727_v51  ;;  %v6207_v31 = vsub.f32 %v6077_v6, %v596_v27  ;;  %v712_v61 = vsel %vm496_vm0, %v645_v30, 0.0 }
 0x147   : > { %v568_v34 = vpop.xlane.xlu1 %567  ;;  %713 = vadd.xlane.f32.xlu0 %v712_v61  ;;  %v663_v11 = vpop.xlane.xlu0 %662  ;;  %v799_v13 = vmul.f32 %v5357_v28, %v6041_v44 }
 0x148   : > { %5362 = vrsqrt.f32 %v752_v29  ;;  %v597_v41 = vmul.f32 0.03125, %v568_v34  ;;  %v728_v42 = vmul.f32 0.03125, %v663_v11  ;;  %v646_v43 = vmul.f32 %v6207_v31, %v6207_v31 }
 0x149   : > { %v830_v54 = vmul.f32 %v6216_v47, %v799_v13 }
 0x14a   : > { %v5359_v6 = vpop.eup %5358  ;;  %v6219_v49 = vsub.f32 %v6086_v19, %v597_v41  ;;  %v753_v50 = vadd.f32 1e-05, %v728_v42  ;;  %v715_v36 = vsel %vm496_vm0, %v646_v43, 0.0  ;;  %v6229_v19 = vld [vmem:[%s8956_s2] ss:$0 sm:$0xff] }
 0x14b   : > { %v666_v37 = vpop.xlane.xlu1 %665  ;;  %716 = vadd.xlane.f32.xlu1 %v715_v36  ;;  %v572_v44 = vpop.xlane.xlu0 %571  ;;  %v800_v53 = vmul.f32 %v5359_v6, %v6052_v52  ;;  %v861_v3 = vadd.f32 %v6229_v19, %v830_v54 }
 0x14c   : > { %5364 = vrsqrt.f32 %v753_v50  ;;  %v729_v55 = vmul.f32 0.03125, %v666_v37  ;;  %v598_v56 = vmul.f32 0.03125, %v572_v44  ;;  %v647_v58 = vmul.f32 %v6219_v49, %v6219_v49 }
 0x14d   : > { %v831_v17 = vmul.f32 %v6216_v47, %v800_v53 }
 0x14e   : > { %v5361_v60 = vpop.eup %5360  ;;  %v754_v0 = vadd.f32 1e-05, %v729_v55  ;;  %v6233_v20 = vsub.f32 %v6102_v38, %v598_v56  ;;  %v718_v52 = vsel %vm496_vm0, %v647_v58, 0.0 }
 0x14f   : > { %719 = vadd.xlane.f32.xlu0 %v718_v52  ;;  %v669_v1 = vpop.xlane.xlu1 %668  ;;  %v672_v2 = vpop.xlane.xlu0 %671  ;;  %v862_v5 = vadd.f32 %v6229_v19, %v831_v17  ;;  %v801_v24 = vmul.f32 %v5361_v60, %v6044_v48 }
 0x150   : > { %5366 = vrsqrt.f32 %v754_v0  ;;  %v730_v10 = vmul.f32 0.03125, %v669_v1  ;;  %v731_v14 = vmul.f32 0.03125, %v672_v2  ;;  %v648_v18 = vmul.f32 %v6233_v20, %v6233_v20 }
 0x151   : > { %v886_v8 = vpack.c.bf16 %v862_v5, %v861_v3  ;;  %v832_v48 = vmul.f32 %v6216_v47, %v801_v24 }
 0x152   : > { %v5363_v38 = vpop.eup %5362  ;;  %v755_v22 = vadd.f32 1e-05, %v730_v10  ;;  %v756_v23 = vadd.f32 1e-05, %v731_v14  ;;  %v721_v51 = vsel %vm569_vm1, %v648_v18, 0.0 }
 0x153   : > { %v675_v27 = vpop.xlane.xlu1 %674  ;;  %5042 = vmatmul.mubr.msk.bf16.vlgmr.msra.gmra.mrb[0].mxu0 %vm496_vm0, %v886_v8  ;;  %722 = vadd.xlane.f32.xlu1 %v721_v51  ;;  %v678_v30 = vpop.xlane.xlu0 %677  ;;  %v802_v28 = vmul.f32 %v5363_v38, %v6058_v57  ;;  %v863_v6 = vadd.f32 %v6229_v19, %v832_v48 }
 0x154   : > { %5368 = vrsqrt.f32 %v755_v22  ;;  %v732_v29 = vmul.f32 0.03125, %v675_v27  ;;  %v733_v61 = vmul.f32 0.03125, %v678_v30  ;;  %5045 = vmatprep.mubr.msk.bf16.mxu0 %vm5840_vm2, %v8969_v40 }
 0x155   : > { %5370 = vrsqrt.f32 %v756_v23  ;;  %v833_v34 = vmul.f32 %v6216_v47, %v802_v28 }
 0x156   : > { %v5365_v11 = vpop.eup %5364  ;;  %v757_v13 = vadd.f32 1e-05, %v732_v29  ;;  %v758_v41 = vadd.f32 1e-05, %v733_v61 }
 0x157   : > { %v681_v42 = vpop.xlane.xlu1 %680  ;;  %v684_v43 = vpop.xlane.xlu0 %683  ;;  %v864_v57 = vadd.f32 %v6229_v19, %v833_v34  ;;  %v803_v50 = vmul.f32 %v5365_v11, %v6072_v4 }
 0x158   : > { %5372 = vrsqrt.f32 %v757_v13  ;;  %v734_v36 = vmul.f32 0.03125, %v681_v42  ;;  %v735_v37 = vmul.f32 0.03125, %v684_v43 }
 0x159   : > { %5374 = vrsqrt.f32 %v758_v41  ;;  %v887_v44 = vpack.c.bf16 %v864_v57, %v863_v6  ;;  %v834_v54 = vmul.f32 %v6216_v47, %v803_v50 }
 0x15a   : > { %v5367_v53 = vpop.eup %5366  ;;  %v759_v55 = vadd.f32 1e-05, %v734_v36  ;;  %v760_v58 = vadd.f32 1e-05, %v735_v37 }
 0x15b   : > { %5046 = vmatmul.mubr.msk.bf16.gmra.mrb[4].mxu0 %vm496_vm0, %v887_v44  ;;  %v804_v56 = vmul.f32 %v5367_v53, %v6080_v7  ;;  %v687_v17 = vpop.xlane.xlu1 %686  ;;  %v690_v60 = vpop.xlane.xlu0 %689  ;;  %v865_v52 = vadd.f32 %v6229_v19, %v834_v54 }
 0x15c   : > { %5049 = vmatprep.mubr.msk.bf16.mxu0 %vm5840_vm2, %v8969_v40  ;;  %5376 = vrsqrt.f32 %v759_v55  ;;  %v736_v2 = vmul.f32 0.03125, %v687_v17  ;;  %v737_v7 = vmul.f32 0.03125, %v690_v60 }
 0x15d   : > { %v835_v4 = vmul.f32 %v6216_v47, %v804_v56  ;;  %5378 = vrsqrt.f32 %v760_v58 }
 0x15e   : > { %v5369_v0 = vpop.eup %5368  ;;  %v761_v22 = vadd.f32 1e-05, %v736_v2  ;;  %v762_v23 = vadd.f32 1e-05, %v737_v7 }
 0x15f   : > { %v5371_v1 = vpop.eup %5370  ;;  %v866_v3 = vadd.f32 %v6229_v19, %v835_v4  ;;  %v805_v5 = vmul.f32 %v5369_v0, %v6096_v26  ;;  %v693_v51 = vpop.xlane.xlu1 %692 }
 0x160   : > { %v806_v24 = vmul.f32 %v5371_v1, %v6091_v9  ;;  %v696_v26 = vpop.xlane.xlu0 %695  ;;  %5380 = vrsqrt.f32 %v761_v22  ;;  %v738_v48 = vmul.f32 0.03125, %v693_v51 }
 0x161   : > { %v888_v10 = vpack.c.bf16 %v866_v3, %v865_v52  ;;  %v836_v14 = vmul.f32 %v6216_v47, %v805_v5  ;;  %5382 = vrsqrt.f32 %v762_v23  ;;  %v739_v29 = vmul.f32 0.03125, %v696_v26 }
 0x162   : > { %v5373_v18 = vpop.eup %5372  ;;  %v837_v8 = vmul.f32 %v6216_v47, %v806_v24  ;;  %v763_v42 = vadd.f32 1e-05, %v738_v48 }
 0x163   : > { %v5375_v38 = vpop.eup %5374  ;;  %5050 = vmatmul.mubr.msk.bf16.gmra.mrb[8].mxu0 %vm496_vm0, %v888_v10  ;;  %v867_v27 = vadd.f32 %v6229_v19, %v836_v14  ;;  %v807_v30 = vmul.f32 %v5373_v18, %v6115_v46  ;;  %v764_v43 = vadd.f32 1e-05, %v739_v29  ;;  %v699_v6 = vpop.xlane.xlu1 %698 }
 0x164   : > { %5053 = vmatprep.mubr.msk.bf16.mxu0 %vm5840_vm2, %v8969_v40  ;;  %v868_v9 = vadd.f32 %v6229_v19, %v837_v8  ;;  %v808_v28 = vmul.f32 %v5375_v38, %v6112_v45  ;;  %v702_v45 = vpop.xlane.xlu0 %701  ;;  %5384 = vrsqrt.f32 %v763_v42  ;;  %v740_v37 = vmul.f32 0.03125, %v699_v6 }
 0x165   : > { %v838_v11 = vmul.f32 %v6216_v47, %v807_v30  ;;  %5386 = vrsqrt.f32 %v764_v43  ;;  %v741_v44 = vmul.f32 0.03125, %v702_v45 }
 0x166   : > { %v5377_v61 = vpop.eup %5376  ;;  %v889_v34 = vpack.c.bf16 %v868_v9, %v867_v27  ;;  %v839_v13 = vmul.f32 %v6216_v47, %v808_v28  ;;  %v765_v17 = vadd.f32 1e-05, %v740_v37 }
 0x167   : > { %v5379_v41 = vpop.eup %5378  ;;  %v869_v46 = vadd.f32 %v6229_v19, %v838_v11  ;;  %v809_v50 = vmul.f32 %v5377_v61, %v6123_v16  ;;  %v766_v60 = vadd.f32 1e-05, %v741_v44  ;;  %v705_v4 = vpop.xlane.xlu1 %704 }
 0x168   : > { %v870_v57 = vadd.f32 %v6229_v19, %v839_v13  ;;  %v810_v36 = vmul.f32 %v5379_v41, %v6120_v59  ;;  %v708_v59 = vpop.xlane.xlu0 %707  ;;  %5388 = vrsqrt.f32 %v765_v17  ;;  %v742_v2 = vmul.f32 0.03125, %v705_v4 }
 0x169   : > { %v840_v55 = vmul.f32 %v6216_v47, %v809_v50  ;;  %5390 = vrsqrt.f32 %v766_v60  ;;  %v743_v3 = vmul.f32 0.03125, %v708_v59 }
 0x16a   : > { %v5381_v53 = vpop.eup %5380  ;;  %v890_v54 = vpack.c.bf16 %v870_v57, %v869_v46  ;;  %v841_v56 = vmul.f32 %v6216_v47, %v810_v36  ;;  %v767_v18 = vadd.f32 1e-05, %v742_v2 }
 0x16b   : > { %5054 = vmatmul.mubr.msk.bf16.gmra.mrb[12].mxu0 %vm496_vm0, %v889_v34  ;;  %v5383_v58 = vpop.eup %5382  ;;  %v871_v16 = vadd.f32 %v6229_v19, %v840_v55  ;;  %v811_v52 = vmul.f32 %v5381_v53, %v6133_v63  ;;  %v768_v8 = vadd.f32 1e-05, %v743_v3 }
 0x16c   : > { %5057 = vmatprep.mubr.msk.bf16.mxu0 %vm5840_vm2, %v8969_v40  ;;  %v872_v0 = vadd.f32 %v6229_v19, %v841_v56  ;;  %v812_v1 = vmul.f32 %v5383_v58, %v6130_v62  ;;  %5392 = vrsqrt.f32 %v767_v18 }
 0x16d   : > { %v842_v24 = vmul.f32 %v6216_v47, %v811_v52  ;;  %5394 = vrsqrt.f32 %v768_v8 }
 0x16e   : > { %v5385_v5 = vpop.eup %5384  ;;  %v891_v7 = vpack.c.bf16 %v872_v0, %v871_v16  ;;  %v843_v10 = vmul.f32 %v6216_v47, %v812_v1 }
 0x16f   : > { %v5387_v14 = vpop.eup %5386  ;;  %v873_v62 = vadd.f32 %v6229_v19, %v842_v24  ;;  %v813_v38 = vmul.f32 %v5385_v5, %v6147_v12 }
 0x170   : > { %v874_v63 = vadd.f32 %v6229_v19, %v843_v10  ;;  %v814_v22 = vmul.f32 %v5387_v14, %v6144_v25 }
 0x171   : > { %v844_v26 = vmul.f32 %v6216_v47, %v813_v38 }
 0x172   : > { %v5389_v23 = vpop.eup %5388  ;;  %v892_v51 = vpack.c.bf16 %v874_v63, %v873_v62  ;;  %v845_v27 = vmul.f32 %v6216_v47, %v814_v22 }
 0x173   : > { %5058 = vmatmul.mubr.msk.bf16.gmra.mrb[16].mxu0 %vm496_vm0, %v890_v54  ;;  %v5391_v9 = vpop.eup %5390  ;;  %v875_v30 = vadd.f32 %v6229_v19, %v844_v26  ;;  %v815_v25 = vmul.f32 %v5389_v23, %v6166_v39  ;;  %v8971_v26 = vmov 0  }
 0x174   : > { %5061 = vmatprep.mubr.msk.bf16.mxu0 %vm5840_vm2, %v8969_v40  ;;  %v876_v12 = vadd.f32 %v6229_v19, %v845_v27  ;;  %v816_v28 = vmul.f32 %v5391_v9, %v6163_v35  ;;  %1320 = vmatprep.subr.bf16.mxu1 %v8971_v26 }
 0x175   : > { %v846_v61 = vmul.f32 %v6216_v47, %v815_v25  ;;  %1352 = vmatprep.mubr.bf16.mxu1 %v8971_v26  ;;  %2018 = vmatprep.subr.bf16.mxu0 %v8971_v26 }
 0x176   : > { %v5393_v48 = vpop.eup %5392  ;;  %v893_v29 = vpack.c.bf16 %v876_v12, %v875_v30  ;;  %v847_v34 = vmul.f32 %v6216_v47, %v816_v28 }
 0x177   : > { %v5395_v11 = vpop.eup %5394  ;;  %v877_v13 = vadd.f32 %v6229_v19, %v846_v61  ;;  %v817_v39 = vmul.f32 %v5393_v48, %v6176_v33 }
 0x178   : > { %v878_v41 = vadd.f32 %v6229_v19, %v847_v34  ;;  %v818_v35 = vmul.f32 %v5395_v11, %v6173_v32 }
 0x179   : > { %v848_v43 = vmul.f32 %v6216_v47, %v817_v39 }
 0x17a   : > { %v894_v42 = vpack.c.bf16 %v878_v41, %v877_v13  ;;  %v849_v6 = vmul.f32 %v6216_v47, %v818_v35 }
 0x17b   : > { %5062 = vmatmul.mubr.msk.bf16.gmra.mrb[20].mxu0 %vm496_vm0, %v891_v7  ;;  %v879_v45 = vadd.f32 %v6229_v19, %v848_v43 }
 0x17c   : > { %5065 = vmatprep.mubr.msk.bf16.mxu0 %vm5840_vm2, %v8969_v40  ;;  %v880_v46 = vadd.f32 %v6229_v19, %v849_v6 }
 0x17e   : > { %v895_v57 = vpack.c.bf16 %v880_v46, %v879_v45 }
 0x183   : > { %5066 = vmatmul.mubr.msk.bf16.gmra.mrb[24].mxu0 %vm496_vm0, %v892_v51 }
 0x184   : > { %5069 = vmatprep.mubr.msk.bf16.mxu0 %vm5840_vm2, %v8969_v40 }
 0x18b   : > { %5070 = vmatmul.mubr.msk.bf16.gmra.mrb[28].mxu0 %vm496_vm0, %v893_v29 }
 0x18c   : > { %5073 = vmatprep.mubr.msk.bf16.mxu0 %vm5840_vm2, %v8969_v40 }
 0x193   : > { %5074 = vmatmul.mubr.msk.bf16.gmra.mrb[32].mxu0 %vm496_vm0, %v894_v42 }
 0x194   : > { %5077 = vmatprep.mubr.msk.bf16.mxu0 %vm5840_vm2, %v8969_v40 }
 0x19b   : > { %5078 = vmatmul.mubr.msk.bf16.gmra.mrb[36].mxu0 %vm496_vm0, %v895_v57 }
 0x19c   : > { %5081 = vmatprep.mubr.msk.bf16.mxu0 %vm5840_vm2, %v8969_v40 }
 0x1d0   : > { %v711_v32 = vpop.xlane.xlu1 %710 }
 0x1d1   : > { %v744_v33 = vmul.f32 0.03125, %v711_v32 }
 0x1d3   : > { %v769_v50 = vadd.f32 1e-05, %v744_v33 }
 0x1d4   : > { %v714_v36 = vpop.xlane.xlu0 %713 }
 0x1d5   : > { %5396 = vrsqrt.f32 %v769_v50  ;;  %v745_v37 = vmul.f32 0.03125, %v714_v36 }
 0x1d7   : > { %v770_v44 = vadd.f32 1e-05, %v745_v37 }
 0x1d8   : > { %v717_v53 = vpop.xlane.xlu1 %716 }
 0x1d9   : > { %5398 = vrsqrt.f32 %v770_v44  ;;  %v746_v54 = vmul.f32 0.03125, %v717_v53 }
 0x1db   : > { %v771_v55 = vadd.f32 1e-05, %v746_v54 }
 0x1dc   : > { %v720_v56 = vpop.xlane.xlu0 %719 }
 0x1dd   : > { %5400 = vrsqrt.f32 %v771_v55  ;;  %v747_v58 = vmul.f32 0.03125, %v720_v56 }
 0x1df   : > { %v5397_v17 = vpop.eup %5396  ;;  %v772_v60 = vadd.f32 1e-05, %v747_v58 }
 0x1e0   : > { %v723_v4 = vpop.xlane.xlu1 %722  ;;  %v819_v59 = vmul.f32 %v5397_v17, %v6196_v21 }
 0x1e1   : > { %5402 = vrsqrt.f32 %v772_v60  ;;  %v748_v16 = vmul.f32 0.03125, %v723_v4 }
 0x1e2   : > { %v850_v2 = vmul.f32 %v6216_v47, %v819_v59 }
 0x1e3   : > { %v5399_v0 = vpop.eup %5398  ;;  %v773_v52 = vadd.f32 1e-05, %v748_v16 }
 0x1e4   : > { %v820_v1 = vmul.f32 %v5399_v0, %v6201_v15  ;;  %v881_v7 = vadd.f32 %v6229_v19, %v850_v2 }
 0x1e5   : > { %5404 = vrsqrt.f32 %v773_v52 }
 0x1e6   : > { %v851_v3 = vmul.f32 %v6216_v47, %v820_v1 }
 0x1e7   : > { %v5401_v5 = vpop.eup %5400 }
 0x1e8   : > { %v882_v24 = vadd.f32 %v6229_v19, %v851_v3  ;;  %v821_v10 = vmul.f32 %v5401_v5, %v6207_v31 }
 0x1ea   : > { %v896_v14 = vpack.c.bf16 %v882_v24, %v881_v7  ;;  %v852_v15 = vmul.f32 %v6216_v47, %v821_v10 }
 0x1eb   : > { %v5403_v21 = vpop.eup %5402 }
 0x1ec   : > { %5082 = vmatmul.mubr.msk.bf16.gmra.mrb[40].mxu0 %vm496_vm0, %v896_v14  ;;  %v822_v18 = vmul.f32 %v5403_v21, %v6219_v49  ;;  %v883_v63 = vadd.f32 %v6229_v19, %v852_v15 }
 0x1ed   : > { %5085 = vmatprep.mubr.msk.bf16.mxu0 %vm5840_vm2, %v8969_v40 }
 0x1ee   : > { %v853_v8 = vmul.f32 %v6216_v47, %v822_v18 }
 0x1ef   : > { %v5405_v62 = vpop.eup %5404 }
 0x1f0   : > { %v884_v38 = vadd.f32 %v6229_v19, %v853_v8  ;;  %v823_v31 = vmul.f32 %v5405_v62, %v6233_v20 }
 0x1f2   : > { %v897_v22 = vpack.c.bf16 %v884_v38, %v883_v63  ;;  %v854_v23 = vmul.f32 %v6216_v47, %v823_v31  ;;  %v6353_v47 = vld [vmem:[%s8958_s4] ss:$0 sm:$0xff] }
 0x1f4   : > { %5086 = vmatmul.mubr.msk.bf16.gmra.mrb[44].mxu0 %vm496_vm0, %v897_v22  ;;  %v885_v49 = vadd.f32 %v6229_v19, %v854_v23 }
 0x1f5   : > { %5089 = vmatprep.mubr.msk.bf16.mxu0 %vm5840_vm2, %v8969_v40 }
 0x1f6   : > { %v898_v51 = vpack.c.bf16 %v885_v49, %v885_v49 }
 0x1fc   : > { %5090 = vmatmul.mubr.msk.bf16.gmra.mrb[48].mxu0 %vm496_vm0, %v898_v51 }
 0x226   : > { %v995_v20 = vpop.f32.mrb[0].mxu0 }
 0x227   : > { %v996_v27 = vadd.f32 %v6353_v47, %v995_v20  ;;  %v5043_v9 = vpop.f32.mrb[1].mxu0 }
 0x228   : > { %v998_v19 = vpop.f32.mrb[2].mxu0 }
 0x229   : > { %v999_v30 = vadd.f32 %v6353_v47, %v998_v19  ;;  %v5044_v12 = vpop.f32.mrb[3].mxu0  ;;  %v1101_v25 = vmul.f32 0.25, %v996_v27 }
 0x22b   : > { %v1102_v28 = vmul.f32 0.25, %v999_v30  ;;  %v6357_v48 = vpack.c.bf16 %v999_v30, %v996_v27 }
 0x22d   : > { %1215 = vrot.lane.b32.xlu0 %v6357_v48, %s5842_s16  ;;  %v6361_v29 = vpack.c.bf16 %v1102_v28, %v1101_v25 }
 0x22e   : > { %v1003_v61 = vpop.f32.mrb[4].mxu0 }
 0x22f   : > { %v1004_v34 = vadd.f32 %v6353_v47, %v1003_v61  ;;  %v5047_v11 = vpop.f32.mrb[5].mxu0 }
 0x230   : > { %v1006_v13 = vpop.f32.mrb[6].mxu0 }
 0x231   : > { %v1007_v41 = vadd.f32 %v6353_v47, %v1006_v13  ;;  %v5048_v39 = vpop.f32.mrb[7].mxu0  ;;  %v1103_v35 = vmul.f32 0.25, %v1004_v34 }
 0x233   : > { %v1104_v42 = vmul.f32 0.25, %v1007_v41  ;;  %v6365_v43 = vpack.c.bf16 %v1007_v41, %v1004_v34 }
 0x235   : > { %1217 = vrot.lane.b32.xlu1 %v6365_v43, %s5842_s16  ;;  %v6369_v6 = vpack.c.bf16 %v1104_v42, %v1103_v35 }
 0x236   : > { %v1011_v45 = vpop.f32.mrb[8].mxu0 }
 0x237   : > { %v1012_v46 = vadd.f32 %v6353_v47, %v1011_v45  ;;  %v5051_v57 = vpop.f32.mrb[9].mxu0 }
 0x238   : > { %v1014_v32 = vpop.f32.mrb[10].mxu0 }
 0x239   : > { %v1015_v33 = vadd.f32 %v6353_v47, %v1014_v32  ;;  %v5052_v50 = vpop.f32.mrb[11].mxu0  ;;  %v1105_v36 = vmul.f32 0.25, %v1012_v46 }
 0x23b   : > { %v1106_v37 = vmul.f32 0.25, %v1015_v33  ;;  %v6373_v44 = vpack.c.bf16 %v1015_v33, %v1012_v46 }
 0x23d   : > { %1219 = vrot.lane.b32.xlu1 %v6373_v44, %s5842_s16  ;;  %v6377_v53 = vpack.c.bf16 %v1106_v37, %v1105_v36 }
 0x23e   : > { %v1019_v54 = vpop.f32.mrb[12].mxu0 }
 0x23f   : > { %v1020_v55 = vadd.f32 %v6353_v47, %v1019_v54  ;;  %v5055_v56 = vpop.f32.mrb[13].mxu0 }
 0x240   : > { %v1022_v58 = vpop.f32.mrb[14].mxu0 }
 0x241   : > { %v1023_v17 = vadd.f32 %v6353_v47, %v1022_v58  ;;  %v5056_v60 = vpop.f32.mrb[15].mxu0  ;;  %v1107_v4 = vmul.f32 0.25, %v1020_v55 }
 0x243   : > { %v1108_v59 = vmul.f32 0.25, %v1023_v17  ;;  %v6381_v16 = vpack.c.bf16 %v1023_v17, %v1020_v55 }
 0x245   : > { %1221 = vrot.lane.b32.xlu1 %v6381_v16, %s5842_s16  ;;  %v6385_v0 = vpack.c.bf16 %v1108_v59, %v1107_v4 }
 0x246   : > { %v1027_v52 = vpop.f32.mrb[16].mxu0 }
 0x247   : > { %v1028_v1 = vadd.f32 %v6353_v47, %v1027_v52  ;;  %v5059_v2 = vpop.f32.mrb[17].mxu0 }
 0x248   : > { %v1030_v3 = vpop.f32.mrb[18].mxu0 }
 0x249   : > { %v1031_v5 = vadd.f32 %v6353_v47, %v1030_v3  ;;  %v5060_v7 = vpop.f32.mrb[19].mxu0  ;;  %v1109_v24 = vmul.f32 0.25, %v1028_v1 }
 0x24b   : > { %v1110_v10 = vmul.f32 0.25, %v1031_v5  ;;  %v6389_v14 = vpack.c.bf16 %v1031_v5, %v1028_v1 }
 0x24d   : > { %1223 = vrot.lane.b32.xlu0 %v6389_v14, %s5842_s16  ;;  %v6393_v21 = vpack.c.bf16 %v1110_v10, %v1109_v24 }
 0x24e   : > { %v1035_v18 = vpop.f32.mrb[20].mxu0 }
 0x24f   : > { %v1036_v15 = vadd.f32 %v6353_v47, %v1035_v18  ;;  %v5063_v8 = vpop.f32.mrb[21].mxu0 }
 0x250   : > { %v1038_v62 = vpop.f32.mrb[22].mxu0 }
 0x251   : > { %v1039_v63 = vadd.f32 %v6353_v47, %v1038_v62  ;;  %v5064_v38 = vpop.f32.mrb[23].mxu0  ;;  %v1111_v31 = vmul.f32 0.25, %v1036_v15 }
 0x253   : > { %v1112_v22 = vmul.f32 0.25, %v1039_v63  ;;  %v6397_v23 = vpack.c.bf16 %v1039_v63, %v1036_v15 }
 0x255   : > { %1225 = vrot.lane.b32.xlu1 %v6397_v23, %s5842_s16  ;;  %v6401_v49 = vpack.c.bf16 %v1112_v22, %v1111_v31 }
 0x256   : > { %v1043_v51 = vpop.f32.mrb[24].mxu0 }
 0x257   : > { %v1044_v20 = vadd.f32 %v6353_v47, %v1043_v51  ;;  %v5067_v27 = vpop.f32.mrb[25].mxu0 }
 0x258   : > { %v1046_v9 = vpop.f32.mrb[26].mxu0 }
 0x259   : > { %v1047_v19 = vadd.f32 %v6353_v47, %v1046_v9  ;;  %v5068_v30 = vpop.f32.mrb[27].mxu0  ;;  %v1113_v12 = vmul.f32 0.25, %v1044_v20 }
 0x25b   : > { %v1114_v25 = vmul.f32 0.25, %v1047_v19  ;;  %v6405_v28 = vpack.c.bf16 %v1047_v19, %v1044_v20 }
 0x25d   : > { %1227 = vrot.lane.b32.xlu0 %v6405_v28, %s5842_s16  ;;  %v6409_v61 = vpack.c.bf16 %v1114_v25, %v1113_v12 }
 0x25e   : > { %v1051_v34 = vpop.f32.mrb[28].mxu0 }
 0x25f   : > { %v1052_v11 = vadd.f32 %v6353_v47, %v1051_v34  ;;  %v5071_v13 = vpop.f32.mrb[29].mxu0 }
 0x260   : > { %v1054_v41 = vpop.f32.mrb[30].mxu0 }
 0x261   : > { %v1055_v39 = vadd.f32 %v6353_v47, %v1054_v41  ;;  %v5072_v35 = vpop.f32.mrb[31].mxu0  ;;  %v1115_v42 = vmul.f32 0.25, %v1052_v11 }
 0x263   : > { %v1116_v45 = vmul.f32 0.25, %v1055_v39  ;;  %v6413_v46 = vpack.c.bf16 %v1055_v39, %v1052_v11 }
 0x265   : > { %1229 = vrot.lane.b32.xlu1 %v6413_v46, %s5842_s16  ;;  %v6417_v57 = vpack.c.bf16 %v1116_v45, %v1115_v42 }
 0x266   : > { %v1059_v32 = vpop.f32.mrb[32].mxu0 }
 0x267   : > { %v1060_v33 = vadd.f32 %v6353_v47, %v1059_v32  ;;  %v5075_v50 = vpop.f32.mrb[33].mxu0 }
 0x268   : > { %v1062_v36 = vpop.f32.mrb[34].mxu0 }
 0x269   : > { %v1063_v37 = vadd.f32 %v6353_v47, %v1062_v36  ;;  %v5076_v54 = vpop.f32.mrb[35].mxu0  ;;  %v1117_v55 = vmul.f32 0.25, %v1060_v33 }
 0x26b   : > { %v1118_v56 = vmul.f32 0.25, %v1063_v37  ;;  %v6421_v58 = vpack.c.bf16 %v1063_v37, %v1060_v33 }
 0x26d   : > { %1231 = vrot.lane.b32.xlu0 %v6421_v58, %s5842_s16  ;;  %v6425_v17 = vpack.c.bf16 %v1118_v56, %v1117_v55 }
 0x26e   : > { %v1067_v60 = vpop.f32.mrb[36].mxu0 }
 0x26f   : > { %v1068_v4 = vadd.f32 %v6353_v47, %v1067_v60  ;;  %v5079_v59 = vpop.f32.mrb[37].mxu0 }
 0x270   : > { %v1070_v52 = vpop.f32.mrb[38].mxu0 }
 0x271   : > { %v1071_v1 = vadd.f32 %v6353_v47, %v1070_v52  ;;  %v5080_v2 = vpop.f32.mrb[39].mxu0  ;;  %v1119_v3 = vmul.f32 0.25, %v1068_v4 }
 0x273   : > { %v1120_v5 = vmul.f32 0.25, %v1071_v1  ;;  %v6429_v7 = vpack.c.bf16 %v1071_v1, %v1068_v4 }
 0x275   : > { %1233 = vrot.lane.b32.xlu1 %v6429_v7, %s5842_s16  ;;  %v6433_v24 = vpack.c.bf16 %v1120_v5, %v1119_v3 }
 0x29f   : > { %v1216_v10 = vpop.permute.xlu0 %1215 }
 0x2a0   : > { %v1282_v18 = vsel %vm1241_vm3, %v1216_v10, 0 }
 0x2a1   : > { %1321 = vmatpush1.bf16.xpose.msra.mxu1 %v1282_v18 }
 0x2a2   : > { %1322 = vmatprep.subr.bf16.mxu1 %v8971_v26 }
 0x2a7   : > { %v1218_v15 = vpop.permute.xlu1 %1217 }
 0x2a8   : > { %v1285_v8 = vsel %vm1241_vm3, %v1218_v15, 0 }
 0x2a9   : > { %1323 = vmatpush1.bf16.xpose.msra.mxu1 %v1285_v8 }
 0x2aa   : > { %1324 = vmatprep.subr.bf16.mxu1 %v8971_v26 }
 0x2af   : > { %v1220_v62 = vpop.permute.xlu1 %1219 }
 0x2b0   : > { %v1288_v63 = vsel %vm1241_vm3, %v1220_v62, 0 }
 0x2b1   : > { %1325 = vmatpush1.bf16.xpose.msra.mxu1 %v1288_v63 }
 0x2b2   : > { %1326 = vmatprep.subr.bf16.mxu1 %v8971_v26 }
 0x2b7   : > { %v1222_v38 = vpop.permute.xlu1 %1221 }
 0x2b8   : > { %v1291_v31 = vsel %vm1241_vm3, %v1222_v38, 0 }
 0x2b9   : > { %1327 = vmatpush1.bf16.xpose.msra.mxu1 %v1291_v31 }
 0x2ba   : > { %1328 = vmatprep.subr.bf16.mxu1 %v8971_v26 }
 0x2bf   : > { %v1075_v22 = vpop.f32.mrb[40].mxu0  ;;  %v1224_v51 = vpop.permute.xlu0 %1223 }
 0x2c0   : > { %v1076_v20 = vadd.f32 %v6353_v47, %v1075_v22  ;;  %v5083_v27 = vpop.f32.mrb[41].mxu0  ;;  %v1294_v9 = vsel %vm1241_vm3, %v1224_v51, 0 }
 0x2c1   : > { %v1078_v19 = vpop.f32.mrb[42].mxu0  ;;  %1329 = vmatpush1.bf16.xpose.msra.mxu1 %v1294_v9 }
 0x2c2   : > { %v1079_v30 = vadd.f32 %v6353_v47, %v1078_v19  ;;  %v5084_v12 = vpop.f32.mrb[43].mxu0  ;;  %1330 = vmatprep.subr.bf16.mxu1 %v8971_v26  ;;  %v1121_v25 = vmul.f32 0.25, %v1076_v20 }
 0x2c4   : > { %v1122_v34 = vmul.f32 0.25, %v1079_v30  ;;  %v6447_v11 = vpack.c.bf16 %v1079_v30, %v1076_v20 }
 0x2c6   : > { %1235 = vrot.lane.b32.xlu0 %v6447_v11, %s5842_s16  ;;  %v6451_v13 = vpack.c.bf16 %v1122_v34, %v1121_v25 }
 0x2c7   : > { %v1226_v41 = vpop.permute.xlu1 %1225  ;;  %v1083_v39 = vpop.f32.mrb[44].mxu0 }
 0x2c8   : > { %v1084_v35 = vadd.f32 %v6353_v47, %v1083_v39  ;;  %v5087_v42 = vpop.f32.mrb[45].mxu0  ;;  %v1297_v45 = vsel %vm1241_vm3, %v1226_v41, 0 }
 0x2c9   : > { %v1086_v32 = vpop.f32.mrb[46].mxu0  ;;  %1331 = vmatpush1.bf16.xpose.msra.mxu1 %v1297_v45 }
 0x2ca   : > { %v1087_v33 = vadd.f32 %v6353_v47, %v1086_v32  ;;  %v5088_v50 = vpop.f32.mrb[47].mxu0  ;;  %1332 = vmatprep.subr.bf16.mxu1 %v8971_v26  ;;  %v1123_v36 = vmul.f32 0.25, %v1084_v35 }
 0x2cc   : > { %v1124_v37 = vmul.f32 0.25, %v1087_v33  ;;  %v6457_v54 = vpack.c.bf16 %v1087_v33, %v1084_v35 }
 0x2ce   : > { %9063 = vst [vmem:[#allocation2_spill] sm:$0xff] %v6457_v54  ;;  %1237 = vrot.lane.b32.xlu1 %v6457_v54, %s5842_s16  ;;  %v6461_v55 = vpack.c.bf16 %v1124_v37, %v1123_v36 }
 0x2cf   : > { %v1091_v56 = vpop.f32.mrb[48].mxu0  ;;  %v1228_v60 = vpop.permute.xlu0 %1227 }
 0x2d0   : > { %v6464_v4 = vadd.f32 %v6353_v47, %v1091_v56  ;;  %v5091_v59 = vpop.f32.mrb[49].mxu0  ;;  %v1300_v52 = vsel %vm1241_vm3, %v1228_v60, 0 }
 0x2d1   : > { %v1094_v1 = vpop.f32.mrb[50].mxu0  ;;  %1333 = vmatpush1.bf16.xpose.msra.mxu1 %v1300_v52 }
 0x2d2   : > { %v6469_v2 = vpack.c.bf16 %v6464_v4, %v6464_v4  ;;  %2257 = vrot.lane.b32.xlu1 %v6357_v48, %s5843_s17  ;;  %v5092_v3 = vpop.f32.mrb[51].mxu0  ;;  %1334 = vmatprep.subr.bf16.mxu1 %v8971_v26 }
 0x2d4   : > { %9064 = vst [vmem:[#allocation3_spill] sm:$0xff] %v6469_v2  ;;  %1239 = vrot.lane.b32.xlu0 %v6469_v2, %s5842_s16 }
 0x2d6   : > { %2261 = vrot.lane.b32.xlu1 %v6373_v44, %s5843_s17 }
 0x2d7   : > { %v1230_v47 = vpop.permute.xlu1 %1229 }
 0x2d8   : > { %2259 = vrot.lane.b32.xlu0 %v6365_v43, %s5843_s17  ;;  %v1303_v5 = vsel %vm1241_vm3, %v1230_v47, 0 }
 0x2d9   : > { %1335 = vmatpush1.bf16.xpose.msra.mxu1 %v1303_v5 }
 0x2da   : > { %2265 = vrot.lane.b32.xlu1 %v6389_v14, %s5843_s17  ;;  %1336 = vmatprep.subr.bf16.mxu1 %v8971_v26 }
 0x2dc   : > { %2263 = vrot.lane.b32.xlu0 %v6381_v16, %s5843_s17 }
 0x2de   : > { %2269 = vrot.lane.b32.xlu1 %v6405_v28, %s5843_s17 }
 0x2df   : > { %v1232_v10 = vpop.permute.xlu0 %1231 }
 0x2e0   : > { %2267 = vrot.lane.b32.xlu0 %v6397_v23, %s5843_s17  ;;  %v1306_v18 = vsel %vm1241_vm3, %v1232_v10, 0 }
 0x2e1   : > { %1337 = vmatpush1.bf16.xpose.msra.mxu1 %v1306_v18 }
 0x2e2   : > { %2273 = vrot.lane.b32.xlu1 %v6421_v58, %s5843_s17  ;;  %1338 = vmatprep.subr.bf16.mxu1 %v8971_v26 }
 0x2e4   : > { %2271 = vrot.lane.b32.xlu0 %v6413_v46, %s5843_s17 }
 0x2e6   : > { %2277 = vrot.lane.b32.xlu1 %v6447_v11, %s5843_s17 }
 0x2e7   : > { %v1234_v15 = vpop.permute.xlu1 %1233 }
 0x2e8   : > { %2275 = vrot.lane.b32.xlu0 %v6429_v7, %s5843_s17  ;;  %v1309_v8 = vsel %vm1241_vm3, %v1234_v15, 0 }
 0x2e9   : > { %1339 = vmatpush1.bf16.xpose.msra.mxu1 %v1309_v8 }
 0x2ea   : > { %2281 = vrot.lane.b32.xlu1 %v6469_v2, %s5843_s17  ;;  %1340 = vmatprep.subr.bf16.mxu1 %v8971_v26 }
 0x2ec   : > { %2279 = vrot.lane.b32.xlu0 %v6457_v54, %s5843_s17 }
 0x2ee   : > { %2233 = vrot.lane.b32.xlu1 %v6369_v6, %s5844_s19 }
 0x2f0   : > { %2231 = vrot.lane.b32.xlu0 %v6361_v29, %s5844_s19 }
 0x2f2   : > { %2237 = vrot.lane.b32.xlu1 %v6385_v0, %s5844_s19 }
 0x2f4   : > { %2235 = vrot.lane.b32.xlu0 %v6377_v53, %s5844_s19 }
 0x2f6   : > { %2241 = vrot.lane.b32.xlu1 %v6401_v49, %s5844_s19 }
 0x2f8   : > { %2239 = vrot.lane.b32.xlu0 %v6393_v21, %s5844_s19 }
 0x2fa   : > { %2245 = vrot.lane.b32.xlu1 %v6417_v57, %s5844_s19 }
 0x2fc   : > { %2243 = vrot.lane.b32.xlu0 %v6409_v61, %s5844_s19 }
 0x2fe   : > { %2249 = vrot.lane.b32.xlu1 %v6433_v24, %s5844_s19 }
 0x300   : > { %2247 = vrot.lane.b32.xlu0 %v6425_v17, %s5844_s19 }
 0x302   : > { %2253 = vrot.lane.b32.xlu1 %v6461_v55, %s5844_s19 }
 0x304   : > { %2251 = vrot.lane.b32.xlu0 %v6451_v13, %s5844_s19 }
 0x306   : > { %1937 = vrot.lane.b32.xlu1 %v6357_v48, %s5845_s20 }
 0x308   : > { %1939 = vrot.lane.b32.xlu0 %v6365_v43, %s5845_s20 }
 0x30a   : > { %1941 = vrot.lane.b32.xlu1 %v6373_v44, %s5845_s20 }
 0x30c   : > { %1945 = vrot.lane.b32.xlu0 %v6389_v14, %s5845_s20 }
 0x30e   : > { %1943 = vrot.lane.b32.xlu1 %v6381_v16, %s5845_s20 }
 0x310   : > { %1949 = vrot.lane.b32.xlu0 %v6405_v28, %s5845_s20 }
 0x312   : > { %1947 = vrot.lane.b32.xlu1 %v6397_v23, %s5845_s20 }
 0x314   : > { %1951 = vrot.lane.b32.xlu0 %v6413_v46, %s5845_s20 }
 0x316   : > { %1953 = vrot.lane.b32.xlu1 %v6421_v58, %s5845_s20 }
 0x318   : > { %1955 = vrot.lane.b32.xlu0 %v6429_v7, %s5845_s20 }
 0x31a   : > { %1957 = vrot.lane.b32.xlu1 %v6447_v11, %s5845_s20 }
 0x31c   : > { %1959 = vrot.lane.b32.xlu0 %v6457_v54, %s5845_s20 }
 0x31e   : > { %2977 = vrot.lane.b32.xlu1 %v6365_v43, %s5846_s21 }
 0x320   : > { %2975 = vrot.lane.b32.xlu0 %v6357_v48, %s5846_s21  ;;  %v1125_v48 = vmul.f32 0.25, %v6464_v4 }
 0x322   : > { %2981 = vrot.lane.b32.xlu1 %v6381_v16, %s5846_s21  ;;  %v6549_v43 = vpack.c.bf16 %v1125_v48, %v1125_v48 }
 0x324   : > { %2979 = vrot.lane.b32.xlu0 %v6373_v44, %s5846_s21 }
 0x326   : > { %2983 = vrot.lane.b32.xlu1 %v6389_v14, %s5846_s21 }
 0x328   : > { %2985 = vrot.lane.b32.xlu0 %v6397_v23, %s5846_s21 }
 0x32a   : > { %2989 = vrot.lane.b32.xlu1 %v6413_v46, %s5846_s21 }
 0x32c   : > { %2987 = vrot.lane.b32.xlu0 %v6405_v28, %s5846_s21 }
 0x32e   : > { %1961 = vrot.lane.b32.xlu1 %v6469_v2, %s5845_s20  ;;  %s8850_s20 = scalar_lea.vmem %s8968_s14, %s5325_s15 }
 0x330   : > { %2991 = vrot.lane.b32.xlu0 %v6421_v58, %s5846_s21 }
 0x334   : > { %2255 = vrot.lane.b32.xlu0 %v6549_v43, %s5844_s19 }
 0x338   : > { %v1236_v44 = vpop.permute.xlu0 %1235 }
 0x339   : > { %v1312_v16 = vsel %vm1241_vm3, %v1236_v44, 0 }
 0x33a   : > { %1341 = vmatpush1.bf16.xpose.msra.mxu1 %v1312_v16 }
 0x33b   : > { %1342 = vmatprep.subr.bf16.mxu1 %v8971_v26 }
 0x340   : > { %v1238_v14 = vpop.permute.xlu1 %1237 }
 0x341   : > { %v1315_v23 = vsel %vm1241_vm3, %v1238_v14, 0 }
 0x342   : > { %1343 = vmatpush1.bf16.xpose.msra.mxu1 %v1315_v23 }
 0x343   : > { %1344 = vmatprep.subr.bf16.mxu1 %v8971_v26 }
 0x344   : > { %v2258_v28 = vpop.permute.xlu1 %2257 }
 0x345   : > { %v2323_v51 = vsel %vm1241_vm3, %v2258_v28, 0 }
 0x346   : > { %v1240_v46 = vpop.permute.xlu0 %1239 }
 0x347   : > { %v1318_v62 = vsel %vm1241_vm3, %v1240_v46, 0 }
 0x348   : > { %v2262_v58 = vpop.permute.xlu1 %2261 }
 0x349   : > { %v2329_v41 = vsel %vm1241_vm3, %v2262_v58, 0 }
 0x34a   : > { %1345 = vmatpush1.bf16.xpose.msra.mxu1 %v1318_v62  ;;  %v2260_v63 = vpop.permute.xlu0 %2259 }
 0x34b   : > { %2361 = vmatprep.subr.bf16.mxu1 %v8971_v26  ;;  %v2326_v30 = vsel %vm1241_vm3, %v2260_v63, 0 }
 0x34c   : > { %v2266_v38 = vpop.permute.xlu1 %2265 }
 0x34d   : > { %v2335_v36 = vsel %vm1241_vm3, %v2266_v38, 0 }
 0x34e   : > { %v2264_v31 = vpop.permute.xlu0 %2263 }
 0x34f   : > { %v2332_v45 = vsel %vm1241_vm3, %v2264_v31, 0  ;;  %v1153_v31 = vld [vmem:[%s8961_s7 + $0x8] sm:$0xff] }
 0x350   : > { %v2270_v22 = vpop.permute.xlu1 %2269 }
 0x351   : > { %4798 = vmatmul.mubr.msk.bf16.vlgmr.msra.gmra.mrb[0].mxu1 %vm1241_vm3, %v6361_v29  ;;  %v2341_v1 = vsel %vm1241_vm3, %v2270_v22, 0  ;;  %v1152_v22 = vld [vmem:[%s8961_s7] sm:$0xff] }
 0x352   : > { %2362 = vmatpush1.bf16.xpose.msra.mxu1 %v2323_v51  ;;  %v2268_v20 = vpop.permute.xlu0 %2267  ;;  %1362 = vmatprep.mubr.bf16.mxu1 %v8971_v26 }
 0x353   : > { %2363 = vmatprep.subr.bf16.mxu1 %v8971_v26  ;;  %v2338_v4 = vsel %vm1241_vm3, %v2268_v20, 0 }
 0x354   : > { %v6564_v27 = vpop.permute.xlu1 %2273 }
 0x355   : > { %v2347_v15 = vsel %vm1241_vm3, %v6564_v27, 0  ;;  %v1155_v27 = vld [vmem:[%s8961_s7 + $0x18] sm:$0xff] }
 0x356   : > { %v2272_v9 = vpop.permute.xlu0 %2271 }
 0x357   : > { %v2344_v5 = vsel %vm1241_vm3, %v2272_v9, 0 }
 0x358   : > { %v6566_v19 = vpop.permute.xlu1 %2277 }
 0x359   : > { %4799 = vmatmul.mubr.msk.bf16.gmra.mrb[4].mxu1 %vm1241_vm3, %v6369_v6  ;;  %v2353_v14 = vsel %vm1241_vm3, %v6566_v19, 0  ;;  %v1154_v19 = vld [vmem:[%s8961_s7 + $0x10] sm:$0xff] }
 0x35a   : > { %2364 = vmatpush1.bf16.xpose.msra.mxu1 %v2326_v30  ;;  %v6571_v12 = vpop.permute.xlu0 %2275  ;;  %1372 = vmatprep.mubr.bf16.mxu1 %v8971_v26 }
 0x35b   : > { %2365 = vmatprep.subr.bf16.mxu1 %v8971_v26  ;;  %v2350_v48 = vsel %vm1241_vm3, %v6571_v12, 0 }
 0x35c   : > { %v6575_v29 = vpop.permute.xlu1 %2281 }
 0x35e   : > { %v6577_v25 = vpop.permute.xlu0 %2279 }
 0x35f   : > { %v2356_v46 = vsel %vm1241_vm3, %v6577_v25, 0 }
 0x360   : > { %v6579_v34 = vpop.permute.xlu1 %2233 }
 0x361   : > { %4800 = vmatmul.mubr.msk.bf16.gmra.mrb[8].mxu1 %vm1241_vm3, %v6377_v53 }
 0x362   : > { %2366 = vmatpush1.bf16.xpose.msra.mxu1 %v2329_v41  ;;  %v6584_v6 = vpop.permute.xlu0 %2231  ;;  %1382 = vmatprep.mubr.bf16.mxu1 %v8971_v26 }
 0x363   : > { %2367 = vmatprep.subr.bf16.mxu1 %v8971_v26 }
 0x364   : > { %v6588_v39 = vpop.permute.xlu1 %2237 }
 0x366   : > { %v6590_v35 = vpop.permute.xlu0 %2235 }
 0x368   : > { %v6592_v42 = vpop.permute.xlu1 %2241 }
 0x369   : > { %4801 = vmatmul.mubr.msk.bf16.gmra.mrb[12].mxu1 %vm1241_vm3, %v6385_v0 }
 0x36a   : > { %2368 = vmatpush1.bf16.xpose.msra.mxu1 %v2332_v45  ;;  %v6597_v53 = vpop.permute.xlu0 %2239  ;;  %1392 = vmatprep.mubr.bf16.mxu1 %v8971_v26  ;;  %v1156_v45 = vld [vmem:[%s8961_s7 + $0x20] sm:$0xff] }
 0x36b   : > { %2369 = vmatprep.subr.bf16.mxu1 %v8971_v26 }
 0x36c   : > { %v6601_v32 = vpop.permute.xlu1 %2245 }
 0x36e   : > { %v6603_v33 = vpop.permute.xlu0 %2243 }
 0x370   : > { %v6605_v50 = vpop.permute.xlu1 %2249 }
 0x371   : > { %4802 = vmatmul.mubr.msk.bf16.gmra.mrb[16].mxu1 %vm1241_vm3, %v6393_v21 }
 0x372   : > { %2370 = vmatpush1.bf16.xpose.msra.mxu1 %v2335_v36  ;;  %v6610_v0 = vpop.permute.xlu0 %2247  ;;  %1402 = vmatprep.mubr.bf16.mxu1 %v8971_v26 }
 0x373   : > { %2371 = vmatprep.subr.bf16.mxu1 %v8971_v26 }
 0x374   : > { %v6614_v37 = vpop.permute.xlu1 %2253 }
 0x376   : > { %v6616_v56 = vpop.permute.xlu0 %2251 }
 0x378   : > { %v1938_v60 = vpop.permute.xlu1 %1937 }
 0x379   : > { %4803 = vmatmul.mubr.msk.bf16.gmra.mrb[20].mxu1 %vm1241_vm3, %v6401_v49  ;;  %2019 = vmatpush1.bf16.msra.mxu0 %v1938_v60  ;;  %v1158_v60 = vld [vmem:[%s8961_s7 + $0x30] sm:$0xff] }
 0x37a   : > { %2372 = vmatpush1.bf16.xpose.msra.mxu1 %v2338_v4  ;;  %2020 = vmatprep.subr.bf16.mxu0 %v8971_v26  ;;  %v1940_v21 = vpop.permute.xlu0 %1939 }
 0x37b   : > { %1412 = vmatprep.mubr.bf16.mxu1 %v8971_v26  ;;  %2373 = vmatprep.subr.bf16.mxu1 %v8971_v26 }
 0x37c   : > { %v1942_v59 = vpop.permute.xlu1 %1941 }
 0x37d   : > { %2021 = vmatpush1.bf16.msra.mxu0 %v1940_v21 }
 0x37e   : > { %2022 = vmatprep.subr.bf16.mxu0 %v8971_v26  ;;  %v1946_v3 = vpop.permute.xlu0 %1945 }
 0x380   : > { %v1944_v52 = vpop.permute.xlu1 %1943 }
 0x381   : > { %4804 = vmatmul.mubr.msk.bf16.gmra.mrb[24].mxu1 %vm1241_vm3, %v6409_v61  ;;  %2023 = vmatpush1.bf16.msra.mxu0 %v1942_v59 }
 0x382   : > { %2374 = vmatpush1.bf16.xpose.msra.mxu1 %v2341_v1  ;;  %2024 = vmatprep.subr.bf16.mxu0 %v8971_v26  ;;  %v1950_v10 = vpop.permute.xlu0 %1949  ;;  %v1161_v1 = vld [vmem:[%s8961_s7 + $0x48] sm:$0xff] }
 0x383   : > { %1422 = vmatprep.mubr.bf16.mxu1 %v8971_v26  ;;  %2375 = vmatprep.subr.bf16.mxu1 %v8971_v26 }
 0x384   : > { %v1948_v49 = vpop.permute.xlu1 %1947 }
 0x385   : > { %2025 = vmatpush1.bf16.msra.mxu0 %v1944_v52 }
 0x386   : > { %2026 = vmatprep.subr.bf16.mxu0 %v8971_v26 }
 0x388   : > { %v1954_v47 = vpop.permute.xlu1 %1953 }
 0x389   : > { %4805 = vmatmul.mubr.msk.bf16.gmra.mrb[28].mxu1 %vm1241_vm3, %v6417_v57  ;;  %2027 = vmatpush1.bf16.msra.mxu0 %v1946_v3  ;;  %v1952_v57 = vpop.permute.xlu0 %1951 }
 0x38a   : > { %2376 = vmatpush1.bf16.xpose.msra.mxu1 %v2344_v5  ;;  %2028 = vmatprep.subr.bf16.mxu0 %v8971_v26 }
 0x38b   : > { %1432 = vmatprep.mubr.bf16.mxu1 %v8971_v26  ;;  %2377 = vmatprep.subr.bf16.mxu1 %v8971_v26 }
 0x38c   : > { %v1958_v61 = vpop.permute.xlu1 %1957 }
 0x38d   : > { %2029 = vmatpush1.bf16.msra.mxu0 %v1948_v49  ;;  %v1160_v49 = vld [vmem:[%s8961_s7 + $0x40] sm:$0xff] }
 0x38e   : > { %2030 = vmatprep.subr.bf16.mxu0 %v8971_v26 }
 0x390   : > { %v6639_v18 = vpop.permute.xlu1 %2977 }
 0x391   : > { %9065 = vst [vmem:[#allocation4_spill] sm:$0xff] %v6639_v18  ;;  %4806 = vmatmul.mubr.msk.bf16.gmra.mrb[32].mxu1 %vm1241_vm3, %v6425_v17  ;;  %2031 = vmatpush1.bf16.msra.mxu0 %v1950_v10  ;;  %v1956_v17 = vpop.permute.xlu0 %1955 }
 0x392   : > { %2378 = vmatpush1.bf16.xpose.msra.mxu1 %v2347_v15  ;;  %2032 = vmatprep.subr.bf16.mxu0 %v8971_v26  ;;  %v1162_v15 = vld [vmem:[%s8961_s7 + $0x50] sm:$0xff] }
 0x393   : > { %1442 = vmatprep.mubr.bf16.mxu1 %v8971_v26  ;;  %2379 = vmatprep.subr.bf16.mxu1 %v8971_v26 }
 0x394   : > { %v6648_v8 = vpop.permute.xlu1 %2981 }
 0x395   : > { %9066 = vst [vmem:[#allocation5_spill] sm:$0xff] %v6648_v8  ;;  %2033 = vmatpush1.bf16.msra.mxu0 %v1952_v57 }
 0x396   : > { %2034 = vmatprep.subr.bf16.mxu0 %v8971_v26 }
 0x398   : > { %v6653_v44 = vpop.permute.xlu1 %2983 }
 0x399   : > { %9067 = vst [vmem:[#allocation6_spill] sm:$0xff] %v6653_v44  ;;  %4807 = vmatmul.mubr.msk.bf16.gmra.mrb[36].mxu1 %vm1241_vm3, %v6433_v24  ;;  %2035 = vmatpush1.bf16.msra.mxu0 %v1954_v47  ;;  %v1960_v24 = vpop.permute.xlu0 %1959 }
 0x39a   : > { %2380 = vmatpush1.bf16.xpose.msra.mxu1 %v2350_v48  ;;  %2036 = vmatprep.subr.bf16.mxu0 %v8971_v26 }
 0x39b   : > { %1452 = vmatprep.mubr.bf16.mxu1 %v8971_v26  ;;  %2381 = vmatprep.subr.bf16.mxu1 %v8971_v26 }
 0x39c   : > { %v6661_v16 = vpop.permute.xlu1 %2989 }
 0x39d   : > { %2037 = vmatpush1.bf16.msra.mxu0 %v1956_v17  ;;  %9068 = vst [vmem:[#allocation7_spill] sm:$0xff] %v6661_v16 }
 0x39e   : > { %2038 = vmatprep.subr.bf16.mxu0 %v8971_v26 }
 0x3a0   : > { %v1962_v23 = vpop.permute.xlu1 %1961 }
 0x3a1   : > { %4808 = vmatmul.mubr.msk.bf16.gmra.mrb[40].mxu1 %vm1241_vm3, %v6451_v13  ;;  %2039 = vmatpush1.bf16.msra.mxu0 %v1958_v61  ;;  %v2016_v28 = vsel %vm2014_vm4, %v1962_v23, 0  ;;  %v2359_v13 = vsel %vm1241_vm3, %v6575_v29, 0  ;;  %v1163_v61 = vld [vmem:[%s8961_s7 + $0x58] sm:$0xff] }
 0x3a2   : > { %2382 = vmatpush1.bf16.xpose.msra.mxu1 %v2353_v14  ;;  %2040 = vmatprep.subr.bf16.mxu0 %v8971_v26 }
 0x3a3   : > { %1462 = vmatprep.mubr.bf16.mxu1 %v8971_v26  ;;  %2383 = vmatprep.subr.bf16.mxu1 %v8971_v26 }
 0x3a5   : > { %2041 = vmatpush1.bf16.msra.mxu0 %v1960_v24 }
 0x3a6   : > { %2042 = vmatprep.subr.bf16.mxu0 %v8971_v26 }
 0x3a9   : > { %4809 = vmatmul.mubr.msk.bf16.gmra.mrb[44].mxu1 %vm1241_vm3, %v6461_v55  ;;  %2043 = vmatpush1.bf16.msra.mxu0 %v2016_v28  ;;  %v6711_v55 = vpop.permute.xlu0 %2975 }
 0x3aa   : > { %2384 = vmatpush1.bf16.xpose.msra.mxu1 %v2356_v46  ;;  %1472 = vmatprep.mubr.bf16.mxu1 %v8971_v26  ;;  %9069 = vst [vmem:[#allocation8_spill] sm:$0xff] %v6711_v55 }
 0x3ab   : > { %2385 = vmatprep.subr.bf16.mxu1 %v8971_v26  ;;  %3055 = vmatprep.subr.bf16.mxu0 %v8971_v26 }
 0x3b1   : > { %4810 = vmatmul.mubr.msk.bf16.gmra.mrb[48].mxu1 %vm1241_vm3, %v6549_v43  ;;  %v6714_v43 = vpop.permute.xlu0 %2979 }
 0x3b2   : > { %2386 = vmatpush1.bf16.xpose.msra.mxu1 %v2359_v13  ;;  %2393 = vmatprep.mubr.bf16.mxu1 %v8971_v26  ;;  %9070 = vst [vmem:[#allocation9_spill] sm:$0xff] %v6714_v43 }
 0x3b3   : > { %5093 = vmatprep.subr.bf16.mxu1 %v8969_v40 }
 0x3b5   : > { %v6719_v58 = vpop.permute.xlu0 %2985 }
 0x3b6   : > { %9071 = vst [vmem:[#allocation10_spill] sm:$0xff] %v6719_v58 }
 0x3b9   : > { %4874 = vmatmul.mubr.msk.bf16.vlgmr.msra.gmra.mrb[52].mxu1 %vm1241_vm3, %v6584_v6  ;;  %v6724_v62 = vpop.permute.xlu0 %2987 }
 0x3ba   : > { %2403 = vmatprep.mubr.bf16.mxu1 %v8971_v26  ;;  %9072 = vst [vmem:[#allocation11_spill] sm:$0xff] %v6724_v62 }
 0x3bd   : > { %v6728_v63 = vpop.permute.xlu0 %2991 }
 0x3be   : > { %9073 = vst [vmem:[#allocation12_spill] sm:$0xff] %v6728_v63 }
 0x3c1   : > { %4875 = vmatmul.mubr.msk.bf16.gmra.mrb[56].mxu1 %vm1241_vm3, %v6579_v34  ;;  %v2256_v38 = vpop.permute.xlu0 %2255 }
 0x3c2   : > { %2413 = vmatprep.mubr.bf16.mxu1 %v8971_v26 }
 0x3c9   : > { %4876 = vmatmul.mubr.msk.bf16.gmra.mrb[60].mxu1 %vm1241_vm3, %v6590_v35 }
 0x3ca   : > { %2423 = vmatprep.mubr.bf16.mxu1 %v8971_v26 }
 0x3d1   : > { %4877 = vmatmul.mubr.msk.bf16.gmra.mrb[64].mxu1 %vm1241_vm3, %v6588_v39 }
 0x3d2   : > { %2433 = vmatprep.mubr.bf16.mxu1 %v8971_v26 }
 0x3d9   : > { %4878 = vmatmul.mubr.msk.bf16.gmra.mrb[68].mxu1 %vm1241_vm3, %v6597_v53 }
 0x3da   : > { %2443 = vmatprep.mubr.bf16.mxu1 %v8971_v26 }
 0x3e1   : > { %4879 = vmatmul.mubr.msk.bf16.gmra.mrb[72].mxu1 %vm1241_vm3, %v6592_v42  ;;  %v1157_v42 = vld [vmem:[%s8961_s7 + $0x28] sm:$0xff] }
 0x3e2   : > { %2453 = vmatprep.mubr.bf16.mxu1 %v8971_v26 }
 0x3e9   : > { %4880 = vmatmul.mubr.msk.bf16.gmra.mrb[76].mxu1 %vm1241_vm3, %v6603_v33  ;;  %v1159_v33 = vld [vmem:[%s8961_s7 + $0x38] sm:$0xff] }
 0x3ea   : > { %2463 = vmatprep.mubr.bf16.mxu1 %v8971_v26 }
 0x3f1   : > { %4881 = vmatmul.mubr.msk.bf16.gmra.mrb[80].mxu1 %vm1241_vm3, %v6601_v32 }
 0x3f2   : > { %2473 = vmatprep.mubr.bf16.mxu1 %v8971_v26 }
 0x3f9   : > { %4882 = vmatmul.mubr.msk.bf16.gmra.mrb[84].mxu1 %vm1241_vm3, %v6610_v0 }
 0x3fa   : > { %2483 = vmatprep.mubr.bf16.mxu1 %v8971_v26 }
 0x401   : > { %4883 = vmatmul.mubr.msk.bf16.gmra.mrb[88].mxu1 %vm1241_vm3, %v6605_v50 }
 0x402   : > { %2493 = vmatprep.mubr.bf16.mxu1 %v8971_v26 }
 0x409   : > { %4884 = vmatmul.mubr.msk.bf16.gmra.mrb[92].mxu1 %vm1241_vm3, %v6616_v56 }
 0x40a   : > { %2503 = vmatprep.mubr.bf16.mxu1 %v8971_v26 }
 0x411   : > { %4885 = vmatmul.mubr.msk.bf16.gmra.mrb[96].mxu1 %vm1241_vm3, %v6614_v37 }
 0x412   : > { %2513 = vmatprep.mubr.bf16.mxu1 %v8971_v26 }
 0x419   : > { %4886 = vmatmul.mubr.msk.bf16.gmra.mrb[100].mxu1 %vm1241_vm3, %v2256_v38  ;;  %v1165_v38 = vld [vmem:[%s8961_s7 + $0x68] sm:$0xff] }
 0x41a   : > { %5095 = vmatprep.mubr.msk.bf16.mxu1 %vm5840_vm2, %v8969_v40 }
 0x424   : > { %v1354_v51 = vpop.f32.mrb[0].mxu1 }
 0x425   : > { %v1356_v20 = vpop.f32.mrb[1].mxu1  ;;  %v6748_v12 = vadd.f32 %v1354_v51, %v1152_v22 }
 0x426   : > { %v6743_v9 = vadd.f32 %v1356_v20, %v1153_v31  ;;  %v1358_v30 = vpop.f32.mrb[2].mxu1  ;;  %v1164_v31 = vld [vmem:[%s8961_s7 + $0x60] sm:$0xff]  ;;  %v1167_v20 = vld [vmem:[%s8961_s7 + $0x78] sm:$0xff] }
 0x427   : > { %v1360_v29 = vpop.f32.mrb[3].mxu1  ;;  %v6755_v6 = vadd.f32 %v1358_v30, %v1154_v19  ;;  %v1166_v19 = vld [vmem:[%s8961_s7 + $0x70] sm:$0xff] }
 0x428   : > { %v1482_v25 = vsel %vm1481_vm5, %v6743_v9, -inf  ;;  %v6752_v34 = vadd.f32 %v1360_v29, %v1155_v27 }
 0x429   : > { %v1483_v41 = vmax.f32 %v6748_v12, %v1482_v25 }
 0x42a   : > { %v1486_v39 = vsel %vm1481_vm5, %v6752_v34, -inf }
 0x42b   : > { %v1487_v35 = vmax.f32 %v6755_v6, %v1486_v39  ;;  %1484 = vmax.xlane.f32.xlu1 %v1483_v41 }
 0x42c   : > { %v1364_v53 = vpop.f32.mrb[4].mxu1 }
 0x42d   : > { %v1366_v32 = vpop.f32.mrb[5].mxu1  ;;  %1488 = vmax.xlane.f32.xlu0 %v1487_v35  ;;  %v6771_v0 = vadd.f32 %v1364_v53, %v1156_v45 }
 0x42e   : > { %v6769_v50 = vadd.f32 %v1366_v32, %v1157_v42  ;;  %v1368_v36 = vpop.f32.mrb[6].mxu1  ;;  %v1169_v32 = vld [vmem:[%s8961_s7 + $0x88] sm:$0xff] }
 0x42f   : > { %v1370_v37 = vpop.f32.mrb[7].mxu1  ;;  %v6783_v52 = vadd.f32 %v1368_v36, %v1158_v60 }
 0x430   : > { %v1490_v56 = vsel %vm1481_vm5, %v6769_v50, -inf  ;;  %v6778_v4 = vadd.f32 %v1370_v37, %v1159_v33  ;;  %v1168_v33 = vld [vmem:[%s8961_s7 + $0x80] sm:$0xff] }
 0x431   : > { %v1491_v21 = vmax.f32 %v6771_v0, %v1490_v56  ;;  %v1171_v56 = vld [vmem:[%s8961_s7 + $0x98] sm:$0xff] }
 0x432   : > { %v1494_v59 = vsel %vm1481_vm5, %v6778_v4, -inf }
 0x433   : > { %1492 = vmax.xlane.f32.xlu0 %v1491_v21  ;;  %v1495_v47 = vmax.f32 %v6783_v52, %v1494_v59  ;;  %v1170_v21 = vld [vmem:[%s8961_s7 + $0x90] sm:$0xff] }
 0x434   : > { %v1374_v3 = vpop.f32.mrb[8].mxu1 }
 0x435   : > { %v1376_v5 = vpop.f32.mrb[9].mxu1  ;;  %v6800_v48 = vadd.f32 %v1374_v3, %v1160_v49 }
 0x436   : > { %v6795_v10 = vadd.f32 %v1376_v5, %v1161_v1  ;;  %v1378_v57 = vpop.f32.mrb[10].mxu1 }
 0x437   : > { %v1380_v17 = vpop.f32.mrb[11].mxu1  ;;  %1496 = vmax.xlane.f32.xlu0 %v1495_v47  ;;  %v6807_v28 = vadd.f32 %v1378_v57, %v1162_v15 }
 0x438   : > { %v1498_v14 = vsel %vm1481_vm5, %v6795_v10, -inf  ;;  %v6804_v24 = vadd.f32 %v1380_v17, %v1163_v61  ;;  %v1173_v17 = vld [vmem:[%s8961_s7 + $0xa8] sm:$0xff] }
 0x439   : > { %v1499_v23 = vmax.f32 %v6800_v48, %v1498_v14  ;;  %v1172_v14 = vld [vmem:[%s8961_s7 + $0xa0] sm:$0xff] }
 0x43a   : > { %v1502_v46 = vsel %vm1481_vm5, %v6804_v24, -inf }
 0x43b   : > { %v1503_v13 = vmax.f32 %v6807_v28, %v1502_v46  ;;  %1500 = vmax.xlane.f32.xlu1 %v1499_v23 }
 0x43c   : > { %v1384_v22 = vpop.f32.mrb[12].mxu1 }
 0x43d   : > { %v1386_v51 = vpop.f32.mrb[13].mxu1  ;;  %1504 = vmax.xlane.f32.xlu0 %v1503_v13  ;;  %v6826_v29 = vadd.f32 %v1384_v22, %v1164_v31  ;;  %v1175_v13 = vld [vmem:[%s8961_s7 + $0xb8] sm:$0xff]  ;;  %v1174_v31 = vld [vmem:[%s8961_s7 + $0xb0] sm:$0xff] }
 0x43e   : > { %v6821_v27 = vadd.f32 %v1386_v51, %v1165_v38  ;;  %v1388_v30 = vpop.f32.mrb[14].mxu1 }
 0x43f   : > { %v1390_v25 = vpop.f32.mrb[15].mxu1  ;;  %v6833_v42 = vadd.f32 %v1388_v30, %v1166_v19 }
 0x440   : > { %v1506_v41 = vsel %vm1481_vm5, %v6821_v27, -inf  ;;  %v6830_v39 = vadd.f32 %v1390_v25, %v1167_v20 }
 0x441   : > { %v1507_v35 = vmax.f32 %v6826_v29, %v1506_v41 }
 0x442   : > { %v1510_v45 = vsel %vm1481_vm5, %v6830_v39, -inf }
 0x443   : > { %v1511_v53 = vmax.f32 %v6833_v42, %v1510_v45  ;;  %1508 = vmax.xlane.f32.xlu1 %v1507_v35 }
 0x444   : > { %v1394_v36 = vpop.f32.mrb[16].mxu1 }
 0x445   : > { %v1396_v37 = vpop.f32.mrb[17].mxu1  ;;  %1512 = vmax.xlane.f32.xlu0 %v1511_v53  ;;  %v6852_v1 = vadd.f32 %v1394_v36, %v1168_v33  ;;  %v1177_v53 = vld [vmem:[%s8961_s7 + $0xc8] sm:$0xff] }
 0x446   : > { %v6847_v60 = vadd.f32 %v1396_v37, %v1169_v32  ;;  %v1398_v59 = vpop.f32.mrb[18].mxu1  ;;  %v1176_v32 = vld [vmem:[%s8961_s7 + $0xc0] sm:$0xff]  ;;  %v1179_v37 = vld [vmem:[%s8961_s7 + $0xd8] sm:$0xff] }
 0x447   : > { %v1400_v49 = vpop.f32.mrb[19].mxu1  ;;  %v6859_v61 = vadd.f32 %v1398_v59, %v1170_v21  ;;  %v1178_v21 = vld [vmem:[%s8961_s7 + $0xd0] sm:$0xff] }
 0x448   : > { %v1514_v3 = vsel %vm1481_vm5, %v6847_v60, -inf  ;;  %v6856_v47 = vadd.f32 %v1400_v49, %v1171_v56 }
 0x449   : > { %v1515_v5 = vmax.f32 %v6852_v1, %v1514_v3 }
 0x44a   : > { %v1518_v15 = vsel %vm1481_vm5, %v6856_v47, -inf }
 0x44b   : > { %v1519_v57 = vmax.f32 %v6859_v61, %v1518_v15  ;;  %1516 = vmax.xlane.f32.xlu1 %v1515_v5 }
 0x44c   : > { %v1404_v23 = vpop.f32.mrb[20].mxu1 }
 0x44d   : > { %v1406_v46 = vpop.f32.mrb[21].mxu1  ;;  %1520 = vmax.xlane.f32.xlu0 %v1519_v57  ;;  %v6878_v51 = vadd.f32 %v1404_v23, %v1172_v14 }
 0x44e   : > { %v6873_v38 = vadd.f32 %v1406_v46, %v1173_v17  ;;  %v1408_v22 = vpop.f32.mrb[22].mxu1  ;;  %v1181_v46 = vld [vmem:[%s8961_s7 + $0xe8] sm:$0xff] }
 0x44f   : > { %v1410_v20 = vpop.f32.mrb[23].mxu1  ;;  %v6885_v41 = vadd.f32 %v1408_v22, %v1174_v31 }
 0x450   : > { %v1522_v19 = vsel %vm1481_vm5, %v6873_v38, -inf  ;;  %v6882_v30 = vadd.f32 %v1410_v20, %v1175_v13  ;;  %v1180_v13 = vld [vmem:[%s8961_s7 + $0xe0] sm:$0xff]  ;;  %v1183_v20 = vld [vmem:[%s8961_s7 + $0xf8] sm:$0xff] }
 0x451   : > { %v1523_v25 = vmax.f32 %v6878_v51, %v1522_v19 }
 0x452   : > { %v1526_v35 = vsel %vm1481_vm5, %v6882_v30, -inf }
 0x453   : > { %v1527_v45 = vmax.f32 %v6885_v41, %v1526_v35  ;;  %1524 = vmax.xlane.f32.xlu1 %v1523_v25  ;;  %v1182_v25 = vld [vmem:[%s8961_s7 + $0xf0] sm:$0xff] }
 0x454   : > { %v1414_v33 = vpop.f32.mrb[24].mxu1 }
 0x455   : > { %v1416_v36 = vpop.f32.mrb[25].mxu1  ;;  %1528 = vmax.xlane.f32.xlu0 %v1527_v45  ;;  %v6904_v49 = vadd.f32 %v1414_v33, %v1176_v32 }
 0x456   : > { %v6899_v56 = vadd.f32 %v1416_v36, %v1177_v53  ;;  %v1418_v59 = vpop.f32.mrb[26].mxu1 }
 0x457   : > { %v1420_v3 = vpop.f32.mrb[27].mxu1  ;;  %v6911_v17 = vadd.f32 %v1418_v59, %v1178_v21 }
 0x458   : > { %v1530_v5 = vsel %vm1481_vm5, %v6899_v56, -inf  ;;  %v6908_v15 = vadd.f32 %v1420_v3, %v1179_v37  ;;  %v1185_v3 = vld [vmem:[%s8961_s7 + $0x108] sm:$0xff] }
 0x459   : > { %v1531_v57 = vmax.f32 %v6904_v49, %v1530_v5  ;;  %v1184_v5 = vld [vmem:[%s8961_s7 + $0x100] sm:$0xff] }
 0x45a   : > { %v1534_v14 = vsel %vm1481_vm5, %v6908_v15, -inf }
 0x45b   : > { %v1535_v23 = vmax.f32 %v6911_v17, %v1534_v14  ;;  %1532 = vmax.xlane.f32.xlu1 %v1531_v57 }
 0x45c   : > { %v1424_v31 = vpop.f32.mrb[28].mxu1 }
 0x45d   : > { %v1426_v22 = vpop.f32.mrb[29].mxu1  ;;  %1536 = vmax.xlane.f32.xlu0 %v1535_v23  ;;  %v6930_v45 = vadd.f32 %v1424_v31, %v1180_v13  ;;  %v1187_v23 = vld [vmem:[%s8961_s7 + $0x118] sm:$0xff]  ;;  %v1186_v13 = vld [vmem:[%s8961_s7 + $0x110] sm:$0xff] }
 0x45e   : > { %v6925_v19 = vadd.f32 %v1426_v22, %v1181_v46  ;;  %v1428_v35 = vpop.f32.mrb[30].mxu1 }
 0x45f   : > { %v1430_v53 = vpop.f32.mrb[31].mxu1  ;;  %v6937_v37 = vadd.f32 %v1428_v35, %v1182_v25 }
 0x460   : > { %v1538_v32 = vsel %vm1481_vm5, %v6925_v19, -inf  ;;  %v6934_v33 = vadd.f32 %v1430_v53, %v1183_v20 }
 0x461   : > { %v1539_v36 = vmax.f32 %v6930_v45, %v1538_v32 }
 0x462   : > { %v1542_v21 = vsel %vm1481_vm5, %v6934_v33, -inf }
 0x463   : > { %v1543_v59 = vmax.f32 %v6937_v37, %v1542_v21  ;;  %1540 = vmax.xlane.f32.xlu1 %v1539_v36 }
 0x464   : > { %v1434_v57 = vpop.f32.mrb[32].mxu1 }
 0x465   : > { %v1436_v14 = vpop.f32.mrb[33].mxu1  ;;  %1544 = vmax.xlane.f32.xlu0 %v1543_v59  ;;  %v6956_v22 = vadd.f32 %v1434_v57, %v1184_v5  ;;  %v1189_v59 = vld [vmem:[%s8961_s7 + $0x128] sm:$0xff] }
 0x466   : > { %v6951_v46 = vadd.f32 %v1436_v14, %v1185_v3  ;;  %v1438_v31 = vpop.f32.mrb[34].mxu1  ;;  %v1188_v3 = vld [vmem:[%s8961_s7 + $0x120] sm:$0xff]  ;;  %v1191_v14 = vld [vmem:[%s8961_s7 + $0x138] sm:$0xff] }
 0x467   : > { %v1440_v20 = vpop.f32.mrb[35].mxu1  ;;  %v6963_v32 = vadd.f32 %v1438_v31, %v1186_v13 }
 0x468   : > { %v1546_v25 = vsel %vm1481_vm5, %v6951_v46, -inf  ;;  %v6960_v35 = vadd.f32 %v1440_v20, %v1187_v23 }
 0x469   : > { %v1547_v53 = vmax.f32 %v6956_v22, %v1546_v25 }
 0x46a   : > { %v1550_v36 = vsel %vm1481_vm5, %v6960_v35, -inf }
 0x46b   : > { %v1551_v21 = vmax.f32 %v6963_v32, %v1550_v36  ;;  %1548 = vmax.xlane.f32.xlu1 %v1547_v53  ;;  %v1190_v53 = vld [vmem:[%s8961_s7 + $0x130] sm:$0xff] }
 0x46c   : > { %v1444_v5 = vpop.f32.mrb[36].mxu1 }
 0x46d   : > { %v1446_v57 = vpop.f32.mrb[37].mxu1  ;;  %1552 = vmax.xlane.f32.xlu0 %v1551_v21  ;;  %v6979_v31 = vadd.f32 %v1444_v5, %v1188_v3  ;;  %v1193_v3 = vld [vmem:[%s8961_s7 + $0x148] sm:$0xff]  ;;  %v1192_v5 = vld [vmem:[%s8961_s7 + $0x140] sm:$0xff] }
 0x46e   : > { %v6977_v23 = vadd.f32 %v1446_v57, %v1189_v59  ;;  %v1448_v13 = vpop.f32.mrb[38].mxu1 }
 0x46f   : > { %v1450_v20 = vpop.f32.mrb[39].mxu1  ;;  %v6991_v59 = vadd.f32 %v1448_v13, %v1190_v53  ;;  %v1194_v13 = vld [vmem:[%s8961_s7 + $0x150] sm:$0xff] }
 0x470   : > { %v1554_v25 = vsel %vm1481_vm5, %v6977_v23, -inf  ;;  %v6986_v36 = vadd.f32 %v1450_v20, %v1191_v14 }
 0x471   : > { %v1555_v21 = vmax.f32 %v6979_v31, %v1554_v25  ;;  %v1195_v25 = vld [vmem:[%s8961_s7 + $0x158] sm:$0xff] }
 0x472   : > { %v1558_v40 = vsel %vm1481_vm5, %v6986_v36, -inf }
 0x473   : > { %1556 = vmax.xlane.f32.xlu0 %v1555_v21  ;;  %v1559_v14 = vmax.f32 %v6991_v59, %v1558_v40 }
 0x474   : > { %v1454_v57 = vpop.f32.mrb[40].mxu1 }
 0x475   : > { %v1456_v20 = vpop.f32.mrb[41].mxu1  ;;  %v7008_v21 = vadd.f32 %v1454_v57, %v1192_v5  ;;  %v1197_v5 = vld [vmem:[%s8961_s7 + $0x168] sm:$0xff]  ;;  %v1196_v57 = vld [vmem:[%s8961_s7 + $0x160] sm:$0xff] }
 0x476   : > { %v7003_v26 = vadd.f32 %v1456_v20, %v1193_v3  ;;  %v1458_v53 = vpop.f32.mrb[42].mxu1 }
 0x477   : > { %v1460_v63 = vpop.f32.mrb[43].mxu1  ;;  %1560 = vmax.xlane.f32.xlu0 %v1559_v14  ;;  %v7015_v58 = vadd.f32 %v1458_v53, %v1194_v13 }
 0x478   : > { %v1562_v16 = vsel %vm1481_vm5, %v7003_v26, -inf  ;;  %v7012_v40 = vadd.f32 %v1460_v63, %v1195_v25 }
 0x479   : > { %v1563_v62 = vmax.f32 %v7008_v21, %v1562_v16  ;;  %v1199_v16 = vld [vmem:[%s8961_s7 + $0x178] sm:$0xff] }
 0x47a   : > { %v1566_v3 = vsel %vm1481_vm5, %v7012_v40, -inf }
 0x47b   : > { %v1567_v20 = vmax.f32 %v7015_v58, %v1566_v3  ;;  %1564 = vmax.xlane.f32.xlu1 %v1563_v62  ;;  %v1198_v62 = vld [vmem:[%s8961_s7 + $0x170] sm:$0xff] }
 0x47c   : > { %v1464_v63 = vpop.f32.mrb[44].mxu1 }
 0x47d   : > { %v1466_v14 = vpop.f32.mrb[45].mxu1  ;;  %1568 = vmax.xlane.f32.xlu0 %v1567_v20  ;;  %v7034_v53 = vadd.f32 %v1464_v63, %v1196_v57  ;;  %v1201_v63 = vld [vmem:[%s8961_s7 + $0x188] sm:$0xf] }
 0x47e   : > { %v7029_v25 = vadd.f32 %v1466_v14, %v1197_v5  ;;  %v1468_v13 = vpop.f32.mrb[46].mxu1  ;;  %v1200_v14 = vld [vmem:[%s8961_s7 + $0x180] sm:$0xf] }
 0x47f   : > { %9075 = vst [vmem:[#allocation14_spill] sm:$0xff] %v7034_v53  ;;  %v1470_v3 = vpop.f32.mrb[47].mxu1  ;;  %v7041_v43 = vadd.f32 %v1468_v13, %v1198_v62 }
 0x480   : > { %9074 = vst [vmem:[#allocation13_spill] sm:$0xff] %v7029_v25  ;;  %v1570_v44 = vsel %vm1481_vm5, %v7029_v25, -inf  ;;  %v7038_v8 = vadd.f32 %v1470_v3, %v1199_v16 }
 0x481   : > { %v1571_v20 = vmax.f32 %v7034_v53, %v1570_v44  ;;  %9077 = vst [vmem:[#allocation16_spill] sm:$0xff] %v7041_v43 }
 0x482   : > { %9076 = vst [vmem:[#allocation15_spill] sm:$0xff] %v7038_v8  ;;  %v1574_v5 = vsel %vm1481_vm5, %v7038_v8, -inf }
 0x483   : > { %v1575_v57 = vmax.f32 %v7041_v43, %v1574_v5  ;;  %1572 = vmax.xlane.f32.xlu1 %v1571_v20 }
 0x484   : > { %v1474_v16 = vpop.f32.mrb[48].mxu1 }
 0x485   : > { %v7052_v3 = vadd.f32 %v1474_v16, %v1200_v14  ;;  %v1476_v44 = vpop.f32.mrb[49].mxu1  ;;  %1576 = vmax.xlane.f32.xlu0 %v1575_v57  ;;  %v4825_v14 = vld [vmem:[%s8961_s7 + $0x198] sm:$0xff]  ;;  %v4824_v57 = vld [vmem:[%s8961_s7 + $0x190] sm:$0xff] }
 0x486   : > { %v7054_v62 = vadd.f32 %v1476_v44, %v1201_v63  ;;  %v1478_v13 = vpop.f32.mrb[50].mxu1  ;;  %v4827_v44 = vld [vmem:[%s8961_s7 + $0x1a8] sm:$0xff] }
 0x487   : > { %9078 = vst [vmem:[#allocation17_spill] sm:$0xff] %v7052_v3  ;;  %v1579_v18 = vsel %vm1578_vm6, %v7052_v3, -inf  ;;  %v1479_v55 = vpop.f32.mrb[51].mxu1 }
 0x488   : > { %9079 = vst [vmem:[#allocation18_spill] sm:$0xff] %v7054_v62  ;;  %v1581_v20 = vsel %vm1580_vm7, %v7054_v62, -inf }
 0x489   : > { %v1582_v5 = vmax.f32 %v1579_v18, %v1581_v20  ;;  %v4826_v18 = vld [vmem:[%s8961_s7 + $0x1a0] sm:$0xff] }
 0x48b   : > { %1583 = vmax.xlane.f32.xlu1 %v1582_v5 }
 0x48c   : > { %v2395_v63 = vpop.f32.mrb[52].mxu1 }
 0x48d   : > { %v2397_v16 = vpop.f32.mrb[53].mxu1  ;;  %v7074_v20 = vadd.f32 %v4824_v57, %v2395_v63  ;;  %v4829_v57 = vld [vmem:[%s8961_s7 + $0x1b8] sm:$0xff]  ;;  %v4828_v63 = vld [vmem:[%s8961_s7 + $0x1b0] sm:$0xff] }
 0x48e   : > { %v7069_v55 = vadd.f32 %v4825_v14, %v2397_v16  ;;  %v2399_v13 = vpop.f32.mrb[54].mxu1 }
 0x48f   : > { %9081 = vst [vmem:[#allocation20_spill] sm:$0xff] %v7074_v20  ;;  %v2401_v5 = vpop.f32.mrb[55].mxu1  ;;  %v7081_v3 = vadd.f32 %v4826_v18, %v2399_v13 }
 0x490   : > { %9080 = vst [vmem:[#allocation19_spill] sm:$0xff] %v7069_v55  ;;  %v2522_v2 = vsel %vm1481_vm5, %v7069_v55, -inf  ;;  %v7078_v54 = vadd.f32 %v4827_v44, %v2401_v5 }
 0x491   : > { %v2523_v62 = vmax.f32 %v7074_v20, %v2522_v2  ;;  %9083 = vst [vmem:[#allocation22_spill] sm:$0xff] %v7081_v3  ;;  %v4831_v2 = vld [vmem:[%s8961_s7 + $0x1c8] sm:$0xff] }
 0x492   : > { %9082 = vst [vmem:[#allocation21_spill] sm:$0xff] %v7078_v54  ;;  %v2526_v14 = vsel %vm1481_vm5, %v7078_v54, -inf }
 0x493   : > { %v2527_v16 = vmax.f32 %v7081_v3, %v2526_v14  ;;  %2524 = vmax.xlane.f32.xlu0 %v2523_v62  ;;  %v4830_v62 = vld [vmem:[%s8961_s7 + $0x1c0] sm:$0xff] }
 0x494   : > { %v2405_v44 = vpop.f32.mrb[56].mxu1 }
 0x495   : > { %v2407_v5 = vpop.f32.mrb[57].mxu1  ;;  %2528 = vmax.xlane.f32.xlu1 %v2527_v16  ;;  %v7100_v14 = vadd.f32 %v4828_v63, %v2405_v44  ;;  %v4833_v63 = vld [vmem:[%s8961_s7 + $0x1d8] sm:$0xff]  ;;  %v4832_v44 = vld [vmem:[%s8961_s7 + $0x1d0] sm:$0xff] }
 0x496   : > { %v7095_v18 = vadd.f32 %v4829_v57, %v2407_v5  ;;  %v2409_v13 = vpop.f32.mrb[58].mxu1 }
 0x497   : > { %9085 = vst [vmem:[#allocation24_spill] sm:$0xff] %v7100_v14  ;;  %v2411_v3 = vpop.f32.mrb[59].mxu1  ;;  %v7107_v55 = vadd.f32 %v4830_v62, %v2409_v13  ;;  %v4834_v13 = vld [vmem:[%s8961_s7 + $0x1e0] sm:$0xff] }
 0x498   : > { %9084 = vst [vmem:[#allocation23_spill] sm:$0xff] %v7095_v18  ;;  %v2530_v54 = vsel %vm1481_vm5, %v7095_v18, -inf  ;;  %v7104_v20 = vadd.f32 %v4831_v2, %v2411_v3 }
 0x499   : > { %v2531_v16 = vmax.f32 %v7100_v14, %v2530_v54  ;;  %9087 = vst [vmem:[#allocation26_spill] sm:$0xff] %v7107_v55  ;;  %v4835_v54 = vld [vmem:[%s8961_s7 + $0x1e8] sm:$0xff] }
 0x49a   : > { %9086 = vst [vmem:[#allocation25_spill] sm:$0xff] %v7104_v20  ;;  %v2534_v57 = vsel %vm1481_vm5, %v7104_v20, -inf }
 0x49b   : > { %v2535_v5 = vmax.f32 %v7107_v55, %v2534_v57  ;;  %2532 = vmax.xlane.f32.xlu0 %v2531_v16 }
 0x49c   : > { %v2415_v3 = vpop.f32.mrb[60].mxu1 }
 0x49d   : > { %2536 = vmax.xlane.f32.xlu1 %v2535_v5  ;;  %v2417_v2 = vpop.f32.mrb[61].mxu1  ;;  %v7126_v57 = vadd.f32 %v4832_v44, %v2415_v3  ;;  %v4837_v44 = vld [vmem:[%s8961_s7 + $0x1f8] sm:$0xff]  ;;  %v4836_v3 = vld [vmem:[%s8961_s7 + $0x1f0] sm:$0xff] }
 0x49e   : > { %v7121_v62 = vadd.f32 %v4833_v63, %v2417_v2  ;;  %v2419_v16 = vpop.f32.mrb[62].mxu1 }
 0x49f   : > { %9089 = vst [vmem:[#allocation28_spill] sm:$0xff] %v7126_v57  ;;  %v2421_v55 = vpop.f32.mrb[63].mxu1  ;;  %v7133_v18 = vadd.f32 %v4834_v13, %v2419_v16 }
 0x4a0   : > { %9088 = vst [vmem:[#allocation27_spill] sm:$0xff] %v7121_v62  ;;  %v2538_v20 = vsel %vm1481_vm5, %v7121_v62, -inf  ;;  %v7130_v14 = vadd.f32 %v4835_v54, %v2421_v55 }
 0x4a1   : > { %v2539_v5 = vmax.f32 %v7126_v57, %v2538_v20  ;;  %9091 = vst [vmem:[#allocation30_spill] sm:$0xff] %v7133_v18  ;;  %v4839_v20 = vld [vmem:[%s8961_s7 + $0x208] sm:$0xff] }
 0x4a2   : > { %9090 = vst [vmem:[#allocation29_spill] sm:$0xff] %v7130_v14  ;;  %v2542_v63 = vsel %vm1481_vm5, %v7130_v14, -inf }
 0x4a3   : > { %v2543_v2 = vmax.f32 %v7133_v18, %v2542_v63  ;;  %2540 = vmax.xlane.f32.xlu0 %v2539_v5  ;;  %v4838_v18 = vld [vmem:[%s8961_s7 + $0x200] sm:$0xff] }
 0x4a4   : > { %v2425_v55 = vpop.f32.mrb[64].mxu1 }
 0x4a5   : > { %v2427_v54 = vpop.f32.mrb[65].mxu1  ;;  %2544 = vmax.xlane.f32.xlu1 %v2543_v2  ;;  %v7149_v63 = vadd.f32 %v4836_v3, %v2425_v55  ;;  %v4841_v3 = vld [vmem:[%s8961_s7 + $0x218] sm:$0xff]  ;;  %v4840_v55 = vld [vmem:[%s8961_s7 + $0x210] sm:$0xff] }
 0x4a6   : > { %v7147_v13 = vadd.f32 %v4837_v44, %v2427_v54  ;;  %v2429_v16 = vpop.f32.mrb[66].mxu1 }
 0x4a7   : > { %9093 = vst [vmem:[#allocation32_spill] sm:$0xff] %v7149_v63  ;;  %v2431_v5 = vpop.f32.mrb[67].mxu1  ;;  %v7161_v44 = vadd.f32 %v4838_v18, %v2429_v16 }
 0x4a8   : > { %9092 = vst [vmem:[#allocation31_spill] sm:$0xff] %v7147_v13  ;;  %v2546_v57 = vsel %vm1481_vm5, %v7147_v13, -inf  ;;  %v7156_v62 = vadd.f32 %v4839_v20, %v2431_v5 }
 0x4a9   : > { %v2547_v2 = vmax.f32 %v7149_v63, %v2546_v57  ;;  %9095 = vst [vmem:[#allocation34_spill] sm:$0xff] %v7161_v44  ;;  %v4843_v57 = vld [vmem:[%s8961_s7 + $0x228] sm:$0xff] }
 0x4aa   : > { %9094 = vst [vmem:[#allocation33_spill] sm:$0xff] %v7156_v62  ;;  %v2550_v14 = vsel %vm1481_vm5, %v7156_v62, -inf  ;;  %v4842_v62 = vld [vmem:[%s8961_s7 + $0x220] sm:$0xff] }
 0x4ab   : > { %2548 = vmax.xlane.f32.xlu0 %v2547_v2  ;;  %v2551_v20 = vmax.f32 %v7161_v44, %v2550_v14 }
 0x4ac   : > { %v2435_v54 = vpop.f32.mrb[68].mxu1 }
 0x4ad   : > { %v2437_v5 = vpop.f32.mrb[69].mxu1  ;;  %v7175_v16 = vadd.f32 %v4840_v55, %v2435_v54  ;;  %v4845_v55 = vld [vmem:[%s8961_s7 + $0x238] sm:$0xff]  ;;  %v4844_v54 = vld [vmem:[%s8961_s7 + $0x230] sm:$0xff] }
 0x4ae   : > { %v7173_v13 = vadd.f32 %v4841_v3, %v2437_v5  ;;  %v2439_v18 = vpop.f32.mrb[70].mxu1 }
 0x4af   : > { %9097 = vst [vmem:[#allocation36_spill] sm:$0xff] %v7175_v16  ;;  %2552 = vmax.xlane.f32.xlu0 %v2551_v20  ;;  %v2441_v2 = vpop.f32.mrb[71].mxu1  ;;  %v7187_v5 = vadd.f32 %v4842_v62, %v2439_v18  ;;  %v4846_v62 = vld [vmem:[%s8961_s7 + $0x240] sm:$0xff] }
 0x4b0   : > { %9096 = vst [vmem:[#allocation35_spill] sm:$0xff] %v7173_v13  ;;  %v2554_v63 = vsel %vm1481_vm5, %v7173_v13, -inf  ;;  %v7182_v14 = vadd.f32 %v4843_v57, %v2441_v2 }
 0x4b1   : > { %v2555_v44 = vmax.f32 %v7175_v16, %v2554_v63  ;;  %9099 = vst [vmem:[#allocation38_spill] sm:$0xff] %v7187_v5  ;;  %v4847_v63 = vld [vmem:[%s8961_s7 + $0x248] sm:$0xff] }
 0x4b2   : > { %9098 = vst [vmem:[#allocation37_spill] sm:$0xff] %v7182_v14  ;;  %v2558_v3 = vsel %vm1481_vm5, %v7182_v14, -inf }
 0x4b3   : > { %2556 = vmax.xlane.f32.xlu0 %v2555_v44  ;;  %v2559_v57 = vmax.f32 %v7187_v5, %v2558_v3 }
 0x4b4   : > { %v2445_v20 = vpop.f32.mrb[72].mxu1 }
 0x4b5   : > { %v2447_v2 = vpop.f32.mrb[73].mxu1  ;;  %v7204_v18 = vadd.f32 %v4844_v54, %v2445_v20 }
 0x4b6   : > { %v7199_v14 = vadd.f32 %v4845_v55, %v2447_v2  ;;  %v2449_v44 = vpop.f32.mrb[74].mxu1 }
 0x4b7   : > { %v2451_v13 = vpop.f32.mrb[75].mxu1  ;;  %2560 = vmax.xlane.f32.xlu0 %v2559_v57  ;;  %v7211_v8 = vadd.f32 %v4846_v62, %v2449_v44 }
 0x4b8   : > { %v2562_v16 = vsel %vm1481_vm5, %v7199_v14, -inf  ;;  %v7208_v3 = vadd.f32 %v4847_v63, %v2451_v13  ;;  %v1485_v5 = vpop.xlane.xlu1 %1484  ;;  %v4849_v13 = vld [vmem:[%s8961_s7 + $0x258] sm:$0xff]  ;;  %v4851_v63 = vld [vmem:[%s8961_s7 + $0x268] sm:$0xff] }
 0x4b9   : > { %v2563_v43 = vmax.f32 %v7204_v18, %v2562_v16  ;;  %9101 = vst [vmem:[#allocation40_spill] sm:$0xff] %v7211_v8  ;;  %v1585_v55 = vsub.f32 %v6748_v12, %v1485_v5  ;;  %v1586_v2 = vsub.f32 %v6743_v9, %v1485_v5  ;;  %v4848_v12 = vld [vmem:[%s8961_s7 + $0x250] sm:$0xff] }
 0x4ba   : > { %9100 = vst [vmem:[#allocation39_spill] sm:$0xff] %v7208_v3  ;;  %v2566_v54 = vsel %vm1481_vm5, %v7208_v3, -inf  ;;  %v1489_v20 = vpop.xlane.xlu0 %1488 }
 0x4bb   : > { %v2567_v57 = vmax.f32 %v7211_v8, %v2566_v54  ;;  %v1635_v25 = vmul.f32 1.442695, %v1585_v55  ;;  %v1637_v53 = vmul.f32 1.442695, %v1586_v2  ;;  %2564 = vmax.xlane.f32.xlu0 %v2563_v43  ;;  %v1588_v16 = vsub.f32 %v6752_v34, %v1489_v20  ;;  %v4850_v43 = vld [vmem:[%s8961_s7 + $0x260] sm:$0xff] }
 0x4bc   : > { %v2455_v9 = vpop.f32.mrb[76].mxu1  ;;  %v1587_v34 = vsub.f32 %v6755_v6, %v1489_v20 }
 0x4bd   : > { %2568 = vmax.xlane.f32.xlu1 %v2567_v57  ;;  %v2457_v5 = vpop.f32.mrb[77].mxu1  ;;  %5406 = vpow2.f32 %v1637_v53  ;;  %v7234_v55 = vadd.f32 %v4848_v12, %v2455_v9  ;;  %v1641_v54 = vmul.f32 1.442695, %v1588_v16 }
 0x4be   : > { %v7228_v62 = vadd.f32 %v4849_v13, %v2457_v5  ;;  %v2459_v44 = vpop.f32.mrb[78].mxu1  ;;  %5408 = vpow2.f32 %v1635_v25  ;;  %v1639_v20 = vmul.f32 1.442695, %v1587_v34 }
 0x4bf   : > { %9103 = vst [vmem:[#allocation42_spill] sm:$0xff] %v7234_v55  ;;  %v2461_v2 = vpop.f32.mrb[79].mxu1  ;;  %v7241_v5 = vadd.f32 %v4850_v43, %v2459_v44  ;;  %5410 = vpow2.f32 %v1641_v54 }
 0x4c0   : > { %9102 = vst [vmem:[#allocation41_spill] sm:$0xff] %v7228_v62  ;;  %v2570_v57 = vsel %vm1481_vm5, %v7228_v62, -inf  ;;  %v7238_v3 = vadd.f32 %v4851_v63, %v2461_v2  ;;  %v1493_v53 = vpop.xlane.xlu0 %1492  ;;  %5412 = vpow2.f32 %v1639_v20 }
 0x4c1   : > { %v2571_v13 = vmax.f32 %v7234_v55, %v2570_v57  ;;  %9105 = vst [vmem:[#allocation44_spill] sm:$0xff] %v7241_v5  ;;  %v1590_v8 = vsub.f32 %v6769_v50, %v1493_v53  ;;  %v1589_v6 = vsub.f32 %v6771_v0, %v1493_v53  ;;  %v4855_v50 = vld [vmem:[%s8961_s7 + $0x288] sm:$0xff]  ;;  %v4853_v0 = vld [vmem:[%s8961_s7 + $0x278] sm:$0xff] }
 0x4c2   : > { %9104 = vst [vmem:[#allocation43_spill] sm:$0xff] %v7238_v3  ;;  %v2574_v25 = vsel %vm1481_vm5, %v7238_v3, -inf }
 0x4c3   : > { %v2575_v16 = vmax.f32 %v7241_v5, %v2574_v25  ;;  %2572 = vmax.xlane.f32.xlu0 %v2571_v13  ;;  %v1645_v12 = vmul.f32 1.442695, %v1590_v8  ;;  %v1643_v57 = vmul.f32 1.442695, %v1589_v6  ;;  %v4854_v8 = vld [vmem:[%s8961_s7 + $0x280] sm:$0xff] }
 0x4c4   : > { %v2465_v9 = vpop.f32.mrb[80].mxu1  ;;  %v1497_v63 = vpop.xlane.xlu0 %1496 }
 0x4c5   : > { %v1591_v2 = vsub.f32 %v6783_v52, %v1497_v63  ;;  %v1592_v43 = vsub.f32 %v6778_v4, %v1497_v63  ;;  %v2467_v44 = vpop.f32.mrb[81].mxu1  ;;  %2576 = vmax.xlane.f32.xlu1 %v2575_v16  ;;  %5414 = vpow2.f32 %v1645_v12 }
 0x4c6   : > { %v2469_v34 = vpop.f32.mrb[82].mxu1  ;;  %v7265_v16 = vadd.f32 %v4853_v0, %v2467_v44 }
 0x4c7   : > { %v1647_v52 = vmul.f32 1.442695, %v1591_v2  ;;  %v1649_v54 = vmul.f32 1.442695, %v1592_v43  ;;  %v2471_v4 = vpop.f32.mrb[83].mxu1  ;;  %v7259_v53 = vpop.eup %5406  ;;  %v7267_v63 = vadd.f32 %v4854_v8, %v2469_v34  ;;  %v4852_v43 = vld [vmem:[%s8961_s7 + $0x270] sm:$0xff] }
 0x4c8   : > { %v7261_v13 = vadd.f32 %v4855_v50, %v2471_v4  ;;  %v1501_v25 = vpop.xlane.xlu1 %1500  ;;  %v7263_v6 = vpop.eup %5408  ;;  %9107 = vst [vmem:[#allocation46_spill] sm:$0xff] %v7265_v16  ;;  %v1735_v12 = vsel %vm1481_vm5, %v7259_v53, 0.0 }
 0x4c9   : > { %5416 = vpow2.f32 %v1647_v52  ;;  %9108 = vst [vmem:[#allocation47_spill] sm:$0xff] %v7267_v63  ;;  %v1594_v3 = vsub.f32 %v6795_v10, %v1501_v25  ;;  %v1593_v50 = vsub.f32 %v6800_v48, %v1501_v25  ;;  %v1736_v34 = vadd.f32 %v7263_v6, %v1735_v12  ;;  %v7284_v4 = vpop.eup %5410 }
 0x4ca   : > { %9106 = vst [vmem:[#allocation45_spill] sm:$0xff] %v7261_v13  ;;  %5418 = vpow2.f32 %v1649_v54  ;;  %v2582_v20 = vsel %vm1481_vm5, %v7261_v13, -inf  ;;  %v1505_v2 = vpop.xlane.xlu0 %1504  ;;  %v2578_v54 = vsel %vm1481_vm5, %v7265_v16, -inf  ;;  %v7286_v13 = vadd.f32 %v4852_v43, %v2465_v9 }
 0x4cb   : > { %5420 = vpow2.f32 %v1643_v57  ;;  %v2583_v44 = vmax.f32 %v7267_v63, %v2582_v20  ;;  %v1653_v0 = vmul.f32 1.442695, %v1594_v3  ;;  %v1595_v10 = vsub.f32 %v6807_v28, %v1505_v2  ;;  %1737 = vadd.xlane.f32.xlu0 %v1736_v34 }
 0x4cc   : > { %v1596_v8 = vsub.f32 %v6804_v24, %v1505_v2  ;;  %v2475_v52 = vpop.f32.mrb[84].mxu1  ;;  %9109 = vst [vmem:[#allocation48_spill] sm:$0xff] %v7286_v13  ;;  %v1651_v3 = vmul.f32 1.442695, %v1593_v50  ;;  %v2579_v28 = vmax.f32 %v7286_v13, %v2578_v54  ;;  %v4859_v2 = vld [vmem:[%s8961_s7 + $0x2a8] sm:$0xff]  ;;  %v1739_v43 = vsel %vm1481_vm5, %v7284_v4, 0.0 }
 0x4cd   : > { %2584 = vmax.xlane.f32.xlu1 %v2583_v44  ;;  %v2477_v57 = vpop.f32.mrb[85].mxu1  ;;  %5422 = vpow2.f32 %v1653_v0  ;;  %v1655_v24 = vmul.f32 1.442695, %v1595_v10  ;;  %v7292_v44 = vpop.eup %5412  ;;  %v4857_v0 = vld [vmem:[%s8961_s7 + $0x298] sm:$0xff] }
 0x4ce   : > { %v1657_v20 = vmul.f32 1.442695, %v1596_v8  ;;  %v2479_v48 = vpop.f32.mrb[86].mxu1  ;;  %v7316_v5 = vadd.f32 %v4857_v0, %v2477_v57 }
 0x4cf   : > { %v2481_v25 = vpop.f32.mrb[87].mxu1  ;;  %v7298_v50 = vpop.eup %5414  ;;  %2580 = vmax.xlane.f32.xlu0 %v2579_v28  ;;  %v4861_v28 = vld [vmem:[%s8961_s7 + $0x2b8] sm:$0xff] }
 0x4d0   : > { %v1509_v12 = vpop.xlane.xlu1 %1508  ;;  %9110 = vst [vmem:[#allocation49_spill] sm:$0xff] %v7298_v50  ;;  %5424 = vpow2.f32 %v1657_v20  ;;  %v7305_v34 = vadd.f32 %v4859_v2, %v2481_v25  ;;  %v1740_v20 = vadd.f32 %v7292_v44, %v1739_v43 }
 0x4d1   : > { %v1597_v63 = vsub.f32 %v6826_v29, %v1509_v12  ;;  %v1598_v9 = vsub.f32 %v6821_v27, %v1509_v12  ;;  %5426 = vpow2.f32 %v1651_v3 }
 0x4d2   : > { %v1513_v10 = vpop.xlane.xlu0 %1512  ;;  %9112 = vst [vmem:[#allocation51_spill] sm:$0xff] %v7305_v34  ;;  %5428 = vpow2.f32 %v1655_v24  ;;  %v2590_v43 = vsel %vm1481_vm5, %v7305_v34, -inf }
 0x4d3   : > { %v7303_v8 = vpop.eup %5416  ;;  %v1659_v29 = vmul.f32 1.442695, %v1597_v63  ;;  %v1661_v54 = vmul.f32 1.442695, %v1598_v9  ;;  %v1600_v12 = vsub.f32 %v6830_v39, %v1513_v10  ;;  %v4858_v63 = vld [vmem:[%s8961_s7 + $0x2a0] sm:$0xff]  ;;  %v1743_v39 = vsel %vm1481_vm5, %v7298_v50, 0.0  ;;  %1741 = vadd.xlane.f32.xlu0 %v1740_v20 }
 0x4d4   : > { %9111 = vst [vmem:[#allocation50_spill] sm:$0xff] %v7303_v8  ;;  %v7307_v27 = vpop.eup %5418  ;;  %v2485_v13 = vpop.f32.mrb[88].mxu1  ;;  %v1599_v24 = vsub.f32 %v6833_v42, %v1513_v10  ;;  %v4856_v9 = vld [vmem:[%s8961_s7 + $0x290] sm:$0xff]  ;;  %v7336_v62 = vadd.f32 %v4858_v63, %v2479_v48  ;;  %v2586_v20 = vsel %vm1481_vm5, %v7316_v5, -inf }
 0x4d5   : > { %v7314_v16 = vpop.eup %5420  ;;  %5430 = vpow2.f32 %v1659_v29  ;;  %v2487_v3 = vpop.f32.mrb[89].mxu1  ;;  %v1747_v25 = vsel %vm1481_vm5, %v7307_v27, 0.0  ;;  %v7348_v48 = vadd.f32 %v4856_v9, %v2475_v52  ;;  %v4863_v52 = vld [vmem:[%s8961_s7 + $0x2c8] sm:$0xff] }
 0x4d6   : > { %9113 = vst [vmem:[#allocation52_spill] sm:$0xff] %v7314_v16  ;;  %5432 = vpow2.f32 %v1661_v54  ;;  %v7326_v2 = vpop.f32.mrb[90].mxu1  ;;  %v1748_v57 = vadd.f32 %v7303_v8, %v1747_v25  ;;  %v7334_v0 = vadd.f32 %v4861_v28, %v2487_v3  ;;  %9114 = vst [vmem:[#allocation53_spill] sm:$0xff] %v7336_v62  ;;  %v1665_v54 = vmul.f32 1.442695, %v1600_v12  ;;  %v4860_v25 = vld [vmem:[%s8961_s7 + $0x2b0] sm:$0xff] }
 0x4d7   : > { %v2491_v29 = vpop.f32.mrb[91].mxu1  ;;  %v1744_v42 = vadd.f32 %v7314_v16, %v1743_v39  ;;  %v7346_v3 = vpop.eup %5422  ;;  %v2591_v12 = vmax.f32 %v7336_v62, %v2590_v43  ;;  %v1663_v63 = vmul.f32 1.442695, %v1599_v24 }
 0x4d8   : > { %1749 = vadd.xlane.f32.xlu1 %v1748_v57  ;;  %v1517_v10 = vpop.xlane.xlu1 %1516  ;;  %v2594_v57 = vsel %vm1481_vm5, %v7334_v0, -inf  ;;  %5434 = vpow2.f32 %v1665_v54 }
 0x4d9   : > { %v1601_v8 = vsub.f32 %v6852_v1, %v1517_v10  ;;  %v1602_v28 = vsub.f32 %v6847_v60, %v1517_v10  ;;  %1745 = vadd.xlane.f32.xlu0 %v1744_v42  ;;  %v2587_v60 = vmax.f32 %v7348_v48, %v2586_v20  ;;  %v7357_v1 = vadd.f32 %v4860_v25, %v2485_v13 }
 0x4da   : > { %v1521_v39 = vpop.xlane.xlu0 %1520  ;;  %v7354_v50 = vpop.eup %5424  ;;  %v1751_v42 = vsel %vm1481_vm5, %v7346_v3, 0.0  ;;  %v7374_v25 = vadd.f32 %v4863_v52, %v2491_v29  ;;  %v4862_v29 = vld [vmem:[%s8961_s7 + $0x2c0] sm:$0xff] }
 0x4db   : > { %v1667_v34 = vmul.f32 1.442695, %v1601_v8  ;;  %v1669_v16 = vmul.f32 1.442695, %v1602_v28  ;;  %v1603_v55 = vsub.f32 %v6859_v61, %v1521_v39  ;;  %v1604_v24 = vsub.f32 %v6856_v47, %v1521_v39  ;;  %v7363_v43 = vpop.eup %5426 }
 0x4dc   : > { %2592 = vmax.xlane.f32.xlu1 %v2591_v12  ;;  %v2495_v9 = vpop.f32.mrb[92].mxu1  ;;  %v7367_v10 = vpop.eup %5428  ;;  %v2595_v13 = vmax.f32 %v7357_v1, %v2594_v57  ;;  %9116 = vst [vmem:[#allocation55_spill] sm:$0xff] %v7374_v25  ;;  %v1752_v12 = vadd.f32 %v7363_v43, %v1751_v42 }
 0x4dd   : > { %5436 = vpow2.f32 %v1667_v34  ;;  %v1671_v8 = vmul.f32 1.442695, %v1603_v55  ;;  %v2497_v61 = vpop.f32.mrb[93].mxu1  ;;  %v1673_v54 = vmul.f32 1.442695, %v1604_v24  ;;  %2588 = vmax.xlane.f32.xlu0 %v2587_v60  ;;  %v1755_v55 = vsel %vm1481_vm5, %v7354_v50, 0.0 }
 0x4de   : > { %5438 = vpow2.f32 %v1669_v16  ;;  %v7370_v20 = vpop.f32.mrb[94].mxu1  ;;  %v4865_v16 = vld [vmem:[%s8961_s7 + $0x2d8] sm:$0xff]  ;;  %v1756_v42 = vadd.f32 %v7367_v10, %v1755_v55 }
 0x4df   : > { %v7372_v47 = vpop.eup %5430  ;;  %5440 = vpow2.f32 %v1663_v63  ;;  %v2501_v34 = vpop.f32.mrb[95].mxu1 }
 0x4e0   : > { %9115 = vst [vmem:[#allocation54_spill] sm:$0xff] %v7372_v47  ;;  %v7378_v28 = vpop.eup %5432  ;;  %5442 = vpow2.f32 %v1673_v54  ;;  %2596 = vmax.xlane.f32.xlu1 %v2595_v13  ;;  %v1525_v39 = vpop.xlane.xlu1 %1524  ;;  %v2598_v13 = vsel %vm1481_vm5, %v7374_v25, -inf  ;;  %v7395_v54 = vadd.f32 %v4865_v16, %v2497_v61 }
 0x4e1   : > { %9117 = vst [vmem:[#allocation56_spill] sm:$0xff] %v7378_v28  ;;  %5444 = vpow2.f32 %v1671_v8  ;;  %v1605_v63 = vsub.f32 %v6878_v51, %v1525_v39  ;;  %v1606_v57 = vsub.f32 %v6873_v38, %v1525_v39  ;;  %v1759_v60 = vsel %vm1481_vm5, %v7378_v28, 0.0  ;;  %1753 = vadd.xlane.f32.xlu0 %v1752_v12  ;;  %v4864_v12 = vld [vmem:[%s8961_s7 + $0x2d0] sm:$0xff] }
 0x4e2   : > { %v1529_v52 = vpop.xlane.xlu0 %1528  ;;  %v1760_v24 = vadd.f32 %v7372_v47, %v1759_v60  ;;  %v7398_v8 = vadd.f32 %v4862_v29, %v7326_v2  ;;  %v7407_v25 = vpop.eup %5434  ;;  %v2602_v29 = vsel %vm1481_vm5, %v7395_v54, -inf }
 0x4e3   : > { %v1677_v62 = vmul.f32 1.442695, %v1606_v57  ;;  %v1608_v38 = vsub.f32 %v6882_v30, %v1529_v52  ;;  %v1675_v39 = vmul.f32 1.442695, %v1605_v63  ;;  %v1607_v55 = vsub.f32 %v6885_v41, %v1529_v52  ;;  %9119 = vst [vmem:[#allocation58_spill] sm:$0xff] %v7407_v25  ;;  %v4867_v41 = vld [vmem:[%s8961_s7 + $0x2e8] sm:$0xff] }
 0x4e4   : > { %9118 = vst [vmem:[#allocation57_spill] sm:$0xff] %v7398_v8  ;;  %1757 = vadd.xlane.f32.xlu1 %v1756_v42  ;;  %v7401_v51 = vpop.f32.mrb[96].mxu1  ;;  %v2599_v61 = vmax.f32 %v7398_v8, %v2598_v13  ;;  %v7416_v63 = vadd.f32 %v4864_v12, %v2495_v9  ;;  %v7434_v47 = vadd.f32 %v4867_v41, %v2501_v34  ;;  %v4866_v34 = vld [vmem:[%s8961_s7 + $0x2e0] sm:$0xff] }
 0x4e5   : > { %v2507_v60 = vpop.f32.mrb[97].mxu1  ;;  %5446 = vpow2.f32 %v1677_v62  ;;  %v1681_v2 = vmul.f32 1.442695, %v1608_v38  ;;  %1761 = vadd.xlane.f32.xlu0 %v1760_v24  ;;  %v4871_v62 = vld [vmem:[%s8961_s7 + $0x308] sm:$0xff]  ;;  %v1679_v24 = vmul.f32 1.442695, %v1607_v55 }
 0x4e6   : > { %v2509_v16 = vpop.f32.mrb[98].mxu1  ;;  %5448 = vpow2.f32 %v1675_v39  ;;  %v2603_v9 = vmax.f32 %v7416_v63, %v2602_v29  ;;  %v1763_v39 = vsel %vm1481_vm5, %v7407_v25, 0.0  ;;  %v4869_v55 = vld [vmem:[%s8961_s7 + $0x2f8] sm:$0xff]  ;;  %v4870_v29 = vld [vmem:[%s8961_s7 + $0x300] sm:$0xff] }
 0x4e7   : > { %v7410_v30 = vpop.eup %5436  ;;  %v2511_v57 = vpop.f32.mrb[99].mxu1  ;;  %5450 = vpow2.f32 %v1681_v2  ;;  %v7464_v25 = vadd.f32 %v4870_v29, %v2509_v16 }
 0x4e8   : > { %9120 = vst [vmem:[#allocation59_spill] sm:$0xff] %v7410_v30  ;;  %v7414_v42 = vpop.eup %5438  ;;  %2600 = vmax.xlane.f32.xlu1 %v2599_v61  ;;  %v7436_v28 = vadd.f32 %v4871_v62, %v2511_v57  ;;  %5452 = vpow2.f32 %v1679_v24 }
 0x4e9   : > { %9121 = vst [vmem:[#allocation60_spill] sm:$0xff] %v7414_v42  ;;  %v7424_v52 = vpop.eup %5440  ;;  %v1767_v13 = vsel %vm1481_vm5, %v7414_v42, 0.0  ;;  %9125 = vst [vmem:[#allocation64_spill] sm:$0xff] %v7464_v25 }
 0x4ea   : > { %v7428_v38 = vpop.eup %5442  ;;  %v1768_v12 = vadd.f32 %v7410_v30, %v1767_v13  ;;  %9123 = vst [vmem:[#allocation62_spill] sm:$0xff] %v7436_v28  ;;  %v1764_v62 = vadd.f32 %v7424_v52, %v1763_v39  ;;  %v2614_v30 = vsel %vm1481_vm5, %v7436_v28, -inf  ;;  %v4872_v39 = vld [vmem:[%s8961_s7 + $0x310] sm:$0xf] }
 0x4eb   : > { %9122 = vst [vmem:[#allocation61_spill] sm:$0xff] %v7428_v38  ;;  %v7432_v8 = vpop.eup %5444  ;;  %v1771_v2 = vsel %vm1481_vm5, %v7428_v38, 0.0  ;;  %v7462_v38 = vadd.f32 %v4866_v34, %v7370_v20  ;;  %v2615_v20 = vmax.f32 %v7464_v25, %v2614_v30 }
 0x4ec   : > { %1769 = vadd.xlane.f32.xlu0 %v1768_v12  ;;  %2604 = vmax.xlane.f32.xlu1 %v2603_v9  ;;  %v2515_v61 = vpop.f32.mrb[100].mxu1  ;;  %v1772_v13 = vadd.f32 %v7432_v8, %v1771_v2  ;;  %v2606_v9 = vsel %vm1481_vm5, %v7434_v47, -inf  ;;  %v7455_v12 = vadd.f32 %v4869_v55, %v2507_v60  ;;  %v4873_v60 = vld [vmem:[%s8961_s7 + $0x318] sm:$0xf] }
 0x4ed   : > { %v2517_v57 = vpop.f32.mrb[101].mxu1  ;;  %9124 = vst [vmem:[#allocation63_spill] sm:$0xff] %v7462_v38  ;;  %v2607_v55 = vmax.f32 %v7462_v38, %v2606_v9  ;;  %v7481_v34 = vadd.f32 %v4872_v39, %v2515_v61 }
 0x4ee   : > { %v2519_v41 = vpop.f32.mrb[102].mxu1  ;;  %v2610_v2 = vsel %vm1481_vm5, %v7455_v12, -inf  ;;  %v7483_v29 = vadd.f32 %v4873_v60, %v2517_v57 }
 0x4ef   : > { %v2520_v42 = vpop.f32.mrb[103].mxu1  ;;  %v7459_v24 = vpop.eup %5446  ;;  %v2618_v61 = vsel %vm1578_vm6, %v7481_v34, -inf }
 0x4f0   : > { %1765 = vadd.xlane.f32.xlu1 %v1764_v62  ;;  %1773 = vadd.xlane.f32.xlu0 %v1772_v13  ;;  %v4868_v42 = vld [vmem:[%s8961_s7 + $0x2f0] sm:$0xff]  ;;  %v7477_v16 = vpop.eup %5448  ;;  %v1775_v41 = vsel %vm1481_vm5, %v7459_v24, 0.0  ;;  %v2619_v57 = vsel %vm1580_vm7, %v7483_v29, -inf }
 0x4f1   : > { %9126 = vst [vmem:[#allocation65_spill] sm:$0xff] %v7477_v16  ;;  %v7487_v62 = vpop.eup %5450  ;;  %v7490_v13 = vadd.f32 %v4868_v42, %v7401_v51  ;;  %v1776_v9 = vadd.f32 %v7477_v16, %v1775_v41  ;;  %v2620_v51 = vmax.f32 %v2618_v61, %v2619_v57  ;;  %v1537_v42 = vpop.xlane.xlu0 %1536 }
 0x4f2   : > { %v7494_v25 = vpop.eup %5452  ;;  %v1779_v39 = vsel %vm1481_vm5, %v7487_v62, 0.0  ;;  %v1612_v41 = vsub.f32 %v6908_v15, %v1537_v42 }
 0x4f3   : > { %v2611_v30 = vmax.f32 %v7490_v13, %v2610_v2  ;;  %9127 = vst [vmem:[#allocation66_spill] sm:$0xff] %v7494_v25  ;;  %v1780_v60 = vadd.f32 %v7494_v25, %v1779_v39  ;;  %v1611_v39 = vsub.f32 %v6911_v17, %v1537_v42 }
 0x4f4   : > { %2608 = vmax.xlane.f32.xlu1 %v2607_v55  ;;  %2616 = vmax.xlane.f32.xlu0 %v2615_v20  ;;  %v1533_v55 = vpop.xlane.xlu1 %1532 }
 0x4f5   : > { %v1545_v20 = vpop.xlane.xlu0 %1544  ;;  %v1610_v2 = vsub.f32 %v6899_v56, %v1533_v55  ;;  %v1609_v61 = vsub.f32 %v6904_v49, %v1533_v55  ;;  %v1687_v56 = vmul.f32 1.442695, %v1611_v39 }
 0x4f6   : > { %v1615_v15 = vsub.f32 %v6937_v37, %v1545_v20 }
 0x4f7   : > { %v1685_v57 = vmul.f32 1.442695, %v1610_v2  ;;  %v1683_v38 = vmul.f32 1.442695, %v1609_v61 }
 0x4f8   : > { %2612 = vmax.xlane.f32.xlu1 %v2611_v30  ;;  %1777 = vadd.xlane.f32.xlu0 %v1776_v9  ;;  %v1541_v30 = vpop.xlane.xlu1 %1540  ;;  %v1695_v42 = vmul.f32 1.442695, %v1615_v15 }
 0x4f9   : > { %5454 = vpow2.f32 %v1685_v57 }
 0x4fa   : > { %v1553_v9 = vpop.xlane.xlu0 %1552 }
 0x4fb   : > { %v1619_v2 = vsub.f32 %v6963_v32, %v1553_v9 }
 0x4fc   : > { %2621 = vmax.xlane.f32.xlu1 %v2620_v51  ;;  %1781 = vadd.xlane.f32.xlu0 %v1780_v60  ;;  %v1689_v51 = vmul.f32 1.442695, %v1612_v41  ;;  %v1616_v60 = vsub.f32 %v6934_v33, %v1545_v20  ;;  %v1549_v16 = vpop.xlane.xlu1 %1548  ;;  %v1620_v33 = vsub.f32 %v6960_v35, %v1553_v9 }
 0x4fd   : > { %v1617_v49 = vsub.f32 %v6956_v22, %v1549_v16  ;;  %v1618_v17 = vsub.f32 %v6951_v46, %v1549_v16  ;;  %v1703_v35 = vmul.f32 1.442695, %v1619_v2 }
 0x4fe   : > { %5456 = vpow2.f32 %v1689_v51  ;;  %v1697_v55 = vmul.f32 1.442695, %v1616_v60  ;;  %v1705_v46 = vmul.f32 1.442695, %v1620_v33 }
 0x4ff   : > { %5458 = vpow2.f32 %v1683_v38  ;;  %v1701_v20 = vmul.f32 1.442695, %v1618_v17 }
 0x500   : > { %v1557_v28 = vpop.xlane.xlu0 %1556  ;;  %5460 = vpow2.f32 %v1687_v56  ;;  %v9128_v56 = vld [vmem:[#allocation14_spill] sm:$0xff] }
 0x501   : > { %v1621_v37 = vsub.f32 %v6979_v31, %v1557_v28  ;;  %v1622_v22 = vsub.f32 %v6977_v23, %v1557_v28 }
 0x503   : > { %v1707_v9 = vmul.f32 1.442695, %v1621_v37  ;;  %v7524_v57 = vpop.eup %5454  ;;  %v1709_v31 = vmul.f32 1.442695, %v1622_v22 }
 0x508   : > { %v1565_v41 = vpop.xlane.xlu1 %1564  ;;  %v7527_v28 = vpop.eup %5456 }
 0x509   : > { %v1626_v23 = vsub.f32 %v7003_v26, %v1565_v41  ;;  %v1783_v26 = vsel %vm1481_vm5, %v7524_v57, 0.0 }
 0x50d   : > { %2995 = vrot.lane.b32.xlu1 %v6447_v11, %s5846_s21  ;;  %v1614_v11 = vsub.f32 %v6925_v19, %v1541_v30 }
 0x50f   : > { %v1693_v25 = vmul.f32 1.442695, %v1614_v11 }
 0x510   : > { %v1573_v32 = vpop.xlane.xlu1 %1572 }
 0x511   : > { %5462 = vpow2.f32 %v1693_v25  ;;  %v1625_v25 = vsub.f32 %v7008_v21, %v1565_v41  ;;  %v1629_v15 = vsub.f32 %v9128_v56, %v1573_v32 }
 0x512   : > { %2993 = vrot.lane.b32.xlu0 %v6429_v7, %s5846_s21  ;;  %v1613_v7 = vsub.f32 %v6930_v45, %v1541_v30  ;;  %v1561_v45 = vpop.xlane.xlu0 %1560  ;;  %v1699_v30 = vmul.f32 1.442695, %v1617_v49  ;;  %5464 = vpow2.f32 %v1697_v55  ;;  %v1717_v55 = vmul.f32 1.442695, %v1626_v23 }
 0x513   : > { %v1624_v38 = vsub.f32 %v6986_v36, %v1561_v45  ;;  %v1623_v16 = vsub.f32 %v6991_v59, %v1561_v45  ;;  %v1715_v21 = vmul.f32 1.442695, %v1625_v25 }
 0x514   : > { %v1691_v19 = vmul.f32 1.442695, %v1613_v7  ;;  %v7531_v7 = vpop.eup %5458 }
 0x515   : > { %v1713_v36 = vmul.f32 1.442695, %v1624_v38  ;;  %v1711_v59 = vmul.f32 1.442695, %v1623_v16  ;;  %v7536_v49 = vpop.eup %5460  ;;  %v9132_v16 = vld [vmem:[#allocation17_spill] sm:$0xff] }
 0x516   : > { %5466 = vpow2.f32 %v1691_v19  ;;  %v1569_v61 = vpop.xlane.xlu0 %1568 }
 0x517   : > { %5468 = vpow2.f32 %v1695_v42  ;;  %v1628_v39 = vsub.f32 %v7012_v40, %v1569_v61  ;;  %v1627_v51 = vsub.f32 %v7015_v58, %v1569_v61  ;;  %v9129_v40 = vld [vmem:[#allocation13_spill] sm:$0xff]  ;;  %v1787_v58 = vsel %vm1481_vm5, %v7527_v28, 0.0  ;;  %v9130_v42 = vld [vmem:[#allocation15_spill] sm:$0xff] }
 0x518   : > { %5470 = vpow2.f32 %v1699_v30  ;;  %v1584_v60 = vpop.xlane.xlu1 %1583  ;;  %v1630_v17 = vsub.f32 %v9129_v40, %v1573_v32  ;;  %v9131_v30 = vld [vmem:[#allocation16_spill] sm:$0xff]  ;;  %v1788_v32 = vadd.f32 %v7536_v49, %v1787_v58 }
 0x519   : > { %5472 = vpow2.f32 %v1701_v20  ;;  %v1721_v33 = vmul.f32 1.442695, %v1628_v39  ;;  %v1719_v41 = vmul.f32 1.442695, %v1627_v51  ;;  %v1633_v61 = vsub.f32 %v9132_v16, %v1584_v60  ;;  %v9135_v51 = vld [vmem:[#allocation19_spill] sm:$0xff] }
 0x51a   : > { %5474 = vpow2.f32 %v1705_v46  ;;  %v1577_v11 = vpop.xlane.xlu0 %1576  ;;  %v1784_v46 = vadd.f32 %v7531_v7, %v1783_v26  ;;  %v1725_v25 = vmul.f32 1.442695, %v1630_v17  ;;  %v9138_v17 = vld [vmem:[#allocation20_spill] sm:$0xff] }
 0x51b   : > { %5476 = vpow2.f32 %v1703_v35  ;;  %v7541_v19 = vpop.eup %5462  ;;  %v1632_v2 = vsub.f32 %v9130_v42, %v1577_v11  ;;  %v1631_v37 = vsub.f32 %v9131_v30, %v1577_v11  ;;  %v1723_v35 = vmul.f32 1.442695, %v1629_v15  ;;  %v9140_v30 = vld [vmem:[#allocation21_spill] sm:$0xff] }
 0x51c   : > { %5478 = vpow2.f32 %v1707_v9  ;;  %v7544_v45 = vpop.eup %5464  ;;  %v1731_v40 = vmul.f32 1.442695, %v1633_v61 }
 0x51d   : > { %5480 = vpow2.f32 %v1709_v31  ;;  %v9134_v31 = vld [vmem:[#allocation18_spill] sm:$0xff]  ;;  %v1727_v15 = vmul.f32 1.442695, %v1631_v37 }
 0x51e   : > { %5482 = vpow2.f32 %v1713_v36  ;;  %v1634_v23 = vsub.f32 %v9134_v31, %v1584_v60  ;;  %v1791_v36 = vsel %vm1481_vm5, %v7541_v19, 0.0 }
 0x51f   : > { %5484 = vpow2.f32 %v1711_v59  ;;  %v1729_v59 = vmul.f32 1.442695, %v1632_v2 }
 0x520   : > { %v2525_v20 = vpop.xlane.xlu0 %2524  ;;  %v7548_v38 = vpop.eup %5466  ;;  %5486 = vpow2.f32 %v1715_v21  ;;  %v1795_v21 = vsel %vm1481_vm5, %v7544_v45, 0.0  ;;  %v1733_v2 = vmul.f32 1.442695, %v1634_v23 }
 0x521   : > { %v7552_v9 = vpop.eup %5468  ;;  %5488 = vpow2.f32 %v1717_v55  ;;  %v2624_v11 = vsub.f32 %v9135_v51, %v2525_v20  ;;  %v2623_v58 = vsub.f32 %v9138_v17, %v2525_v20 }
 0x522   : > { %v2529_v22 = vpop.xlane.xlu1 %2528  ;;  %9133 = vst [vmem:[#allocation14_spill] sm:$0xff] %v7552_v9  ;;  %v7557_v39 = vpop.eup %5470  ;;  %5490 = vpow2.f32 %v1721_v33  ;;  %v1792_v33 = vadd.f32 %v7548_v38, %v1791_v36  ;;  %v1796_v37 = vadd.f32 %v7552_v9, %v1795_v21  ;;  %v9149_v9 = vld [vmem:[#allocation29_spill] sm:$0xff] }
 0x523   : > { %v7562_v56 = vpop.eup %5472  ;;  %5492 = vpow2.f32 %v1719_v41  ;;  %v2626_v41 = vsub.f32 %v9140_v30, %v2529_v22  ;;  %v2675_v31 = vmul.f32 1.442695, %v2624_v11  ;;  %v9146_v11 = vld [vmem:[#allocation24_spill] sm:$0xff] }
 0x524   : > { %9136 = vst [vmem:[#allocation13_spill] sm:$0xff] %v7562_v56  ;;  %v7566_v60 = vpop.eup %5474  ;;  %5494 = vpow2.f32 %v1723_v35  ;;  %v9142_v35 = vld [vmem:[#allocation23_spill] sm:$0xff]  ;;  %v1799_v20 = vsel %vm1481_vm5, %v7562_v56, 0.0 }
 0x525   : > { %9137 = vst [vmem:[#allocation15_spill] sm:$0xff] %v7566_v60  ;;  %v7570_v42 = vpop.eup %5476  ;;  %5496 = vpow2.f32 %v1725_v25  ;;  %v1803_v51 = vsel %vm1481_vm5, %v7566_v60, 0.0 }
 0x526   : > { %9139 = vst [vmem:[#allocation16_spill] sm:$0xff] %v7570_v42  ;;  %v7574_v16 = vpop.eup %5478  ;;  %5498 = vpow2.f32 %v1729_v59  ;;  %v2673_v59 = vmul.f32 1.442695, %v2623_v58  ;;  %v1804_v58 = vadd.f32 %v7570_v42, %v1803_v51 }
 0x527   : > { %9141 = vst [vmem:[#allocation17_spill] sm:$0xff] %v7574_v16  ;;  %5500 = vpow2.f32 %v1727_v15  ;;  %v2679_v15 = vmul.f32 1.442695, %v2626_v41 }
 0x528   : > { %v2533_v26 = vpop.xlane.xlu0 %2532  ;;  %5502 = vpow2.f32 %v1731_v40 }
 0x529   : > { %v2628_v61 = vsub.f32 %v9142_v35, %v2533_v26  ;;  %v2627_v17 = vsub.f32 %v9146_v11, %v2533_v26  ;;  %5504 = vpow2.f32 %v1733_v2 }
 0x52a   : > { %v7564_v55 = vpop.xlane.xlu1 %2536  ;;  %5506 = vpow2.f32 %v2675_v31 }
 0x52b   : > { %v2683_v60 = vmul.f32 1.442695, %v2628_v61  ;;  %5508 = vpow2.f32 %v2673_v59  ;;  %v9153_v61 = vld [vmem:[#allocation27_spill] sm:$0xff] }
 0x52c   : > { %5510 = vpow2.f32 %v2679_v15 }
 0x530   : > { %v7582_v25 = vpop.xlane.xlu0 %2540 }
 0x531   : > { %1785 = vadd.xlane.f32.xlu0 %v1784_v46  ;;  %1789 = vadd.xlane.f32.xlu1 %v1788_v32  ;;  %v7579_v46 = vpop.eup %5480  ;;  %v9144_v32 = vld [vmem:[#allocation22_spill] sm:$0xff]  ;;  %v2632_v51 = vsub.f32 %v9153_v61, %v7582_v25  ;;  %5512 = vpow2.f32 %v2683_v60  ;;  %v9158_v60 = vld [vmem:[#allocation28_spill] sm:$0xff] }
 0x532   : > { %9143 = vst [vmem:[#allocation18_spill] sm:$0xff] %v7579_v46  ;;  %v2625_v36 = vsub.f32 %v9144_v32, %v2529_v22  ;;  %v2545_v23 = vpop.xlane.xlu1 %2544  ;;  %v7586_v21 = vpop.eup %5482  ;;  %v9148_v22 = vld [vmem:[#allocation25_spill] sm:$0xff]  ;;  %v1800_v32 = vadd.f32 %v7557_v39, %v1799_v20  ;;  %v1807_v11 = vsel %vm1481_vm5, %v7579_v46, 0.0 }
 0x533   : > { %9145 = vst [vmem:[#allocation19_spill] sm:$0xff] %v7586_v21  ;;  %v7589_v30 = vpop.eup %5484  ;;  %v2630_v35 = vsub.f32 %v9148_v22, %v7564_v55  ;;  %v2634_v40 = vsub.f32 %v9149_v9, %v2545_v23  ;;  %v1811_v20 = vsel %vm1481_vm5, %v7586_v21, 0.0  ;;  %v2681_v9 = vmul.f32 1.442695, %v2627_v17  ;;  %v9154_v22 = vld [vmem:[#allocation30_spill] sm:$0xff] }
 0x534   : > { %9147 = vst [vmem:[#allocation20_spill] sm:$0xff] %v7589_v30  ;;  %v7594_v56 = vpop.eup %5486  ;;  %v1808_v21 = vadd.f32 %v7574_v16, %v1807_v11  ;;  %v1812_v59 = vadd.f32 %v7589_v30, %v1811_v20  ;;  %v9159_v11 = vld [vmem:[#allocation33_spill] sm:$0xff] }
 0x535   : > { %1793 = vadd.xlane.f32.xlu0 %v1792_v33  ;;  %1797 = vadd.xlane.f32.xlu1 %v1796_v37  ;;  %v7598_v26 = vpop.eup %5488  ;;  %v2677_v33 = vmul.f32 1.442695, %v2625_v36  ;;  %v9151_v37 = vld [vmem:[#allocation26_spill] sm:$0xff]  ;;  %v2695_v46 = vmul.f32 1.442695, %v2634_v40 }
 0x536   : > { %9150 = vst [vmem:[#allocation21_spill] sm:$0xff] %v7598_v26  ;;  %v2629_v2 = vsub.f32 %v9151_v37, %v7564_v55  ;;  %v7608_v31 = vpop.eup %5490  ;;  %v2687_v55 = vmul.f32 1.442695, %v2630_v35  ;;  %v2633_v37 = vsub.f32 %v9154_v22, %v2545_v23  ;;  %v2631_v35 = vsub.f32 %v9158_v60, %v7582_v25  ;;  %v9161_v22 = vld [vmem:[#allocation34_spill] sm:$0xff] }
 0x537   : > { %9152 = vst [vmem:[#allocation23_spill] sm:$0xff] %v7608_v31  ;;  %v7612_v36 = vpop.eup %5492  ;;  %5514 = vpow2.f32 %v2677_v33  ;;  %v1819_v15 = vsel %vm1481_vm5, %v7608_v31, 0.0  ;;  %v2691_v40 = vmul.f32 1.442695, %v2632_v51 }
 0x538   : > { %v7602_v41 = vpop.xlane.xlu0 %2548  ;;  %v7615_v42 = vpop.eup %5494  ;;  %v2685_v61 = vmul.f32 1.442695, %v2629_v2  ;;  %5516 = vpow2.f32 %v2681_v9  ;;  %v2693_v2 = vmul.f32 1.442695, %v2633_v37  ;;  %v1820_v16 = vadd.f32 %v7612_v36, %v1819_v15 }
 0x539   : > { %1801 = vadd.xlane.f32.xlu0 %v1800_v32  ;;  %1805 = vadd.xlane.f32.xlu1 %v1804_v58  ;;  %9155 = vst [vmem:[#allocation22_spill] sm:$0xff] %v7615_v42  ;;  %v7619_v17 = vpop.eup %5496  ;;  %v1815_v58 = vsel %vm1481_vm5, %v7598_v26, 0.0  ;;  %5518 = vpow2.f32 %v2687_v55  ;;  %v2689_v37 = vmul.f32 1.442695, %v2631_v35 }
 0x53a   : > { %9156 = vst [vmem:[#allocation24_spill] sm:$0xff] %v7619_v17  ;;  %v7625_v23 = vpop.eup %5498  ;;  %5520 = vpow2.f32 %v2695_v46  ;;  %v1816_v9 = vadd.f32 %v7594_v56, %v1815_v58 }
 0x53b   : > { %9157 = vst [vmem:[#allocation25_spill] sm:$0xff] %v7625_v23  ;;  %v7630_v33 = vpop.eup %5500  ;;  %5522 = vpow2.f32 %v2685_v61  ;;  %v1827_v51 = vsel %vm1481_vm5, %v7625_v23, 0.0 }
 0x53c   : > { %v2553_v32 = vpop.xlane.xlu0 %2552  ;;  %9160 = vst [vmem:[#allocation29_spill] sm:$0xff] %v7630_v33  ;;  %v7633_v30 = vpop.eup %5502  ;;  %5524 = vpow2.f32 %v2691_v40  ;;  %v1828_v61 = vadd.f32 %v7630_v33, %v1827_v51 }
 0x53d   : > { %1809 = vadd.xlane.f32.xlu0 %v1808_v21  ;;  %1813 = vadd.xlane.f32.xlu1 %v1812_v59  ;;  %v2638_v20 = vsub.f32 %v9159_v11, %v2553_v32  ;;  %v2637_v26 = vsub.f32 %v9161_v22, %v2553_v32  ;;  %9162 = vst [vmem:[#allocation26_spill] sm:$0xff] %v7633_v30  ;;  %v7637_v25 = vpop.eup %5504  ;;  %v1823_v21 = vsel %vm1481_vm5, %v7619_v17, 0.0  ;;  %5526 = vpow2.f32 %v2693_v2 }
 0x53e   : > { %9163 = vst [vmem:[#allocation27_spill] sm:$0xff] %v7637_v25  ;;  %v7643_v55 = vpop.eup %5506  ;;  %v1824_v32 = vadd.f32 %v7615_v42, %v1823_v21  ;;  %v1831_v15 = vsel %vm1578_vm6, %v7633_v30, 0.0  ;;  %v1832_v60 = vsel %vm1580_vm7, %v7637_v25, 0.0  ;;  %v9183_v30 = vld [vmem:[#allocation38_spill] sm:$0xff] }
 0x53f   : > { %v2703_v31 = vmul.f32 1.442695, %v2638_v20  ;;  %9164 = vst [vmem:[#allocation30_spill] sm:$0xff] %v7643_v55  ;;  %v2701_v46 = vmul.f32 1.442695, %v2637_v26  ;;  %v7645_v59 = vpop.eup %5508  ;;  %v1833_v11 = vadd.f32 %v1832_v60, %v1831_v15 }
 0x540   : > { %9165 = vst [vmem:[#allocation28_spill] sm:$0xff] %v7645_v59  ;;  %v7649_v58 = vpop.eup %5510  ;;  %v2557_v40 = vpop.xlane.xlu0 %2556 }
 0x541   : > { %1817 = vadd.xlane.f32.xlu0 %v1816_v9  ;;  %1821 = vadd.xlane.f32.xlu1 %v1820_v16  ;;  %5528 = vpow2.f32 %v2703_v31  ;;  %9166 = vst [vmem:[#allocation33_spill] sm:$0xff] %v7649_v58  ;;  %v2773_v16 = vsel %vm1481_vm5, %v7643_v55, 0.0  ;;  %v7657_v35 = vpop.eup %5512  ;;  %v2777_v22 = vsel %vm1481_vm5, %v7649_v58, 0.0  ;;  %v9182_v55 = vld [vmem:[#allocation2_spill] sm:$0xff] }
 0x542   : > { %9167 = vst [vmem:[#allocation34_spill] sm:$0xff] %v7657_v35  ;;  %5530 = vpow2.f32 %v2689_v37  ;;  %v7659_v26 = vpop.eup %5514  ;;  %v2774_v20 = vadd.f32 %v7645_v59, %v2773_v16  ;;  %v2781_v9 = vsel %vm1481_vm5, %v7657_v35, 0.0 }
 0x543   : > { %9168 = vst [vmem:[#allocation67_spill] sm:$0xff] %v7659_v26  ;;  %5532 = vpow2.f32 %v2701_v46  ;;  %v7661_v31 = vpop.eup %5516  ;;  %v2778_v46 = vadd.f32 %v7659_v26, %v2777_v22 }
 0x544   : > { %9169 = vst [vmem:[#allocation68_spill] sm:$0xff] %v7661_v31  ;;  %v7664_v2 = vpop.eup %5518 }
 0x545   : > { %1825 = vadd.xlane.f32.xlu0 %v1824_v32  ;;  %1829 = vadd.xlane.f32.xlu1 %v1828_v61  ;;  %9170 = vst [vmem:[#allocation69_spill] sm:$0xff] %v7664_v2  ;;  %v7670_v21 = vpop.eup %5520  ;;  %v2782_v32 = vadd.f32 %v7661_v31, %v2781_v9  ;;  %v2785_v15 = vsel %vm1481_vm5, %v7664_v2, 0.0 }
 0x546   : > { %9171 = vst [vmem:[#allocation70_spill] sm:$0xff] %v7670_v21  ;;  %v7672_v51 = vpop.eup %5522  ;;  %v2793_v60 = vsel %vm1481_vm5, %v7670_v21, 0.0 }
 0x547   : > { %9172 = vst [vmem:[#allocation71_spill] sm:$0xff] %v7672_v51  ;;  %v7674_v37 = vpop.eup %5524  ;;  %v2786_v35 = vadd.f32 %v7672_v51, %v2785_v15 }
 0x548   : > { %9173 = vst [vmem:[#allocation72_spill] sm:$0xff] %v7674_v37  ;;  %v7678_v61 = vpop.eup %5526  ;;  %v2789_v31 = vsel %vm1481_vm5, %v7674_v37, 0.0 }
 0x549   : > { %1834 = vadd.xlane.f32.xlu0 %v1833_v11  ;;  %2775 = vadd.xlane.f32.xlu1 %v2774_v20  ;;  %9174 = vst [vmem:[#allocation73_spill] sm:$0xff] %v7678_v61  ;;  %v2561_v11 = vpop.xlane.xlu0 %2560  ;;  %v2794_v22 = vadd.f32 %v7678_v61, %v2793_v60 }
 0x54a   : > { %v7700_v60 = vpop.xlane.xlu1 %2568  ;;  %v2641_v25 = vsub.f32 %v9183_v30, %v2561_v11 }
 0x54b   : > { %v7684_v16 = vpop.eup %5528 }
 0x54c   : > { %9175 = vst [vmem:[#allocation74_spill] sm:$0xff] %v7684_v16  ;;  %v7686_v20 = vpop.eup %5530  ;;  %v2801_v59 = vsel %vm1481_vm5, %v7684_v16, 0.0 }
 0x54d   : > { %2779 = vadd.xlane.f32.xlu1 %v2778_v46  ;;  %2783 = vadd.xlane.f32.xlu0 %v2782_v32  ;;  %9176 = vst [vmem:[#allocation75_spill] sm:$0xff] %v7686_v20  ;;  %v7690_v9 = vpop.eup %5532  ;;  %v2565_v21 = vpop.xlane.xlu0 %2564  ;;  %v2790_v46 = vadd.f32 %v7686_v20, %v2789_v31  ;;  %v9181_v20 = vld [vmem:[#allocation35_spill] sm:$0xff] }
 0x54e   : > { %9177 = vst [vmem:[#allocation76_spill] sm:$0xff] %v7690_v9  ;;  %v2802_v32 = vadd.f32 %v7690_v9, %v2801_v59  ;;  %v9179_v59 = vld [vmem:[#allocation31_spill] sm:$0xff]  ;;  %v2640_v26 = vsub.f32 %v9181_v20, %v2557_v40 }
 0x54f   : > { %v9185_v20 = vld [vmem:[#allocation3_spill] sm:$0xff] }
 0x551   : > { %2787 = vadd.xlane.f32.xlu1 %v2786_v35  ;;  %2795 = vadd.xlane.f32.xlu0 %v2794_v22  ;;  %v7698_v15 = vpop.xlane.xlu0 %2572  ;;  %v9178_v35 = vld [vmem:[#allocation32_spill] sm:$0xff] }
 0x552   : > { %v7702_v51 = vpop.xlane.xlu1 %2576  ;;  %v2635_v22 = vsub.f32 %v9178_v35, %v7602_v41 }
 0x554   : > { %v2697_v58 = vmul.f32 1.442695, %v2635_v22 }
 0x555   : > { %2791 = vadd.xlane.f32.xlu1 %v2790_v46  ;;  %2803 = vadd.xlane.f32.xlu0 %v2802_v32  ;;  %v2636_v46 = vsub.f32 %v9179_v59, %v7602_v41  ;;  %v9180_v32 = vld [vmem:[#allocation36_spill] sm:$0xff]  ;;  %v2707_v59 = vmul.f32 1.442695, %v2640_v26 }
 0x556   : > { %v2639_v9 = vsub.f32 %v9180_v32, %v2557_v40  ;;  %v2709_v32 = vmul.f32 1.442695, %v2641_v25  ;;  %v9186_v25 = vld [vmem:[#allocation40_spill] sm:$0xff] }
 0x557   : > { %v2699_v35 = vmul.f32 1.442695, %v2636_v46 }
 0x558   : > { %v1738_v61 = vpop.xlane.xlu0 %1737  ;;  %v2705_v23 = vmul.f32 1.442695, %v2639_v9 }
 0x559   : > { %5534 = vrcp.f32 %v1738_v61  ;;  %v9184_v61 = vld [vmem:[#allocation37_spill] sm:$0xff] }
 0x55a   : > { %v7706_v2 = vpop.xlane.xlu1 %2584  ;;  %v2642_v42 = vsub.f32 %v9184_v61, %v2561_v11 }
 0x55c   : > { %v7704_v37 = vpop.xlane.xlu0 %2580 }
 0x560   : > { %v1742_v31 = vpop.xlane.xlu0 %1741 }
 0x561   : > { %5536 = vrcp.f32 %v1742_v31 }
 0x563   : > { %v5535_v22 = vpop.eup %5534 }
 0x564   : > { %v1861_v9 = vmul.f32 %v5535_v22, %v7263_v6 }
 0x565   : > { %v1750_v16 = vpop.xlane.xlu1 %1749 }
 0x566   : > { %2997 = vrot.lane.b32.xlu1 %v9182_v55, %s5846_s21  ;;  %5538 = vrcp.f32 %v1750_v16  ;;  %v1746_v33 = vpop.xlane.xlu0 %1745  ;;  %v2711_v55 = vmul.f32 1.442695, %v2642_v42  ;;  %v2643_v16 = vsub.f32 %v7204_v18, %v2565_v21 }
 0x567   : > { %5540 = vrcp.f32 %v1746_v33  ;;  %v2644_v33 = vsub.f32 %v7199_v14, %v2565_v21 }
 0x568   : > { %5542 = vpow2.f32 %v2697_v58  ;;  %v2645_v58 = vsub.f32 %v9186_v25, %v7700_v60  ;;  %v2713_v21 = vmul.f32 1.442695, %v2643_v16 }
 0x569   : > { %v7718_v41 = vpop.xlane.xlu1 %2592  ;;  %5544 = vpow2.f32 %v2699_v35  ;;  %v1862_v35 = vmul.f32 %v5535_v22, %v7259_v53  ;;  %v2715_v61 = vmul.f32 1.442695, %v2644_v33  ;;  %v9189_v33 = vld [vmem:[#allocation42_spill] sm:$0xff] }
 0x56a   : > { %v2589_v40 = vpop.xlane.xlu0 %2588  ;;  %5546 = vpow2.f32 %v2705_v23 }
 0x56b   : > { %2999 = vrot.lane.b32.xlu0 %v9185_v20, %s5846_s21  ;;  %5548 = vpow2.f32 %v2707_v59  ;;  %v5537_v26 = vpop.eup %5536  ;;  %v2656_v23 = vsub.f32 %v7316_v5, %v2589_v40  ;;  %v9187_v59 = vld [vmem:[#allocation39_spill] sm:$0xff]  ;;  %v2655_v6 = vsub.f32 %v7348_v48, %v2589_v40  ;;  %v2717_v5 = vmul.f32 1.442695, %v2645_v58  ;;  %v9190_v58 = vld [vmem:[#allocation8_spill] sm:$0xff] }
 0x56c   : > { %5550 = vpow2.f32 %v2709_v32  ;;  %v1863_v42 = vmul.f32 %v5537_v26, %v7292_v44  ;;  %v1864_v18 = vmul.f32 %v5537_v26, %v7284_v4  ;;  %v2646_v32 = vsub.f32 %v9187_v59, %v7700_v60  ;;  %v9188_v44 = vld [vmem:[#allocation49_spill] sm:$0xff] }
 0x56d   : > { %v7722_v30 = vpop.xlane.xlu1 %2596  ;;  %5552 = vpow2.f32 %v2711_v55  ;;  %v2739_v22 = vmul.f32 1.442695, %v2656_v23  ;;  %v2647_v26 = vsub.f32 %v9189_v33, %v7698_v15  ;;  %v9192_v23 = vld [vmem:[#allocation52_spill] sm:$0xff]  ;;  %v9197_v33 = vld [vmem:[#allocation43_spill] sm:$0xff] }
 0x56e   : > { %v1754_v11 = vpop.xlane.xlu0 %1753  ;;  %v1912_v55 = vpack.c.bf16 %v1864_v18, %v1862_v35  ;;  %v1911_v25 = vpack.c.bf16 %v1863_v42, %v1861_v9  ;;  %v2660_v53 = vsub.f32 %v7334_v0, %v7722_v30  ;;  %v2719_v40 = vmul.f32 1.442695, %v2646_v32  ;;  %v9193_v35 = vld [vmem:[#allocation50_spill] sm:$0xff] }
 0x56f   : > { %5554 = vrcp.f32 %v1754_v11  ;;  %v2737_v11 = vmul.f32 1.442695, %v2655_v6  ;;  %v9191_v42 = vmov 0  }
 0x570   : > { %v5539_v31 = vpop.eup %5538  ;;  %4811 = vmatprep.mubr.msk.bf16.mxu0 %vm1481_vm5, %v1912_v55  ;;  %v2721_v55 = vmul.f32 1.442695, %v2647_v26 }
 0x571   : > { %v1758_v46 = vpop.xlane.xlu1 %1757  ;;  %v5541_v14 = vpop.eup %5540  ;;  %v1868_v20 = vmul.f32 %v5539_v31, %v7307_v27  ;;  %2051 = vmatmul.mubr.bf16.vlgmr.msra.gmra.mrb[52].mxu0 %v1911_v25  ;;  %v1867_v18 = vmul.f32 %v5539_v31, %v9193_v35  ;;  %v2659_v25 = vsub.f32 %v7357_v1, %v7722_v30  ;;  %v2650_v1 = vsub.f32 %v9197_v33, %v7702_v51 }
 0x572   : > { %v1866_v17 = vmul.f32 %v5541_v14, %v9188_v44  ;;  %v7740_v4 = vpop.eup %5542  ;;  %5556 = vrcp.f32 %v1758_v46  ;;  %v1762_v60 = vpop.xlane.xlu0 %1761  ;;  %3056 = vmatpush1.bf16.msra.mxu0 %v9190_v58  ;;  %v1865_v46 = vmul.f32 %v5541_v14, %v9192_v23  ;;  %v9195_v44 = vld [vmem:[#allocation4_spill] sm:$0xff]  ;;  %v9198_v58 = vld [vmem:[#allocation9_spill] sm:$0xff] }
 0x573   : > { %v7745_v48 = vpop.eup %5544  ;;  %5558 = vpow2.f32 %v2713_v21  ;;  %3057 = vmatprep.subr.bf16.mxu0 %v9191_v42  ;;  %v2745_v26 = vmul.f32 1.442695, %v2659_v25 }
 0x574   : > { %v1914_v27 = vpack.c.bf16 %v1868_v20, %v1866_v17  ;;  %v7749_v0 = vpop.eup %5546  ;;  %5560 = vpow2.f32 %v2715_v61  ;;  %v2747_v17 = vmul.f32 1.442695, %v2660_v53  ;;  %v9194_v20 = vld [vmem:[#allocation41_spill] sm:$0xff]  ;;  %v1913_v14 = vpack.c.bf16 %v1867_v18, %v1865_v46 }
 0x575   : > { %v7743_v16 = vpop.xlane.xlu1 %2600  ;;  %v7753_v9 = vpop.eup %5548  ;;  %5562 = vpow2.f32 %v2717_v5  ;;  %v2648_v6 = vsub.f32 %v9194_v20, %v7698_v15  ;;  %v9196_v5 = vld [vmem:[#allocation44_spill] sm:$0xff]  ;;  %v2727_v20 = vmul.f32 1.442695, %v2650_v1 }
 0x576   : > { %4812 = vmatprep.mubr.msk.bf16.mxu0 %vm1481_vm5, %v1914_v27  ;;  %v7758_v21 = vpop.eup %5550  ;;  %5564 = vpow2.f32 %v2739_v22  ;;  %3058 = vmatpush1.bf16.msra.mxu0 %v9195_v44  ;;  %v2649_v53 = vsub.f32 %v9196_v5, %v7702_v51  ;;  %v9200_v5 = vld [vmem:[#allocation46_spill] sm:$0xff] }
 0x577   : > { %v7760_v32 = vpop.eup %5552  ;;  %5566 = vpow2.f32 %v2719_v40  ;;  %3059 = vmatprep.subr.bf16.mxu0 %v9191_v42  ;;  %v2723_v40 = vmul.f32 1.442695, %v2648_v6 }
 0x578   : > { %5568 = vpow2.f32 %v2737_v11  ;;  %v2725_v35 = vmul.f32 1.442695, %v2649_v53  ;;  %v2652_v53 = vsub.f32 %v9200_v5, %v7704_v37 }
 0x579   : > { %v2605_v59 = vpop.xlane.xlu1 %2604  ;;  %v1770_v61 = vpop.xlane.xlu0 %1769  ;;  %5570 = vpow2.f32 %v2747_v17  ;;  %2059 = vmatmul.mubr.bf16.gmra.mrb[56].mxu0 %v1913_v14 }
 0x57a   : > { %v2664_v31 = vsub.f32 %v7395_v54, %v2605_v59  ;;  %5572 = vrcp.f32 %v1762_v60  ;;  %v5555_v15 = vpop.eup %5554  ;;  %v2663_v54 = vsub.f32 %v7416_v63, %v2605_v59  ;;  %3060 = vmatpush1.bf16.msra.mxu0 %v9198_v58 }
 0x57b   : > { %5574 = vpow2.f32 %v2721_v55  ;;  %3061 = vmatprep.subr.bf16.mxu0 %v9191_v42  ;;  %v1870_v60 = vmul.f32 %v5555_v15, %v7346_v3  ;;  %v1869_v59 = vmul.f32 %v5555_v15, %v7363_v43  ;;  %v9199_v55 = vld [vmem:[#allocation5_spill] sm:$0xff]  ;;  %v2805_v43 = vsel %vm1481_vm5, %v7753_v9, 0.0 }
 0x57c   : > { %v5557_v30 = vpop.eup %5556  ;;  %v2755_v11 = vmul.f32 1.442695, %v2664_v31  ;;  %5576 = vrcp.f32 %v1770_v61  ;;  %v2809_v31 = vsel %vm1481_vm5, %v7760_v32, 0.0 }
 0x57d   : > { %v1766_v22 = vpop.xlane.xlu1 %1765  ;;  %v1774_v27 = vpop.xlane.xlu0 %1773  ;;  %v1872_v23 = vmul.f32 %v5557_v30, %v7354_v50  ;;  %v1871_v51 = vmul.f32 %v5557_v30, %v7367_v10  ;;  %v2797_v50 = vsel %vm1481_vm5, %v7745_v48, 0.0  ;;  %v2753_v10 = vmul.f32 1.442695, %v2663_v54  ;;  %v9202_v54 = vld [vmem:[#allocation6_spill] sm:$0xff] }
 0x57e   : > { %v7775_v17 = vpop.eup %5558  ;;  %5578 = vrcp.f32 %v1766_v22  ;;  %3062 = vmatpush1.bf16.msra.mxu0 %v9199_v55  ;;  %v2798_v15 = vadd.f32 %v7740_v4, %v2797_v50  ;;  %v2810_v58 = vadd.f32 %v7758_v21, %v2809_v31  ;;  %v9205_v50 = vld [vmem:[#allocation48_spill] sm:$0xff]  ;;  %v2731_v55 = vmul.f32 1.442695, %v2652_v53  ;;  %v9208_v53 = vld [vmem:[#allocation58_spill] sm:$0xff] }
 0x57f   : > { %v7781_v46 = vpop.eup %5560  ;;  %5580 = vrcp.f32 %v1774_v27  ;;  %v1916_v6 = vpack.c.bf16 %v1872_v23, %v1870_v60  ;;  %v1915_v25 = vpack.c.bf16 %v1871_v51, %v1869_v59  ;;  %3063 = vmatprep.subr.bf16.mxu0 %v9191_v42 }
 0x580   : > { %v7788_v61 = vpop.eup %5562  ;;  %5582 = vpow2.f32 %v2723_v40  ;;  %v2813_v60 = vsel %vm1481_vm5, %v7781_v46, 0.0 }
 0x581   : > { %v7783_v63 = vpop.xlane.xlu1 %2608  ;;  %v7785_v18 = vpop.xlane.xlu0 %2616  ;;  %5584 = vpow2.f32 %v2745_v26  ;;  %4813 = vmatprep.mubr.msk.bf16.mxu0 %vm1481_vm5, %v1916_v6 }
 0x582   : > { %v7792_v3 = vpop.eup %5564  ;;  %5586 = vpow2.f32 %v2755_v11  ;;  %2067 = vmatmul.mubr.bf16.gmra.mrb[60].mxu0 %v1915_v25  ;;  %v2806_v11 = vadd.f32 %v7749_v0, %v2805_v43 }
 0x583   : > { %v7795_v44 = vpop.eup %5566  ;;  %5588 = vpow2.f32 %v2725_v35  ;;  %v2837_v30 = vsel %vm1481_vm5, %v7792_v3, 0.0  ;;  %3064 = vmatpush1.bf16.msra.mxu0 %v9202_v54 }
 0x584   : > { %v7803_v14 = vpop.eup %5568  ;;  %5590 = vpow2.f32 %v2727_v20  ;;  %3065 = vmatprep.subr.bf16.mxu0 %v9191_v42 }
 0x585   : > { %v2613_v22 = vpop.xlane.xlu1 %2612  ;;  %v1778_v27 = vpop.xlane.xlu0 %1777  ;;  %5592 = vpow2.f32 %v2753_v10  ;;  %v2651_v10 = vsub.f32 %v9205_v50, %v7704_v37  ;;  %v2838_v43 = vadd.f32 %v7803_v14, %v2837_v30  ;;  %v9207_v37 = vld [vmem:[#allocation10_spill] sm:$0xff] }
 0x586   : > { %v7808_v40 = vpop.eup %5570  ;;  %v2667_v33 = vsub.f32 %v7490_v13, %v2613_v22  ;;  %v2668_v1 = vsub.f32 %v7455_v12, %v2613_v22  ;;  %v9203_v13 = vld [vmem:[#allocation47_spill] sm:$0xff]  ;;  %v9204_v12 = vld [vmem:[#allocation45_spill] sm:$0xff] }
 0x587   : > { %9201 = vst [vmem:[#allocation32_spill] sm:$0xff] %v7808_v40  ;;  %v5573_v26 = vpop.eup %5572  ;;  %v2653_v51 = vsub.f32 %v9203_v13, %v7706_v2  ;;  %v2654_v35 = vsub.f32 %v9204_v12, %v7706_v2  ;;  %v2845_v31 = vsel %vm1481_vm5, %v7808_v40, 0.0  ;;  %3066 = vmatpush1.bf16.msra.mxu0 %v9207_v37  ;;  %v9209_v12 = vld [vmem:[#allocation54_spill] sm:$0xff]  ;;  %v9211_v37 = vld [vmem:[#allocation60_spill] sm:$0xff] }
 0x588   : > { %v7819_v23 = vpop.eup %5574  ;;  %v2761_v59 = vmul.f32 1.442695, %v2667_v33  ;;  %v2763_v20 = vmul.f32 1.442695, %v2668_v1  ;;  %v9206_v1 = vld [vmem:[#allocation56_spill] sm:$0xff]  ;;  %v1873_v50 = vmul.f32 %v5573_v26, %v9209_v12  ;;  %3067 = vmatprep.subr.bf16.mxu0 %v9191_v42 }
 0x589   : > { %v7826_v6 = vpop.eup %5576  ;;  %v2622_v25 = vpop.xlane.xlu1 %2621  ;;  %v1874_v54 = vmul.f32 %v5573_v26, %v9206_v1 }
 0x58a   : > { %v5579_v5 = vpop.eup %5578  ;;  %5594 = vpow2.f32 %v2761_v59  ;;  %v2671_v2 = vsub.f32 %v7481_v34, %v2622_v25  ;;  %v2672_v22 = vsub.f32 %v7483_v29, %v2622_v25  ;;  %v1782_v33 = vpop.xlane.xlu0 %1781  ;;  %2799 = vadd.xlane.f32.xlu1 %v2798_v15  ;;  %2807 = vadd.xlane.f32.xlu0 %v2806_v11  ;;  %v9210_v15 = vld [vmem:[#allocation61_spill] sm:$0xff] }
 0x58b   : > { %v5581_v13 = vpop.eup %5580  ;;  %5596 = vpow2.f32 %v2763_v20  ;;  %v1876_v30 = vmul.f32 %v5579_v5, %v9208_v53  ;;  %v1875_v40 = vmul.f32 %v5579_v5, %v7424_v52  ;;  %v1878_v53 = vmul.f32 %v7826_v6, %v9211_v37 }
 0x58c   : > { %v7840_v59 = vpop.eup %5582  ;;  %5598 = vrcp.f32 %v1778_v27  ;;  %v2769_v34 = vmul.f32 1.442695, %v2671_v2  ;;  %v2771_v29 = vmul.f32 1.442695, %v2672_v22  ;;  %v1880_v11 = vmul.f32 %v5581_v13, %v9210_v15  ;;  %v9212_v2 = vld [vmem:[#allocation11_spill] sm:$0xff] }
 0x58d   : > { %v7844_v25 = vpop.eup %5584  ;;  %5600 = vrcp.f32 %v1782_v33  ;;  %v1918_v20 = vpack.c.bf16 %v1876_v30, %v1874_v54  ;;  %v1917_v1 = vpack.c.bf16 %v1875_v40, %v1873_v50  ;;  %v2814_v52 = vadd.f32 %v7775_v17, %v2813_v60  ;;  %3068 = vmatpush1.bf16.msra.mxu0 %v9212_v2  ;;  %v9214_v50 = vld [vmem:[#allocation53_spill] sm:$0xff] }
 0x58e   : > { %v7848_v26 = vpop.eup %5586  ;;  %5602 = vpow2.f32 %v2769_v34  ;;  %2811 = vadd.xlane.f32.xlu1 %v2810_v58  ;;  %2839 = vadd.xlane.f32.xlu0 %v2838_v43  ;;  %v2729_v5 = vmul.f32 1.442695, %v2651_v10  ;;  %v1920_v22 = vpack.c.bf16 %v1880_v11, %v1878_v53  ;;  %v2817_v40 = vsel %vm1481_vm5, %v7795_v44, 0.0  ;;  %v9213_v58 = vld [vmem:[#allocation51_spill] sm:$0xff] }
 0x58f   : > { %v7851_v27 = vpop.eup %5588  ;;  %5604 = vpow2.f32 %v2771_v29  ;;  %4814 = vmatprep.mubr.msk.bf16.mxu0 %vm1481_vm5, %v1918_v20  ;;  %v2735_v54 = vmul.f32 1.442695, %v2654_v35  ;;  %v2658_v43 = vsub.f32 %v9213_v58, %v7718_v41  ;;  %3069 = vmatprep.subr.bf16.mxu0 %v9191_v42  ;;  %v2846_v60 = vadd.f32 %v7844_v25, %v2845_v31  ;;  %v9215_v34 = vld [vmem:[#allocation55_spill] sm:$0xff] }
 0x590   : > { %v7857_v33 = vpop.eup %5590  ;;  %5606 = vpow2.f32 %v2731_v55  ;;  %2075 = vmatmul.mubr.bf16.gmra.mrb[64].mxu0 %v1917_v1  ;;  %v2733_v30 = vmul.f32 1.442695, %v2653_v51  ;;  %v2853_v12 = vsel %vm1481_vm5, %v7848_v26, 0.0  ;;  %v2657_v35 = vsub.f32 %v9214_v50, %v7718_v41  ;;  %v9216_v31 = vld [vmem:[#allocation7_spill] sm:$0xff] }
 0x591   : > { %v7863_v10 = vpop.eup %5592  ;;  %4815 = vmatprep.mubr.msk.bf16.mxu0 %vm1481_vm5, %v1920_v22  ;;  %v1879_v55 = vmul.f32 %v5581_v13, %v7432_v8  ;;  %5608 = vpow2.f32 %v2729_v5  ;;  %v2662_v29 = vsub.f32 %v9215_v34, %v7743_v16  ;;  %3070 = vmatpush1.bf16.msra.mxu0 %v9216_v31  ;;  %v2818_v51 = vadd.f32 %v7788_v61, %v2817_v40  ;;  %v9217_v8 = vld [vmem:[#allocation59_spill] sm:$0xff]  ;;  %v9218_v40 = vld [vmem:[#allocation57_spill] sm:$0xff]  ;;  %v2994_v34 = vpop.permute.xlu0 %2993 }
 0x592   : > { %2815 = vadd.xlane.f32.xlu1 %v2814_v52  ;;  %2847 = vadd.xlane.f32.xlu0 %v2846_v60  ;;  %v2821_v15 = vsel %vm1481_vm5, %v7840_v59, 0.0  ;;  %5610 = vpow2.f32 %v2735_v54  ;;  %v2743_v20 = vmul.f32 1.442695, %v2658_v43  ;;  %v2854_v41 = vadd.f32 %v7863_v10, %v2853_v12  ;;  %v9219_v43 = vld [vmem:[#allocation12_spill] sm:$0xff] }
 0x593   : > { %3071 = vmatprep.subr.bf16.mxu0 %v9191_v42  ;;  %v1877_v13 = vmul.f32 %v7826_v6, %v9217_v8  ;;  %5612 = vpow2.f32 %v2733_v30  ;;  %v2741_v53 = vmul.f32 1.442695, %v2657_v35  ;;  %v2822_v5 = vadd.f32 %v7819_v23, %v2821_v15  ;;  %v9222_v15 = vld [vmem:[#allocation63_spill] sm:$0xff] }
 0x594   : > { %v7877_v11 = vpop.eup %5594  ;;  %v2661_v54 = vsub.f32 %v9218_v40, %v7743_v16  ;;  %v2751_v58 = vmul.f32 1.442695, %v2662_v29  ;;  %v2666_v6 = vsub.f32 %v7434_v47, %v7783_v63  ;;  %v2825_v60 = vsel %vm1481_vm5, %v7857_v33, 0.0 }
 0x595   : > { %v7883_v1 = vpop.eup %5596  ;;  %v1919_v52 = vpack.c.bf16 %v1879_v55, %v1877_v13  ;;  %3072 = vmatpush1.bf16.msra.mxu0 %v9219_v43  ;;  %5614 = vpow2.f32 %v2743_v20  ;;  %v2665_v20 = vsub.f32 %v9222_v15, %v7783_v63  ;;  %v9223_v13 = vld [vmem:[#allocation62_spill] sm:$0xff] }
 0x596   : > { %v5599_v37 = vpop.eup %5598  ;;  %2819 = vadd.xlane.f32.xlu1 %v2818_v51  ;;  %2855 = vadd.xlane.f32.xlu0 %v2854_v41  ;;  %v2861_v2 = vsel %vm1481_vm5, %v7883_v1, 0.0  ;;  %5616 = vpow2.f32 %v2741_v53  ;;  %v2826_v41 = vadd.f32 %v7851_v27, %v2825_v60  ;;  %v2759_v8 = vmul.f32 1.442695, %v2666_v6  ;;  %v9225_v60 = vld [vmem:[#allocation64_spill] sm:$0xff] }
 0x597   : > { %v5601_v22 = vpop.eup %5600  ;;  %3073 = vmatprep.subr.bf16.mxu0 %v9191_v42  ;;  %v1882_v12 = vmul.f32 %v5599_v37, %v7459_v24  ;;  %v2862_v16 = vadd.f32 %v7877_v11, %v2861_v2  ;;  %v9221_v24 = vld [vmem:[#allocation66_spill] sm:$0xff]  ;;  %5618 = vpow2.f32 %v2751_v58  ;;  %v2670_v53 = vsub.f32 %v9223_v13, %v7785_v18 }
 0x598   : > { %v7895_v30 = vpop.eup %5602  ;;  %2083 = vmatmul.mubr.bf16.gmra.mrb[68].mxu0 %v1919_v52  ;;  %v1884_v50 = vmul.f32 %v5601_v22, %v7487_v62  ;;  %v1883_v51 = vmul.f32 %v5601_v22, %v9221_v24  ;;  %v2749_v62 = vmul.f32 1.442695, %v2661_v54  ;;  %v2996_v54 = vpop.permute.xlu1 %2995  ;;  %v2757_v43 = vmul.f32 1.442695, %v2665_v20 }
 0x599   : > { %9220 = vst [vmem:[#allocation31_spill] sm:$0xff] %v7895_v30  ;;  %v7901_v35 = vpop.eup %5604  ;;  %v2869_v47 = vsel %vm1578_vm6, %v7895_v30, 0.0  ;;  %3074 = vmatpush1.bf16.msra.mxu0 %v2994_v34 }
 0x59a   : > { %v7905_v55 = vpop.eup %5606  ;;  %v1922_v29 = vpack.c.bf16 %v1884_v50, %v1882_v12  ;;  %2823 = vadd.xlane.f32.xlu1 %v2822_v5  ;;  %2863 = vadd.xlane.f32.xlu0 %v2862_v16  ;;  %v2870_v31 = vsel %vm1580_vm7, %v7901_v35, 0.0  ;;  %v9224_v5 = vld [vmem:[#allocation65_spill] sm:$0xff]  ;;  %5620 = vpow2.f32 %v2749_v62  ;;  %v2669_v12 = vsub.f32 %v9225_v60, %v7785_v18 }
 0x59b   : > { %3075 = vmatprep.subr.bf16.mxu0 %v9191_v42  ;;  %v2871_v52 = vadd.f32 %v2870_v31, %v2869_v47  ;;  %v1881_v2 = vmul.f32 %v5599_v37, %v9224_v5  ;;  %v7918_v22 = vpop.eup %5608  ;;  %v2829_v40 = vsel %vm1481_vm5, %v7905_v55, 0.0  ;;  %5622 = vpow2.f32 %v2759_v8 }
 0x59c   : > { %4816 = vmatprep.mubr.msk.bf16.mxu0 %vm1481_vm5, %v1922_v29  ;;  %v7922_v63 = vpop.eup %5610  ;;  %v2767_v37 = vmul.f32 1.442695, %v2670_v53  ;;  %v2830_v50 = vadd.f32 %v7918_v22, %v2829_v40  ;;  %5624 = vpow2.f32 %v2757_v43  ;;  %v2765_v34 = vmul.f32 1.442695, %v2669_v12 }
 0x59d   : > { %v1921_v58 = vpack.c.bf16 %v1883_v51, %v1881_v2  ;;  %v7924_v6 = vpop.eup %5612  ;;  %3076 = vmatpush1.bf16.msra.mxu0 %v2996_v54  ;;  %v2833_v16 = vsel %vm1481_vm5, %v7922_v63, 0.0 }
 0x59e   : > { %2827 = vadd.xlane.f32.xlu1 %v2826_v41  ;;  %2872 = vadd.xlane.f32.xlu0 %v2871_v52  ;;  %5626 = vpow2.f32 %v2767_v37  ;;  %v2834_v18 = vadd.f32 %v7924_v6, %v2833_v16 }
 0x59f   : > { %3077 = vmatprep.subr.bf16.mxu0 %v9191_v42  ;;  %v7932_v47 = vpop.eup %5614  ;;  %5628 = vpow2.f32 %v2765_v34 }
 0x5a0   : > { %2091 = vmatmul.mubr.bf16.gmra.mrb[72].mxu0 %v1921_v58  ;;  %v7934_v29 = vpop.eup %5616  ;;  %v2841_v24 = vsel %vm1481_vm5, %v7932_v47, 0.0 }
 0x5a1   : > { %v7937_v31 = vpop.eup %5618  ;;  %v2842_v51 = vadd.f32 %v7934_v29, %v2841_v24 }
 0x5a2   : > { %2831 = vadd.xlane.f32.xlu1 %v2830_v50  ;;  %v2849_v15 = vsel %vm1481_vm5, %v7937_v31, 0.0 }
 0x5a4   : > { %v7942_v62 = vpop.eup %5620 }
 0x5a5   : > { %v7946_v20 = vpop.eup %5622  ;;  %v2850_v41 = vadd.f32 %v7942_v62, %v2849_v15 }
 0x5a6   : > { %2835 = vadd.xlane.f32.xlu1 %v2834_v18  ;;  %v7949_v8 = vpop.eup %5624  ;;  %v2857_v13 = vsel %vm1481_vm5, %v7946_v20, 0.0 }
 0x5a7   : > { %v2858_v52 = vadd.f32 %v7949_v8, %v2857_v13 }
 0x5a8   : > { %v7953_v53 = vpop.eup %5626 }
 0x5a9   : > { %v7956_v5 = vpop.eup %5628  ;;  %v2865_v2 = vsel %vm1481_vm5, %v7953_v53, 0.0 }
 0x5aa   : > { %2843 = vadd.xlane.f32.xlu1 %v2842_v51  ;;  %v2866_v40 = vadd.f32 %v7956_v5, %v2865_v2 }
 0x5ae   : > { %2851 = vadd.xlane.f32.xlu1 %v2850_v41 }
 0x5b2   : > { %2859 = vadd.xlane.f32.xlu1 %v2858_v52 }
 0x5b6   : > { %2867 = vadd.xlane.f32.xlu1 %v2866_v40 }
 0x5be   : > { %v1790_v54 = vpop.xlane.xlu1 %1789  ;;  %v1786_v58 = vpop.xlane.xlu0 %1785 }
 0x5bf   : > { %5630 = vrcp.f32 %v1790_v54 }
 0x5c0   : > { %5632 = vrcp.f32 %v1786_v58 }
 0x5c2   : > { %v1798_v43 = vpop.xlane.xlu1 %1797  ;;  %v1794_v60 = vpop.xlane.xlu0 %1793 }
 0x5c3   : > { %5634 = vrcp.f32 %v1798_v43 }
 0x5c4   : > { %5636 = vrcp.f32 %v1794_v60 }
 0x5c6   : > { %v1806_v12 = vpop.xlane.xlu1 %1805  ;;  %v1802_v37 = vpop.xlane.xlu0 %1801 }
 0x5c7   : > { %5638 = vrcp.f32 %v1806_v12 }
 0x5c8   : > { %5640 = vrcp.f32 %v1802_v37 }
 0x5c9   : > { %v5631_v50 = vpop.eup %5630 }
 0x5ca   : > { %v5633_v16 = vpop.eup %5632  ;;  %v1814_v34 = vpop.xlane.xlu1 %1813  ;;  %v1888_v24 = vmul.f32 %v5631_v50, %v7527_v28  ;;  %v1887_v51 = vmul.f32 %v5631_v50, %v7536_v49  ;;  %v9226_v50 = vld [vmem:[#allocation14_spill] sm:$0xff] }
 0x5cb   : > { %v1810_v18 = vpop.xlane.xlu0 %1809  ;;  %v1886_v15 = vmul.f32 %v5633_v16, %v7524_v57  ;;  %v1885_v41 = vmul.f32 %v5633_v16, %v7531_v7  ;;  %5642 = vrcp.f32 %v1814_v34  ;;  %v9227_v34 = vld [vmem:[#allocation13_spill] sm:$0xff] }
 0x5cc   : > { %5644 = vrcp.f32 %v1810_v18 }
 0x5cd   : > { %v5635_v13 = vpop.eup %5634  ;;  %v1924_v52 = vpack.c.bf16 %v1888_v24, %v1886_v15  ;;  %v1923_v2 = vpack.c.bf16 %v1887_v51, %v1885_v41  ;;  %v9228_v24 = vld [vmem:[#allocation15_spill] sm:$0xff] }
 0x5ce   : > { %v5637_v40 = vpop.eup %5636  ;;  %v1822_v54 = vpop.xlane.xlu1 %1821  ;;  %v1892_v43 = vmul.f32 %v5635_v13, %v7544_v45  ;;  %v1891_v16 = vmul.f32 %v5635_v13, %v9226_v50 }
 0x5cf   : > { %v1818_v58 = vpop.xlane.xlu0 %1817  ;;  %4817 = vmatprep.mubr.msk.bf16.mxu0 %vm1481_vm5, %v1924_v52  ;;  %v1890_v28 = vmul.f32 %v5637_v40, %v7541_v19  ;;  %v1889_v37 = vmul.f32 %v5637_v40, %v7548_v38  ;;  %5646 = vrcp.f32 %v1822_v54 }
 0x5d0   : > { %2099 = vmatmul.mubr.bf16.gmra.mrb[76].mxu0 %v1923_v2  ;;  %5648 = vrcp.f32 %v1818_v58 }
 0x5d1   : > { %v5639_v49 = vpop.eup %5638  ;;  %v1926_v60 = vpack.c.bf16 %v1892_v43, %v1890_v28  ;;  %v1925_v15 = vpack.c.bf16 %v1891_v16, %v1889_v37  ;;  %v9229_v43 = vld [vmem:[#allocation16_spill] sm:$0xff] }
 0x5d2   : > { %v5641_v57 = vpop.eup %5640  ;;  %v1830_v12 = vpop.xlane.xlu1 %1829  ;;  %v1896_v45 = vmul.f32 %v5639_v49, %v9228_v24  ;;  %v1895_v28 = vmul.f32 %v5639_v49, %v9229_v43 }
 0x5d3   : > { %v1826_v7 = vpop.xlane.xlu0 %1825  ;;  %4818 = vmatprep.mubr.msk.bf16.mxu0 %vm1481_vm5, %v1926_v60  ;;  %v1894_v18 = vmul.f32 %v5641_v57, %v9227_v34  ;;  %v1893_v13 = vmul.f32 %v5641_v57, %v7557_v39  ;;  %v9230_v60 = vld [vmem:[#allocation18_spill] sm:$0xff]  ;;  %v9231_v34 = vld [vmem:[#allocation19_spill] sm:$0xff]  ;;  %5650 = vrcp.f32 %v1830_v12  ;;  %v9232_v39 = vld [vmem:[#allocation17_spill] sm:$0xff] }
 0x5d4   : > { %5652 = vrcp.f32 %v1826_v7  ;;  %v9233_v57 = vld [vmem:[#allocation20_spill] sm:$0xff]  ;;  %v9235_v12 = vld [vmem:[#allocation23_spill] sm:$0xff] }
 0x5d5   : > { %v5643_v41 = vpop.eup %5642  ;;  %v1928_v52 = vpack.c.bf16 %v1896_v45, %v1894_v18  ;;  %v1927_v16 = vpack.c.bf16 %v1895_v28, %v1893_v13 }
 0x5d6   : > { %v2776_v51 = vpop.xlane.xlu1 %2775  ;;  %v5645_v2 = vpop.eup %5644  ;;  %v1900_v54 = vmul.f32 %v5643_v41, %v9231_v34  ;;  %v1899_v43 = vmul.f32 %v5643_v41, %v9233_v57 }
 0x5d7   : > { %v1835_v19 = vpop.xlane.xlu0 %1834  ;;  %v1898_v50 = vmul.f32 %v5645_v2, %v9230_v60  ;;  %v1897_v49 = vmul.f32 %v5645_v2, %v9232_v39  ;;  %v9234_v60 = vld [vmem:[#allocation21_spill] sm:$0xff] }
 0x5d8   : > { %2107 = vmatmul.mubr.bf16.gmra.mrb[80].mxu0 %v1925_v15  ;;  %5654 = vrcp.f32 %v1835_v19  ;;  %v9236_v19 = vld [vmem:[#allocation24_spill] sm:$0xff] }
 0x5d9   : > { %4819 = vmatprep.mubr.msk.bf16.mxu0 %vm1481_vm5, %v1928_v52  ;;  %v5647_v18 = vpop.eup %5646  ;;  %v1930_v24 = vpack.c.bf16 %v1900_v54, %v1898_v50  ;;  %v1929_v13 = vpack.c.bf16 %v1899_v43, %v1897_v49  ;;  %v9237_v49 = vld [vmem:[#allocation25_spill] sm:$0xff]  ;;  %v9238_v43 = vmov 0.0  }
 0x5da   : > { %v2780_v38 = vpop.xlane.xlu1 %2779  ;;  %v5649_v45 = vpop.eup %5648  ;;  %v1904_v7 = vmul.f32 %v5647_v18, %v9235_v12 }
 0x5db   : > { %v2784_v40 = vpop.xlane.xlu0 %2783  ;;  %v1902_v34 = vmul.f32 %v5649_v45, %v9234_v60  ;;  %v1901_v41 = vmul.f32 %v5649_v45, %v7594_v56  ;;  %5656 = vrcp.f32 %v2780_v38  ;;  %v9240_v56 = vld [vmem:[#allocation29_spill] sm:$0xff] }
 0x5dc   : > { %5658 = vrcp.f32 %v2776_v51 }
 0x5dd   : > { %v5651_v28 = vpop.eup %5650  ;;  %v1932_v54 = vpack.c.bf16 %v1904_v7, %v1902_v34 }
 0x5de   : > { %v2788_v58 = vpop.xlane.xlu1 %2787  ;;  %v1908_v57 = vmul.f32 %v5651_v28, %v9237_v49  ;;  %v1907_v45 = vmul.f32 %v5651_v28, %v9240_v56  ;;  %v9245_v49 = vld [vmem:[#allocation67_spill] sm:$0xff] }
 0x5df   : > { %v2796_v37 = vpop.xlane.xlu0 %2795  ;;  %5660 = vrcp.f32 %v2788_v58  ;;  %v9244_v58 = vld [vmem:[#allocation30_spill] sm:$0xff] }
 0x5e0   : > { %2115 = vmatmul.mubr.bf16.gmra.mrb[84].mxu0 %v1927_v16  ;;  %v5653_v16 = vpop.eup %5652  ;;  %5662 = vrcp.f32 %v2784_v40 }
 0x5e1   : > { %4820 = vmatprep.mubr.msk.bf16.mxu0 %vm1481_vm5, %v1930_v24  ;;  %v1903_v24 = vmul.f32 %v5647_v18, %v7612_v36  ;;  %v1906_v39 = vmul.f32 %v5653_v16, %v9236_v19  ;;  %v9241_v36 = vld [vmem:[#allocation27_spill] sm:$0xff] }
 0x5e2   : > { %v2792_v15 = vpop.xlane.xlu1 %2791  ;;  %v5655_v34 = vpop.eup %5654 }
 0x5e3   : > { %v7979_v52 = vpop.xlane.xlu0 %2803  ;;  %v1934_v60 = vpack.c.bf16 %v1908_v57, %v1906_v39  ;;  %v1910_v18 = vmul.f32 %v5655_v34, %v9241_v36  ;;  %5664 = vrcp.f32 %v2792_v15  ;;  %v5344_v15 = vld [vmem:[%s8959_s5] sm:$0xff]  }
 0x5e4   : > { %5666 = vrcp.f32 %v2796_v37 }
 0x5e5   : > { %v1936_v38 = vpack.c.bf16 %v1910_v18, %v1910_v18  ;;  %5668 = vrcp.f32 %v7979_v52  ;;  %v9256_v52 = vld [vmem:[#allocation76_spill] sm:$0xff] }
 0x5e6   : > { %v2998_v30 = vpop.permute.xlu1 %2997 }
 0x5e7   : > { %v3000_v50 = vpop.permute.xlu0 %2999  ;;  %3078 = vmatpush1.bf16.msra.mxu0 %v2998_v30  ;;  %v1931_v30 = vpack.c.bf16 %v1903_v24, %v1901_v41 }
 0x5e8   : > { %2123 = vmatmul.mubr.bf16.gmra.mrb[88].mxu0 %v1929_v13  ;;  %3079 = vmatprep.subr.bf16.mxu0 %v9191_v42  ;;  %v3053_v2 = vsel %vm2014_vm4, %v3000_v50, 0  ;;  %v9239_v42 = vld [vmem:[#allocation22_spill] sm:$0xff]  ;;  %v5345_v13 = vld [vmem:[%s8959_s5 + $0x8] sm:$0xff]   ;;  %v5657_v50 = vpop.eup %5656 }
 0x5e9   : > { %4821 = vmatprep.mubr.msk.bf16.mxu0 %vm1481_vm5, %v1932_v54  ;;  %v1905_v12 = vmul.f32 %v5653_v16, %v9239_v42  ;;  %5094 = vmatpush3.bf16.msra.mxu1 %v5345_v13  ;;  %v5659_v51 = vpop.eup %5658  ;;  %v9242_v54 = vld [vmem:[#allocation26_spill] sm:$0xff]  ;;  %v9243_v16 = vld [vmem:[#allocation33_spill] sm:$0xff]  ;;  %v2901_v57 = vmul.f32 %v5657_v50, %v9245_v49  ;;  %v9247_v42 = vld [vmem:[#allocation28_spill] sm:$0xff] }
 0x5ea   : > { %5201 = vmatprep.subr.bf16.mxu1 %v9238_v43  ;;  %v1909_v28 = vmul.f32 %v5655_v34, %v9242_v54  ;;  %v2900_v41 = vmul.f32 %v5659_v51, %v9244_v58  ;;  %v5661_v39 = vpop.eup %5660  ;;  %v9248_v34 = vld [vmem:[#allocation34_spill] sm:$0xff] }
 0x5eb   : > { %3080 = vmatpush1.bf16.msra.mxu0 %v3053_v2  ;;  %v1933_v7 = vpack.c.bf16 %v1907_v45, %v1905_v12  ;;  %v2902_v2 = vmul.f32 %v5657_v50, %v9243_v16  ;;  %v5663_v40 = vpop.eup %5662  ;;  %v2899_v12 = vmul.f32 %v5659_v51, %v9247_v42  ;;  %v9251_v51 = vld [vmem:[#allocation68_spill] sm:$0xff] }
 0x5ec   : > { %5147 = vmatprep.subr.bf16.mxu0 %v9238_v43  ;;  %v1935_v24 = vpack.c.bf16 %v1909_v28, %v1909_v28  ;;  %v2904_v56 = vmul.f32 %v5663_v40, %v9248_v34  ;;  %v2903_v54 = vmul.f32 %v5663_v40, %v9251_v51  ;;  %v9252_v28 = vld [vmem:[#allocation70_spill] sm:$0xff] }
 0x5ed   : > { %v2950_v19 = vpack.c.bf16 %v2902_v2, %v2900_v41  ;;  %v2949_v45 = vpack.c.bf16 %v2901_v57, %v2899_v12  ;;  %v5665_v18 = vpop.eup %5664  ;;  %v9253_v41 = vld [vmem:[#allocation75_spill] sm:$0xff] }
 0x5ee   : > { %v5667_v37 = vpop.eup %5666 }
 0x5ef   : > { %v2910_v16 = vmul.f32 %v5667_v37, %v9252_v28  ;;  %v5669_v42 = vpop.eup %5668 }
 0x5f0   : > { %2131 = vmatmul.mubr.bf16.gmra.mrb[92].mxu0 %v1931_v30  ;;  %v9246_v30 = vld [vmem:[#allocation69_spill] sm:$0xff] }
 0x5f1   : > { %4822 = vmatprep.mubr.msk.bf16.mxu0 %vm1481_vm5, %v1934_v60  ;;  %v2906_v60 = vmul.f32 %v5661_v39, %v9246_v30 }
 0x5f3   : > { %v2952_v36 = vpack.c.bf16 %v2906_v60, %v2904_v56 }
 0x5f8   : > { %2139 = vmatmul.mubr.bf16.gmra.mrb[96].mxu0 %v1933_v7  ;;  %v9249_v7 = vld [vmem:[#allocation71_spill] sm:$0xff] }
 0x5f9   : > { %4823 = vmatprep.mubr.msk.bf16.mxu0 %vm1481_vm5, %v1936_v38  ;;  %v2905_v13 = vmul.f32 %v5661_v39, %v9249_v7  ;;  %v9250_v38 = vld [vmem:[#allocation72_spill] sm:$0xff] }
 0x5fa   : > { %v2908_v50 = vmul.f32 %v5665_v18, %v9250_v38 }
 0x5fb   : > { %v2951_v2 = vpack.c.bf16 %v2905_v13, %v2903_v54 }
 0x5fc   : > { %v2954_v58 = vpack.c.bf16 %v2910_v16, %v2908_v50 }
 0x600   : > { %2147 = vmatmul.mubr.bf16.gmra.mrb[100].mxu0 %v1935_v24  ;;  %v2907_v24 = vmul.f32 %v5665_v18, %v9253_v41  ;;  %v2913_v18 = vmul.f32 %v5669_v42, %v9256_v52 }
 0x601   : > { %4887 = vmatprep.mubr.msk.bf16.mxu0 %vm1481_vm5, %v2950_v19  ;;  %v9254_v19 = vld [vmem:[#allocation73_spill] sm:$0xff] }
 0x602   : > { %v2909_v49 = vmul.f32 %v5667_v37, %v9254_v19 }
 0x604   : > { %v2953_v39 = vpack.c.bf16 %v2909_v49, %v2907_v24 }
 0x608   : > { %3088 = vmatmul.mubr.bf16.vlgmr.msra.gmra.mrb[104].mxu0 %v2949_v45 }
 0x609   : > { %4888 = vmatprep.mubr.msk.bf16.mxu0 %vm1481_vm5, %v2952_v36  ;;  %5148 = vmatpush3.bf16.msra.mxu0 %v5344_v15  ;;  %v9255_v15 = vld [vmem:[#allocation74_spill] sm:$0xff] }
 0x60a   : > { %5257 = vmatprep.subr.bf16.mxu0 %v9238_v43  ;;  %v2914_v45 = vmul.f32 %v5669_v42, %v9255_v15 }
 0x610   : > { %3096 = vmatmul.mubr.bf16.gmra.mrb[108].mxu0 %v2951_v2 }
 0x611   : > { %4889 = vmatprep.mubr.msk.bf16.mxu0 %vm1481_vm5, %v2954_v58 }
 0x617   : > { %v2800_v57 = vpop.xlane.xlu1 %2799  ;;  %v2808_v30 = vpop.xlane.xlu0 %2807 }
 0x618   : > { %5670 = vrcp.f32 %v2800_v57  ;;  %3104 = vmatmul.mubr.bf16.gmra.mrb[112].mxu0 %v2953_v39 }
 0x619   : > { %5672 = vrcp.f32 %v2808_v30 }
 0x61b   : > { %v2812_v40 = vpop.xlane.xlu1 %2811  ;;  %v2840_v57 = vpop.xlane.xlu0 %2839 }
 0x61c   : > { %5674 = vrcp.f32 %v2812_v40 }
 0x61f   : > { %v2816_v60 = vpop.xlane.xlu1 %2815 }
 0x620   : > { %5676 = vrcp.f32 %v2816_v60 }
 0x622   : > { %v5671_v12 = vpop.eup %5670 }
 0x623   : > { %v2820_v34 = vpop.xlane.xlu1 %2819  ;;  %v2912_v56 = vmul.f32 %v5671_v12, %v7745_v48  ;;  %v2911_v36 = vmul.f32 %v5671_v12, %v7740_v4  ;;  %v5673_v37 = vpop.eup %5672 }
 0x624   : > { %5678 = vrcp.f32 %v2820_v34  ;;  %v2916_v51 = vmul.f32 %v5673_v37, %v7753_v9  ;;  %v2915_v2 = vmul.f32 %v5673_v37, %v7749_v0 }
 0x625   : > { %v2956_v7 = vpack.c.bf16 %v2914_v45, %v2912_v56  ;;  %v2955_v13 = vpack.c.bf16 %v2913_v18, %v2911_v36 }
 0x626   : > { %v5675_v38 = vpop.eup %5674 }
 0x627   : > { %v2824_v50 = vpop.xlane.xlu1 %2823  ;;  %4890 = vmatprep.mubr.msk.bf16.mxu0 %vm1481_vm5, %v2956_v7  ;;  %v2918_v54 = vmul.f32 %v5675_v38, %v7760_v32  ;;  %v2917_v28 = vmul.f32 %v5675_v38, %v7758_v21 }
 0x628   : > { %3112 = vmatmul.mubr.bf16.gmra.mrb[116].mxu0 %v2955_v13  ;;  %5680 = vrcp.f32 %v2824_v50 }
 0x629   : > { %v2958_v48 = vpack.c.bf16 %v2918_v54, %v2916_v51  ;;  %v2957_v41 = vpack.c.bf16 %v2917_v28, %v2915_v2 }
 0x62a   : > { %v5677_v16 = vpop.eup %5676 }
 0x62b   : > { %v2828_v4 = vpop.xlane.xlu1 %2827  ;;  %4891 = vmatprep.mubr.msk.bf16.mxu0 %vm1481_vm5, %v2958_v48  ;;  %v2920_v19 = vmul.f32 %v5677_v16, %v7781_v46  ;;  %v2919_v0 = vmul.f32 %v5677_v16, %v7775_v17  ;;  %v2848_v17 = vpop.xlane.xlu0 %2847 }
 0x62c   : > { %5682 = vrcp.f32 %v2828_v4 }
 0x62e   : > { %v5679_v58 = vpop.eup %5678 }
 0x62f   : > { %v2832_v24 = vpop.xlane.xlu1 %2831  ;;  %v2922_v9 = vmul.f32 %v5679_v58, %v7795_v44  ;;  %v2921_v49 = vmul.f32 %v5679_v58, %v7788_v61  ;;  %v2856_v13 = vpop.xlane.xlu0 %2855  ;;  %v9257_v58 = vld [vmem:[#allocation32_spill] sm:$0xff] }
 0x630   : > { %3120 = vmatmul.mubr.bf16.gmra.mrb[120].mxu0 %v2957_v41  ;;  %5684 = vrcp.f32 %v2832_v24 }
 0x631   : > { %v2960_v32 = vpack.c.bf16 %v2922_v9, %v2920_v19  ;;  %v2959_v40 = vpack.c.bf16 %v2921_v49, %v2919_v0 }
 0x632   : > { %v5681_v39 = vpop.eup %5680 }
 0x633   : > { %v2836_v21 = vpop.xlane.xlu1 %2835  ;;  %4892 = vmatprep.mubr.msk.bf16.mxu0 %vm1481_vm5, %v2960_v32  ;;  %v2924_v46 = vmul.f32 %v5681_v39, %v7840_v59  ;;  %v2923_v56 = vmul.f32 %v5681_v39, %v7819_v23  ;;  %v2864_v2 = vpop.xlane.xlu0 %2863 }
 0x634   : > { %5686 = vrcp.f32 %v2836_v21 }
 0x635   : > { %5688 = vrcp.f32 %v2840_v57 }
 0x636   : > { %v5683_v30 = vpop.eup %5682 }
 0x637   : > { %v2844_v60 = vpop.xlane.xlu1 %2843  ;;  %v2926_v44 = vmul.f32 %v5683_v30, %v7857_v33  ;;  %v2925_v61 = vmul.f32 %v5683_v30, %v7851_v27  ;;  %v2873_v21 = vpop.xlane.xlu0 %2872 }
 0x638   : > { %5690 = vrcp.f32 %v2844_v60  ;;  %3128 = vmatmul.mubr.bf16.gmra.mrb[124].mxu0 %v2959_v40 }
 0x639   : > { %v2962_v42 = vpack.c.bf16 %v2926_v44, %v2924_v46  ;;  %v2961_v45 = vpack.c.bf16 %v2925_v61, %v2923_v56 }
 0x63a   : > { %v5685_v34 = vpop.eup %5684 }
 0x63b   : > { %v2852_v12 = vpop.xlane.xlu1 %2851  ;;  %4893 = vmatprep.mubr.msk.bf16.mxu0 %vm1481_vm5, %v2962_v42  ;;  %v2928_v36 = vmul.f32 %v5685_v34, %v7905_v55  ;;  %v2927_v7 = vmul.f32 %v5685_v34, %v7918_v22 }
 0x63c   : > { %5692 = vrcp.f32 %v2852_v12 }
 0x63d   : > { %5694 = vrcp.f32 %v2848_v17 }
 0x63e   : > { %v5687_v15 = vpop.eup %5686 }
 0x63f   : > { %v2930_v59 = vmul.f32 %v5687_v15, %v7922_v63  ;;  %v5689_v33 = vpop.eup %5688  ;;  %v2929_v27 = vmul.f32 %v5687_v15, %v7924_v6  ;;  %v2860_v37 = vpop.xlane.xlu1 %2859 }
 0x640   : > { %3136 = vmatmul.mubr.bf16.gmra.mrb[128].mxu0 %v2961_v45  ;;  %v2932_v38 = vmul.f32 %v5689_v33, %v7792_v3  ;;  %5696 = vrcp.f32 %v2860_v37  ;;  %v2931_v16 = vmul.f32 %v5689_v33, %v7803_v14 }
 0x641   : > { %v2964_v52 = vpack.c.bf16 %v2930_v59, %v2928_v36  ;;  %v2963_v55 = vpack.c.bf16 %v2929_v27, %v2927_v7  ;;  %5698 = vrcp.f32 %v2856_v13 }
 0x642   : > { %v5691_v18 = vpop.eup %5690 }
 0x643   : > { %4894 = vmatprep.mubr.msk.bf16.mxu0 %vm1481_vm5, %v2964_v52  ;;  %v2934_v23 = vmul.f32 %v5691_v18, %v7932_v47  ;;  %v2933_v48 = vmul.f32 %v5691_v18, %v7934_v29  ;;  %v2868_v47 = vpop.xlane.xlu1 %2867 }
 0x644   : > { %v8050_v51 = vpop.f32.mrb[52].mxu0  ;;  %5700 = vrcp.f32 %v2868_v47 }
 0x645   : > { %v2966_v63 = vpack.c.bf16 %v2934_v23, %v2932_v38  ;;  %v2054_v54 = vpop.f32.mrb[53].mxu0  ;;  %v2965_v24 = vpack.c.bf16 %v2933_v48, %v2931_v16  ;;  %5702 = vrcp.f32 %v2864_v2 }
 0x646   : > { %v5693_v50 = vpop.eup %5692  ;;  %v8054_v28 = vpop.f32.mrb[54].mxu0  ;;  %5704 = vrcp.f32 %v2873_v21 }
 0x647   : > { %v5695_v6 = vpop.eup %5694  ;;  %v2938_v22 = vmul.f32 %v5693_v50, %v7937_v31  ;;  %v2154_v3 = vpack.c.bf16 %v8054_v28, %v8050_v51  ;;  %v2057_v4 = vpop.f32.mrb[55].mxu0  ;;  %v2937_v49 = vmul.f32 %v5693_v50, %v7942_v62 }
 0x648   : > { %3144 = vmatmul.mubr.bf16.gmra.mrb[132].mxu0 %v2963_v55  ;;  %v2936_v41 = vmul.f32 %v5695_v6, %v9257_v58  ;;  %v2935_v30 = vmul.f32 %v5695_v6, %v7844_v25 }
 0x649   : > { %4895 = vmatprep.mubr.msk.bf16.mxu0 %vm1481_vm5, %v2966_v63 }
 0x64a   : > { %v2968_v19 = vpack.c.bf16 %v2938_v22, %v2936_v41  ;;  %v5697_v9 = vpop.eup %5696  ;;  %v2967_v60 = vpack.c.bf16 %v2937_v49, %v2935_v30 }
 0x64b   : > { %v5699_v32 = vpop.eup %5698  ;;  %v2942_v14 = vmul.f32 %v5697_v9, %v7946_v20  ;;  %v2941_v12 = vmul.f32 %v5697_v9, %v7949_v8 }
 0x64c   : > { %v2060_v29 = vpop.f32.mrb[56].mxu0  ;;  %v2940_v40 = vmul.f32 %v5699_v32, %v7848_v26  ;;  %v2939_v25 = vmul.f32 %v5699_v32, %v7863_v10 }
 0x64d   : > { %v2062_v31 = vpop.f32.mrb[57].mxu0 }
 0x64e   : > { %v2063_v39 = vpop.f32.mrb[58].mxu0  ;;  %v2970_v46 = vpack.c.bf16 %v2942_v14, %v2940_v40  ;;  %v5701_v44 = vpop.eup %5700  ;;  %v2969_v15 = vpack.c.bf16 %v2941_v12, %v2939_v25 }
 0x64f   : > { %v2155_v57 = vpack.c.bf16 %v2063_v39, %v2060_v29  ;;  %v2065_v0 = vpop.f32.mrb[59].mxu0  ;;  %v5703_v61 = vpop.eup %5702  ;;  %v2946_v20 = vmul.f32 %v5701_v44, %v7953_v53  ;;  %v2945_v59 = vmul.f32 %v5701_v44, %v7956_v5 }
 0x650   : > { %3152 = vmatmul.mubr.bf16.gmra.mrb[136].mxu0 %v2965_v24  ;;  %v2944_v26 = vmul.f32 %v5703_v61, %v7883_v1  ;;  %v5705_v36 = vpop.eup %5704  ;;  %v2943_v53 = vmul.f32 %v5703_v61, %v7877_v11  ;;  %v9258_v1 = vld [vmem:[#allocation31_spill] sm:$0xff] }
 0x651   : > { %4896 = vmatprep.mubr.msk.bf16.mxu0 %vm1481_vm5, %v2968_v19  ;;  %v2948_v8 = vmul.f32 %v5705_v36, %v7901_v35  ;;  %v2947_v7 = vmul.f32 %v5705_v36, %v9258_v1 }
 0x652   : > { %v2972_v45 = vpack.c.bf16 %v2946_v20, %v2944_v26  ;;  %v2971_v10 = vpack.c.bf16 %v2945_v59, %v2943_v53 }
 0x653   : > { %v2974_v23 = vpack.c.bf16 %v2948_v8, %v2948_v8  ;;  %v2973_v50 = vpack.c.bf16 %v2947_v7, %v2947_v7 }
 0x655   : > { %v2068_v42 = vpop.f32.mrb[60].mxu0 }
 0x656   : > { %v2070_v62 = vpop.f32.mrb[61].mxu0 }
 0x657   : > { %v2071_v34 = vpop.f32.mrb[62].mxu0 }
 0x658   : > { %3160 = vmatmul.mubr.bf16.gmra.mrb[140].mxu0 %v2967_v60  ;;  %v2156_v56 = vpack.c.bf16 %v2071_v34, %v2068_v42  ;;  %v2073_v17 = vpop.f32.mrb[63].mxu0 }
 0x659   : > { %4897 = vmatprep.mubr.msk.bf16.mxu0 %vm1481_vm5, %v2970_v46 }
 0x660   : > { %3168 = vmatmul.mubr.bf16.gmra.mrb[144].mxu0 %v2969_v15 }
 0x661   : > { %4898 = vmatprep.mubr.msk.bf16.mxu0 %vm1481_vm5, %v2972_v45 }
 0x663   : > { %v2076_v33 = vpop.f32.mrb[64].mxu0 }
 0x664   : > { %v2078_v52 = vpop.f32.mrb[65].mxu0 }
 0x665   : > { %v2079_v18 = vpop.f32.mrb[66].mxu0 }
 0x666   : > { %v2157_v27 = vpack.c.bf16 %v2079_v18, %v2076_v33  ;;  %v2081_v37 = vpop.f32.mrb[67].mxu0 }
 0x668   : > { %3176 = vmatmul.mubr.bf16.gmra.mrb[148].mxu0 %v2971_v10 }
 0x669   : > { %4899 = vmatprep.mubr.msk.bf16.mxu0 %vm1481_vm5, %v2974_v23 }
 0x66b   : > { %v2084_v13 = vpop.f32.mrb[68].mxu0 }
 0x66c   : > { %v2086_v38 = vpop.f32.mrb[69].mxu0 }
 0x66d   : > { %v2087_v55 = vpop.f32.mrb[70].mxu0 }
 0x66e   : > { %v2158_v5 = vpack.c.bf16 %v2087_v55, %v2084_v13  ;;  %v2089_v63 = vpop.f32.mrb[71].mxu0 }
 0x670   : > { %3184 = vmatmul.mubr.bf16.gmra.mrb[152].mxu0 %v2973_v50 }
 0x671   : > { %5149 = vmatprep.mubr.msk.bf16.mxu0 %vm5840_vm2, %v9238_v43 }
 0x673   : > { %v2092_v11 = vpop.f32.mrb[72].mxu0 }
 0x674   : > { %v2094_v35 = vpop.f32.mrb[73].mxu0 }
 0x675   : > { %v2095_v6 = vpop.f32.mrb[74].mxu0 }
 0x676   : > { %v2159_v54 = vpack.c.bf16 %v2095_v6, %v2092_v11  ;;  %v2097_v48 = vpop.f32.mrb[75].mxu0 }
 0x678   : > { %5150 = vmatmul.mubr.msk.bf16.vlgmr.msra.gmra.mrb[156].mxu0 %vm1241_vm3, %v2154_v3 }
 0x679   : > { %5153 = vmatprep.mubr.msk.bf16.mxu0 %vm5840_vm2, %v9238_v43 }
 0x680   : > { %5154 = vmatmul.mubr.msk.bf16.gmra.mrb[160].mxu0 %vm1241_vm3, %v2155_v57 }
 0x681   : > { %5157 = vmatprep.mubr.msk.bf16.mxu0 %vm5840_vm2, %v9238_v43 }
 0x688   : > { %5158 = vmatmul.mubr.msk.bf16.gmra.mrb[164].mxu0 %vm1241_vm3, %v2156_v56 }
 0x689   : > { %5161 = vmatprep.mubr.msk.bf16.mxu0 %vm5840_vm2, %v9238_v43 }
 0x690   : > { %5162 = vmatmul.mubr.msk.bf16.gmra.mrb[168].mxu0 %vm1241_vm3, %v2157_v27 }
 0x691   : > { %5165 = vmatprep.mubr.msk.bf16.mxu0 %vm5840_vm2, %v9238_v43 }
 0x698   : > { %5166 = vmatmul.mubr.msk.bf16.gmra.mrb[172].mxu0 %vm1241_vm3, %v2158_v5 }
 0x699   : > { %5169 = vmatprep.mubr.msk.bf16.mxu0 %vm5840_vm2, %v9238_v43 }
 0x6a0   : > { %5170 = vmatmul.mubr.msk.bf16.gmra.mrb[176].mxu0 %vm1241_vm3, %v2159_v54 }
 0x6a1   : > { %5173 = vmatprep.mubr.msk.bf16.mxu0 %vm5840_vm2, %v9238_v43 }
 0x6a3   : > { %v2100_v51 = vpop.f32.mrb[76].mxu0 }
 0x6a4   : > { %v2102_v47 = vpop.f32.mrb[77].mxu0 }
 0x6a5   : > { %v2103_v28 = vpop.f32.mrb[78].mxu0 }
 0x6a6   : > { %v2160_v22 = vpack.c.bf16 %v2103_v28, %v2100_v51  ;;  %v2105_v3 = vpop.f32.mrb[79].mxu0 }
 0x6a8   : > { %5174 = vmatmul.mubr.msk.bf16.gmra.mrb[180].mxu0 %vm1241_vm3, %v2160_v22 }
 0x6a9   : > { %5177 = vmatprep.mubr.msk.bf16.mxu0 %vm5840_vm2, %v9238_v43 }
 0x6ab   : > { %v2108_v4 = vpop.f32.mrb[80].mxu0 }
 0x6ac   : > { %v2110_v16 = vpop.f32.mrb[81].mxu0 }
 0x6ad   : > { %v2111_v2 = vpop.f32.mrb[82].mxu0 }
 0x6ae   : > { %v2161_v58 = vpack.c.bf16 %v2111_v2, %v2108_v4  ;;  %v2113_v41 = vpop.f32.mrb[83].mxu0 }
 0x6b0   : > { %5178 = vmatmul.mubr.msk.bf16.gmra.mrb[184].mxu0 %vm1241_vm3, %v2161_v58 }
 0x6b1   : > { %5181 = vmatprep.mubr.msk.bf16.mxu0 %vm5840_vm2, %v9238_v43 }
 0x6b3   : > { %v2116_v24 = vpop.f32.mrb[84].mxu0 }
 0x6b4   : > { %v2118_v19 = vpop.f32.mrb[85].mxu0 }
 0x6b5   : > { %v2119_v9 = vpop.f32.mrb[86].mxu0 }
 0x6b6   : > { %v2162_v29 = vpack.c.bf16 %v2119_v9, %v2116_v24  ;;  %v2121_v32 = vpop.f32.mrb[87].mxu0 }
 0x6b8   : > { %5182 = vmatmul.mubr.msk.bf16.gmra.mrb[188].mxu0 %vm1241_vm3, %v2162_v29 }
 0x6b9   : > { %5185 = vmatprep.mubr.msk.bf16.mxu0 %vm5840_vm2, %v9238_v43 }
 0x6bb   : > { %v2124_v31 = vpop.f32.mrb[88].mxu0 }
 0x6bc   : > { %v2126_v49 = vpop.f32.mrb[89].mxu0 }
 0x6bd   : > { %v2127_v21 = vpop.f32.mrb[90].mxu0 }
 0x6be   : > { %v2163_v39 = vpack.c.bf16 %v2127_v21, %v2124_v31  ;;  %v2129_v14 = vpop.f32.mrb[91].mxu0 }
 0x6c0   : > { %5186 = vmatmul.mubr.msk.bf16.gmra.mrb[192].mxu0 %vm1241_vm3, %v2163_v39 }
 0x6c1   : > { %5189 = vmatprep.mubr.msk.bf16.mxu0 %vm5840_vm2, %v9238_v43 }
 0x6c3   : > { %v2132_v57 = vpop.f32.mrb[92].mxu0 }
 0x6c4   : > { %v2134_v0 = vpop.f32.mrb[93].mxu0 }
 0x6c5   : > { %v2135_v30 = vpop.f32.mrb[94].mxu0 }
 0x6c6   : > { %v2164_v40 = vpack.c.bf16 %v2135_v30, %v2132_v57  ;;  %v2137_v60 = vpop.f32.mrb[95].mxu0 }
 0x6c8   : > { %5190 = vmatmul.mubr.msk.bf16.gmra.mrb[196].mxu0 %vm1241_vm3, %v2164_v40 }
 0x6c9   : > { %5193 = vmatprep.mubr.msk.bf16.mxu0 %vm5840_vm2, %v9238_v43 }
 0x6cb   : > { %v2140_v46 = vpop.f32.mrb[96].mxu0 }
 0x6cc   : > { %v2142_v44 = vpop.f32.mrb[97].mxu0 }
 0x6cd   : > { %v2143_v42 = vpop.f32.mrb[98].mxu0 }
 0x6ce   : > { %v2165_v61 = vpack.c.bf16 %v2143_v42, %v2140_v46  ;;  %v2145_v62 = vpop.f32.mrb[99].mxu0 }
 0x6d0   : > { %5194 = vmatmul.mubr.msk.bf16.gmra.mrb[200].mxu0 %vm1241_vm3, %v2165_v61 }
 0x6d1   : > { %5197 = vmatprep.mubr.msk.bf16.mxu0 %vm5840_vm2, %v9238_v43 }
 0x6d3   : > { %v2148_v12 = vpop.f32.mrb[100].mxu0 }
 0x6d4   : > { %v2150_v34 = vpop.f32.mrb[101].mxu0  ;;  %v2166_v56 = vpack.c.bf16 %v2148_v12, %v2148_v12 }
 0x6d5   : > { %v2151_v20 = vpop.f32.mrb[102].mxu0 }
 0x6d6   : > { %v2152_v17 = vpop.f32.mrb[103].mxu0 }
 0x6d8   : > { %5198 = vmatmul.mubr.msk.bf16.gmra.mrb[204].mxu0 %vm1241_vm3, %v2166_v56 }
 0x6d9   : > { %5273 = vmatprep.mubr.msk.bf16.mxu0 %vm5840_vm2, %v9238_v43 }
 0x6db   : > { %v3089_v25 = vpop.f32.mrb[104].mxu0 }
 0x6dc   : > { %v3091_v26 = vpop.f32.mrb[105].mxu0 }
 0x6dd   : > { %v3092_v15 = vpop.f32.mrb[106].mxu0 }
 0x6de   : > { %v3191_v45 = vpack.c.bf16 %v3092_v15, %v3089_v25  ;;  %v3094_v36 = vpop.f32.mrb[107].mxu0 }
 0x6e0   : > { %5096 = vmatmul.mubr.msk.bf16.vlgmr.msra.gmra.mrb[104].mxu1 %vm1241_vm3, %v3191_v45 }
 0x6e1   : > { %5099 = vmatprep.mubr.msk.bf16.mxu1 %vm5840_vm2, %v9238_v43 }
 0x6e3   : > { %v3097_v59 = vpop.f32.mrb[108].mxu0 }
 0x6e4   : > { %v3099_v33 = vpop.f32.mrb[109].mxu0 }
 0x6e5   : > { %v3100_v8 = vpop.f32.mrb[110].mxu0 }
 0x6e6   : > { %v3192_v52 = vpack.c.bf16 %v3100_v8, %v3097_v59  ;;  %v3102_v53 = vpop.f32.mrb[111].mxu0 }
 0x6e8   : > { %5100 = vmatmul.mubr.msk.bf16.gmra.mrb[108].mxu1 %vm1241_vm3, %v3192_v52 }
 0x6e9   : > { %5103 = vmatprep.mubr.msk.bf16.mxu1 %vm5840_vm2, %v9238_v43 }
 0x6eb   : > { %v3105_v18 = vpop.f32.mrb[112].mxu0 }
 0x6ec   : > { %v3107_v27 = vpop.f32.mrb[113].mxu0 }
 0x6ed   : > { %v3108_v37 = vpop.f32.mrb[114].mxu0 }
 0x6ee   : > { %v3193_v10 = vpack.c.bf16 %v3108_v37, %v3105_v18  ;;  %v3110_v23 = vpop.f32.mrb[115].mxu0 }
 0x6f0   : > { %5104 = vmatmul.mubr.msk.bf16.gmra.mrb[112].mxu1 %vm1241_vm3, %v3193_v10 }
 0x6f1   : > { %5107 = vmatprep.mubr.msk.bf16.mxu1 %vm5840_vm2, %v9238_v43 }
 0x6fb   : > { %v3113_v1 = vpop.f32.mrb[116].mxu0 }
 0x6fc   : > { %v3115_v7 = vpop.f32.mrb[117].mxu0 }
 0x6fd   : > { %v3116_v13 = vpop.f32.mrb[118].mxu0 }
 0x6fe   : > { %v3194_v38 = vpack.c.bf16 %v3116_v13, %v3113_v1  ;;  %v3118_v55 = vpop.f32.mrb[119].mxu0 }
 0x700   : > { %5108 = vmatmul.mubr.msk.bf16.gmra.mrb[116].mxu1 %vm1241_vm3, %v3194_v38 }
 0x701   : > { %5111 = vmatprep.mubr.msk.bf16.mxu1 %vm5840_vm2, %v9238_v43 }
 0x703   : > { %v3121_v5 = vpop.f32.mrb[120].mxu0 }
 0x704   : > { %v3123_v63 = vpop.f32.mrb[121].mxu0 }
 0x705   : > { %v3124_v50 = vpop.f32.mrb[122].mxu0 }
 0x706   : > { %v3195_v11 = vpack.c.bf16 %v3124_v50, %v3121_v5  ;;  %v3126_v35 = vpop.f32.mrb[123].mxu0 }
 0x708   : > { %5112 = vmatmul.mubr.msk.bf16.gmra.mrb[120].mxu1 %vm1241_vm3, %v3195_v11 }
 0x709   : > { %5115 = vmatprep.mubr.msk.bf16.mxu1 %vm5840_vm2, %v9238_v43 }
 0x70b   : > { %v3129_v6 = vpop.f32.mrb[124].mxu0 }
 0x70c   : > { %v3131_v54 = vpop.f32.mrb[125].mxu0 }
 0x70d   : > { %v3132_v48 = vpop.f32.mrb[126].mxu0 }
 0x70e   : > { %v3196_v51 = vpack.c.bf16 %v3132_v48, %v3129_v6  ;;  %v3134_v47 = vpop.f32.mrb[127].mxu0 }
 0x710   : > { %5116 = vmatmul.mubr.msk.bf16.gmra.mrb[124].mxu1 %vm1241_vm3, %v3196_v51 }
 0x711   : > { %5119 = vmatprep.mubr.msk.bf16.mxu1 %vm5840_vm2, %v9238_v43 }
 0x713   : > { %v3137_v28 = vpop.f32.mrb[128].mxu0 }
 0x714   : > { %v3139_v22 = vpop.f32.mrb[129].mxu0 }
 0x715   : > { %v3140_v3 = vpop.f32.mrb[130].mxu0 }
 0x716   : > { %v3197_v4 = vpack.c.bf16 %v3140_v3, %v3137_v28  ;;  %v3142_v16 = vpop.f32.mrb[131].mxu0 }
 0x718   : > { %5120 = vmatmul.mubr.msk.bf16.gmra.mrb[128].mxu1 %vm1241_vm3, %v3197_v4 }
 0x719   : > { %5123 = vmatprep.mubr.msk.bf16.mxu1 %vm5840_vm2, %v9238_v43 }
 0x71b   : > { %v3145_v2 = vpop.f32.mrb[132].mxu0 }
 0x71c   : > { %v3147_v58 = vpop.f32.mrb[133].mxu0 }
 0x71d   : > { %v3148_v41 = vpop.f32.mrb[134].mxu0 }
 0x71e   : > { %v3198_v24 = vpack.c.bf16 %v3148_v41, %v3145_v2  ;;  %v3150_v19 = vpop.f32.mrb[135].mxu0 }
 0x720   : > { %5124 = vmatmul.mubr.msk.bf16.gmra.mrb[132].mxu1 %vm1241_vm3, %v3198_v24 }
 0x721   : > { %5127 = vmatprep.mubr.msk.bf16.mxu1 %vm5840_vm2, %v9238_v43 }
 0x723   : > { %v3153_v9 = vpop.f32.mrb[136].mxu0 }
 0x724   : > { %v3155_v29 = vpop.f32.mrb[137].mxu0 }
 0x725   : > { %v3156_v32 = vpop.f32.mrb[138].mxu0 }
 0x726   : > { %v3199_v31 = vpack.c.bf16 %v3156_v32, %v3153_v9  ;;  %v3158_v49 = vpop.f32.mrb[139].mxu0 }
 0x728   : > { %5128 = vmatmul.mubr.msk.bf16.gmra.mrb[136].mxu1 %vm1241_vm3, %v3199_v31 }
 0x729   : > { %5131 = vmatprep.mubr.msk.bf16.mxu1 %vm5840_vm2, %v9238_v43 }
 0x72b   : > { %v3161_v21 = vpop.f32.mrb[140].mxu0 }
 0x72c   : > { %v3163_v39 = vpop.f32.mrb[141].mxu0 }
 0x72d   : > { %v3164_v14 = vpop.f32.mrb[142].mxu0 }
 0x72e   : > { %v3200_v57 = vpack.c.bf16 %v3164_v14, %v3161_v21  ;;  %v3166_v0 = vpop.f32.mrb[143].mxu0 }
 0x730   : > { %5132 = vmatmul.mubr.msk.bf16.gmra.mrb[140].mxu1 %vm1241_vm3, %v3200_v57 }
 0x731   : > { %5135 = vmatprep.mubr.msk.bf16.mxu1 %vm5840_vm2, %v9238_v43 }
 0x733   : > { %v3169_v30 = vpop.f32.mrb[144].mxu0 }
 0x734   : > { %v3171_v40 = vpop.f32.mrb[145].mxu0 }
 0x735   : > { %v3172_v60 = vpop.f32.mrb[146].mxu0 }
 0x736   : > { %v3201_v46 = vpack.c.bf16 %v3172_v60, %v3169_v30  ;;  %v3174_v44 = vpop.f32.mrb[147].mxu0 }
 0x738   : > { %5136 = vmatmul.mubr.msk.bf16.gmra.mrb[144].mxu1 %vm1241_vm3, %v3201_v46 }
 0x739   : > { %5139 = vmatprep.mubr.msk.bf16.mxu1 %vm5840_vm2, %v9238_v43 }
 0x73b   : > { %v3177_v42 = vpop.f32.mrb[148].mxu0 }
 0x73c   : > { %v3179_v61 = vpop.f32.mrb[149].mxu0 }
 0x73d   : > { %v3180_v62 = vpop.f32.mrb[150].mxu0 }
 0x73e   : > { %v3202_v12 = vpack.c.bf16 %v3180_v62, %v3177_v42  ;;  %v3182_v34 = vpop.f32.mrb[151].mxu0  ;;  %v8209_v62 = vld [vmem:[%s8960_s6] ss:$0 sm:$0xff] }
 0x73f   : > { %v5806_v34 = vld [vmem:[%s5938_s18] sm:$0xff] }
 0x740   : > { %5140 = vmatmul.mubr.msk.bf16.gmra.mrb[148].mxu1 %vm1241_vm3, %v3202_v12 }
 0x741   : > { %5143 = vmatprep.mubr.msk.bf16.mxu1 %vm5840_vm2, %v9238_v43 }
 0x743   : > { %v3185_v20 = vpop.f32.mrb[152].mxu0 }
 0x744   : > { %v3187_v56 = vpop.f32.mrb[153].mxu0  ;;  %v3203_v25 = vpack.c.bf16 %v3185_v20, %v3185_v20 }
 0x745   : > { %v3188_v17 = vpop.f32.mrb[154].mxu0 }
 0x746   : > { %v3189_v26 = vpop.f32.mrb[155].mxu0 }
 0x747   : > { %v5807_v26 = vld [vmem:[%s5938_s18 + $0x8] sm:$0xff] }
 0x748   : > { %5144 = vmatmul.mubr.msk.bf16.gmra.mrb[152].mxu1 %vm1241_vm3, %v3203_v25 }
 0x749   : > { %5205 = vmatprep.mubr.msk.bf16.mxu1 %vm5840_vm2, %v9238_v43 }
 0x74b   : > { %v3464_v15 = vpop.f32.mrb[156].mxu0 }
 0x74c   : > { %v5151_v45 = vpop.f32.mrb[157].mxu0 }
 0x74d   : > { %v3467_v36 = vpop.f32.mrb[158].mxu0 }
 0x74e   : > { %v5152_v59 = vpop.f32.mrb[159].mxu0 }
 0x753   : > { %v8160_v33 = vpop.f32.mrb[160].mxu0 }
 0x754   : > { %v5155_v8 = vpop.f32.mrb[161].mxu0 }
 0x755   : > { %v8162_v52 = vpop.f32.mrb[162].mxu0 }
 0x756   : > { %v5156_v53 = vpop.f32.mrb[163].mxu0 }
 0x75b   : > { %v8164_v18 = vpop.f32.mrb[164].mxu0 }
 0x75c   : > { %v5159_v27 = vpop.f32.mrb[165].mxu0 }
 0x75d   : > { %v8166_v37 = vpop.f32.mrb[166].mxu0 }
 0x75e   : > { %v5160_v10 = vpop.f32.mrb[167].mxu0 }
 0x763   : > { %v8168_v23 = vpop.f32.mrb[168].mxu0 }
 0x764   : > { %v5163_v1 = vpop.f32.mrb[169].mxu0 }
 0x765   : > { %v8170_v7 = vpop.f32.mrb[170].mxu0  ;;  %v5808_v1 = vld [vmem:[%s5938_s18 + $0x10] sm:$0xff] }
 0x766   : > { %v5164_v13 = vpop.f32.mrb[171].mxu0 }
 0x76b   : > { %v8172_v38 = vpop.f32.mrb[172].mxu0 }
 0x76c   : > { %v5167_v55 = vpop.f32.mrb[173].mxu0 }
 0x76d   : > { %v8174_v5 = vpop.f32.mrb[174].mxu0 }
 0x76e   : > { %v5168_v63 = vpop.f32.mrb[175].mxu0 }
 0x773   : > { %v8176_v50 = vpop.f32.mrb[176].mxu0 }
 0x774   : > { %v5171_v11 = vpop.f32.mrb[177].mxu0 }
 0x775   : > { %v8178_v35 = vpop.f32.mrb[178].mxu0 }
 0x776   : > { %v5172_v6 = vpop.f32.mrb[179].mxu0 }
 0x777   : > { %v5809_v6 = vld [vmem:[%s5938_s18 + $0x18] sm:$0xff] }
 0x77b   : > { %v8180_v54 = vpop.f32.mrb[180].mxu0 }
 0x77c   : > { %v5175_v48 = vpop.f32.mrb[181].mxu0 }
 0x77d   : > { %v8182_v51 = vpop.f32.mrb[182].mxu0 }
 0x77e   : > { %v5176_v47 = vpop.f32.mrb[183].mxu0 }
 0x783   : > { %v8184_v28 = vpop.f32.mrb[184].mxu0 }
 0x784   : > { %v5179_v22 = vpop.f32.mrb[185].mxu0 }
 0x785   : > { %v8186_v3 = vpop.f32.mrb[186].mxu0 }
 0x786   : > { %v5180_v4 = vpop.f32.mrb[187].mxu0 }
 0x78b   : > { %v8188_v16 = vpop.f32.mrb[188].mxu0 }
 0x78c   : > { %v5183_v2 = vpop.f32.mrb[189].mxu0 }
 0x78d   : > { %v8190_v58 = vpop.f32.mrb[190].mxu0 }
 0x78e   : > { %v5184_v41 = vpop.f32.mrb[191].mxu0 }
 0x793   : > { %v8192_v24 = vpop.f32.mrb[192].mxu0 }
 0x794   : > { %v5187_v19 = vpop.f32.mrb[193].mxu0 }
 0x795   : > { %v8194_v9 = vpop.f32.mrb[194].mxu0  ;;  %v5810_v19 = vld [vmem:[%s5938_s18 + $0x20] sm:$0xff] }
 0x796   : > { %v5188_v29 = vpop.f32.mrb[195].mxu0 }
 0x79b   : > { %v8196_v32 = vpop.f32.mrb[196].mxu0 }
 0x79c   : > { %v5191_v31 = vpop.f32.mrb[197].mxu0 }
 0x79d   : > { %v8198_v49 = vpop.f32.mrb[198].mxu0 }
 0x79e   : > { %v5192_v21 = vpop.f32.mrb[199].mxu0 }
 0x7a3   : > { %v8200_v39 = vpop.f32.mrb[200].mxu0 }
 0x7a4   : > { %v5195_v14 = vpop.f32.mrb[201].mxu0 }
 0x7a5   : > { %v8202_v57 = vpop.f32.mrb[202].mxu0 }
 0x7a6   : > { %v5196_v0 = vpop.f32.mrb[203].mxu0 }
 0x7a7   : > { %v5811_v0 = vld [vmem:[%s5938_s18 + $0x28] sm:$0xff] }
 0x7ab   : > { %v8204_v30 = vpop.f32.mrb[204].mxu0 }
 0x7ac   : > { %v5199_v40 = vpop.f32.mrb[205].mxu0 }
 0x7ad   : > { %v3563_v60 = vpop.f32.mrb[206].mxu0 }
 0x7ae   : > { %v5200_v46 = vpop.f32.mrb[207].mxu0 }
 0x7b3   : > { %v3283_v44 = vpop.f32.mrb[104].mxu1 }
 0x7b4   : > { %v3465_v42 = vadd.f32 %v3464_v15, %v3283_v44  ;;  %v5097_v61 = vpop.f32.mrb[105].mxu1 }
 0x7b5   : > { %v3286_v12 = vpop.f32.mrb[106].mxu1 }
 0x7b6   : > { %v3566_v20 = vadd.f32 %v5806_v34, %v3465_v42  ;;  %v3468_v56 = vadd.f32 %v3467_v36, %v3286_v12  ;;  %v5098_v17 = vpop.f32.mrb[107].mxu1  ;;  %v5812_v12 = vld [vmem:[%s5938_s18 + $0x30] sm:$0xff] }
 0x7b8   : > { %v8213_v25 = vadd.f32 %v8209_v62, %v3566_v20  ;;  %v3567_v45 = vadd.f32 %v5807_v26, %v3468_v56  ;;  %v5813_v26 = vld [vmem:[%s5938_s18 + $0x38] sm:$0xff] }
 0x7ba   : > { %v8217_v15 = vadd.f32 %v8209_v62, %v3567_v45  ;;  %v3625_v59 = vsel %vm496_vm0, %v8213_v25, 0.0 }
 0x7bb   : > { %v3291_v8 = vpop.f32.mrb[108].mxu1  ;;  %3626 = vadd.xlane.f32.xlu1 %v3625_v59 }
 0x7bc   : > { %v3473_v53 = vadd.f32 %v8160_v33, %v3291_v8  ;;  %v5101_v27 = vpop.f32.mrb[109].mxu1  ;;  %v3628_v36 = vsel %vm496_vm0, %v8217_v15, 0.0 }
 0x7bd   : > { %v3294_v10 = vpop.f32.mrb[110].mxu1  ;;  %3629 = vadd.xlane.f32.xlu0 %v3628_v36 }
 0x7be   : > { %v3568_v13 = vadd.f32 %v5808_v1, %v3473_v53  ;;  %v3476_v55 = vadd.f32 %v8162_v52, %v3294_v10  ;;  %v5102_v63 = vpop.f32.mrb[111].mxu1  ;;  %v5814_v10 = vld [vmem:[%s5938_s18 + $0x40] sm:$0xff] }
 0x7c0   : > { %v8227_v11 = vadd.f32 %v8209_v62, %v3568_v13  ;;  %v3569_v48 = vadd.f32 %v5809_v6, %v3476_v55  ;;  %v5815_v6 = vld [vmem:[%s5938_s18 + $0x48] sm:$0xff] }
 0x7c2   : > { %v8231_v33 = vadd.f32 %v8209_v62, %v3569_v48  ;;  %v3631_v47 = vsel %vm496_vm0, %v8227_v11, 0.0 }
 0x7c3   : > { %v3299_v22 = vpop.f32.mrb[112].mxu1  ;;  %3632 = vadd.xlane.f32.xlu1 %v3631_v47 }
 0x7c4   : > { %v3481_v4 = vadd.f32 %v8164_v18, %v3299_v22  ;;  %v5105_v2 = vpop.f32.mrb[113].mxu1  ;;  %v3634_v52 = vsel %vm496_vm0, %v8231_v33, 0.0 }
 0x7c5   : > { %v3302_v41 = vpop.f32.mrb[114].mxu1  ;;  %3635 = vadd.xlane.f32.xlu0 %v3634_v52 }
 0x7c6   : > { %v3570_v29 = vadd.f32 %v5810_v19, %v3481_v4  ;;  %v3484_v31 = vadd.f32 %v8166_v37, %v3302_v41  ;;  %v5106_v21 = vpop.f32.mrb[115].mxu1  ;;  %v5816_v41 = vld [vmem:[%s5938_s18 + $0x50] sm:$0xff] }
 0x7c8   : > { %v8241_v14 = vadd.f32 %v8209_v62, %v3570_v29  ;;  %v3571_v40 = vadd.f32 %v5811_v0, %v3484_v31  ;;  %v5817_v0 = vld [vmem:[%s5938_s18 + $0x58] sm:$0xff] }
 0x7ca   : > { %v8245_v18 = vadd.f32 %v8209_v62, %v3571_v40  ;;  %v3637_v60 = vsel %vm496_vm0, %v8241_v14, 0.0 }
 0x7cb   : > { %3638 = vadd.xlane.f32.xlu1 %v3637_v60 }
 0x7cc   : > { %v3640_v46 = vsel %vm496_vm0, %v8245_v18, 0.0 }
 0x7cd   : > { %3641 = vadd.xlane.f32.xlu0 %v3640_v46 }
 0x7d3   : > { %v3307_v44 = vpop.f32.mrb[116].mxu1 }
 0x7d4   : > { %v3489_v37 = vadd.f32 %v8168_v23, %v3307_v44  ;;  %v5109_v42 = vpop.f32.mrb[117].mxu1 }
 0x7d5   : > { %v3310_v61 = vpop.f32.mrb[118].mxu1 }
 0x7d6   : > { %v3572_v34 = vadd.f32 %v5812_v12, %v3489_v37  ;;  %v3492_v20 = vadd.f32 %v8170_v7, %v3310_v61  ;;  %v5110_v56 = vpop.f32.mrb[119].mxu1  ;;  %v5818_v61 = vld [vmem:[%s5938_s18 + $0x60] sm:$0xff] }
 0x7d8   : > { %v8255_v17 = vadd.f32 %v8209_v62, %v3572_v34  ;;  %v3573_v45 = vadd.f32 %v5813_v26, %v3492_v20  ;;  %v5819_v26 = vld [vmem:[%s5938_s18 + $0x68] sm:$0xff] }
 0x7da   : > { %v8259_v59 = vadd.f32 %v8209_v62, %v3573_v45  ;;  %v3643_v23 = vsel %vm496_vm0, %v8255_v17, 0.0 }
 0x7db   : > { %v3315_v8 = vpop.f32.mrb[120].mxu1  ;;  %3644 = vadd.xlane.f32.xlu1 %v3643_v23 }
 0x7dc   : > { %v3497_v53 = vadd.f32 %v8172_v38, %v3315_v8  ;;  %v5113_v27 = vpop.f32.mrb[121].mxu1  ;;  %v3646_v7 = vsel %vm496_vm0, %v8259_v59, 0.0 }
 0x7dd   : > { %v3318_v36 = vpop.f32.mrb[122].mxu1  ;;  %3647 = vadd.xlane.f32.xlu0 %v3646_v7 }
 0x7de   : > { %v3574_v1 = vadd.f32 %v5814_v10, %v3497_v53  ;;  %v3500_v13 = vadd.f32 %v8174_v5, %v3318_v36  ;;  %v5114_v55 = vpop.f32.mrb[123].mxu1  ;;  %v5820_v36 = vld [vmem:[%s5938_s18 + $0x70] sm:$0xff] }
 0x7e0   : > { %v8269_v63 = vadd.f32 %v8209_v62, %v3574_v1  ;;  %v3575_v48 = vadd.f32 %v5815_v6, %v3500_v13  ;;  %v5821_v6 = vld [vmem:[%s5938_s18 + $0x78] sm:$0xff] }
 0x7e2   : > { %v8273_v38 = vadd.f32 %v8209_v62, %v3575_v48  ;;  %v3649_v47 = vsel %vm496_vm0, %v8269_v63, 0.0 }
 0x7e3   : > { %v3323_v22 = vpop.f32.mrb[124].mxu1  ;;  %3650 = vadd.xlane.f32.xlu1 %v3649_v47 }
 0x7e4   : > { %v3505_v4 = vadd.f32 %v8176_v50, %v3323_v22  ;;  %v5117_v2 = vpop.f32.mrb[125].mxu1  ;;  %v3652_v5 = vsel %vm496_vm0, %v8273_v38, 0.0 }
 0x7e5   : > { %v3326_v52 = vpop.f32.mrb[126].mxu1  ;;  %3653 = vadd.xlane.f32.xlu0 %v3652_v5 }
 0x7e6   : > { %v3576_v19 = vadd.f32 %v5816_v41, %v3505_v4  ;;  %v3508_v29 = vadd.f32 %v8178_v35, %v3326_v52  ;;  %v5118_v31 = vpop.f32.mrb[127].mxu1  ;;  %v5822_v52 = vld [vmem:[%s5938_s18 + $0x80] sm:$0xff] }
 0x7e8   : > { %v8283_v21 = vadd.f32 %v8209_v62, %v3576_v19  ;;  %v3577_v40 = vadd.f32 %v5817_v0, %v3508_v29  ;;  %v5823_v0 = vld [vmem:[%s5938_s18 + $0x88] sm:$0xff] }
 0x7ea   : > { %v8287_v50 = vadd.f32 %v8209_v62, %v3577_v40  ;;  %v3655_v60 = vsel %vm496_vm0, %v8283_v21, 0.0 }
 0x7eb   : > { %v3331_v46 = vpop.f32.mrb[128].mxu1  ;;  %3656 = vadd.xlane.f32.xlu1 %v3655_v60 }
 0x7ec   : > { %v3513_v44 = vadd.f32 %v8180_v54, %v3331_v46  ;;  %v5121_v37 = vpop.f32.mrb[129].mxu1  ;;  %v3658_v35 = vsel %vm496_vm0, %v8287_v50, 0.0 }
 0x7ed   : > { %v3334_v42 = vpop.f32.mrb[130].mxu1  ;;  %3659 = vadd.xlane.f32.xlu0 %v3658_v35 }
 0x7ee   : > { %v3578_v12 = vadd.f32 %v5818_v61, %v3513_v44  ;;  %v3516_v34 = vadd.f32 %v8182_v51, %v3334_v42  ;;  %v5122_v20 = vpop.f32.mrb[131].mxu1  ;;  %v5824_v42 = vld [vmem:[%s5938_s18 + $0x90] sm:$0xff] }
 0x7f0   : > { %v8297_v56 = vadd.f32 %v8209_v62, %v3578_v12  ;;  %v3579_v45 = vadd.f32 %v5819_v26, %v3516_v34  ;;  %v5825_v26 = vld [vmem:[%s5938_s18 + $0x98] sm:$0xff] }
 0x7f2   : > { %v8301_v54 = vadd.f32 %v8209_v62, %v3579_v45  ;;  %v3661_v23 = vsel %vm496_vm0, %v8297_v56, 0.0 }
 0x7f3   : > { %v3339_v8 = vpop.f32.mrb[132].mxu1  ;;  %3662 = vadd.xlane.f32.xlu1 %v3661_v23 }
 0x7f4   : > { %v3521_v53 = vadd.f32 %v8184_v28, %v3339_v8  ;;  %v5125_v27 = vpop.f32.mrb[133].mxu1  ;;  %v3664_v51 = vsel %vm496_vm0, %v8301_v54, 0.0 }
 0x7f5   : > { %v3342_v7 = vpop.f32.mrb[134].mxu1  ;;  %3665 = vadd.xlane.f32.xlu0 %v3664_v51 }
 0x7f6   : > { %v3580_v10 = vadd.f32 %v5820_v36, %v3521_v53  ;;  %v3524_v1 = vadd.f32 %v8186_v3, %v3342_v7  ;;  %v5126_v13 = vpop.f32.mrb[135].mxu1 }
 0x7f8   : > { %v8311_v55 = vadd.f32 %v8209_v62, %v3580_v10  ;;  %v3581_v48 = vadd.f32 %v5821_v6, %v3524_v1 }
 0x7fa   : > { %v8315_v28 = vadd.f32 %v8209_v62, %v3581_v48  ;;  %v3667_v47 = vsel %vm496_vm0, %v8311_v55, 0.0 }
 0x7fb   : > { %v3347_v22 = vpop.f32.mrb[136].mxu1  ;;  %3668 = vadd.xlane.f32.xlu1 %v3667_v47 }
 0x7fc   : > { %v3529_v4 = vadd.f32 %v8188_v16, %v3347_v22  ;;  %v5129_v2 = vpop.f32.mrb[137].mxu1  ;;  %v3670_v3 = vsel %vm496_vm0, %v8315_v28, 0.0 }
 0x7fd   : > { %v3350_v5 = vpop.f32.mrb[138].mxu1  ;;  %3671 = vadd.xlane.f32.xlu0 %v3670_v3 }
 0x7fe   : > { %v3582_v41 = vadd.f32 %v5822_v52, %v3529_v4  ;;  %v3532_v19 = vadd.f32 %v8190_v58, %v3350_v5  ;;  %v5130_v29 = vpop.f32.mrb[139].mxu1 }
 0x7ff   : > { %v5827_v29 = vld [vmem:[%s5938_s18 + $0xa8] sm:$0xff] }
 0x800   : > { %v8325_v31 = vadd.f32 %v8209_v62, %v3582_v41  ;;  %v3583_v40 = vadd.f32 %v5823_v0, %v3532_v19  ;;  %v5826_v41 = vld [vmem:[%s5938_s18 + $0xa0] sm:$0xff] }
 0x802   : > { %v8329_v16 = vadd.f32 %v8209_v62, %v3583_v40  ;;  %v3673_v60 = vsel %vm496_vm0, %v8325_v31, 0.0 }
 0x803   : > { %v3355_v46 = vpop.f32.mrb[140].mxu1  ;;  %3674 = vadd.xlane.f32.xlu1 %v3673_v60 }
 0x804   : > { %v3537_v44 = vadd.f32 %v8192_v24, %v3355_v46  ;;  %v5133_v37 = vpop.f32.mrb[141].mxu1  ;;  %v3676_v58 = vsel %vm496_vm0, %v8329_v16, 0.0 }
 0x805   : > { %v3358_v35 = vpop.f32.mrb[142].mxu1  ;;  %3677 = vadd.xlane.f32.xlu0 %v3676_v58 }
 0x806   : > { %v3584_v61 = vadd.f32 %v5824_v42, %v3537_v44  ;;  %v3540_v12 = vadd.f32 %v8194_v9, %v3358_v35  ;;  %v5134_v34 = vpop.f32.mrb[143].mxu1 }
 0x807   : > { %v5828_v34 = vld [vmem:[%s5938_s18 + $0xb0] sm:$0xff] }
 0x808   : > { %v8339_v20 = vadd.f32 %v8209_v62, %v3584_v61  ;;  %v3585_v45 = vadd.f32 %v5825_v26, %v3540_v12 }
 0x80a   : > { %v8343_v23 = vadd.f32 %v8209_v62, %v3585_v45  ;;  %v3679_v24 = vsel %vm496_vm0, %v8339_v20, 0.0 }
 0x80b   : > { %v3363_v8 = vpop.f32.mrb[144].mxu1  ;;  %3680 = vadd.xlane.f32.xlu1 %v3679_v24 }
 0x80c   : > { %v3545_v53 = vadd.f32 %v8196_v32, %v3363_v8  ;;  %v5137_v27 = vpop.f32.mrb[145].mxu1  ;;  %v3682_v9 = vsel %vm496_vm0, %v8343_v23, 0.0 }
 0x80d   : > { %v3366_v51 = vpop.f32.mrb[146].mxu1  ;;  %3683 = vadd.xlane.f32.xlu0 %v3682_v9 }
 0x80e   : > { %v3548_v7 = vadd.f32 %v8198_v49, %v3366_v51  ;;  %v5138_v36 = vpop.f32.mrb[147].mxu1  ;;  %v5346_v49 = vld [vmem:[%s8964_s10] sm:$0xff]  }
 0x80f   : > { %5202 = vmatpush3.bf16.msra.mxu1 %v5346_v49 }
 0x810   : > { %5203 = vmatprep.subr.bf16.mxu1 %v9238_v43  ;;  %v3587_v0 = vadd.f32 %v5827_v29, %v3548_v7 }
 0x812   : > { %v8375_v35 = vadd.f32 %v8209_v62, %v3587_v0 }
 0x813   : > { %v3371_v10 = vpop.f32.mrb[148].mxu1 }
 0x814   : > { %v3553_v1 = vadd.f32 %v8200_v39, %v3371_v10  ;;  %v5141_v13 = vpop.f32.mrb[149].mxu1  ;;  %v3688_v51 = vsel %vm496_vm0, %v8375_v35, 0.0 }
 0x815   : > { %v3374_v6 = vpop.f32.mrb[150].mxu1 }
 0x816   : > { %v3556_v48 = vadd.f32 %v8202_v57, %v3374_v6  ;;  %v5142_v47 = vpop.f32.mrb[151].mxu1  ;;  %v3586_v57 = vadd.f32 %v5826_v41, %v3545_v53  ;;  %v3588_v26 = vadd.f32 %v5828_v34, %v3553_v1  ;;  %v5829_v53 = vld [vmem:[%s5938_s18 + $0xb8] sm:$0xff] }
 0x818   : > { %v8369_v46 = vadd.f32 %v8209_v62, %v3586_v57  ;;  %v3589_v27 = vadd.f32 %v5829_v53, %v3556_v48  ;;  %v8393_v36 = vadd.f32 %v8209_v62, %v3588_v26 }
 0x81a   : > { %v3685_v8 = vsel %vm496_vm0, %v8369_v46, 0.0  ;;  %9259 = vst [vmem:[#allocation36_spill] sm:$0xff] %v8393_v36  ;;  %v8399_v6 = vadd.f32 %v8209_v62, %v3589_v27 }
 0x81b   : > { %v3379_v32 = vpop.f32.mrb[152].mxu1 }
 0x81c   : > { %v3561_v22 = vadd.f32 %v8204_v30, %v3379_v32  ;;  %v5145_v4 = vpop.f32.mrb[153].mxu1  ;;  %9260 = vst [vmem:[#allocation35_spill] sm:$0xff] %v8399_v6 }
 0x81d   : > { %v3382_v2 = vpop.f32.mrb[154].mxu1  ;;  %v5830_v4 = vld [vmem:[%s5938_s18 + $0xc0] sm:$0xf] }
 0x81e   : > { %v5146_v3 = vpop.f32.mrb[155].mxu1  ;;  %v3590_v2 = vadd.f32 %v5830_v4, %v3561_v22 }
 0x820   : > { %v8416_v22 = vadd.f32 %v8209_v62, %v3590_v2 }
 0x822   : > { %v3697_v0 = vsel %vm569_vm1, %v8416_v22, 0.0 }
 0x848   : > { %v3627_v39 = vpop.xlane.xlu1 %3626 }
 0x849   : > { %v3700_v5 = vmul.f32 0.03125, %v3627_v39  ;;  %v3691_v39 = vsel %vm496_vm0, %v8393_v36, 0.0 }
 0x84a   : > { %v3630_v52 = vpop.xlane.xlu0 %3629 }
 0x84b   : > { %v8360_v19 = vsub.f32 %v8213_v25, %v3700_v5  ;;  %v3701_v30 = vmul.f32 0.03125, %v3630_v52  ;;  %v3694_v52 = vsel %vm496_vm0, %v8399_v6, 0.0 }
 0x84d   : > { %v8364_v40 = vsub.f32 %v8217_v15, %v3701_v30  ;;  %v3750_v60 = vmul.f32 %v8360_v19, %v8360_v19 }
 0x84f   : > { %v3775_v44 = vsel %vm496_vm0, %v3750_v60, 0.0  ;;  %v3751_v37 = vmul.f32 %v8364_v40, %v8364_v40 }
 0x850   : > { %v3633_v58 = vpop.xlane.xlu1 %3632  ;;  %3776 = vadd.xlane.f32.xlu1 %v3775_v44 }
 0x851   : > { %v3702_v42 = vmul.f32 0.03125, %v3633_v58  ;;  %v3778_v61 = vsel %vm496_vm0, %v3751_v37, 0.0 }
 0x852   : > { %v3636_v12 = vpop.xlane.xlu0 %3635  ;;  %3779 = vadd.xlane.f32.xlu0 %v3778_v61 }
 0x853   : > { %v8380_v45 = vsub.f32 %v8227_v11, %v3702_v42  ;;  %v3703_v24 = vmul.f32 0.03125, %v3636_v12 }
 0x854   : > { %3686 = vadd.xlane.f32.xlu1 %v3685_v8 }
 0x855   : > { %v8386_v9 = vsub.f32 %v8231_v33, %v3703_v24  ;;  %v3752_v7 = vmul.f32 %v8380_v45, %v8380_v45 }
 0x856   : > { %3689 = vadd.xlane.f32.xlu0 %v3688_v51 }
 0x857   : > { %v3781_v10 = vsel %vm496_vm0, %v3752_v7, 0.0  ;;  %v3753_v1 = vmul.f32 %v8386_v9, %v8386_v9 }
 0x858   : > { %v3639_v13 = vpop.xlane.xlu1 %3638  ;;  %3782 = vadd.xlane.f32.xlu1 %v3781_v10 }
 0x859   : > { %v3704_v48 = vmul.f32 0.03125, %v3639_v13  ;;  %v3784_v47 = vsel %vm496_vm0, %v3753_v1, 0.0 }
 0x85a   : > { %v3642_v32 = vpop.xlane.xlu0 %3641  ;;  %3785 = vadd.xlane.f32.xlu0 %v3784_v47 }
 0x85b   : > { %v8404_v3 = vsub.f32 %v8241_v14, %v3704_v48  ;;  %v3705_v49 = vmul.f32 0.03125, %v3642_v32  ;;  %v5347_v48 = vld [vmem:[%s8964_s10 + $0x8] sm:$0xff]  }
 0x85c   : > { %3692 = vadd.xlane.f32.xlu1 %v3691_v39  ;;  %5204 = vmatpush3.bf16.msra.mxu1 %v5347_v48 }
 0x85d   : > { %v8409_v5 = vsub.f32 %v8245_v18, %v3705_v49  ;;  %v3754_v41 = vmul.f32 %v8404_v3, %v8404_v3 }
 0x85e   : > { %3695 = vadd.xlane.f32.xlu0 %v3694_v52 }
 0x85f   : > { %v3787_v57 = vsel %vm496_vm0, %v3754_v41, 0.0  ;;  %v3755_v30 = vmul.f32 %v8409_v5, %v8409_v5 }
 0x860   : > { %3788 = vadd.xlane.f32.xlu1 %v3787_v57 }
 0x861   : > { %v3790_v29 = vsel %vm496_vm0, %v3755_v30, 0.0 }
 0x862   : > { %3791 = vadd.xlane.f32.xlu0 %v3790_v29 }
 0x864   : > { %3698 = vadd.xlane.f32.xlu1 %v3697_v0 }
 0x868   : > { %v3645_v60 = vpop.xlane.xlu1 %3644 }
 0x869   : > { %v3706_v44 = vmul.f32 0.03125, %v3645_v60 }
 0x86a   : > { %v3648_v37 = vpop.xlane.xlu0 %3647 }
 0x86b   : > { %v8425_v58 = vsub.f32 %v8255_v17, %v3706_v44  ;;  %v3707_v62 = vmul.f32 0.03125, %v3648_v37 }
 0x86d   : > { %v8428_v42 = vsub.f32 %v8259_v59, %v3707_v62  ;;  %v3756_v61 = vmul.f32 %v8425_v58, %v8425_v58 }
 0x86f   : > { %v3793_v12 = vsel %vm496_vm0, %v3756_v61, 0.0  ;;  %v3757_v34 = vmul.f32 %v8428_v42, %v8428_v42 }
 0x870   : > { %v3651_v26 = vpop.xlane.xlu1 %3650  ;;  %3794 = vadd.xlane.f32.xlu0 %v3793_v12 }
 0x871   : > { %v3708_v24 = vmul.f32 0.03125, %v3651_v26  ;;  %v3796_v8 = vsel %vm496_vm0, %v3757_v34, 0.0 }
 0x872   : > { %v3654_v53 = vpop.xlane.xlu0 %3653  ;;  %3797 = vadd.xlane.f32.xlu1 %v3796_v8 }
 0x873   : > { %v8437_v27 = vsub.f32 %v8269_v63, %v3708_v24  ;;  %v3709_v51 = vmul.f32 0.03125, %v3654_v53 }
 0x875   : > { %v8440_v7 = vsub.f32 %v8273_v38, %v3709_v51  ;;  %v3758_v10 = vmul.f32 %v8437_v27, %v8437_v27 }
 0x877   : > { %v3799_v1 = vsel %vm496_vm0, %v3758_v10, 0.0  ;;  %v3759_v13 = vmul.f32 %v8440_v7, %v8440_v7 }
 0x878   : > { %v3657_v47 = vpop.xlane.xlu1 %3656  ;;  %3800 = vadd.xlane.f32.xlu0 %v3799_v1 }
 0x879   : > { %v3710_v32 = vmul.f32 0.03125, %v3657_v47  ;;  %v3802_v4 = vsel %vm496_vm0, %v3759_v13, 0.0 }
 0x87a   : > { %v3660_v2 = vpop.xlane.xlu0 %3659  ;;  %3803 = vadd.xlane.f32.xlu1 %v3802_v4 }
 0x87b   : > { %v8452_v49 = vsub.f32 %v8283_v21, %v3710_v32  ;;  %v3711_v39 = vmul.f32 0.03125, %v3660_v2 }
 0x87d   : > { %v8455_v52 = vsub.f32 %v8287_v50, %v3711_v39  ;;  %v3760_v41 = vmul.f32 %v8452_v49, %v8452_v49 }
 0x87f   : > { %v3805_v57 = vsel %vm496_vm0, %v3760_v41, 0.0  ;;  %v3761_v30 = vmul.f32 %v8455_v52, %v8455_v52 }
 0x880   : > { %v3663_v29 = vpop.xlane.xlu1 %3662  ;;  %3806 = vadd.xlane.f32.xlu0 %v3805_v57 }
 0x881   : > { %v3712_v0 = vmul.f32 0.03125, %v3663_v29  ;;  %v3808_v60 = vsel %vm496_vm0, %v3761_v30, 0.0 }
 0x882   : > { %v3666_v44 = vpop.xlane.xlu0 %3665  ;;  %3809 = vadd.xlane.f32.xlu1 %v3808_v60 }
 0x883   : > { %v8464_v37 = vsub.f32 %v8297_v56, %v3712_v0  ;;  %v3713_v62 = vmul.f32 0.03125, %v3666_v44 }
 0x885   : > { %v8467_v61 = vsub.f32 %v8301_v54, %v3713_v62  ;;  %v3762_v12 = vmul.f32 %v8464_v37, %v8464_v37 }
 0x887   : > { %v3811_v34 = vsel %vm496_vm0, %v3762_v12, 0.0  ;;  %v3763_v26 = vmul.f32 %v8467_v61, %v8467_v61 }
 0x888   : > { %v3669_v24 = vpop.xlane.xlu1 %3668  ;;  %3812 = vadd.xlane.f32.xlu0 %v3811_v34 }
 0x889   : > { %v3714_v8 = vmul.f32 0.03125, %v3669_v24  ;;  %v3814_v53 = vsel %vm496_vm0, %v3763_v26, 0.0 }
 0x88a   : > { %v3672_v51 = vpop.xlane.xlu0 %3671  ;;  %3815 = vadd.xlane.f32.xlu1 %v3814_v53 }
 0x88b   : > { %v8476_v10 = vsub.f32 %v8311_v55, %v3714_v8  ;;  %v3715_v1 = vmul.f32 0.03125, %v3672_v51 }
 0x88d   : > { %v8479_v13 = vsub.f32 %v8315_v28, %v3715_v1  ;;  %v3764_v48 = vmul.f32 %v8476_v10, %v8476_v10 }
 0x88f   : > { %v3817_v47 = vsel %vm496_vm0, %v3764_v48, 0.0  ;;  %v3765_v32 = vmul.f32 %v8479_v13, %v8479_v13 }
 0x890   : > { %v3675_v4 = vpop.xlane.xlu1 %3674  ;;  %3818 = vadd.xlane.f32.xlu0 %v3817_v47 }
 0x891   : > { %v3716_v2 = vmul.f32 0.03125, %v3675_v4  ;;  %v3820_v39 = vsel %vm496_vm0, %v3765_v32, 0.0 }
 0x892   : > { %v3678_v41 = vpop.xlane.xlu0 %3677  ;;  %3821 = vadd.xlane.f32.xlu1 %v3820_v39 }
 0x893   : > { %v8488_v57 = vsub.f32 %v8325_v31, %v3716_v2  ;;  %v3717_v30 = vmul.f32 0.03125, %v3678_v41 }
 0x895   : > { %v8491_v29 = vsub.f32 %v8329_v16, %v3717_v30  ;;  %v3766_v0 = vmul.f32 %v8488_v57, %v8488_v57 }
 0x897   : > { %v3823_v60 = vsel %vm496_vm0, %v3766_v0, 0.0  ;;  %v3767_v44 = vmul.f32 %v8491_v29, %v8491_v29 }
 0x898   : > { %v3681_v62 = vpop.xlane.xlu1 %3680  ;;  %3824 = vadd.xlane.f32.xlu0 %v3823_v60 }
 0x899   : > { %v3718_v12 = vmul.f32 0.03125, %v3681_v62  ;;  %v3826_v34 = vsel %vm496_vm0, %v3767_v44, 0.0 }
 0x89a   : > { %v3684_v26 = vpop.xlane.xlu0 %3683  ;;  %3827 = vadd.xlane.f32.xlu1 %v3826_v34 }
 0x89b   : > { %v8500_v24 = vsub.f32 %v8339_v20, %v3718_v12  ;;  %v3719_v8 = vmul.f32 0.03125, %v3684_v26 }
 0x89d   : > { %v8503_v53 = vsub.f32 %v8343_v23, %v3719_v8  ;;  %v3768_v51 = vmul.f32 %v8500_v24, %v8500_v24 }
 0x89f   : > { %v3829_v1 = vsel %vm496_vm0, %v3768_v51, 0.0  ;;  %v3769_v48 = vmul.f32 %v8503_v53, %v8503_v53 }
 0x8a0   : > { %3830 = vadd.xlane.f32.xlu0 %v3829_v1 }
 0x8a1   : > { %v3832_v47 = vsel %vm496_vm0, %v3769_v48, 0.0 }
 0x8a2   : > { %3833 = vadd.xlane.f32.xlu1 %v3832_v47 }
 0x8dd   : > { %v3777_v32 = vpop.xlane.xlu1 %3776 }
 0x8de   : > { %v3850_v4 = vmul.f32 0.03125, %v3777_v32 }
 0x8df   : > { %v3780_v2 = vpop.xlane.xlu0 %3779 }
 0x8e0   : > { %v3875_v39 = vadd.f32 1e-05, %v3850_v4  ;;  %v3851_v41 = vmul.f32 0.03125, %v3780_v2 }
 0x8e1   : > { %v3687_v30 = vpop.xlane.xlu1 %3686 }
 0x8e2   : > { %5706 = vrsqrt.f32 %v3875_v39  ;;  %v3876_v0 = vadd.f32 1e-05, %v3851_v41  ;;  %v3720_v60 = vmul.f32 0.03125, %v3687_v30 }
 0x8e3   : > { %v3690_v44 = vpop.xlane.xlu0 %3689 }
 0x8e4   : > { %5708 = vrsqrt.f32 %v3876_v0  ;;  %v8512_v62 = vsub.f32 %v8369_v46, %v3720_v60  ;;  %v3721_v12 = vmul.f32 0.03125, %v3690_v44  ;;  %v8526_v44 = vld [vmem:[%s8962_s8] ss:$0 sm:$0xff] }
 0x8e5   : > { %v3783_v34 = vpop.xlane.xlu1 %3782 }
 0x8e6   : > { %v8515_v26 = vsub.f32 %v8375_v35, %v3721_v12  ;;  %v3852_v8 = vmul.f32 0.03125, %v3783_v34  ;;  %v3770_v51 = vmul.f32 %v8512_v62, %v8512_v62 }
 0x8e7   : > { %v3786_v1 = vpop.xlane.xlu0 %3785 }
 0x8e8   : > { %v3877_v48 = vadd.f32 1e-05, %v3852_v8  ;;  %v3853_v47 = vmul.f32 0.03125, %v3786_v1  ;;  %v3835_v32 = vsel %vm496_vm0, %v3770_v51, 0.0  ;;  %v3771_v4 = vmul.f32 %v8515_v26, %v8515_v26 }
 0x8e9   : > { %v3693_v2 = vpop.xlane.xlu1 %3692  ;;  %3836 = vadd.xlane.f32.xlu0 %v3835_v32 }
 0x8ea   : > { %5710 = vrsqrt.f32 %v3877_v48  ;;  %v3878_v39 = vadd.f32 1e-05, %v3853_v47  ;;  %v3722_v41 = vmul.f32 0.03125, %v3693_v2  ;;  %v3838_v30 = vsel %vm496_vm0, %v3771_v4, 0.0 }
 0x8eb   : > { %v3696_v0 = vpop.xlane.xlu0 %3695  ;;  %3839 = vadd.xlane.f32.xlu1 %v3838_v30 }
 0x8ec   : > { %v5707_v60 = vpop.eup %5706  ;;  %5712 = vrsqrt.f32 %v3878_v39  ;;  %v8529_v12 = vsub.f32 %v8393_v36, %v3722_v41  ;;  %v3723_v34 = vmul.f32 0.03125, %v3696_v0  ;;  %v8542_v41 = vld [vmem:[%s8963_s9] ss:$0 sm:$0xff] }
 0x8ed   : > { %v3925_v8 = vmul.f32 %v5707_v60, %v8360_v19  ;;  %v3789_v51 = vpop.xlane.xlu1 %3788 }
 0x8ee   : > { %v5709_v1 = vpop.eup %5708  ;;  %v8533_v48 = vsub.f32 %v8399_v6, %v3723_v34  ;;  %v3854_v47 = vmul.f32 0.03125, %v3789_v51  ;;  %v3772_v32 = vmul.f32 %v8529_v12, %v8529_v12 }
 0x8ef   : > { %v3956_v4 = vmul.f32 %v8526_v44, %v3925_v8  ;;  %v3926_v2 = vmul.f32 %v5709_v1, %v8364_v40  ;;  %v3792_v39 = vpop.xlane.xlu0 %3791 }
 0x8f0   : > { %v3879_v19 = vadd.f32 1e-05, %v3854_v47  ;;  %v3855_v30 = vmul.f32 0.03125, %v3792_v39  ;;  %v3841_v0 = vsel %vm496_vm0, %v3772_v32, 0.0  ;;  %v3773_v60 = vmul.f32 %v8533_v48, %v8533_v48 }
 0x8f1   : > { %v3957_v34 = vmul.f32 %v8526_v44, %v3926_v2  ;;  %3842 = vadd.xlane.f32.xlu0 %v3841_v0  ;;  %v3699_v51 = vpop.xlane.xlu1 %3698  ;;  %v3987_v6 = vadd.f32 %v8542_v41, %v3956_v4 }
 0x8f2   : > { %5714 = vrsqrt.f32 %v3879_v19  ;;  %v3880_v8 = vadd.f32 1e-05, %v3855_v30  ;;  %v3724_v40 = vmul.f32 0.03125, %v3699_v51  ;;  %v3844_v1 = vsel %vm496_vm0, %v3773_v60, 0.0 }
 0x8f3   : > { %v3988_v36 = vadd.f32 %v8542_v41, %v3957_v34  ;;  %3845 = vadd.xlane.f32.xlu1 %v3844_v1 }
 0x8f4   : > { %v5711_v47 = vpop.eup %5710  ;;  %5716 = vrsqrt.f32 %v3880_v8  ;;  %v8552_v32 = vsub.f32 %v8416_v22, %v3724_v40 }
 0x8f5   : > { %v3927_v39 = vmul.f32 %v5711_v47, %v8380_v45  ;;  %v4012_v2 = vpack.c.bf16 %v3988_v36, %v3987_v6 }
 0x8f6   : > { %v5713_v0 = vpop.eup %5712  ;;  %v3774_v19 = vmul.f32 %v8552_v32, %v8552_v32 }
 0x8f7   : > { %v3928_v30 = vmul.f32 %v5713_v0, %v8386_v9  ;;  %5206 = vmatmul.mubr.msk.bf16.vlgmr.msra.gmra.mrb[156].mxu1 %vm496_vm0, %v4012_v2  ;;  %v3958_v4 = vmul.f32 %v8526_v44, %v3927_v39 }
 0x8f8   : > { %v3847_v60 = vsel %vm569_vm1, %v3774_v19, 0.0  ;;  %5209 = vmatprep.mubr.msk.bf16.mxu1 %vm5840_vm2, %v9238_v43 }
 0x8f9   : > { %3848 = vadd.xlane.f32.xlu0 %v3847_v60  ;;  %v3959_v34 = vmul.f32 %v8526_v44, %v3928_v30  ;;  %v3989_v45 = vadd.f32 %v8542_v41, %v3958_v4 }
 0x8fb   : > { %v3990_v36 = vadd.f32 %v8542_v41, %v3959_v34 }
 0x8fc   : > { %v5715_v6 = vpop.eup %5714 }
 0x8fd   : > { %v3929_v51 = vmul.f32 %v5715_v6, %v8404_v3  ;;  %v3795_v9 = vpop.xlane.xlu0 %3794  ;;  %v4013_v8 = vpack.c.bf16 %v3990_v36, %v3989_v45 }
 0x8fe   : > { %v5717_v40 = vpop.eup %5716  ;;  %v3856_v1 = vmul.f32 0.03125, %v3795_v9 }
 0x8ff   : > { %v3930_v47 = vmul.f32 %v5717_v40, %v8409_v5  ;;  %5210 = vmatmul.mubr.msk.bf16.gmra.mrb[160].mxu1 %vm496_vm0, %v4013_v8  ;;  %v3798_v39 = vpop.xlane.xlu1 %3797  ;;  %v3960_v2 = vmul.f32 %v8526_v44, %v3929_v51 }
 0x900   : > { %v3881_v0 = vadd.f32 1e-05, %v3856_v1  ;;  %v3857_v19 = vmul.f32 0.03125, %v3798_v39  ;;  %5213 = vmatprep.mubr.msk.bf16.mxu1 %vm5840_vm2, %v9238_v43 }
 0x901   : > { %v3961_v30 = vmul.f32 %v8526_v44, %v3930_v47  ;;  %v3991_v4 = vadd.f32 %v8542_v41, %v3960_v2 }
 0x902   : > { %5718 = vrsqrt.f32 %v3881_v0  ;;  %v3882_v3 = vadd.f32 1e-05, %v3857_v19 }
 0x903   : > { %v3992_v60 = vadd.f32 %v8542_v41, %v3961_v30 }
 0x904   : > { %5720 = vrsqrt.f32 %v3882_v3 }
 0x905   : > { %v3801_v5 = vpop.xlane.xlu0 %3800  ;;  %v4014_v34 = vpack.c.bf16 %v3992_v60, %v3991_v4 }
 0x906   : > { %v3858_v45 = vmul.f32 0.03125, %v3801_v5 }
 0x907   : > { %5214 = vmatmul.mubr.msk.bf16.gmra.mrb[164].mxu1 %vm496_vm0, %v4014_v34  ;;  %v3804_v36 = vpop.xlane.xlu1 %3803 }
 0x908   : > { %v3883_v6 = vadd.f32 1e-05, %v3858_v45  ;;  %v3859_v51 = vmul.f32 0.03125, %v3804_v36  ;;  %5217 = vmatprep.mubr.msk.bf16.mxu1 %vm5840_vm2, %v9238_v43 }
 0x90a   : > { %5722 = vrsqrt.f32 %v3883_v6  ;;  %v3884_v9 = vadd.f32 1e-05, %v3859_v51 }
 0x90c   : > { %v5719_v8 = vpop.eup %5718  ;;  %5724 = vrsqrt.f32 %v3884_v9 }
 0x90d   : > { %v3931_v40 = vmul.f32 %v5719_v8, %v8425_v58  ;;  %v3807_v1 = vpop.xlane.xlu0 %3806 }
 0x90e   : > { %v5721_v47 = vpop.eup %5720  ;;  %v3860_v39 = vmul.f32 0.03125, %v3807_v1 }
 0x90f   : > { %v3932_v2 = vmul.f32 %v5721_v47, %v8428_v42  ;;  %v3810_v0 = vpop.xlane.xlu1 %3809  ;;  %v3962_v19 = vmul.f32 %v8526_v44, %v3931_v40 }
 0x910   : > { %v3885_v30 = vadd.f32 1e-05, %v3860_v39  ;;  %v3861_v3 = vmul.f32 0.03125, %v3810_v0 }
 0x911   : > { %v3963_v4 = vmul.f32 %v8526_v44, %v3932_v2  ;;  %v3993_v5 = vadd.f32 %v8542_v41, %v3962_v19 }
 0x912   : > { %5726 = vrsqrt.f32 %v3885_v30  ;;  %v3886_v60 = vadd.f32 1e-05, %v3861_v3 }
 0x913   : > { %v3994_v34 = vadd.f32 %v8542_v41, %v3963_v4 }
 0x914   : > { %v5723_v45 = vpop.eup %5722  ;;  %5728 = vrsqrt.f32 %v3886_v60 }
 0x915   : > { %v3933_v58 = vmul.f32 %v5723_v45, %v8437_v27  ;;  %v3813_v36 = vpop.xlane.xlu0 %3812  ;;  %v4015_v6 = vpack.c.bf16 %v3994_v34, %v3993_v5 }
 0x916   : > { %v5725_v42 = vpop.eup %5724  ;;  %v3862_v51 = vmul.f32 0.03125, %v3813_v36 }
 0x917   : > { %v3934_v9 = vmul.f32 %v5725_v42, %v8440_v7  ;;  %5218 = vmatmul.mubr.msk.bf16.gmra.mrb[168].mxu1 %vm496_vm0, %v4015_v6  ;;  %v3816_v8 = vpop.xlane.xlu1 %3815  ;;  %v3964_v40 = vmul.f32 %v8526_v44, %v3933_v58 }
 0x918   : > { %v3887_v1 = vadd.f32 1e-05, %v3862_v51  ;;  %v3863_v47 = vmul.f32 0.03125, %v3816_v8  ;;  %5221 = vmatprep.mubr.msk.bf16.mxu1 %vm5840_vm2, %v9238_v43 }
 0x919   : > { %v3965_v39 = vmul.f32 %v8526_v44, %v3934_v9  ;;  %v3995_v2 = vadd.f32 %v8542_v41, %v3964_v40 }
 0x91a   : > { %5730 = vrsqrt.f32 %v3887_v1  ;;  %v3888_v27 = vadd.f32 1e-05, %v3863_v47 }
 0x91b   : > { %v3996_v0 = vadd.f32 %v8542_v41, %v3965_v39 }
 0x91c   : > { %v5727_v19 = vpop.eup %5726  ;;  %5732 = vrsqrt.f32 %v3888_v27 }
 0x91d   : > { %v3935_v7 = vmul.f32 %v5727_v19, %v8452_v49  ;;  %v3819_v30 = vpop.xlane.xlu0 %3818  ;;  %v4016_v3 = vpack.c.bf16 %v3996_v0, %v3995_v2 }
 0x91e   : > { %v5729_v4 = vpop.eup %5728  ;;  %v3864_v60 = vmul.f32 0.03125, %v3819_v30 }
 0x91f   : > { %v3936_v5 = vmul.f32 %v5729_v4, %v8455_v52  ;;  %5222 = vmatmul.mubr.msk.bf16.gmra.mrb[172].mxu1 %vm496_vm0, %v4016_v3  ;;  %v3822_v34 = vpop.xlane.xlu1 %3821  ;;  %v3966_v45 = vmul.f32 %v8526_v44, %v3935_v7 }
 0x920   : > { %v3889_v58 = vadd.f32 1e-05, %v3864_v60  ;;  %v3865_v36 = vmul.f32 0.03125, %v3822_v34  ;;  %5225 = vmatprep.mubr.msk.bf16.mxu1 %vm5840_vm2, %v9238_v43 }
 0x921   : > { %v3967_v6 = vmul.f32 %v8526_v44, %v3936_v5  ;;  %v3997_v42 = vadd.f32 %v8542_v41, %v3966_v45 }
 0x922   : > { %5734 = vrsqrt.f32 %v3889_v58  ;;  %v3890_v49 = vadd.f32 1e-05, %v3865_v36 }
 0x923   : > { %v3998_v51 = vadd.f32 %v8542_v41, %v3967_v6 }
 0x924   : > { %v5731_v9 = vpop.eup %5730  ;;  %5736 = vrsqrt.f32 %v3890_v49 }
 0x925   : > { %v3937_v52 = vmul.f32 %v5731_v9, %v8464_v37  ;;  %v3825_v8 = vpop.xlane.xlu0 %3824  ;;  %v4017_v40 = vpack.c.bf16 %v3998_v51, %v3997_v42 }
 0x926   : > { %v5733_v1 = vpop.eup %5732  ;;  %v3866_v47 = vmul.f32 0.03125, %v3825_v8 }
 0x927   : > { %v3938_v39 = vmul.f32 %v5733_v1, %v8467_v61  ;;  %5226 = vmatmul.mubr.msk.bf16.gmra.mrb[176].mxu1 %vm496_vm0, %v4017_v40  ;;  %v3828_v27 = vpop.xlane.xlu1 %3827  ;;  %v3968_v2 = vmul.f32 %v8526_v44, %v3937_v52 }
 0x928   : > { %v3891_v0 = vadd.f32 1e-05, %v3866_v47  ;;  %v3867_v19 = vmul.f32 0.03125, %v3828_v27  ;;  %5229 = vmatprep.mubr.msk.bf16.mxu1 %vm5840_vm2, %v9238_v43 }
 0x929   : > { %v3969_v7 = vmul.f32 %v8526_v44, %v3938_v39  ;;  %v3999_v30 = vadd.f32 %v8542_v41, %v3968_v2 }
 0x92a   : > { %5738 = vrsqrt.f32 %v3891_v0  ;;  %v3892_v37 = vadd.f32 1e-05, %v3867_v19 }
 0x92b   : > { %v4000_v3 = vadd.f32 %v8542_v41, %v3969_v7 }
 0x92c   : > { %v5735_v4 = vpop.eup %5734  ;;  %5740 = vrsqrt.f32 %v3892_v37 }
 0x92d   : > { %v3939_v61 = vmul.f32 %v5735_v4, %v8476_v10  ;;  %v3831_v60 = vpop.xlane.xlu0 %3830  ;;  %v4018_v5 = vpack.c.bf16 %v4000_v3, %v3999_v30 }
 0x92e   : > { %v5737_v34 = vpop.eup %5736  ;;  %v3868_v45 = vmul.f32 0.03125, %v3831_v60 }
 0x92f   : > { %v3940_v58 = vmul.f32 %v5737_v34, %v8479_v13  ;;  %5230 = vmatmul.mubr.msk.bf16.gmra.mrb[180].mxu1 %vm496_vm0, %v4018_v5  ;;  %v3834_v36 = vpop.xlane.xlu1 %3833  ;;  %v3970_v6 = vmul.f32 %v8526_v44, %v3939_v61  ;;  %v5350_v5 = vld [vmem:[%s8966_s12 + $0x10] sm:$0xff]   ;;  %v5351_v34 = vld [vmem:[%s8966_s12 + $0x18] sm:$0xff]  }
 0x930   : > { %v3893_v49 = vadd.f32 1e-05, %v3868_v45  ;;  %v3869_v42 = vmul.f32 0.03125, %v3834_v36  ;;  %5233 = vmatprep.mubr.msk.bf16.mxu1 %vm5840_vm2, %v9238_v43  ;;  %v5352_v45 = vld [vmem:[%s8966_s12 + $0x20] sm:$0xff]   ;;  %v5354_v36 = vld [vmem:[%s8966_s12 + $0x30] sm:$0xff]  }
 0x931   : > { %v3971_v51 = vmul.f32 %v8526_v44, %v3940_v58  ;;  %v4001_v9 = vadd.f32 %v8542_v41, %v3970_v6  ;;  %v5353_v58 = vld [vmem:[%s8966_s12 + $0x28] sm:$0xff]   ;;  %v5355_v6 = vld [vmem:[%s8966_s12 + $0x38] sm:$0xff]  }
 0x932   : > { %5742 = vrsqrt.f32 %v3893_v49  ;;  %v3894_v10 = vadd.f32 1e-05, %v3869_v42 }
 0x933   : > { %v4002_v52 = vadd.f32 %v8542_v41, %v3971_v51 }
 0x934   : > { %v5739_v8 = vpop.eup %5738  ;;  %5744 = vrsqrt.f32 %v3894_v10 }
 0x935   : > { %v3941_v13 = vmul.f32 %v5739_v8, %v8488_v57  ;;  %v4019_v40 = vpack.c.bf16 %v4002_v52, %v4001_v9 }
 0x936   : > { %v5741_v1 = vpop.eup %5740 }
 0x937   : > { %v3942_v47 = vmul.f32 %v5741_v1, %v8491_v29  ;;  %5234 = vmatmul.mubr.msk.bf16.gmra.mrb[184].mxu1 %vm496_vm0, %v4019_v40  ;;  %v3972_v39 = vmul.f32 %v8526_v44, %v3941_v13 }
 0x938   : > { %5237 = vmatprep.mubr.msk.bf16.mxu1 %vm5840_vm2, %v9238_v43 }
 0x939   : > { %v3973_v27 = vmul.f32 %v8526_v44, %v3942_v47  ;;  %v4003_v2 = vadd.f32 %v8542_v41, %v3972_v39 }
 0x93b   : > { %v4004_v0 = vadd.f32 %v8542_v41, %v3973_v27 }
 0x93c   : > { %v5743_v19 = vpop.eup %5742 }
 0x93d   : > { %v3943_v57 = vmul.f32 %v5743_v19, %v8500_v24  ;;  %v4020_v7 = vpack.c.bf16 %v4004_v0, %v4003_v2  ;;  %v5348_v24 = vld [vmem:[%s8966_s12] sm:$0xff]  }
 0x93e   : > { %v5745_v37 = vpop.eup %5744  ;;  %5258 = vmatpush3.bf16.msra.mxu0 %v5348_v24 }
 0x93f   : > { %v3944_v29 = vmul.f32 %v5745_v37, %v8503_v53  ;;  %5238 = vmatmul.mubr.msk.bf16.gmra.mrb[188].mxu1 %vm496_vm0, %v4020_v7  ;;  %v3974_v30 = vmul.f32 %v8526_v44, %v3943_v57  ;;  %5259 = vmatprep.subr.bf16.mxu0 %v9238_v43  ;;  %v5349_v53 = vld [vmem:[%s8966_s12 + $0x8] sm:$0xff]  }
 0x940   : > { %5241 = vmatprep.mubr.msk.bf16.mxu1 %vm5840_vm2, %v9238_v43 }
 0x941   : > { %v3975_v3 = vmul.f32 %v8526_v44, %v3944_v29  ;;  %v4005_v4 = vadd.f32 %v8542_v41, %v3974_v30 }
 0x942   : > { %5260 = vmatpush3.bf16.msra.mxu0 %v5349_v53 }
 0x943   : > { %v4006_v61 = vadd.f32 %v8542_v41, %v3975_v3  ;;  %5261 = vmatprep.subr.bf16.mxu0 %v9238_v43 }
 0x945   : > { %v4021_v60 = vpack.c.bf16 %v4006_v61, %v4005_v4 }
 0x946   : > { %5262 = vmatpush3.bf16.msra.mxu0 %v5350_v5 }
 0x947   : > { %5242 = vmatmul.mubr.msk.bf16.gmra.mrb[192].mxu1 %vm496_vm0, %v4021_v60  ;;  %5263 = vmatprep.subr.bf16.mxu0 %v9238_v43 }
 0x948   : > { %5245 = vmatprep.mubr.msk.bf16.mxu1 %vm5840_vm2, %v9238_v43 }
 0x94a   : > { %5264 = vmatpush3.bf16.msra.mxu0 %v5351_v34 }
 0x94b   : > { %5265 = vmatprep.subr.bf16.mxu0 %v9238_v43 }
 0x94e   : > { %5266 = vmatpush3.bf16.msra.mxu0 %v5352_v45 }
 0x94f   : > { %5267 = vmatprep.subr.bf16.mxu0 %v9238_v43 }
 0x952   : > { %5268 = vmatpush3.bf16.msra.mxu0 %v5353_v58 }
 0x953   : > { %5269 = vmatprep.subr.bf16.mxu0 %v9238_v43 }
 0x956   : > { %5270 = vmatpush3.bf16.msra.mxu0 %v5354_v36 }
 0x957   : > { %5271 = vmatprep.subr.bf16.mxu0 %v9238_v43 }
 0x95a   : > { %5272 = vmatpush3.bf16.msra.mxu0 %v5355_v6 }
 0x976   : > { %v3837_v49 = vpop.xlane.xlu0 %3836 }
 0x977   : > { %v3870_v42 = vmul.f32 0.03125, %v3837_v49 }
 0x978   : > { %v3840_v51 = vpop.xlane.xlu1 %3839 }
 0x979   : > { %v3895_v10 = vadd.f32 1e-05, %v3870_v42  ;;  %v3871_v9 = vmul.f32 0.03125, %v3840_v51  ;;  %v8697_v42 = vld [vmem:[%s8965_s11] ss:$0 sm:$0xff] }
 0x97b   : > { %5746 = vrsqrt.f32 %v3895_v10  ;;  %v3896_v52 = vadd.f32 1e-05, %v3871_v9 }
 0x97d   : > { %5748 = vrsqrt.f32 %v3896_v52 }
 0x97e   : > { %v3843_v8 = vpop.xlane.xlu0 %3842 }
 0x97f   : > { %v3872_v13 = vmul.f32 0.03125, %v3843_v8 }
 0x980   : > { %v3846_v40 = vpop.xlane.xlu1 %3845 }
 0x981   : > { %v3897_v1 = vadd.f32 1e-05, %v3872_v13  ;;  %v3873_v47 = vmul.f32 0.03125, %v3846_v40 }
 0x983   : > { %5750 = vrsqrt.f32 %v3897_v1  ;;  %v3898_v39 = vadd.f32 1e-05, %v3873_v47 }
 0x985   : > { %v5747_v27 = vpop.eup %5746  ;;  %5752 = vrsqrt.f32 %v3898_v39 }
 0x986   : > { %v3945_v2 = vmul.f32 %v5747_v27, %v8512_v62  ;;  %v3849_v0 = vpop.xlane.xlu0 %3848 }
 0x987   : > { %v5749_v19 = vpop.eup %5748  ;;  %v3874_v57 = vmul.f32 0.03125, %v3849_v0 }
 0x988   : > { %v3946_v7 = vmul.f32 %v5749_v19, %v8515_v26  ;;  %v3976_v37 = vmul.f32 %v8526_v44, %v3945_v2 }
 0x989   : > { %v3899_v29 = vadd.f32 1e-05, %v3874_v57 }
 0x98a   : > { %v3977_v30 = vmul.f32 %v8526_v44, %v3946_v7  ;;  %v4007_v3 = vadd.f32 %v8542_v41, %v3976_v37 }
 0x98b   : > { %5754 = vrsqrt.f32 %v3899_v29 }
 0x98c   : > { %v4008_v4 = vadd.f32 %v8542_v41, %v3977_v30 }
 0x98d   : > { %v5751_v61 = vpop.eup %5750 }
 0x98e   : > { %v3947_v60 = vmul.f32 %v5751_v61, %v8529_v12  ;;  %v4022_v24 = vpack.c.bf16 %v4008_v4, %v4007_v3 }
 0x98f   : > { %v5753_v62 = vpop.eup %5752 }
 0x990   : > { %v3948_v53 = vmul.f32 %v5753_v62, %v8533_v48  ;;  %5246 = vmatmul.mubr.msk.bf16.gmra.mrb[196].mxu1 %vm496_vm0, %v4022_v24  ;;  %v3978_v26 = vmul.f32 %v8526_v44, %v3947_v60 }
 0x991   : > { %5249 = vmatprep.mubr.msk.bf16.mxu1 %vm5840_vm2, %v9238_v43 }
 0x992   : > { %v3979_v5 = vmul.f32 %v8526_v44, %v3948_v53  ;;  %v4009_v34 = vadd.f32 %v8542_v41, %v3978_v26 }
 0x994   : > { %v4010_v45 = vadd.f32 %v8542_v41, %v3979_v5 }
 0x995   : > { %v5755_v58 = vpop.eup %5754 }
 0x996   : > { %v3949_v12 = vmul.f32 %v5755_v58, %v8552_v32  ;;  %v4023_v36 = vpack.c.bf16 %v4010_v45, %v4009_v34 }
 0x998   : > { %5250 = vmatmul.mubr.msk.bf16.gmra.mrb[200].mxu1 %vm496_vm0, %v4023_v36  ;;  %v3980_v48 = vmul.f32 %v8526_v44, %v3949_v12 }
 0x999   : > { %5253 = vmatprep.mubr.msk.bf16.mxu1 %vm5840_vm2, %v9238_v43 }
 0x99a   : > { %v4011_v6 = vadd.f32 %v8542_v41, %v3980_v48 }
 0x99c   : > { %v4024_v49 = vpack.c.bf16 %v4011_v6, %v4011_v6 }
 0x9a0   : > { %5254 = vmatmul.mubr.msk.bf16.gmra.mrb[204].mxu1 %vm496_vm0, %v4024_v49 }
 0x9ca   : > { %v4121_v51 = vpop.f32.mrb[156].mxu1 }
 0x9cb   : > { %v4122_v32 = vadd.f32 %v8697_v42, %v4121_v51  ;;  %v5207_v10 = vpop.f32.mrb[157].mxu1 }
 0x9cc   : > { %v4124_v9 = vpop.f32.mrb[158].mxu1 }
 0x9cd   : > { %v4248_v52 = vmul.f32 0.044715, %v4122_v32  ;;  %v4125_v44 = vadd.f32 %v8697_v42, %v4124_v9  ;;  %v5208_v8 = vpop.f32.mrb[159].mxu1 }
 0x9cf   : > { %v4273_v13 = vmul.f32 %v4248_v52, %v4122_v32  ;;  %v4249_v40 = vmul.f32 0.044715, %v4125_v44 }
 0x9d1   : > { %v4298_v41 = vmul.f32 %v4273_v13, %v4122_v32  ;;  %v4274_v1 = vmul.f32 %v4249_v40, %v4125_v44 }
 0x9d2   : > { %v4129_v47 = vpop.f32.mrb[160].mxu1 }
 0x9d3   : > { %v4323_v39 = vadd.f32 %v4298_v41, %v4122_v32  ;;  %v4299_v27 = vmul.f32 %v4274_v1, %v4125_v44  ;;  %v4130_v2 = vadd.f32 %v8697_v42, %v4129_v47  ;;  %v5211_v0 = vpop.f32.mrb[161].mxu1  ;;  %v4223_v47 = vmul.f32 0.5, %v4122_v32 }
 0x9d4   : > { %v4132_v19 = vpop.f32.mrb[162].mxu1 }
 0x9d5   : > { %v4348_v57 = vmul.f32 0.7978846, %v4323_v39  ;;  %v4324_v7 = vadd.f32 %v4299_v27, %v4125_v44  ;;  %v4250_v37 = vmul.f32 0.044715, %v4130_v2  ;;  %v4133_v29 = vadd.f32 %v8697_v42, %v4132_v19  ;;  %v5212_v30 = vpop.f32.mrb[163].mxu1 }
 0x9d6   : > { %v4224_v39 = vmul.f32 0.5, %v4125_v44  ;;  %v4225_v44 = vmul.f32 0.5, %v4130_v2 }
 0x9d7   : > { %5756 = vtanh.f32 %v4348_v57  ;;  %v4349_v3 = vmul.f32 0.7978846, %v4324_v7  ;;  %v4275_v4 = vmul.f32 %v4250_v37, %v4130_v2  ;;  %v4251_v61 = vmul.f32 0.044715, %v4133_v29 }
 0x9d9   : > { %5758 = vtanh.f32 %v4349_v3  ;;  %v4300_v60 = vmul.f32 %v4275_v4, %v4130_v2  ;;  %v4276_v24 = vmul.f32 %v4251_v61, %v4133_v29 }
 0x9da   : > { %v4137_v62 = vpop.f32.mrb[164].mxu1 }
 0x9db   : > { %v4301_v53 = vmul.f32 %v4276_v24, %v4133_v29  ;;  %v8704_v26 = vadd.f32 %v8697_v42, %v4137_v62  ;;  %v5215_v5 = vpop.f32.mrb[165].mxu1  ;;  %v4325_v34 = vadd.f32 %v4300_v60, %v4130_v2 }
 0x9dc   : > { %v4140_v45 = vpop.f32.mrb[166].mxu1 }
 0x9dd   : > { %v4252_v58 = vmul.f32 0.044715, %v8704_v26  ;;  %v4141_v12 = vadd.f32 %v8697_v42, %v4140_v45  ;;  %v5216_v36 = vpop.f32.mrb[167].mxu1  ;;  %v4326_v48 = vadd.f32 %v4301_v53, %v4133_v29  ;;  %v4350_v6 = vmul.f32 0.7978846, %v4325_v34 }
 0x9de   : > { %v4226_v53 = vmul.f32 0.5, %v4133_v29 }
 0x9df   : > { %v4277_v49 = vmul.f32 %v4252_v58, %v8704_v26  ;;  %v4253_v51 = vmul.f32 0.044715, %v4141_v12  ;;  %v4351_v10 = vmul.f32 0.7978846, %v4326_v48  ;;  %5760 = vtanh.f32 %v4350_v6 }
 0x9e1   : > { %v5757_v9 = vpop.eup %5756  ;;  %v4302_v52 = vmul.f32 %v4277_v49, %v8704_v26  ;;  %v4278_v8 = vmul.f32 %v4253_v51, %v4141_v12  ;;  %5762 = vtanh.f32 %v4351_v10 }
 0x9e2   : > { %v4398_v13 = vadd.f32 1.0, %v5757_v9 }
 0x9e3   : > { %v5759_v40 = vpop.eup %5758  ;;  %v4303_v41 = vmul.f32 %v4278_v8, %v4141_v12  ;;  %v4327_v1 = vadd.f32 %v4302_v52, %v8704_v26 }
 0x9e4   : > { %v4399_v27 = vadd.f32 1.0, %v5759_v40  ;;  %v4423_v57 = vmul.f32 %v4398_v13, %v4223_v47 }
 0x9e5   : > { %v4328_v0 = vadd.f32 %v4303_v41, %v4141_v12  ;;  %v4352_v19 = vmul.f32 0.7978846, %v4327_v1 }
 0x9e6   : > { %v4424_v7 = vmul.f32 %v4399_v27, %v4224_v39  ;;  %v4227_v39 = vmul.f32 0.5, %v8704_v26  ;;  %v4228_v27 = vmul.f32 0.5, %v4141_v12 }
 0x9e7   : > { %v4353_v37 = vmul.f32 0.7978846, %v4328_v0  ;;  %5764 = vtanh.f32 %v4352_v19 }
 0x9e8   : > { %v4448_v30 = vpack.c.bf16 %v4424_v7, %v4423_v57 }
 0x9e9   : > { %v5761_v3 = vpop.eup %5760  ;;  %5766 = vtanh.f32 %v4353_v37 }
 0x9ea   : > { %5274 = vmatmul.mubr.bf16.vlgmr.msra.gmra.mrb[208].mxu0 %v4448_v30  ;;  %v4145_v4 = vpop.f32.mrb[168].mxu1  ;;  %v4400_v61 = vadd.f32 1.0, %v5761_v3 }
 0x9eb   : > { %v5763_v60 = vpop.eup %5762  ;;  %v8712_v24 = vadd.f32 %v8697_v42, %v4145_v4  ;;  %v5219_v62 = vpop.f32.mrb[169].mxu1  ;;  %5277 = vmatprep.mubr.msk.bf16.mxu0 %vm5840_vm2, %v9238_v43 }
 0x9ec   : > { %v4148_v32 = vpop.f32.mrb[170].mxu1  ;;  %v4401_v5 = vadd.f32 1.0, %v5763_v60  ;;  %v4425_v36 = vmul.f32 %v4400_v61, %v4225_v44 }
 0x9ed   : > { %v4254_v34 = vmul.f32 0.044715, %v8712_v24  ;;  %v8718_v45 = vadd.f32 %v8697_v42, %v4148_v32  ;;  %v5220_v58 = vpop.f32.mrb[171].mxu1 }
 0x9ee   : > { %v4426_v48 = vmul.f32 %v4401_v5, %v4226_v53 }
 0x9ef   : > { %v4279_v6 = vmul.f32 %v4254_v34, %v8712_v24  ;;  %v4255_v49 = vmul.f32 0.044715, %v8718_v45 }
 0x9f0   : > { %v4449_v51 = vpack.c.bf16 %v4426_v48, %v4425_v36 }
 0x9f1   : > { %v5765_v10 = vpop.eup %5764  ;;  %v4304_v9 = vmul.f32 %v4279_v6, %v8712_v24  ;;  %v4280_v2 = vmul.f32 %v4255_v49, %v8718_v45 }
 0x9f2   : > { %5278 = vmatmul.mubr.bf16.gmra.mrb[212].mxu0 %v4449_v51  ;;  %v4153_v29 = vpop.f32.mrb[172].mxu1  ;;  %v4402_v52 = vadd.f32 1.0, %v5765_v10 }
 0x9f3   : > { %v5767_v8 = vpop.eup %5766  ;;  %v4305_v13 = vmul.f32 %v4280_v2, %v8718_v45  ;;  %v8726_v40 = vadd.f32 %v8697_v42, %v4153_v29  ;;  %v5223_v41 = vpop.f32.mrb[173].mxu1  ;;  %5281 = vmatprep.mubr.msk.bf16.mxu0 %vm5840_vm2, %v9238_v43  ;;  %v4329_v1 = vadd.f32 %v4304_v9, %v8712_v24 }
 0x9f4   : > { %v4156_v47 = vpop.f32.mrb[174].mxu1  ;;  %v4403_v0 = vadd.f32 1.0, %v5767_v8  ;;  %v4427_v3 = vmul.f32 %v4402_v52, %v4227_v39 }
 0x9f5   : > { %v4256_v19 = vmul.f32 0.044715, %v8726_v40  ;;  %v8734_v57 = vadd.f32 %v8697_v42, %v4156_v47  ;;  %v5224_v7 = vpop.f32.mrb[175].mxu1  ;;  %v4330_v37 = vadd.f32 %v4305_v13, %v8718_v45  ;;  %v4354_v30 = vmul.f32 0.7978846, %v4329_v1 }
 0x9f6   : > { %v4428_v4 = vmul.f32 %v4403_v0, %v4228_v27 }
 0x9f7   : > { %v4281_v61 = vmul.f32 %v4256_v19, %v8726_v40  ;;  %v4257_v60 = vmul.f32 0.044715, %v8734_v57  ;;  %v4355_v62 = vmul.f32 0.7978846, %v4330_v37  ;;  %5768 = vtanh.f32 %v4354_v30 }
 0x9f8   : > { %v4450_v26 = vpack.c.bf16 %v4428_v4, %v4427_v3  ;;  %v4229_v37 = vmul.f32 0.5, %v8712_v24  ;;  %v4230_v30 = vmul.f32 0.5, %v8718_v45 }
 0x9f9   : > { %v4306_v12 = vmul.f32 %v4281_v61, %v8726_v40  ;;  %v4282_v32 = vmul.f32 %v4257_v60, %v8734_v57  ;;  %5770 = vtanh.f32 %v4355_v62 }
 0x9fa   : > { %5282 = vmatmul.mubr.bf16.gmra.mrb[216].mxu0 %v4450_v26  ;;  %v4161_v44 = vpop.f32.mrb[176].mxu1 }
 0x9fb   : > { %v4307_v53 = vmul.f32 %v4282_v32, %v8734_v57  ;;  %v8743_v5 = vadd.f32 %v8697_v42, %v4161_v44  ;;  %v5227_v34 = vpop.f32.mrb[177].mxu1  ;;  %5285 = vmatprep.mubr.msk.bf16.mxu0 %vm5840_vm2, %v9238_v43  ;;  %v4331_v58 = vadd.f32 %v4306_v12, %v8726_v40 }
 0x9fc   : > { %v4164_v36 = vpop.f32.mrb[178].mxu1 }
 0x9fd   : > { %v4258_v48 = vmul.f32 0.044715, %v8743_v5  ;;  %v8750_v6 = vadd.f32 %v8697_v42, %v4164_v36  ;;  %v5228_v49 = vpop.f32.mrb[179].mxu1  ;;  %v4332_v51 = vadd.f32 %v4307_v53, %v8734_v57  ;;  %v4356_v10 = vmul.f32 0.7978846, %v4331_v58 }
 0x9ff   : > { %v4283_v9 = vmul.f32 %v4258_v48, %v8743_v5  ;;  %v4259_v2 = vmul.f32 0.044715, %v8750_v6  ;;  %v4357_v29 = vmul.f32 0.7978846, %v4332_v51  ;;  %5772 = vtanh.f32 %v4356_v10 }
 0xa01   : > { %v5769_v52 = vpop.eup %5768  ;;  %v4308_v8 = vmul.f32 %v4283_v9, %v8743_v5  ;;  %v4284_v13 = vmul.f32 %v4259_v2, %v8750_v6  ;;  %5774 = vtanh.f32 %v4357_v29 }
 0xa02   : > { %v4169_v41 = vpop.f32.mrb[180].mxu1  ;;  %v4404_v1 = vadd.f32 1.0, %v5769_v52 }
 0xa03   : > { %v5771_v47 = vpop.eup %5770  ;;  %v4309_v39 = vmul.f32 %v4284_v13, %v8750_v6  ;;  %v8759_v27 = vadd.f32 %v8697_v42, %v4169_v41  ;;  %v5231_v0 = vpop.f32.mrb[181].mxu1  ;;  %v4333_v19 = vadd.f32 %v4308_v8, %v8743_v5  ;;  %v4231_v8 = vmul.f32 0.5, %v8726_v40 }
 0xa04   : > { %v4172_v7 = vpop.f32.mrb[182].mxu1  ;;  %v4405_v3 = vadd.f32 1.0, %v5771_v47  ;;  %v4429_v12 = vmul.f32 %v4404_v1, %v4229_v37  ;;  %v4232_v13 = vmul.f32 0.5, %v8734_v57 }
 0xa05   : > { %v4260_v4 = vmul.f32 0.044715, %v8759_v27  ;;  %v8766_v61 = vadd.f32 %v8697_v42, %v4172_v7  ;;  %v5232_v60 = vpop.f32.mrb[183].mxu1  ;;  %v4334_v62 = vadd.f32 %v4309_v39, %v8750_v6  ;;  %v4358_v26 = vmul.f32 0.7978846, %v4333_v19 }
 0xa06   : > { %v4430_v32 = vmul.f32 %v4405_v3, %v4230_v30 }
 0xa07   : > { %v4285_v44 = vmul.f32 %v4260_v4, %v8759_v27  ;;  %v4261_v53 = vmul.f32 0.044715, %v8766_v61  ;;  %v4359_v34 = vmul.f32 0.7978846, %v4334_v62  ;;  %5776 = vtanh.f32 %v4358_v26 }
 0xa08   : > { %v4451_v24 = vpack.c.bf16 %v4430_v32, %v4429_v12 }
 0xa09   : > { %v5773_v45 = vpop.eup %5772  ;;  %v4310_v58 = vmul.f32 %v4285_v44, %v8759_v27  ;;  %v4286_v36 = vmul.f32 %v4261_v53, %v8766_v61  ;;  %5778 = vtanh.f32 %v4359_v34 }
 0xa0a   : > { %v4177_v48 = vpop.f32.mrb[184].mxu1  ;;  %5286 = vmatmul.mubr.bf16.gmra.mrb[220].mxu0 %v4451_v24  ;;  %v4406_v49 = vadd.f32 1.0, %v5773_v45 }
 0xa0b   : > { %v5775_v51 = vpop.eup %5774  ;;  %v4311_v10 = vmul.f32 %v4286_v36, %v8766_v61  ;;  %v8775_v9 = vadd.f32 %v8697_v42, %v4177_v48  ;;  %v5235_v2 = vpop.f32.mrb[185].mxu1  ;;  %5289 = vmatprep.mubr.msk.bf16.mxu0 %vm5840_vm2, %v9238_v43  ;;  %v4335_v29 = vadd.f32 %v4310_v58, %v8759_v27  ;;  %v4233_v58 = vmul.f32 0.5, %v8743_v5 }
 0xa0c   : > { %v4180_v52 = vpop.f32.mrb[186].mxu1  ;;  %v4407_v41 = vadd.f32 1.0, %v5775_v51  ;;  %v4431_v7 = vmul.f32 %v4406_v49, %v4231_v8  ;;  %v4234_v36 = vmul.f32 0.5, %v8750_v6 }
 0xa0d   : > { %v4262_v1 = vmul.f32 0.044715, %v8775_v9  ;;  %v8784_v47 = vadd.f32 %v8697_v42, %v4180_v52  ;;  %v5236_v39 = vpop.f32.mrb[187].mxu1  ;;  %v4336_v0 = vadd.f32 %v4311_v10, %v8766_v61  ;;  %v4360_v19 = vmul.f32 0.7978846, %v4335_v29 }
 0xa0e   : > { %v4432_v37 = vmul.f32 %v4407_v41, %v4232_v13 }
 0xa0f   : > { %v4287_v30 = vmul.f32 %v4262_v1, %v8775_v9  ;;  %v4263_v3 = vmul.f32 0.044715, %v8784_v47  ;;  %v4361_v4 = vmul.f32 0.7978846, %v4336_v0  ;;  %5780 = vtanh.f32 %v4360_v19 }
 0xa10   : > { %v4452_v40 = vpack.c.bf16 %v4432_v37, %v4431_v7 }
 0xa11   : > { %v5777_v57 = vpop.eup %5776  ;;  %v4312_v60 = vmul.f32 %v4287_v30, %v8775_v9  ;;  %v4288_v62 = vmul.f32 %v4263_v3, %v8784_v47  ;;  %5782 = vtanh.f32 %v4361_v4 }
 0xa12   : > { %v4185_v26 = vpop.f32.mrb[188].mxu1  ;;  %5290 = vmatmul.mubr.bf16.gmra.mrb[224].mxu0 %v4452_v40  ;;  %v4408_v12 = vadd.f32 1.0, %v5777_v57 }
 0xa13   : > { %v5779_v32 = vpop.eup %5778  ;;  %v4313_v44 = vmul.f32 %v4288_v62, %v8784_v47  ;;  %v8793_v53 = vadd.f32 %v8697_v42, %v4185_v26  ;;  %v5239_v34 = vpop.f32.mrb[189].mxu1  ;;  %5293 = vmatprep.mubr.msk.bf16.mxu0 %vm5840_vm2, %v9238_v43  ;;  %v4337_v24 = vadd.f32 %v4312_v60, %v8775_v9  ;;  %v4235_v60 = vmul.f32 0.5, %v8759_v27 }
 0xa14   : > { %v4188_v45 = vpop.f32.mrb[190].mxu1  ;;  %v4409_v48 = vadd.f32 1.0, %v5779_v32  ;;  %v4433_v52 = vmul.f32 %v4408_v12, %v4233_v58  ;;  %v4236_v62 = vmul.f32 0.5, %v8766_v61 }
 0xa15   : > { %v4264_v49 = vmul.f32 0.044715, %v8793_v53  ;;  %v8802_v51 = vadd.f32 %v8697_v42, %v4188_v45  ;;  %v5240_v10 = vpop.f32.mrb[191].mxu1  ;;  %v4338_v2 = vadd.f32 %v4313_v44, %v8784_v47  ;;  %v4362_v29 = vmul.f32 0.7978846, %v4337_v24 }
 0xa16   : > { %v4434_v8 = vmul.f32 %v4409_v48, %v4234_v36 }
 0xa17   : > { %v4289_v13 = vmul.f32 %v4264_v49, %v8793_v53  ;;  %v4265_v41 = vmul.f32 0.044715, %v8802_v51  ;;  %v4363_v1 = vmul.f32 0.7978846, %v4338_v2  ;;  %5784 = vtanh.f32 %v4362_v29 }
 0xa18   : > { %v4453_v5 = vpack.c.bf16 %v4434_v8, %v4433_v52 }
 0xa19   : > { %v5781_v6 = vpop.eup %5780  ;;  %v4314_v39 = vmul.f32 %v4289_v13, %v8793_v53  ;;  %v4290_v0 = vmul.f32 %v4265_v41, %v8802_v51  ;;  %5786 = vtanh.f32 %v4363_v1  ;;  %v4237_v41 = vmul.f32 0.5, %v8775_v9 }
 0xa1a   : > { %v4193_v19 = vpop.f32.mrb[192].mxu1  ;;  %5294 = vmatmul.mubr.bf16.gmra.mrb[228].mxu0 %v4453_v5  ;;  %v4410_v7 = vadd.f32 1.0, %v5781_v6  ;;  %v4238_v1 = vmul.f32 0.5, %v8784_v47  ;;  %v4239_v9 = vmul.f32 0.5, %v8793_v53  ;;  %v4240_v47 = vmul.f32 0.5, %v8802_v51 }
 0xa1b   : > { %v5783_v37 = vpop.eup %5782  ;;  %v4315_v30 = vmul.f32 %v4290_v0, %v8802_v51  ;;  %v4194_v3 = vadd.f32 %v8697_v42, %v4193_v19  ;;  %v5243_v4 = vpop.f32.mrb[193].mxu1  ;;  %5297 = vmatprep.mubr.msk.bf16.mxu0 %vm5840_vm2, %v9238_v43  ;;  %v4339_v40 = vadd.f32 %v4314_v39, %v8793_v53 }
 0xa1c   : > { %v4196_v57 = vpop.f32.mrb[194].mxu1  ;;  %v4411_v26 = vadd.f32 1.0, %v5783_v37  ;;  %v4435_v45 = vmul.f32 %v4410_v7, %v4235_v60 }
 0xa1d   : > { %v4266_v12 = vmul.f32 0.044715, %v4194_v3  ;;  %v4197_v32 = vadd.f32 %v8697_v42, %v4196_v57  ;;  %v5244_v44 = vpop.f32.mrb[195].mxu1  ;;  %v4340_v34 = vadd.f32 %v4315_v30, %v8802_v51  ;;  %v4364_v24 = vmul.f32 0.7978846, %v4339_v40 }
 0xa1e   : > { %v4436_v58 = vmul.f32 %v4411_v26, %v4236_v62 }
 0xa1f   : > { %v4291_v36 = vmul.f32 %v4266_v12, %v4194_v3  ;;  %v4267_v48 = vmul.f32 0.044715, %v4197_v32  ;;  %v4365_v49 = vmul.f32 0.7978846, %v4340_v34  ;;  %5788 = vtanh.f32 %v4364_v24 }
 0xa20   : > { %v4454_v10 = vpack.c.bf16 %v4436_v58, %v4435_v45  ;;  %v4241_v24 = vmul.f32 0.5, %v4194_v3  ;;  %v4242_v45 = vmul.f32 0.5, %v4197_v32 }
 0xa21   : > { %v5785_v2 = vpop.eup %5784  ;;  %v4316_v29 = vmul.f32 %v4291_v36, %v4194_v3  ;;  %v4292_v27 = vmul.f32 %v4267_v48, %v4197_v32  ;;  %5790 = vtanh.f32 %v4365_v49 }
 0xa22   : > { %5298 = vmatmul.mubr.bf16.gmra.mrb[232].mxu0 %v4454_v10  ;;  %v4412_v61 = vadd.f32 1.0, %v5785_v2 }
 0xa23   : > { %v5787_v52 = vpop.eup %5786  ;;  %v4317_v8 = vmul.f32 %v4292_v27, %v4197_v32  ;;  %5301 = vmatprep.mubr.msk.bf16.mxu0 %vm5840_vm2, %v9238_v43  ;;  %v4341_v13 = vadd.f32 %v4316_v29, %v4194_v3 }
 0xa24   : > { %v4413_v5 = vadd.f32 1.0, %v5787_v52  ;;  %v4437_v0 = vmul.f32 %v4412_v61, %v4237_v41 }
 0xa25   : > { %v4342_v6 = vadd.f32 %v4317_v8, %v4197_v32  ;;  %v4366_v39 = vmul.f32 0.7978846, %v4341_v13 }
 0xa26   : > { %v4438_v19 = vmul.f32 %v4413_v5, %v4238_v1 }
 0xa27   : > { %v4367_v7 = vmul.f32 0.7978846, %v4342_v6  ;;  %5792 = vtanh.f32 %v4366_v39 }
 0xa28   : > { %v4455_v37 = vpack.c.bf16 %v4438_v19, %v4437_v0 }
 0xa29   : > { %v5789_v30 = vpop.eup %5788  ;;  %5794 = vtanh.f32 %v4367_v7 }
 0xa2a   : > { %5302 = vmatmul.mubr.bf16.gmra.mrb[236].mxu0 %v4455_v37  ;;  %v4414_v4 = vadd.f32 1.0, %v5789_v30 }
 0xa2b   : > { %v5791_v40 = vpop.eup %5790  ;;  %5305 = vmatprep.mubr.msk.bf16.mxu0 %vm5840_vm2, %v9238_v43 }
 0xa2c   : > { %v4415_v57 = vadd.f32 1.0, %v5791_v40  ;;  %v4439_v60 = vmul.f32 %v4414_v4, %v4239_v9 }
 0xa2e   : > { %v4440_v62 = vmul.f32 %v4415_v57, %v4240_v47 }
 0xa30   : > { %v4456_v26 = vpack.c.bf16 %v4440_v62, %v4439_v60 }
 0xa31   : > { %v5793_v12 = vpop.eup %5792 }
 0xa32   : > { %5306 = vmatmul.mubr.bf16.gmra.mrb[240].mxu0 %v4456_v26  ;;  %v4416_v44 = vadd.f32 1.0, %v5793_v12 }
 0xa33   : > { %v5795_v34 = vpop.eup %5794  ;;  %5309 = vmatprep.mubr.msk.bf16.mxu0 %vm5840_vm2, %v9238_v43 }
 0xa34   : > { %v4417_v58 = vadd.f32 1.0, %v5795_v34  ;;  %v4441_v36 = vmul.f32 %v4416_v44, %v4241_v24 }
 0xa36   : > { %v4442_v48 = vmul.f32 %v4417_v58, %v4242_v45 }
 0xa38   : > { %v4457_v49 = vpack.c.bf16 %v4442_v48, %v4441_v36 }
 0xa3a   : > { %5310 = vmatmul.mubr.bf16.gmra.mrb[244].mxu0 %v4457_v49 }
 0xa3b   : > { %5313 = vmatprep.mubr.msk.bf16.mxu0 %vm5840_vm2, %v9238_v43 }
 0xa63   : > { %v4201_v53 = vpop.f32.mrb[196].mxu1 }
 0xa64   : > { %v4202_v51 = vadd.f32 %v8697_v42, %v4201_v53  ;;  %v5247_v10 = vpop.f32.mrb[197].mxu1 }
 0xa65   : > { %v4204_v2 = vpop.f32.mrb[198].mxu1 }
 0xa66   : > { %v4268_v29 = vmul.f32 0.044715, %v4202_v51  ;;  %v4205_v27 = vadd.f32 %v8697_v42, %v4204_v2  ;;  %v5248_v61 = vpop.f32.mrb[199].mxu1 }
 0xa68   : > { %v4293_v52 = vmul.f32 %v4268_v29, %v4202_v51  ;;  %v4269_v3 = vmul.f32 0.044715, %v4205_v27 }
 0xa6a   : > { %v4318_v32 = vmul.f32 %v4293_v52, %v4202_v51  ;;  %v4294_v8 = vmul.f32 %v4269_v3, %v4205_v27  ;;  %v4243_v52 = vmul.f32 0.5, %v4202_v51  ;;  %v4244_v3 = vmul.f32 0.5, %v4205_v27 }
 0xa6b   : > { %v4209_v13 = vpop.f32.mrb[200].mxu1 }
 0xa6c   : > { %v4319_v41 = vmul.f32 %v4294_v8, %v4205_v27  ;;  %v4210_v1 = vadd.f32 %v8697_v42, %v4209_v13  ;;  %v5251_v5 = vpop.f32.mrb[201].mxu1  ;;  %v4343_v6 = vadd.f32 %v4318_v32, %v4202_v51 }
 0xa6d   : > { %v4212_v39 = vpop.f32.mrb[202].mxu1 }
 0xa6e   : > { %v4270_v0 = vmul.f32 0.044715, %v4210_v1  ;;  %v4213_v19 = vadd.f32 %v8697_v42, %v4212_v39  ;;  %v5252_v7 = vpop.f32.mrb[203].mxu1  ;;  %v4344_v37 = vadd.f32 %v4319_v41, %v4205_v27  ;;  %v4368_v30 = vmul.f32 0.7978846, %v4343_v6 }
 0xa70   : > { %v4295_v4 = vmul.f32 %v4270_v0, %v4210_v1  ;;  %v4271_v40 = vmul.f32 0.044715, %v4213_v19  ;;  %v4369_v9 = vmul.f32 0.7978846, %v4344_v37  ;;  %5796 = vtanh.f32 %v4368_v30 }
 0xa71   : > { %v4245_v0 = vmul.f32 0.5, %v4210_v1  ;;  %v4246_v7 = vmul.f32 0.5, %v4213_v19 }
 0xa72   : > { %v4320_v47 = vmul.f32 %v4295_v4, %v4210_v1  ;;  %v4296_v57 = vmul.f32 %v4271_v40, %v4213_v19  ;;  %5798 = vtanh.f32 %v4369_v9 }
 0xa73   : > { %v4217_v60 = vpop.f32.mrb[204].mxu1 }
 0xa74   : > { %v4321_v62 = vmul.f32 %v4296_v57, %v4213_v19  ;;  %v4218_v26 = vadd.f32 %v8697_v42, %v4217_v60  ;;  %v5255_v12 = vpop.f32.mrb[205].mxu1  ;;  %v4345_v44 = vadd.f32 %v4320_v47, %v4210_v1  ;;  %v8842_v1 = vld [vmem:[%s8967_s13] ss:$0 sm:$0xff] }
 0xa75   : > { %v4220_v34 = vpop.f32.mrb[206].mxu1 }
 0xa76   : > { %v4272_v24 = vmul.f32 0.044715, %v4218_v26  ;;  %v5256_v45 = vpop.f32.mrb[207].mxu1  ;;  %v4346_v58 = vadd.f32 %v4321_v62, %v4213_v19  ;;  %v4370_v36 = vmul.f32 0.7978846, %v4345_v44  ;;  %v4247_v40 = vmul.f32 0.5, %v4218_v26 }
 0xa78   : > { %v4297_v48 = vmul.f32 %v4272_v24, %v4218_v26  ;;  %v4371_v49 = vmul.f32 0.7978846, %v4346_v58  ;;  %5800 = vtanh.f32 %v4370_v36 }
 0xa7a   : > { %v5797_v53 = vpop.eup %5796  ;;  %v4322_v10 = vmul.f32 %v4297_v48, %v4218_v26  ;;  %5802 = vtanh.f32 %v4371_v49 }
 0xa7b   : > { %v4418_v2 = vadd.f32 1.0, %v5797_v53 }
 0xa7c   : > { %v5799_v29 = vpop.eup %5798  ;;  %v4347_v61 = vadd.f32 %v4322_v10, %v4218_v26 }
 0xa7d   : > { %v4419_v32 = vadd.f32 1.0, %v5799_v29  ;;  %v4443_v8 = vmul.f32 %v4418_v2, %v4243_v52 }
 0xa7e   : > { %v4372_v42 = vmul.f32 0.7978846, %v4347_v61 }
 0xa7f   : > { %v4444_v13 = vmul.f32 %v4419_v32, %v4244_v3 }
 0xa80   : > { %5804 = vtanh.f32 %v4372_v42 }
 0xa81   : > { %v4458_v41 = vpack.c.bf16 %v4444_v13, %v4443_v8 }
 0xa82   : > { %v5801_v5 = vpop.eup %5800 }
 0xa83   : > { %5314 = vmatmul.mubr.bf16.gmra.mrb[248].mxu0 %v4458_v41  ;;  %v4420_v6 = vadd.f32 1.0, %v5801_v5 }
 0xa84   : > { %v5803_v39 = vpop.eup %5802  ;;  %5317 = vmatprep.mubr.msk.bf16.mxu0 %vm5840_vm2, %v9238_v43 }
 0xa85   : > { %v4421_v37 = vadd.f32 1.0, %v5803_v39  ;;  %v4445_v30 = vmul.f32 %v4420_v6, %v4245_v0 }
 0xa87   : > { %v4446_v51 = vmul.f32 %v4421_v37, %v4246_v7 }
 0xa89   : > { %v4459_v27 = vpack.c.bf16 %v4446_v51, %v4445_v30 }
 0xa8a   : > { %v5805_v4 = vpop.eup %5804 }
 0xa8b   : > { %v4422_v9 = vadd.f32 1.0, %v5805_v4  ;;  %5318 = vmatmul.mubr.bf16.gmra.mrb[252].mxu0 %v4459_v27 }
 0xa8c   : > { %5321 = vmatprep.mubr.msk.bf16.mxu0 %vm5840_vm2, %v9238_v43 }
 0xa8d   : > { %v4447_v47 = vmul.f32 %v4422_v9, %v4247_v40 }
 0xa8f   : > { %v4460_v57 = vpack.c.bf16 %v4447_v47, %v4447_v47 }
 0xa93   : > { %5322 = vmatmul.mubr.bf16.gmra.mrb[0].mxu0 %v4460_v57 }
 0xabd   : > { %v4566_v19 = vpop.f32.mrb[208].mxu0 }
 0xabe   : > { %v4567_v60 = vadd.f32 %v8842_v1, %v4566_v19  ;;  %v5275_v62 = vpop.f32.mrb[209].mxu0 }
 0xabf   : > { %v4569_v43 = vpop.f32.mrb[210].mxu0 }
 0xac0   : > { %v4668_v26 = vadd.f32 %v4567_v60, %v8213_v25  ;;  %v4570_v12 = vadd.f32 %v8842_v1, %v4569_v43  ;;  %v5276_v44 = vpop.f32.mrb[211].mxu0 }
 0xac2   : > { %4693 = vst.msk [vmem:[%s8850_s20] sm:$0xff] %vm496_vm0, %v4668_v26  ;;  %v4669_v34 = vadd.f32 %v4570_v12, %v8217_v15 }
 0xac4   : > { %4694 = vst.msk [vmem:[%s8850_s20 + $0x8] sm:$0xff] %vm496_vm0, %v4669_v34 }
 0xac5   : > { %v4574_v24 = vpop.f32.mrb[212].mxu0 }
 0xac6   : > { %v4575_v45 = vadd.f32 %v8842_v1, %v4574_v24  ;;  %v5279_v58 = vpop.f32.mrb[213].mxu0 }
 0xac7   : > { %v4577_v36 = vpop.f32.mrb[214].mxu0 }
 0xac8   : > { %v4670_v48 = vadd.f32 %v4575_v45, %v8227_v11  ;;  %v4578_v25 = vadd.f32 %v8842_v1, %v4577_v36  ;;  %v5280_v49 = vpop.f32.mrb[215].mxu0 }
 0xaca   : > { %4695 = vst.msk [vmem:[%s8850_s20 + $0x10] sm:$0xff] %vm496_vm0, %v4670_v48  ;;  %v4671_v53 = vadd.f32 %v4578_v25, %v8231_v33 }
 0xacc   : > { %4696 = vst.msk [vmem:[%s8850_s20 + $0x18] sm:$0xff] %vm496_vm0, %v4671_v53 }
 0xacd   : > { %v4582_v15 = vpop.f32.mrb[216].mxu0 }
 0xace   : > { %v4583_v10 = vadd.f32 %v8842_v1, %v4582_v15  ;;  %v5283_v2 = vpop.f32.mrb[217].mxu0 }
 0xacf   : > { %v4585_v29 = vpop.f32.mrb[218].mxu0 }
 0xad0   : > { %v4672_v61 = vadd.f32 %v4583_v10, %v8241_v14  ;;  %v4586_v11 = vadd.f32 %v8842_v1, %v4585_v29  ;;  %v5284_v52 = vpop.f32.mrb[219].mxu0 }
 0xad2   : > { %4697 = vst.msk [vmem:[%s8850_s20 + $0x20] sm:$0xff] %vm496_vm0, %v4672_v61  ;;  %v4673_v3 = vadd.f32 %v4586_v11, %v8245_v18 }
 0xad4   : > { %4698 = vst.msk [vmem:[%s8850_s20 + $0x28] sm:$0xff] %vm496_vm0, %v4673_v3 }
 0xadd   : > { %v4590_v33 = vpop.f32.mrb[220].mxu0 }
 0xade   : > { %v4591_v32 = vadd.f32 %v8842_v1, %v4590_v33  ;;  %v5287_v42 = vpop.f32.mrb[221].mxu0 }
 0xadf   : > { %v4593_v8 = vpop.f32.mrb[222].mxu0 }
 0xae0   : > { %v4674_v13 = vadd.f32 %v4591_v32, %v8255_v17  ;;  %v4594_v14 = vadd.f32 %v8842_v1, %v4593_v8  ;;  %v5288_v41 = vpop.f32.mrb[223].mxu0 }
 0xae2   : > { %4699 = vst.msk [vmem:[%s8850_s20 + $0x30] sm:$0xff] %vm496_vm0, %v4674_v13  ;;  %v4675_v5 = vadd.f32 %v4594_v14, %v8259_v59 }
 0xae4   : > { %4700 = vst.msk [vmem:[%s8850_s20 + $0x38] sm:$0xff] %vm496_vm0, %v4675_v5 }
 0xae5   : > { %v4598_v18 = vpop.f32.mrb[224].mxu0 }
 0xae6   : > { %v4599_v6 = vadd.f32 %v8842_v1, %v4598_v18  ;;  %v5291_v39 = vpop.f32.mrb[225].mxu0  ;;  %v9261_v18 = vld [vmem:[#allocation36_spill] sm:$0xff] }
 0xae7   : > { %v4601_v0 = vpop.f32.mrb[226].mxu0 }
 0xae8   : > { %v4676_v7 = vadd.f32 %v4599_v6, %v8269_v63  ;;  %v4602_v17 = vadd.f32 %v8842_v1, %v4601_v0  ;;  %v5292_v37 = vpop.f32.mrb[227].mxu0  ;;  %v9262_v0 = vld [vmem:[#allocation35_spill] sm:$0xff] }
 0xaea   : > { %4701 = vst.msk [vmem:[%s8850_s20 + $0x40] sm:$0xff] %vm496_vm0, %v4676_v7  ;;  %v4677_v30 = vadd.f32 %v4602_v17, %v8273_v38 }
 0xaec   : > { %4702 = vst.msk [vmem:[%s8850_s20 + $0x48] sm:$0xff] %vm496_vm0, %v4677_v30 }
 0xaed   : > { %v4606_v59 = vpop.f32.mrb[228].mxu0 }
 0xaee   : > { %v4607_v51 = vadd.f32 %v8842_v1, %v4606_v59  ;;  %v5295_v27 = vpop.f32.mrb[229].mxu0 }
 0xaef   : > { %v4609_v4 = vpop.f32.mrb[230].mxu0 }
 0xaf0   : > { %v4678_v40 = vadd.f32 %v4607_v51, %v8283_v21  ;;  %v4610_v63 = vadd.f32 %v8842_v1, %v4609_v4  ;;  %v5296_v9 = vpop.f32.mrb[231].mxu0 }
 0xaf2   : > { %4703 = vst.msk [vmem:[%s8850_s20 + $0x50] sm:$0xff] %vm496_vm0, %v4678_v40  ;;  %v4679_v47 = vadd.f32 %v4610_v63, %v8287_v50 }
 0xaf4   : > { %4704 = vst.msk [vmem:[%s8850_s20 + $0x58] sm:$0xff] %vm496_vm0, %v4679_v47 }
 0xaf5   : > { %v4614_v38 = vpop.f32.mrb[232].mxu0 }
 0xaf6   : > { %v4615_v57 = vadd.f32 %v8842_v1, %v4614_v38  ;;  %v5299_v19 = vpop.f32.mrb[233].mxu0 }
 0xaf7   : > { %v4617_v60 = vpop.f32.mrb[234].mxu0 }
 0xaf8   : > { %v4680_v62 = vadd.f32 %v4615_v57, %v8297_v56  ;;  %v4618_v21 = vadd.f32 %v8842_v1, %v4617_v60  ;;  %v5300_v43 = vpop.f32.mrb[235].mxu0 }
 0xafa   : > { %4705 = vst.msk [vmem:[%s8850_s20 + $0x60] sm:$0xff] %vm496_vm0, %v4680_v62  ;;  %v4681_v26 = vadd.f32 %v4618_v21, %v8301_v54 }
 0xafc   : > { %4706 = vst.msk [vmem:[%s8850_s20 + $0x68] sm:$0xff] %vm496_vm0, %v4681_v26 }
 0xafd   : > { %v4622_v50 = vpop.f32.mrb[236].mxu0 }
 0xafe   : > { %v4623_v12 = vadd.f32 %v8842_v1, %v4622_v50  ;;  %v5303_v44 = vpop.f32.mrb[237].mxu0 }
 0xaff   : > { %v4625_v34 = vpop.f32.mrb[238].mxu0 }
 0xb00   : > { %v4682_v24 = vadd.f32 %v4623_v12, %v8311_v55  ;;  %v4626_v56 = vadd.f32 %v8842_v1, %v4625_v34  ;;  %v5304_v45 = vpop.f32.mrb[239].mxu0 }
 0xb02   : > { %4707 = vst.msk [vmem:[%s8850_s20 + $0x70] sm:$0xff] %vm496_vm0, %v4682_v24  ;;  %v4683_v58 = vadd.f32 %v4626_v56, %v8315_v28 }
 0xb04   : > { %4708 = vst.msk [vmem:[%s8850_s20 + $0x78] sm:$0xff] %vm496_vm0, %v4683_v58 }
 0xb05   : > { %v4630_v54 = vpop.f32.mrb[240].mxu0 }
 0xb06   : > { %v4631_v36 = vadd.f32 %v8842_v1, %v4630_v54  ;;  %v5307_v48 = vpop.f32.mrb[241].mxu0 }
 0xb07   : > { %v4633_v25 = vpop.f32.mrb[242].mxu0 }
 0xb08   : > { %v4684_v49 = vadd.f32 %v4631_v36, %v8325_v31  ;;  %v4634_v55 = vadd.f32 %v8842_v1, %v4633_v25  ;;  %v5308_v53 = vpop.f32.mrb[243].mxu0 }
 0xb0a   : > { %4709 = vst.msk [vmem:[%s8850_s20 + $0x80] sm:$0xff] %vm496_vm0, %v4684_v49  ;;  %v4685_v15 = vadd.f32 %v4634_v55, %v8329_v16 }
 0xb0c   : > { %4710 = vst.msk [vmem:[%s8850_s20 + $0x88] sm:$0xff] %vm496_vm0, %v4685_v15 }
 0xb0d   : > { %v4638_v28 = vpop.f32.mrb[244].mxu0 }
 0xb0e   : > { %v4639_v10 = vadd.f32 %v8842_v1, %v4638_v28  ;;  %v5311_v2 = vpop.f32.mrb[245].mxu0 }
 0xb0f   : > { %v4641_v29 = vpop.f32.mrb[246].mxu0 }
 0xb10   : > { %v4686_v61 = vadd.f32 %v4639_v10, %v8339_v20  ;;  %v4642_v31 = vadd.f32 %v8842_v1, %v4641_v29  ;;  %v5312_v11 = vpop.f32.mrb[247].mxu0 }
 0xb12   : > { %4711 = vst.msk [vmem:[%s8850_s20 + $0x90] sm:$0xff] %vm496_vm0, %v4686_v61  ;;  %v4687_v52 = vadd.f32 %v4642_v31, %v8343_v23 }
 0xb14   : > { %4712 = vst.msk [vmem:[%s8850_s20 + $0x98] sm:$0xff] %vm496_vm0, %v4687_v52 }
 0xb56   : > { %v4646_v16 = vpop.f32.mrb[248].mxu0 }
 0xb57   : > { %v4647_v3 = vadd.f32 %v8842_v1, %v4646_v16  ;;  %v5315_v33 = vpop.f32.mrb[249].mxu0 }
 0xb58   : > { %v4649_v32 = vpop.f32.mrb[250].mxu0 }
 0xb59   : > { %v4688_v42 = vadd.f32 %v4647_v3, %v8369_v46  ;;  %v4650_v20 = vadd.f32 %v8842_v1, %v4649_v32  ;;  %v5316_v8 = vpop.f32.mrb[251].mxu0 }
 0xb5b   : > { %4713 = vst.msk [vmem:[%s8850_s20 + $0xa0] sm:$0xff] %vm496_vm0, %v4688_v42  ;;  %v4689_v13 = vadd.f32 %v4650_v20, %v8375_v35 }
 0xb5d   : > { %4714 = vst.msk [vmem:[%s8850_s20 + $0xa8] sm:$0xff] %vm496_vm0, %v4689_v13 }
 0xb5e   : > { %v4654_v23 = vpop.f32.mrb[252].mxu0 }
 0xb5f   : > { %v4655_v14 = vadd.f32 %v8842_v1, %v4654_v23  ;;  %v5319_v41 = vpop.f32.mrb[253].mxu0 }
 0xb60   : > { %v4657_v5 = vpop.f32.mrb[254].mxu0 }
 0xb61   : > { %v4690_v6 = vadd.f32 %v4655_v14, %v9261_v18  ;;  %v4658_v39 = vadd.f32 %v8842_v1, %v4657_v5  ;;  %v5320_v46 = vpop.f32.mrb[255].mxu0 }
 0xb63   : > { %4715 = vst.msk [vmem:[%s8850_s20 + $0xb0] sm:$0xff] %vm496_vm0, %v4690_v6  ;;  %v4691_v7 = vadd.f32 %v4658_v39, %v9262_v0 }
 0xb65   : > { %4716 = vst.msk [vmem:[%s8850_s20 + $0xb8] sm:$0xff] %vm496_vm0, %v4691_v7 }
 0xb66   : > { %v4662_v35 = vpop.f32.mrb[0].mxu0 }
 0xb67   : > { %v4663_v17 = vadd.f32 %v8842_v1, %v4662_v35  ;;  %v5323_v37 = vpop.f32.mrb[1].mxu0 }
 0xb68   : > { %v4665_v30 = vpop.f32.mrb[2].mxu0 }
 0xb69   : > { %v4692_v59 = vadd.f32 %v4663_v17, %v8416_v22  ;;  %v5324_v51 = vpop.f32.mrb[3].mxu0 }
 0xb6b   : > { %4717 = vst.msk [vmem:[%s8850_s20 + $0xc0] sm:$0xf] %vm569_vm1, %v4692_v59 }
 0xb6c PF: > { %s24_s29 = sadd.s32 1, %s5837_s29  }
 0xb6d   : > { %p21_p4 = scmp.ge.s32.totalorder %s24_s29, 4  }
 0xb6f   :  { %23 = sbr.rel (!%p21_p4) target bundleno = 1 (0x1), region = 107 }

// kernel: _lambda_.11
= control target key start
LH: loop header
LB: loop body
LE: loop exit
PB: predicated region body
PF: predicated region fallthrough
CT: control target
= control target key end

     0   :  { %s3724_s29 = smov 0   ;;  %s4771_s0 = inlined_call_operand.vmem [shape: f32[2,49,64], index: 0, kind: input, shape index: {}]   ;;  %s4772_s1 = inlined_call_operand.vmem [shape: f32[1,64], index: 1, kind: input, shape index: {}, may-alias: {1,8}]   ;;  %s4773_s2 = inlined_call_operand.vmem [shape: f32[1,64], index: 2, kind: input, shape index: {}, may-alias: {2,6,9,13}]   ;;  %s4774_s3 = inlined_call_operand.vmem [shape: bf16[64,192], index: 3, kind: input, shape index: {}]   ;;  %s4775_s4 = inlined_call_operand.vmem [shape: f32[1,192], index: 4, kind: input, shape index: {}]   ;;  %s4776_s5 = inlined_call_operand.vmem [shape: bf16[64,64], index: 5, kind: input, shape index: {}]   ;;  %s4777_s6 = inlined_call_operand.vmem [shape: f32[1,64], index: 6, kind: input, shape index: {}, may-alias: {2,6,9,13}]   ;;  %s4778_s7 = inlined_call_operand.vmem [shape: f32[4,49,49], index: 7, kind: input, shape index: {}]   ;;  %s4779_s8 = inlined_call_operand.vmem [shape: f32[1,64], index: 8, kind: input, shape index: {}, may-alias: {1,8}]   ;;  %s4780_s9 = inlined_call_operand.vmem [shape: f32[1,64], index: 9, kind: input, shape index: {}, may-alias: {2,6,9,13}]   ;;  %s4781_s10 = inlined_call_operand.vmem [shape: bf16[64,256], index: 10, kind: input, shape index: {}]   ;;  %s4782_s11 = inlined_call_operand.vmem [shape: f32[1,256], index: 11, kind: input, shape index: {}]   ;;  %s4783_s12 = inlined_call_operand.vmem [shape: bf16[256,64], index: 12, kind: input, shape index: {}]   ;;  %s4784_s13 = inlined_call_operand.vmem [shape: f32[1,64], index: 13, kind: input, shape index: {}, may-alias: {2,6,9,13}]   ;;  %s4785_s14 = inlined_call_operand.vmem [shape: f32[2,49,64], index: 14, kind: output, shape index: {}]  }
   0x1 LB: > { %s2949_s30 = sadd.s32 4294967295, %s3639_s29   ;;  %p2953_p0 = scmp.ge.s32.totalorder %s3639_s29, 1  ;;  %s3639_s29 = sphi %s3724_s29, %s24_s29  }
   0x2   : > { %p412_p1 = scmp.lt.s32.totalorder %s3639_s29, 3 }
   0x4   : > { %p413_p2 = pnand %p2953_p0, %p412_p1 }
   0x5   : > { %p458_p3 = scmp.lt.s32.totalorder (!%p413_p2), %s2949_s30, 1  ;;  %vm478_vm0 = vcmask (!%p413_p2), 523264   ;;  %vm497_vm1 = vcmask (!%p413_p2), 516096   ;;  %v3414_v49 = vld [vmem:[%s4774_s3 + $0x4] ss:$8 sps:$4 sm:$0xff] (!%p413_p2)   ;;  %v3641_v56 = vmov (!%p413_p2), 0  }
   0x6   : > { %416 = sbr.rel (%p413_p2) target bundleno = 3101 (0xc1d), region = 76  ;;  %v3416_v50 = vld [vmem:[%s4774_s3] ss:$8 sps:$4 sm:$0xff] (!%p413_p2)   ;;  %674 = vmatprep.subr.bf16.mxu0 (!%p413_p2), %v3414_v49  ;;  %v3417_v51 = vld [vmem:[%s4774_s3 + $0x14] ss:$8 sps:$4 sm:$0xff] (!%p413_p2)   ;;  %706 = vmatprep.mubr.bf16.mxu0 (!%p413_p2), %v3641_v56  ;;  %vm787_vm2 = vcmask (!%p413_p2), 130048  }
   0x7   : > { %675 = vmatpush1.bf16.msra.mxu0 (!%p413_p2), %v3416_v50  ;;  %v3419_v52 = vld [vmem:[%s4774_s3 + $0x10] ss:$8 sps:$4 sm:$0xff] (!%p413_p2)   ;;  %v3420_v53 = vld [vmem:[%s4774_s3 + $0x24] ss:$8 sps:$4 sm:$0xff] (!%p413_p2)   ;;  %v3422_v54 = vld [vmem:[%s4774_s3 + $0x20] ss:$8 sps:$4 sm:$0xff] (!%p413_p2)   ;;  %v612_v50 = vlaneseq (!%p413_p2) }
   0x8   : > { %676 = vmatprep.subr.bf16.mxu0 (!%p413_p2), %v3417_v51  ;;  %v3423_v55 = vld [vmem:[%s4774_s3 + $0x34] ss:$8 sps:$4 sm:$0xff] (!%p413_p2)   ;;  %v3425_v57 = vld [vmem:[%s4774_s3 + $0x30] ss:$8 sps:$4 sm:$0xff] (!%p413_p2)   ;;  %s3642_s16 = smov (!%p413_p2), 64   ;;  %s3643_s17 = smov (!%p413_p2), 48  }
   0x9   : > { %v3836_v51 = vshrl.u32 (!%p413_p2), %v612_v50, 7  ;;  %s3644_s19 = smov (!%p413_p2), 112   ;;  %s3645_s20 = smov (!%p413_p2), 32   ;;  %vm975_vm3 = vcmask (!%p413_p2), 1040384   ;;  %vm876_vm4 = vcmask (!%p413_p2), 400384   ;;  %vm895_vm5 = vcmask (!%p413_p2), 393216  }
   0xa   : > { %s3646_s21 = smov (!%p413_p2), 96  }
   0xb   : > { %677 = vmatpush1.bf16.msra.mxu0 (!%p413_p2), %v3419_v52  ;;  %v614_v52 = vsub.s32 (!%p413_p2), 0, %v3836_v51 }
   0xc   : > { %678 = vmatprep.subr.bf16.mxu0 (!%p413_p2), %v3420_v53  ;;  %v618_v53 = vsub.s32 (!%p413_p2), 1, %v3836_v51 }
   0xd   : > { %s4787_s30 = smov (!%p458_p3, %s2949_s30), 1 }
   0xe   : > { %s3397_s15 = smul.u32 56, %s4787_s30 }
   0xf   : > { %679 = vmatpush1.bf16.msra.mxu0 %v3422_v54 }
  0x10   : > { %s3740_s18 = scalar_lea.vmem %s4771_s0, %s3397_s15  ;;  %680 = vmatprep.subr.bf16.mxu0 %v3423_v55 }
  0x11   : > { %v469_v0 = vld [vmem:[%s3740_s18] sm:$0xff]  ;;  %v471_v1 = vld [vmem:[%s3740_s18 + $0x10] sm:$0xff]  ;;  %v470_v2 = vld [vmem:[%s3740_s18 + $0x8] sm:$0xff] }
  0x12   : > { %v479_v3 = vsel %vm478_vm0, %v469_v0, 0.0  ;;  %v485_v4 = vsel %vm478_vm0, %v471_v1, 0.0  ;;  %v472_v5 = vld [vmem:[%s3740_s18 + $0x18] sm:$0xff]  ;;  %v473_v6 = vld [vmem:[%s3740_s18 + $0x20] sm:$0xff]  ;;  %v474_v7 = vld [vmem:[%s3740_s18 + $0x28] sm:$0xff]  ;;  %v482_v8 = vsel %vm478_vm0, %v470_v2, 0.0 }
  0x13   : > { %480 = vadd.xlane.f32.xlu0 %v479_v3  ;;  %486 = vadd.xlane.f32.xlu1 %v485_v4  ;;  %v488_v9 = vsel %vm478_vm0, %v472_v5, 0.0  ;;  %v491_v10 = vsel %vm478_vm0, %v473_v6, 0.0  ;;  %v475_v11 = vld [vmem:[%s3740_s18 + $0x30] sm:$0x1]  ;;  %v494_v12 = vsel %vm478_vm0, %v474_v7, 0.0 }
  0x14   : > { %v498_v13 = vsel %vm497_vm1, %v475_v11, 0.0  ;;  %681 = vmatpush1.bf16.msra.mxu0 %v3425_v57 }
  0x17   : > { %483 = vadd.xlane.f32.xlu0 %v482_v8  ;;  %489 = vadd.xlane.f32.xlu1 %v488_v9 }
  0x1b   : > { %492 = vadd.xlane.f32.xlu0 %v491_v10  ;;  %495 = vadd.xlane.f32.xlu1 %v494_v12 }
  0x1f   : > { %499 = vadd.xlane.f32.xlu0 %v498_v13 }
  0xa0   : > { %v481_v14 = vpop.xlane.xlu0 %480  ;;  %v487_v15 = vpop.xlane.xlu1 %486 }
  0xa1   : > { %v502_v16 = vmul.f32 0.015625, %v481_v14  ;;  %v504_v17 = vmul.f32 0.015625, %v487_v15 }
  0xa3   : > { %v3756_v18 = vsub.f32 %v469_v0, %v502_v16  ;;  %v3758_v19 = vsub.f32 %v471_v1, %v504_v17  ;;  %v2956_v16 = vld [vmem:[%s4772_s1] ss:$0 sm:$0xff] }
  0xa4   : > { %v484_v20 = vpop.xlane.xlu0 %483  ;;  %v490_v21 = vpop.xlane.xlu1 %489 }
  0xa5   : > { %v503_v22 = vmul.f32 0.015625, %v484_v20  ;;  %v505_v23 = vmul.f32 0.015625, %v490_v21  ;;  %v516_v24 = vmul.f32 %v3756_v18, %v3756_v18  ;;  %v518_v25 = vmul.f32 %v3758_v19, %v3758_v19 }
  0xa7   : > { %v3764_v26 = vsub.f32 %v470_v2, %v503_v22  ;;  %v3766_v27 = vsub.f32 %v472_v5, %v505_v23  ;;  %v523_v28 = vsel %vm478_vm0, %v516_v24, 0.0  ;;  %v529_v31 = vsel %vm478_vm0, %v518_v25, 0.0  ;;  %v2957_v24 = vld [vmem:[%s4773_s2] ss:$0 sm:$0xff] }
  0xa8   : > { %524 = vadd.xlane.f32.xlu1 %v523_v28  ;;  %v493_v29 = vpop.xlane.xlu0 %492  ;;  %v496_v30 = vpop.xlane.xlu1 %495 }
  0xa9   : > { %v506_v32 = vmul.f32 0.015625, %v493_v29  ;;  %v507_v33 = vmul.f32 0.015625, %v496_v30  ;;  %v517_v34 = vmul.f32 %v3764_v26, %v3764_v26  ;;  %v519_v35 = vmul.f32 %v3766_v27, %v3766_v27 }
  0xab   : > { %v3774_v36 = vsub.f32 %v473_v6, %v506_v32  ;;  %v3776_v37 = vsub.f32 %v474_v7, %v507_v33  ;;  %v526_v38 = vsel %vm478_vm0, %v517_v34, 0.0  ;;  %v532_v41 = vsel %vm478_vm0, %v519_v35, 0.0 }
  0xac   : > { %530 = vadd.xlane.f32.xlu1 %v529_v31  ;;  %527 = vadd.xlane.f32.xlu0 %v526_v38  ;;  %v500_v39 = vpop.xlane.xlu0 %499 }
  0xad   : > { %v508_v40 = vmul.f32 0.015625, %v500_v39  ;;  %v520_v42 = vmul.f32 %v3774_v36, %v3774_v36  ;;  %v521_v43 = vmul.f32 %v3776_v37, %v3776_v37 }
  0xaf   : > { %v3784_v44 = vsub.f32 %v475_v11, %v508_v40  ;;  %v535_v45 = vsel %vm478_vm0, %v520_v42, 0.0  ;;  %v538_v46 = vsel %vm478_vm0, %v521_v43, 0.0 }
  0xb0   : > { %533 = vadd.xlane.f32.xlu0 %v532_v41  ;;  %536 = vadd.xlane.f32.xlu1 %v535_v45 }
  0xb1   : > { %v522_v47 = vmul.f32 %v3784_v44, %v3784_v44 }
  0xb3   : > { %v541_v48 = vsel %vm497_vm1, %v522_v47, 0.0 }
  0xb4   : > { %539 = vadd.xlane.f32.xlu0 %v538_v46  ;;  %542 = vadd.xlane.f32.xlu1 %v541_v48 }
 0x135   : > { %v525_v58 = vpop.xlane.xlu1 %524 }
 0x136   : > { %v544_v59 = vmul.f32 0.015625, %v525_v58 }
 0x138   : > { %v551_v60 = vadd.f32 1e-05, %v544_v59 }
 0x139   : > { %v531_v61 = vpop.xlane.xlu1 %530  ;;  %v528_v62 = vpop.xlane.xlu0 %527 }
 0x13a   : > { %3458 = vrsqrt.f32 %v551_v60  ;;  %v546_v63 = vmul.f32 0.015625, %v531_v61  ;;  %v545_v0 = vmul.f32 0.015625, %v528_v62 }
 0x13c   : > { %v552_v1 = vadd.f32 1e-05, %v545_v0  ;;  %v553_v2 = vadd.f32 1e-05, %v546_v63 }
 0x13d   : > { %v534_v3 = vpop.xlane.xlu0 %533  ;;  %v537_v4 = vpop.xlane.xlu1 %536 }
 0x13e   : > { %v547_v5 = vmul.f32 0.015625, %v534_v3  ;;  %3460 = vrsqrt.f32 %v552_v1  ;;  %v548_v7 = vmul.f32 0.015625, %v537_v4 }
 0x13f   : > { %3462 = vrsqrt.f32 %v553_v2 }
 0x140   : > { %v554_v6 = vadd.f32 1e-05, %v547_v5  ;;  %v555_v13 = vadd.f32 1e-05, %v548_v7 }
 0x141   : > { %v540_v8 = vpop.xlane.xlu0 %539  ;;  %v543_v11 = vpop.xlane.xlu1 %542 }
 0x142   : > { %v549_v9 = vmul.f32 0.015625, %v540_v8  ;;  %3464 = vrsqrt.f32 %v554_v6  ;;  %v550_v15 = vmul.f32 0.015625, %v543_v11 }
 0x144   : > { %v3459_v10 = vpop.eup %3458  ;;  %v556_v12 = vadd.f32 1e-05, %v549_v9  ;;  %v557_v23 = vadd.f32 1e-05, %v550_v15 }
 0x145   : > { %v565_v14 = vmul.f32 %v3459_v10, %v3756_v18 }
 0x146   : > { %3466 = vrsqrt.f32 %v556_v12 }
 0x147   : > { %3468 = vrsqrt.f32 %v555_v13  ;;  %v578_v21 = vmul.f32 %v2956_v16, %v565_v14 }
 0x148   : > { %v3461_v17 = vpop.eup %3460  ;;  %3470 = vrsqrt.f32 %v557_v23 }
 0x149   : > { %v566_v20 = vmul.f32 %v3461_v17, %v3764_v26  ;;  %v3463_v22 = vpop.eup %3462  ;;  %v591_v18 = vadd.f32 %v2957_v24, %v578_v21 }
 0x14a   : > { %v567_v30 = vmul.f32 %v3463_v22, %v3758_v19 }
 0x14b   : > { %v579_v25 = vmul.f32 %v2956_v16, %v566_v20 }
 0x14c   : > { %v3465_v28 = vpop.eup %3464  ;;  %v580_v26 = vmul.f32 %v2956_v16, %v567_v30 }
 0x14d   : > { %v592_v29 = vadd.f32 %v2957_v24, %v579_v25  ;;  %v568_v31 = vmul.f32 %v3465_v28, %v3766_v27 }
 0x14e   : > { %v593_v40 = vadd.f32 %v2957_v24, %v580_v26 }
 0x14f   : > { %v598_v32 = vpack.c.bf16 %v592_v29, %v591_v18  ;;  %v581_v33 = vmul.f32 %v2956_v16, %v568_v31 }
 0x150   : > { %v3467_v34 = vpop.eup %3466 }
 0x151   : > { %2966 = vmatmul.mubr.msk.bf16.vlgmr.msra.gmra.mrb[0].mxu0 %vm478_vm0, %v598_v32  ;;  %v3469_v35 = vpop.eup %3468  ;;  %v594_v38 = vadd.f32 %v2957_v24, %v581_v33  ;;  %v570_v39 = vmul.f32 %v3467_v34, %v3776_v37 }
 0x152   : > { %716 = vmatprep.mubr.bf16.mxu0 %v3641_v56  ;;  %v569_v41 = vmul.f32 %v3469_v35, %v3774_v36  ;;  %v3471_v43 = vpop.eup %3470 }
 0x153   : > { %v599_v42 = vpack.c.bf16 %v594_v38, %v593_v40  ;;  %v583_v19 = vmul.f32 %v2956_v16, %v570_v39  ;;  %v571_v46 = vmul.f32 %v3471_v43, %v3784_v44  ;;  %v610_v44 = vld [vmem:[%s4775_s4] sm:$0x3] }
 0x154   : > { %v582_v27 = vmul.f32 %v2956_v16, %v569_v41  ;;  %v615_v54 = vrot.slane %v610_v44, %v614_v52  ;;  %v3847_v57 = vrot.slane %v610_v44, %v618_v53 }
 0x155   : > { %v596_v45 = vadd.f32 %v2957_v24, %v583_v19  ;;  %v584_v49 = vmul.f32 %v2956_v16, %v571_v46 }
 0x156   : > { %v595_v47 = vadd.f32 %v2957_v24, %v582_v27 }
 0x157   : > { %v597_v37 = vadd.f32 %v2957_v24, %v584_v49 }
 0x158   : > { %v600_v48 = vpack.c.bf16 %v596_v45, %v595_v47 }
 0x159   : > { %2967 = vmatmul.mubr.msk.bf16.gmra.mrb[4].mxu0 %vm478_vm0, %v599_v42  ;;  %v601_v36 = vpack.c.bf16 %v597_v37, %v597_v37 }
 0x15a   : > { %726 = vmatprep.mubr.bf16.mxu0 %v3641_v56 }
 0x161   : > { %2968 = vmatmul.mubr.msk.bf16.gmra.mrb[8].mxu0 %vm478_vm0, %v600_v48 }
 0x162   : > { %736 = vmatprep.mubr.bf16.mxu0 %v3641_v56 }
 0x169   : > { %2969 = vmatmul.mubr.msk.bf16.gmra.mrb[12].mxu0 %vm478_vm0, %v601_v36 }
 0x224   : > { %v708_v55 = vpop.f32.mrb[0].mxu0 }
 0x225   : > { %v709_v58 = vadd.f32 %v708_v55, %v615_v54  ;;  %v710_v59 = vpop.f32.mrb[1].mxu0 }
 0x226   : > { %v712_v60 = vpop.f32.mrb[2].mxu0  ;;  %v711_v63 = vadd.f32 %v710_v59, %v3847_v57 }
 0x227   : > { %v713_v61 = vadd.f32 %v712_v60, %v615_v54  ;;  %v714_v62 = vpop.f32.mrb[3].mxu0  ;;  %v753_v1 = vmul.f32 0.25, %v709_v58 }
 0x228   : > { %v715_v0 = vadd.f32 %v714_v62, %v3847_v57 }
 0x229   : > { %v754_v2 = vmul.f32 0.25, %v713_v61  ;;  %v3851_v3 = vpack.c.bf16 %v713_v61, %v709_v58 }
 0x22a   : > { %v3853_v4 = vpack.c.bf16 %v715_v0, %v711_v63 }
 0x22b   : > { %v3855_v5 = vpack.c.bf16 %v754_v2, %v753_v1  ;;  %779 = vrot.lane.b32.xlu0 %v3851_v3, %s3642_s16 }
 0x22c   : > { %v718_v6 = vpop.f32.mrb[4].mxu0 }
 0x22d   : > { %v719_v7 = vadd.f32 %v718_v6, %v615_v54  ;;  %v720_v8 = vpop.f32.mrb[5].mxu0  ;;  %3209 = vmatprep.mubr.msk.bf16.mxu0 %vm787_vm2, %v3855_v5 }
 0x22e   : > { %v722_v9 = vpop.f32.mrb[6].mxu0  ;;  %v721_v12 = vadd.f32 %v720_v8, %v3847_v57 }
 0x22f   : > { %v723_v10 = vadd.f32 %v722_v9, %v615_v54  ;;  %v724_v11 = vpop.f32.mrb[7].mxu0  ;;  %v755_v14 = vmul.f32 0.25, %v719_v7 }
 0x230   : > { %v725_v13 = vadd.f32 %v724_v11, %v3847_v57 }
 0x231   : > { %v756_v15 = vmul.f32 0.25, %v723_v10  ;;  %v3863_v16 = vpack.c.bf16 %v723_v10, %v719_v7 }
 0x232   : > { %v3865_v17 = vpack.c.bf16 %v725_v13, %v721_v12 }
 0x233   : > { %v3867_v20 = vpack.c.bf16 %v756_v15, %v755_v14  ;;  %781 = vrot.lane.b32.xlu1 %v3863_v16, %s3642_s16 }
 0x234   : > { %v728_v21 = vpop.f32.mrb[8].mxu0 }
 0x235   : > { %v729_v22 = vadd.f32 %v728_v21, %v615_v54  ;;  %v730_v23 = vpop.f32.mrb[9].mxu0 }
 0x236   : > { %v732_v24 = vpop.f32.mrb[10].mxu0  ;;  %v731_v18 = vadd.f32 %v730_v23, %v3847_v57 }
 0x237   : > { %v733_v25 = vadd.f32 %v732_v24, %v615_v54  ;;  %v734_v28 = vpop.f32.mrb[11].mxu0  ;;  %v757_v30 = vmul.f32 0.25, %v729_v22  ;;  %v768_v24 = vld [vmem:[%s4778_s7] sm:$0xff] }
 0x238   : > { %v735_v29 = vadd.f32 %v734_v28, %v3847_v57  ;;  %v770_v28 = vld [vmem:[%s4778_s7 + $0x10] sm:$0xff] }
 0x239   : > { %v758_v31 = vmul.f32 0.25, %v733_v25  ;;  %v3873_v32 = vpack.c.bf16 %v733_v25, %v729_v22 }
 0x23a   : > { %v3875_v33 = vpack.c.bf16 %v735_v29, %v731_v18  ;;  %v769_v29 = vld [vmem:[%s4778_s7 + $0x8] sm:$0xff] }
 0x23b   : > { %v3877_v34 = vpack.c.bf16 %v758_v31, %v757_v30  ;;  %783 = vrot.lane.b32.xlu1 %v3873_v32, %s3642_s16 }
 0x23c   : > { %v738_v26 = vpop.f32.mrb[12].mxu0 }
 0x23d   : > { %v739_v35 = vadd.f32 %v738_v26, %v615_v54  ;;  %v740_v38 = vpop.f32.mrb[13].mxu0 }
 0x23e   : > { %v742_v39 = vpop.f32.mrb[14].mxu0  ;;  %v741_v59 = vadd.f32 %v740_v38, %v3847_v57  ;;  %v3938_v57 = vsel %vm975_vm3, 65535, %v3641_v56 }
 0x23f   : > { %v3881_v40 = vpack.c.bf16 %v739_v35, %v739_v35  ;;  %v743_v41 = vpop.f32.mrb[15].mxu0  ;;  %1069 = vrot.lane.b32.xlu1 %v3851_v3, %s3643_s17  ;;  %v759_v42 = vmul.f32 0.25, %v739_v35 }
 0x240   : > { %v3933_v61 = vpack.c.bf16 %v741_v59, %v741_v59  ;;  %v771_v41 = vld [vmem:[%s4778_s7 + $0x18] sm:$0xff] }
 0x241   : > { %785 = vrot.lane.b32.xlu0 %v3881_v40, %s3642_s16  ;;  %v3893_v19 = vpack.c.bf16 %v759_v42, %v759_v42 }
 0x242   : > { %v979_v0 = vand.u32 %v3938_v57, %v3933_v61 }
 0x243   : > { %1071 = vrot.lane.b32.xlu1 %v3863_v16, %s3643_s17 }
 0x245   : > { %1073 = vrot.lane.b32.xlu0 %v3873_v32, %s3643_s17 }
 0x247   : > { %1075 = vrot.lane.b32.xlu1 %v3881_v40, %s3643_s17  ;;  %s3647_s17 = smov 16  }
 0x249   : > { %1061 = vrot.lane.b32.xlu0 %v3855_v5, %s3644_s19 }
 0x24b   : > { %1063 = vrot.lane.b32.xlu1 %v3867_v20, %s3644_s19 }
 0x24d   : > { %1065 = vrot.lane.b32.xlu0 %v3877_v34, %s3644_s19 }
 0x24f   : > { %1067 = vrot.lane.b32.xlu1 %v3893_v19, %s3644_s19 }
 0x251   : > { %1524 = vrot.lane.b32.xlu0 %v3851_v3, %s3645_s20 }
 0x253   : > { %1526 = vrot.lane.b32.xlu1 %v3863_v16, %s3645_s20 }
 0x255   : > { %1528 = vrot.lane.b32.xlu0 %v3873_v32, %s3645_s20 }
 0x257   : > { %1530 = vrot.lane.b32.xlu1 %v3881_v40, %s3645_s20  ;;  %s3648_s20 = smov 80  }
 0x259   : > { %1516 = vrot.lane.b32.xlu0 %v3855_v5, %s3646_s21 }
 0x25b   : > { %1518 = vrot.lane.b32.xlu1 %v3867_v20, %s3646_s21 }
 0x25d   : > { %1520 = vrot.lane.b32.xlu0 %v3877_v34, %s3646_s21 }
 0x25f   : > { %1522 = vrot.lane.b32.xlu1 %v3893_v19, %s3646_s21 }
 0x29d   : > { %v780_v43 = vpop.permute.xlu0 %779 }
 0x29e   : > { %3381 = vmatprep.subr.msk.bf16.mxu0 %vm787_vm2, %v780_v43  ;;  %v801_v27 = vsel %vm787_vm2, %v780_v43, 0 }
 0x29f   : > { %3202 = vmatpush3.bf16.xpose.msra.mxu0 %v801_v27 }
 0x2a5   : > { %v782_v45 = vpop.permute.xlu1 %781 }
 0x2a6   : > { %3382 = vmatprep.subr.msk.bf16.mxu0 %vm787_vm2, %v782_v45  ;;  %v804_v46 = vsel %vm787_vm2, %v782_v45, 0 }
 0x2a7   : > { %3204 = vmatpush3.bf16.xpose.msra.mxu0 %v804_v46 }
 0x2ad   : > { %v784_v47 = vpop.permute.xlu1 %783 }
 0x2ae   : > { %3383 = vmatprep.subr.msk.bf16.mxu0 %vm787_vm2, %v784_v47  ;;  %v807_v48 = vsel %vm787_vm2, %v784_v47, 0  ;;  %v772_v47 = vld [vmem:[%s4778_s7 + $0x20] sm:$0xff] }
 0x2af   : > { %3206 = vmatpush3.bf16.xpose.msra.mxu0 %v807_v48  ;;  %v773_v48 = vld [vmem:[%s4778_s7 + $0x28] sm:$0xff] }
 0x2b1   : > { %v1070_v49 = vpop.permute.xlu1 %1069 }
 0x2b2   : > { %3385 = vmatprep.subr.msk.bf16.mxu1 %vm787_vm2, %v1070_v49  ;;  %v1090_v37 = vsel %vm787_vm2, %v1070_v49, 0 }
 0x2b3   : > { %3234 = vmatpush3.bf16.xpose.msra.mxu1 %v1090_v37  ;;  %v786_v36 = vpop.permute.xlu0 %785 }
 0x2b4   : > { %3384 = vmatprep.subr.msk.bf16.mxu0 %vm787_vm2, %v786_v36  ;;  %v810_v44 = vsel %vm787_vm2, %v786_v36, 0 }
 0x2b5   : > { %v1072_v50 = vpop.permute.xlu1 %1071 }
 0x2b6   : > { %3386 = vmatprep.subr.msk.bf16.mxu1 %vm787_vm2, %v1072_v50  ;;  %v1093_v55 = vsel %vm787_vm2, %v1072_v50, 0 }
 0x2b7   : > { %3208 = vmatpush3.bf16.xpose.msra.mxu0 %v810_v44  ;;  %v1074_v54 = vpop.permute.xlu0 %1073 }
 0x2b8   : > { %3217 = vmatprep.subr.bf16.mxu0 %v3853_v4  ;;  %v1096_v62 = vsel %vm787_vm2, %v1074_v54, 0 }
 0x2b9   : > { %v1076_v60 = vpop.permute.xlu1 %1075 }
 0x2ba   : > { %v1099_v2 = vsel %vm787_vm2, %v1076_v60, 0 }
 0x2bb   : > { %3236 = vmatpush3.bf16.xpose.msra.mxu1 %v1093_v55  ;;  %v1062_v58 = vpop.permute.xlu0 %1061 }
 0x2bc   : > { %3387 = vmatprep.subr.msk.bf16.mxu1 %vm787_vm2, %v1074_v54  ;;  %3241 = vmatprep.mubr.msk.bf16.mxu1 %vm787_vm2, %v1062_v58  ;;  %v774_v54 = vld [vmem:[%s4778_s7 + $0x30] sm:$0x1] }
 0x2bd   : > { %v1064_v1 = vpop.permute.xlu1 %1063 }
 0x2be   : > { %3210 = vmatmul.mubr.msk.bf16.vlgmr.msra.gmra.mrb[16].mxu0 %vm787_vm2, %v3867_v20 }
 0x2bf   : > { %3213 = vmatprep.mubr.msk.bf16.mxu0 %vm787_vm2, %v3877_v34  ;;  %3218 = vmatpush3.bf16.msra.mxu0 %v3853_v4  ;;  %v1066_v63 = vpop.permute.xlu0 %1065 }
 0x2c0   : > { %3219 = vmatprep.subr.bf16.mxu0 %v3865_v17 }
 0x2c1   : > { %v1068_v7 = vpop.permute.xlu1 %1067 }
 0x2c3   : > { %3220 = vmatpush3.bf16.msra.mxu0 %v3865_v17  ;;  %3238 = vmatpush3.bf16.xpose.msra.mxu1 %v1096_v62  ;;  %v1525_v6 = vpop.permute.xlu0 %1524 }
 0x2c4   : > { %3221 = vmatprep.subr.bf16.mxu0 %v3875_v33  ;;  %3388 = vmatprep.subr.msk.bf16.mxu1 %vm787_vm2, %v1076_v60  ;;  %v1545_v8 = vsel %vm787_vm2, %v1525_v6, 0  ;;  %v2978_v60 = vld [vmem:[%s4778_s7 + $0x38] sm:$0xff] }
 0x2c5   : > { %v1527_v9 = vpop.permute.xlu1 %1526 }
 0x2c6   : > { %3214 = vmatmul.mubr.msk.bf16.gmra.mrb[20].mxu0 %vm787_vm2, %v3893_v19  ;;  %v1548_v11 = vsel %vm787_vm2, %v1527_v9, 0 }
 0x2c7   : > { %3222 = vmatpush3.bf16.msra.mxu0 %v3875_v33  ;;  %v1529_v10 = vpop.permute.xlu0 %1528 }
 0x2c8   : > { %3223 = vmatprep.subr.bf16.mxu0 %v979_v0  ;;  %v1551_v13 = vsel %vm787_vm2, %v1529_v10, 0 }
 0x2c9   : > { %v1531_v14 = vpop.permute.xlu1 %1530 }
 0x2ca   : > { %v1554_v15 = vsel %vm787_vm2, %v1531_v14, 0 }
 0x2cb   : > { %3224 = vmatpush3.bf16.msra.mxu0 %v979_v0  ;;  %3240 = vmatpush3.bf16.xpose.msra.mxu1 %v1099_v2  ;;  %v1517_v12 = vpop.permute.xlu0 %1516  ;;  %v2980_v0 = vld [vmem:[%s4778_s7 + $0x48] sm:$0xff]  ;;  %v2979_v2 = vld [vmem:[%s4778_s7 + $0x40] sm:$0xff] }
 0x2cc   : > { %3389 = vmatprep.subr.msk.bf16.mxu1 %vm787_vm2, %v1525_v6 }
 0x2cd   : > { %v1519_v21 = vpop.permute.xlu1 %1518 }
 0x2cf   : > { %v1521_v22 = vpop.permute.xlu0 %1520 }
 0x2d1   : > { %v1523_v23 = vpop.permute.xlu1 %1522 }
 0x2d2   : > { %3242 = vmatmul.mubr.msk.bf16.vlgmr.msra.gmra.mrb[0].mxu1 %vm787_vm2, %v1064_v1 }
 0x2d3   : > { %3245 = vmatprep.mubr.msk.bf16.mxu1 %vm787_vm2, %v1066_v63  ;;  %3286 = vmatpush3.bf16.xpose.msra.mxu1 %v1545_v8  ;;  %v2981_v8 = vld [vmem:[%s4778_s7 + $0x50] sm:$0xff] }
 0x2d4   : > { %3390 = vmatprep.subr.msk.bf16.mxu1 %vm787_vm2, %v1527_v9 }
 0x2da   : > { %3246 = vmatmul.mubr.msk.bf16.gmra.mrb[4].mxu1 %vm787_vm2, %v1068_v7 }
 0x2db   : > { %3288 = vmatpush3.bf16.xpose.msra.mxu1 %v1548_v11  ;;  %3293 = vmatprep.mubr.msk.bf16.mxu1 %vm787_vm2, %v1517_v12 }
 0x2dc   : > { %3391 = vmatprep.subr.msk.bf16.mxu1 %vm787_vm2, %v1529_v10 }
 0x2e3   : > { %3290 = vmatpush3.bf16.xpose.msra.mxu1 %v1551_v13 }
 0x2e4   : > { %3392 = vmatprep.subr.msk.bf16.mxu1 %vm787_vm2, %v1531_v14 }
 0x2eb   : > { %3292 = vmatpush3.bf16.xpose.msra.mxu1 %v1554_v15  ;;  %v2982_v15 = vld [vmem:[%s4778_s7 + $0x58] sm:$0xff] }
 0x2f2   : > { %3294 = vmatmul.mubr.msk.bf16.vlgmr.msra.gmra.mrb[8].mxu1 %vm787_vm2, %v1519_v21 }
 0x2f3   : > { %3297 = vmatprep.mubr.msk.bf16.mxu1 %vm787_vm2, %v1521_v22 }
 0x2fa   : > { %3298 = vmatmul.mubr.msk.bf16.gmra.mrb[12].mxu1 %vm787_vm2, %v1523_v23  ;;  %v2984_v23 = vld [vmem:[%s4778_s7 + $0x68] sm:$0x1] }
 0x391   : > { %v3211_v25 = vpop.f32.mrb[16].mxu0 }
 0x392   : > { %v846_v18 = vpop.f32.mrb[17].mxu0  ;;  %v3974_v35 = vadd.f32 %v3211_v25, %v770_v28  ;;  %v2983_v25 = vld [vmem:[%s4778_s7 + $0x60] sm:$0xff] }
 0x393   : > { %v3972_v30 = vadd.f32 %v846_v18, %v768_v24  ;;  %v3212_v31 = vpop.f32.mrb[18].mxu0 }
 0x394   : > { %v849_v26 = vpop.f32.mrb[19].mxu0  ;;  %v3985_v43 = vadd.f32 %v3212_v31, %v771_v41  ;;  %v883_v45 = vsel %vm876_vm4, %v3974_v35, -inf }
 0x395   : > { %v3976_v38 = vadd.f32 %v849_v26, %v769_v29  ;;  %v877_v39 = vsel %vm876_vm4, %v3972_v30, -inf }
 0x396   : > { %878 = vmax.xlane.f32.xlu0 %v877_v39  ;;  %v886_v44 = vsel %vm876_vm4, %v3985_v43, -inf }
 0x397   : > { %v880_v42 = vsel %vm876_vm4, %v3976_v38, -inf }
 0x398   : > { %881 = vmax.xlane.f32.xlu1 %v880_v42 }
 0x399   : > { %v3215_v27 = vpop.f32.mrb[20].mxu0 }
 0x39a   : > { %v862_v46 = vpop.f32.mrb[21].mxu0  ;;  %884 = vmax.xlane.f32.xlu0 %v883_v45  ;;  %v4006_v58 = vadd.f32 %v3215_v27, %v774_v54 }
 0x39b   : > { %v3216_v49 = vpop.f32.mrb[22].mxu0  ;;  %v3995_v36 = vadd.f32 %v862_v46, %v772_v47 }
 0x39c   : > { %v865_v37 = vpop.f32.mrb[23].mxu0  ;;  %v896_v63 = vsel %vm895_vm5, %v4006_v58, -inf }
 0x39d   : > { %v3997_v50 = vadd.f32 %v865_v37, %v773_v48  ;;  %v889_v59 = vsel %vm876_vm4, %v3995_v36, -inf }
 0x39e   : > { %887 = vmax.xlane.f32.xlu0 %v886_v44 }
 0x39f   : > { %v892_v55 = vsel %vm876_vm4, %v3997_v50, -inf }
 0x3a0   : > { %893 = vmax.xlane.f32.xlu1 %v892_v55 }
 0x3a2   : > { %890 = vmax.xlane.f32.xlu0 %v889_v59 }
 0x3a5   : > { %v3243_v62 = vpop.f32.mrb[0].mxu1 }
 0x3a6   : > { %897 = vmax.xlane.f32.xlu0 %v896_v63  ;;  %v1135_v1 = vpop.f32.mrb[1].mxu1  ;;  %v4026_v10 = vadd.f32 %v3243_v62, %v2980_v0 }
 0x3a7   : > { %v4021_v6 = vadd.f32 %v2978_v60, %v1135_v1  ;;  %v3244_v7 = vpop.f32.mrb[2].mxu1 }
 0x3a8   : > { %v1138_v9 = vpop.f32.mrb[3].mxu1  ;;  %v4032_v13 = vadd.f32 %v3244_v7, %v2981_v8  ;;  %v1171_v22 = vsel %vm876_vm4, %v4026_v10, -inf }
 0x3a9   : > { %v4028_v11 = vadd.f32 %v2979_v2, %v1138_v9  ;;  %v1165_v12 = vsel %vm876_vm4, %v4021_v6, -inf }
 0x3aa   : > { %1166 = vmax.xlane.f32.xlu1 %v1165_v12  ;;  %v1174_v29 = vsel %vm876_vm4, %v4032_v13, -inf }
 0x3ab   : > { %v1168_v14 = vsel %vm876_vm4, %v4028_v11, -inf }
 0x3ac   : > { %1169 = vmax.xlane.f32.xlu0 %v1168_v14 }
 0x3ad   : > { %v3247_v21 = vpop.f32.mrb[4].mxu1 }
 0x3ae   : > { %1172 = vmax.xlane.f32.xlu1 %v1171_v22  ;;  %v1151_v24 = vpop.f32.mrb[5].mxu1  ;;  %v4051_v26 = vadd.f32 %v3247_v21, %v2984_v23 }
 0x3af   : > { %v4047_v28 = vadd.f32 %v2982_v15, %v1151_v24  ;;  %v3248_v18 = vpop.f32.mrb[6].mxu1 }
 0x3b0   : > { %1175 = vmax.xlane.f32.xlu0 %v1174_v29  ;;  %v1154_v31 = vpop.f32.mrb[7].mxu1  ;;  %v1183_v27 = vsel %vm895_vm5, %v4051_v26, -inf }
 0x3b1   : > { %v4053_v39 = vadd.f32 %v2983_v25, %v1154_v31  ;;  %v1177_v41 = vsel %vm876_vm4, %v4047_v28, -inf }
 0x3b2   : > { %1178 = vmax.xlane.f32.xlu1 %v1177_v41 }
 0x3b3   : > { %v1180_v42 = vsel %vm876_vm4, %v4053_v39, -inf }
 0x3b4   : > { %1181 = vmax.xlane.f32.xlu0 %v1180_v42 }
 0x3b6   : > { %1184 = vmax.xlane.f32.xlu1 %v1183_v27 }
 0x3c5   : > { %v4061_v45 = vpop.f32.mrb[8].mxu1 }
 0x3c6   : > { %v4063_v46 = vpop.f32.mrb[9].mxu1 }
 0x3c7   : > { %v4065_v47 = vpop.f32.mrb[10].mxu1 }
 0x3c8   : > { %v4067_v48 = vpop.f32.mrb[11].mxu1 }
 0x3cd   : > { %v4069_v49 = vpop.f32.mrb[12].mxu1 }
 0x3ce   : > { %v4071_v37 = vpop.f32.mrb[13].mxu1 }
 0x3cf   : > { %v3300_v44 = vpop.f32.mrb[14].mxu1 }
 0x3d0   : > { %v4073_v54 = vpop.f32.mrb[15].mxu1 }
 0x423   : > { %v879_v55 = vpop.xlane.xlu0 %878 }
 0x424   : > { %v899_v59 = vsub.f32 %v3972_v30, %v879_v55 }
 0x425   : > { %v882_v2 = vpop.xlane.xlu1 %881 }
 0x426   : > { %v906_v63 = vmul.f32 1.442695, %v899_v59  ;;  %v900_v59 = vsub.f32 %v3976_v38, %v882_v2 }
 0x427   : > { %v885_v60 = vpop.xlane.xlu0 %884 }
 0x428   : > { %v901_v62 = vsub.f32 %v3974_v35, %v885_v60 }
 0x42a   : > { %v910_v0 = vmul.f32 1.442695, %v901_v62 }
 0x42b   : > { %v888_v1 = vpop.xlane.xlu0 %887 }
 0x42c   : > { %3472 = vpow2.f32 %v910_v0  ;;  %v902_v31 = vsub.f32 %v3985_v43, %v888_v1 }
 0x42d   : > { %3474 = vpow2.f32 %v906_v63  ;;  %v894_v8 = vpop.xlane.xlu1 %893  ;;  %v908_v63 = vmul.f32 1.442695, %v900_v59 }
 0x42f   : > { %v891_v7 = vpop.xlane.xlu0 %890 }
 0x430   : > { %v903_v60 = vsub.f32 %v3995_v36, %v891_v7 }
 0x432   : > { %v914_v0 = vmul.f32 1.442695, %v903_v60 }
 0x433   : > { %v898_v9 = vpop.xlane.xlu0 %897 }
 0x436   : > { %v4077_v12 = vpop.eup %3472 }
 0x437   : > { %v1167_v14 = vpop.xlane.xlu1 %1166  ;;  %v926_v15 = vsel %vm876_vm4, %v4077_v12, 0.0  ;;  %v4081_v21 = vpop.eup %3474 }
 0x438   : > { %927 = vadd.xlane.f32.xlu0 %v926_v15  ;;  %v1186_v30 = vsub.f32 %v4021_v6, %v1167_v14  ;;  %v920_v23 = vsel %vm876_vm4, %v4081_v21, 0.0  ;;  %v905_v6 = vsub.f32 %v4006_v58, %v898_v9  ;;  %v904_v15 = vsub.f32 %v3997_v50, %v894_v8 }
 0x439   : > { %v1170_v35 = vpop.xlane.xlu0 %1169 }
 0x43a   : > { %v1187_v24 = vsub.f32 %v4028_v11, %v1170_v35  ;;  %v1193_v18 = vmul.f32 1.442695, %v1186_v30  ;;  %v912_v11 = vmul.f32 1.442695, %v902_v31  ;;  %v918_v62 = vmul.f32 1.442695, %v905_v6 }
 0x43b   : > { %v1173_v22 = vpop.xlane.xlu1 %1172 }
 0x43c   : > { %v1188_v25 = vsub.f32 %v4026_v10, %v1173_v22  ;;  %921 = vadd.xlane.f32.xlu0 %v920_v23  ;;  %v1195_v44 = vmul.f32 1.442695, %v1187_v24  ;;  %v916_v24 = vmul.f32 1.442695, %v904_v15 }
 0x43d   : > { %v1176_v29 = vpop.xlane.xlu0 %1175 }
 0x43e   : > { %v1197_v41 = vmul.f32 1.442695, %v1188_v25  ;;  %v1189_v42 = vsub.f32 %v4032_v13, %v1176_v29 }
 0x43f   : > { %v1179_v27 = vpop.xlane.xlu1 %1178 }
 0x440   : > { %3476 = vpow2.f32 %v1197_v41  ;;  %v1199_v55 = vmul.f32 1.442695, %v1189_v42  ;;  %v1190_v38 = vsub.f32 %v4047_v28, %v1179_v27 }
 0x441   : > { %3478 = vpow2.f32 %v1193_v18  ;;  %v1182_v43 = vpop.xlane.xlu0 %1181 }
 0x442   : > { %3480 = vpow2.f32 %v1199_v55  ;;  %v1191_v58 = vsub.f32 %v4053_v39, %v1182_v43  ;;  %v1201_v30 = vmul.f32 1.442695, %v1190_v38  ;;  %v3008_v43 = vld [vmem:[%s4778_s7 + $0x98] sm:$0xff] }
 0x443   : > { %v1185_v10 = vpop.xlane.xlu1 %1184  ;;  %3482 = vpow2.f32 %v1195_v44 }
 0x444   : > { %3484 = vpow2.f32 %v912_v11  ;;  %v1192_v13 = vsub.f32 %v4051_v26, %v1185_v10  ;;  %v1203_v14 = vmul.f32 1.442695, %v1191_v58 }
 0x445   : > { %3486 = vpow2.f32 %v918_v62 }
 0x446   : > { %3488 = vpow2.f32 %v908_v63  ;;  %v1205_v2 = vmul.f32 1.442695, %v1192_v13  ;;  %v4213_v13 = vadd.f32 %v3008_v43, %v4073_v54 }
 0x447   : > { %3490 = vpow2.f32 %v914_v0 }
 0x448   : > { %3492 = vpow2.f32 %v1205_v2  ;;  %v1635_v58 = vsel %vm876_vm4, %v4213_v13, -inf }
 0x449   : > { %3494 = vpow2.f32 %v1203_v14 }
 0x44a   : > { %v4095_v1 = vpop.eup %3476  ;;  %3496 = vpow2.f32 %v1201_v30 }
 0x44b   : > { %v4098_v9 = vpop.eup %3478  ;;  %v1213_v36 = vsel %vm876_vm4, %v4095_v1, 0.0  ;;  %3498 = vpow2.f32 %v916_v24 }
 0x44c   : > { %v4102_v7 = vpop.eup %3480  ;;  %1214 = vadd.xlane.f32.xlu1 %v1213_v36  ;;  %v1207_v28 = vsel %vm876_vm4, %v4098_v9, 0.0 }
 0x44d   : > { %v1216_v26 = vsel %vm876_vm4, %v4102_v7, 0.0  ;;  %v4106_v39 = vpop.eup %3482 }
 0x44e   : > { %1217 = vadd.xlane.f32.xlu0 %v1216_v26  ;;  %v4111_v35 = vpop.eup %3484  ;;  %v1210_v22 = vsel %vm876_vm4, %v4106_v39, 0.0 }
 0x44f   : > { %v4115_v23 = vpop.eup %3486  ;;  %v929_v50 = vsel %vm876_vm4, %v4111_v35, 0.0 }
 0x450   : > { %1208 = vadd.xlane.f32.xlu1 %v1207_v28  ;;  %v4119_v8 = vpop.eup %3488  ;;  %v938_v25 = vsel %vm895_vm5, %v4115_v23, 0.0 }
 0x451   : > { %v4123_v18 = vpop.eup %3490  ;;  %v923_v29 = vsel %vm876_vm4, %v4119_v8, 0.0 }
 0x452   : > { %1211 = vadd.xlane.f32.xlu0 %v1210_v22  ;;  %v4127_v31 = vpop.eup %3492  ;;  %v932_v41 = vsel %vm876_vm4, %v4123_v18, 0.0 }
 0x453   : > { %v4131_v42 = vpop.eup %3494  ;;  %v1225_v27 = vsel %vm895_vm5, %v4127_v31, 0.0 }
 0x454   : > { %930 = vadd.xlane.f32.xlu1 %v929_v50  ;;  %v4135_v6 = vpop.eup %3496  ;;  %v1222_v44 = vsel %vm876_vm4, %v4131_v42, 0.0 }
 0x455   : > { %v1219_v55 = vsel %vm876_vm4, %v4135_v6, 0.0  ;;  %v4141_v59 = vpop.eup %3498 }
 0x456   : > { %939 = vadd.xlane.f32.xlu0 %v938_v25  ;;  %v935_v11 = vsel %vm876_vm4, %v4141_v59, 0.0 }
 0x458   : > { %924 = vadd.xlane.f32.xlu1 %v923_v29 }
 0x45a   : > { %933 = vadd.xlane.f32.xlu0 %v932_v41 }
 0x45c   : > { %1226 = vadd.xlane.f32.xlu1 %v1225_v27 }
 0x45e   : > { %1223 = vadd.xlane.f32.xlu0 %v1222_v44 }
 0x460   : > { %1220 = vadd.xlane.f32.xlu1 %v1219_v55 }
 0x464   : > { %936 = vadd.xlane.f32.xlu1 %v935_v11 }
 0x474   : > { %1250 = vrot.lane.b32.xlu0 %v3853_v4, %s3644_s19 }
 0x475   : > { %1252 = vrot.lane.b32.xlu1 %v3865_v17, %s3644_s19 }
 0x478   : > { %1900 = vrot.lane.b32.xlu0 %v3851_v3, %s3647_s17  ;;  %v3003_v3 = vld [vmem:[%s4778_s7 + $0x70] sm:$0xff] }
 0x479   : > { %1254 = vrot.lane.b32.xlu1 %v3875_v33, %s3644_s19 }
 0x47c   : > { %1904 = vrot.lane.b32.xlu0 %v3873_v32, %s3647_s17  ;;  %v4169_v32 = vadd.f32 %v3003_v3, %v4063_v46  ;;  %v3007_v46 = vld [vmem:[%s4778_s7 + $0x90] sm:$0xff] }
 0x47d   : > { %1256 = vrot.lane.b32.xlu1 %v3933_v61, %s3644_s19  ;;  %v4194_v10 = vadd.f32 %v3007_v46, %v4071_v37 }
 0x47f   : > { %v1632_v37 = vsel %vm876_vm4, %v4194_v10, -inf }
 0x480   : > { %1892 = vrot.lane.b32.xlu0 %v3855_v5, %s3648_s20  ;;  %v3005_v5 = vld [vmem:[%s4778_s7 + $0x80] sm:$0xff] }
 0x481   : > { %1902 = vrot.lane.b32.xlu1 %v3863_v16, %s3647_s17  ;;  %v4175_v16 = vadd.f32 %v4061_v45, %v3005_v5  ;;  %v3004_v45 = vld [vmem:[%s4778_s7 + $0x78] sm:$0xff] }
 0x482   : > { %v4202_v62 = vadd.f32 %v3004_v45, %v4067_v48 }
 0x484   : > { %1896 = vrot.lane.b32.xlu0 %v3877_v34, %s3648_s20  ;;  %v3006_v34 = vld [vmem:[%s4778_s7 + $0x88] sm:$0xff]  ;;  %v1623_v0 = vsel %vm876_vm4, %v4202_v62, -inf }
 0x485   : > { %1906 = vrot.lane.b32.xlu1 %v3881_v40, %s3647_s17  ;;  %v4183_v40 = vadd.f32 %v4065_v47, %v3006_v34  ;;  %v3009_v47 = vld [vmem:[%s4778_s7 + $0xa0] sm:$0x1]  ;;  %s4745_s17 = scalar_lea.vmem %s4785_s14, %s3397_s15 }
 0x486   : > { %v4208_v63 = vadd.f32 %v4069_v49, %v3009_v47 }
 0x487   : > { %v1629_v60 = vsel %vm876_vm4, %v4183_v40, -inf }
 0x488   : > { %v1638_v48 = vsel %vm895_vm5, %v4208_v63, -inf }
 0x489   : > { %1894 = vrot.lane.b32.xlu1 %v3867_v20, %s3648_s20  ;;  %v1620_v20 = vsel %vm876_vm4, %v4169_v32, -inf }
 0x48d   : > { %1898 = vrot.lane.b32.xlu1 %v3893_v19, %s3648_s20  ;;  %v1626_v19 = vsel %vm876_vm4, %v4175_v16, -inf }
 0x4a3   : > { %1621 = vmax.xlane.f32.xlu0 %v1620_v20 }
 0x4a7   : > { %1627 = vmax.xlane.f32.xlu0 %v1626_v19 }
 0x4ab   : > { %1630 = vmax.xlane.f32.xlu0 %v1629_v60 }
 0x4af   : > { %1633 = vmax.xlane.f32.xlu0 %v1632_v37 }
 0x4b1   : > { %1624 = vmax.xlane.f32.xlu1 %v1623_v0 }
 0x4b3   : > { %1639 = vmax.xlane.f32.xlu0 %v1638_v48 }
 0x4b5   : > { %1636 = vmax.xlane.f32.xlu1 %v1635_v58 }
 0x4c5   : > { %v928_v49 = vpop.xlane.xlu0 %927 }
 0x4c9   : > { %v922_v38 = vpop.xlane.xlu0 %921 }
 0x4d9   : > { %v1215_v2 = vpop.xlane.xlu1 %1214 }
 0x4db   : > { %v1218_v36 = vpop.xlane.xlu0 %1217 }
 0x4dd   : > { %v1209_v14 = vpop.xlane.xlu1 %1208 }
 0x4df   : > { %v1212_v26 = vpop.xlane.xlu0 %1211 }
 0x4e1   : > { %v931_v54 = vpop.xlane.xlu1 %930 }
 0x4e2   : > { %3500 = vrcp.f32 %v931_v54 }
 0x4e3   : > { %v940_v15 = vpop.xlane.xlu0 %939  ;;  %3502 = vrcp.f32 %v922_v38 }
 0x4e4   : > { %3504 = vrcp.f32 %v928_v49 }
 0x4e5   : > { %v925_v30 = vpop.xlane.xlu1 %924 }
 0x4e6   : > { %3506 = vrcp.f32 %v925_v30 }
 0x4e7   : > { %v934_v28 = vpop.xlane.xlu0 %933  ;;  %3508 = vrcp.f32 %v1212_v26 }
 0x4e8   : > { %3510 = vrcp.f32 %v940_v15 }
 0x4e9   : > { %v1227_v22 = vpop.xlane.xlu1 %1226  ;;  %3512 = vrcp.f32 %v934_v28 }
 0x4ea   : > { %3514 = vrcp.f32 %v1209_v14 }
 0x4eb   : > { %v1224_v24 = vpop.xlane.xlu0 %1223 }
 0x4ec   : > { %v3501_v50 = vpop.eup %3500 }
 0x4ed   : > { %v1221_v25 = vpop.xlane.xlu1 %1220  ;;  %v3503_v29 = vpop.eup %3502  ;;  %v951_v55 = vmul.f32 %v3501_v50, %v4111_v35 }
 0x4ee   : > { %v3505_v41 = vpop.eup %3504  ;;  %v948_v3 = vmul.f32 %v3503_v29, %v4081_v21 }
 0x4ef   : > { %v1251_v27 = vpop.permute.xlu0 %1250  ;;  %v950_v20 = vmul.f32 %v3505_v41, %v4077_v12 }
 0x4f0   : > { %v3507_v44 = vpop.eup %3506  ;;  %3249 = vmatprep.subr.bf16.mxu0 %v1251_v27 }
 0x4f1   : > { %v937_v11 = vpop.xlane.xlu1 %936  ;;  %v949_v5 = vmul.f32 %v3507_v44, %v4119_v8  ;;  %v956_v46 = vpack.c.bf16 %v951_v55, %v950_v20  ;;  %v3509_v35 = vpop.eup %3508 }
 0x4f2   : > { %3516 = vrcp.f32 %v937_v11  ;;  %v3511_v12 = vpop.eup %3510 }
 0x4f3   : > { %v1901_v34 = vpop.permute.xlu0 %1900  ;;  %v955_v19 = vpack.c.bf16 %v949_v5, %v948_v3  ;;  %3518 = vrcp.f32 %v1218_v36  ;;  %v3513_v47 = vpop.eup %3512  ;;  %v954_v48 = vmul.f32 %v3511_v12, %v4115_v23  ;;  %v1236_v36 = vmul.f32 %v3509_v35, %v4106_v39 }
 0x4f4   : > { %v1921_v45 = vsel %vm787_vm2, %v1901_v34, 0  ;;  %3393 = vmatprep.subr.msk.bf16.mxu1 %vm787_vm2, %v1901_v34  ;;  %3520 = vrcp.f32 %v1221_v25  ;;  %v3515_v43 = vpop.eup %3514  ;;  %v952_v49 = vmul.f32 %v3513_v47, %v4123_v18 }
 0x4f5   : > { %v1253_v60 = vpop.permute.xlu1 %1252  ;;  %3225 = vmatprep.mubr.msk.bf16.mxu0 %vm876_vm4, %v955_v19  ;;  %3328 = vmatpush3.bf16.xpose.msra.mxu1 %v1921_v45  ;;  %3522 = vrcp.f32 %v1215_v2  ;;  %v1235_v26 = vmul.f32 %v3515_v43, %v4098_v9  ;;  %v958_v54 = vpack.c.bf16 %v954_v48, %v954_v48 }
 0x4f6   : > { %3226 = vmatmul.mubr.msk.bf16.vlgmr.msra.gmra.mrb[24].mxu0 %vm876_vm4, %v956_v46  ;;  %3524 = vrcp.f32 %v1224_v24 }
 0x4f7   : > { %3250 = vmatpush3.bf16.msra.mxu0 %v1251_v27  ;;  %v1905_v21 = vpop.permute.xlu0 %1904  ;;  %3526 = vrcp.f32 %v1227_v22  ;;  %v1242_v23 = vpack.c.bf16 %v1236_v36, %v1235_v26 }
 0x4f8   : > { %3251 = vmatprep.subr.bf16.mxu0 %v1253_v60  ;;  %v1927_v27 = vsel %vm787_vm2, %v1905_v21, 0 }
 0x4f9   : > { %v1255_v8 = vpop.permute.xlu1 %1254 }
 0x4fb   : > { %3252 = vmatpush3.bf16.msra.mxu0 %v1253_v60  ;;  %v1893_v37 = vpop.permute.xlu0 %1892 }
 0x4fc   : > { %v3517_v0 = vpop.eup %3516  ;;  %3253 = vmatprep.subr.bf16.mxu0 %v1255_v8  ;;  %3335 = vmatprep.mubr.msk.bf16.mxu1 %vm787_vm2, %v1893_v37 }
 0x4fd   : > { %v1257_v58 = vpop.permute.xlu1 %1256  ;;  %v953_v38 = vmul.f32 %v3517_v0, %v4141_v59  ;;  %v3519_v15 = vpop.eup %3518 }
 0x4fe   : > { %v1274_v2 = vand.u32 %v1257_v58, %v3938_v57  ;;  %v3521_v28 = vpop.eup %3520  ;;  %v1238_v9 = vmul.f32 %v3519_v15, %v4102_v7 }
 0x4ff   : > { %3254 = vmatpush3.bf16.msra.mxu0 %v1255_v8  ;;  %v957_v14 = vpack.c.bf16 %v953_v38, %v952_v49  ;;  %v3523_v39 = vpop.eup %3522  ;;  %v1239_v22 = vmul.f32 %v3521_v28, %v4135_v6  ;;  %v1897_v55 = vpop.permute.xlu0 %1896  ;;  %v3427_v28 = vld [vmem:[%s4776_s5] sm:$0xff]  }
 0x500   : > { %3255 = vmatprep.subr.bf16.mxu0 %v1274_v2  ;;  %v3525_v59 = vpop.eup %3524  ;;  %v1237_v24 = vmul.f32 %v3523_v39, %v4095_v1 }
 0x501   : > { %v1903_v30 = vpop.permute.xlu1 %1902  ;;  %3229 = vmatprep.mubr.msk.bf16.mxu0 %vm876_vm4, %v957_v14  ;;  %v1240_v50 = vmul.f32 %v3525_v59, %v4131_v42  ;;  %v3527_v29 = vpop.eup %3526 }
 0x502   : > { %v1924_v18 = vsel %vm787_vm2, %v1903_v30, 0  ;;  %3230 = vmatmul.mubr.msk.bf16.gmra.mrb[28].mxu0 %vm876_vm4, %v958_v54  ;;  %3394 = vmatprep.subr.msk.bf16.mxu1 %vm787_vm2, %v1903_v30  ;;  %v1243_v25 = vpack.c.bf16 %v1238_v9, %v1237_v24  ;;  %v1241_v7 = vmul.f32 %v3527_v29, %v4127_v31 }
 0x503   : > { %3256 = vmatpush3.bf16.msra.mxu0 %v1274_v2  ;;  %3257 = vmatprep.mubr.msk.bf16.mxu0 %vm876_vm4, %v1242_v23  ;;  %v1244_v41 = vpack.c.bf16 %v1240_v50, %v1239_v22  ;;  %v3426_v23 = vld [vmem:[%s4776_s5 + $0x8] sm:$0xff]  }
 0x504   : > { %3330 = vmatpush3.bf16.xpose.msra.mxu1 %v1924_v18  ;;  %v1245_v6 = vpack.c.bf16 %v1241_v7, %v1241_v7  ;;  %3265 = vmatprep.subr.bf16.mxu0 %v3426_v23 }
 0x505   : > { %3395 = vmatprep.subr.msk.bf16.mxu1 %vm787_vm2, %v1905_v21  ;;  %v1907_v44 = vpop.permute.xlu1 %1906 }
 0x506   : > { %v1930_v1 = vsel %vm787_vm2, %v1907_v44, 0 }
 0x509   : > { %v1895_v42 = vpop.permute.xlu1 %1894 }
 0x50a   : > { %3258 = vmatmul.mubr.msk.bf16.vlgmr.msra.gmra.mrb[32].mxu0 %vm876_vm4, %v1243_v25 }
 0x50b   : > { %3261 = vmatprep.mubr.msk.bf16.mxu0 %vm876_vm4, %v1244_v41  ;;  %3266 = vmatpush3.bf16.msra.mxu0 %v3426_v23 }
 0x50c   : > { %3332 = vmatpush3.bf16.xpose.msra.mxu1 %v1927_v27  ;;  %3275 = vmatprep.subr.bf16.mxu0 %v3427_v28 }
 0x50d   : > { %3396 = vmatprep.subr.msk.bf16.mxu1 %vm787_vm2, %v1907_v44  ;;  %v1899_v11 = vpop.permute.xlu1 %1898 }
 0x512   : > { %3262 = vmatmul.mubr.msk.bf16.gmra.mrb[36].mxu0 %vm876_vm4, %v1245_v6 }
 0x514   : > { %3334 = vmatpush3.bf16.xpose.msra.mxu1 %v1930_v1 }
 0x51b   : > { %3336 = vmatmul.mubr.msk.bf16.vlgmr.msra.gmra.mrb[16].mxu1 %vm787_vm2, %v1895_v42 }
 0x51c   : > { %3339 = vmatprep.mubr.msk.bf16.mxu1 %vm787_vm2, %v1897_v55 }
 0x523   : > { %3340 = vmatmul.mubr.msk.bf16.gmra.mrb[20].mxu1 %vm787_vm2, %v1899_v11 }
 0x524   : > { %2508 = vmatprep.mubr.bf16.mxu1 %v3641_v56 }
 0x530   : > { %v1622_v31 = vpop.xlane.xlu0 %1621 }
 0x531   : > { %v1641_v3 = vsub.f32 %v4169_v32, %v1622_v31 }
 0x533   : > { %v1648_v34 = vmul.f32 1.442695, %v1641_v3 }
 0x534   : > { %v1628_v5 = vpop.xlane.xlu0 %1627 }
 0x535   : > { %v1643_v20 = vsub.f32 %v4175_v16, %v1628_v5 }
 0x537   : > { %v1652_v19 = vmul.f32 1.442695, %v1643_v20 }
 0x538   : > { %v1631_v46 = vpop.xlane.xlu0 %1630 }
 0x539   : > { %3528 = vpow2.f32 %v1652_v19  ;;  %v1644_v45 = vsub.f32 %v4183_v40, %v1631_v46 }
 0x53a   : > { %3530 = vpow2.f32 %v1648_v34 }
 0x53b   : > { %v1654_v60 = vmul.f32 1.442695, %v1644_v45 }
 0x53c   : > { %v1634_v21 = vpop.xlane.xlu0 %1633 }
 0x53d   : > { %3532 = vpow2.f32 %v1654_v60  ;;  %v1645_v35 = vsub.f32 %v4194_v10, %v1634_v21 }
 0x53e   : > { %v1625_v12 = vpop.xlane.xlu1 %1624 }
 0x53f   : > { %v1642_v8 = vsub.f32 %v4202_v62, %v1625_v12  ;;  %v1656_v16 = vmul.f32 1.442695, %v1645_v35 }
 0x540   : > { %v1640_v47 = vpop.xlane.xlu0 %1639 }
 0x541   : > { %v1650_v32 = vmul.f32 1.442695, %v1642_v8  ;;  %v1647_v43 = vsub.f32 %v4208_v63, %v1640_v47 }
 0x542   : > { %v1637_v37 = vpop.xlane.xlu1 %1636 }
 0x543   : > { %v4263_v0 = vpop.eup %3528  ;;  %3534 = vpow2.f32 %v1650_v32  ;;  %v1660_v48 = vmul.f32 1.442695, %v1647_v43  ;;  %v1646_v40 = vsub.f32 %v4213_v13, %v1637_v37  ;;  %v3023_v32 = vld [vmem:[%s4778_s7 + $0xa8] sm:$0xff] }
 0x544   : > { %v1668_v58 = vsel %vm876_vm4, %v4263_v0, 0.0  ;;  %v4268_v49 = vpop.eup %3530 }
 0x545   : > { %3536 = vpow2.f32 %v1660_v48  ;;  %v1658_v10 = vmul.f32 1.442695, %v1646_v40  ;;  %1669 = vadd.xlane.f32.xlu1 %v1668_v58  ;;  %v1662_v63 = vsel %vm876_vm4, %v4268_v49, 0.0  ;;  %v3024_v48 = vld [vmem:[%s4778_s7 + $0xb0] sm:$0xff] }
 0x546   : > { %3538 = vpow2.f32 %v1656_v16  ;;  %v3025_v16 = vld [vmem:[%s4778_s7 + $0xb8] sm:$0xff] }
 0x547   : > { %v4270_v62 = vpop.eup %3532  ;;  %3540 = vpow2.f32 %v1658_v10 }
 0x548   : > { %v1671_v38 = vsel %vm876_vm4, %v4270_v62, 0.0 }
 0x549   : > { %1663 = vadd.xlane.f32.xlu1 %v1662_v63  ;;  %1672 = vadd.xlane.f32.xlu0 %v1671_v38 }
 0x54d   : > { %v4276_v13 = vpop.eup %3534 }
 0x54e   : > { %v1665_v36 = vsel %vm876_vm4, %v4276_v13, 0.0 }
 0x54f   : > { %v4280_v2 = vpop.eup %3536  ;;  %1666 = vadd.xlane.f32.xlu0 %v1665_v36 }
 0x550   : > { %v4282_v14 = vpop.eup %3538  ;;  %v1680_v26 = vsel %vm895_vm5, %v4280_v2, 0.0 }
 0x551   : > { %v4286_v54 = vpop.eup %3540  ;;  %1681 = vadd.xlane.f32.xlu1 %v1680_v26  ;;  %v1674_v30 = vsel %vm876_vm4, %v4282_v14, 0.0 }
 0x552   : > { %v1677_v15 = vsel %vm876_vm4, %v4286_v54, 0.0 }
 0x553   : > { %1678 = vadd.xlane.f32.xlu0 %v1677_v15  ;;  %v3026_v15 = vld [vmem:[%s4778_s7 + $0xc0] sm:$0xff] }
 0x555   : > { %1675 = vadd.xlane.f32.xlu1 %v1674_v30 }
 0x566   : > { %1703 = vrot.lane.b32.xlu1 %v3865_v17, %s3646_s21 }
 0x569   : > { %1701 = vrot.lane.b32.xlu0 %v3853_v4, %s3646_s21 }
 0x56a   : > { %1705 = vrot.lane.b32.xlu1 %v3875_v33, %s3646_s21 }
 0x56e   : > { %1707 = vrot.lane.b32.xlu1 %v3933_v61, %s3646_s21 }
 0x5c9   : > { %v3227_v18 = vpop.f32.mrb[24].mxu0 }
 0x5ca   : > { %v1015_v39 = vpop.f32.mrb[25].mxu0 }
 0x5cb   : > { %v3228_v59 = vpop.f32.mrb[26].mxu0 }
 0x5cc   : > { %v1046_v9 = vpack.c.bf16 %v3228_v59, %v3227_v18  ;;  %v1018_v22 = vpop.f32.mrb[27].mxu0 }
 0x5cd   : > { %v1045_v24 = vpack.c.bf16 %v1018_v22, %v1015_v39 }
 0x5d2   : > { %v1670_v29 = vpop.xlane.xlu1 %1669 }
 0x5d5   : > { %v4306_v50 = vpop.f32.mrb[28].mxu0 }
 0x5d6   : > { %v1031_v25 = vpop.f32.mrb[29].mxu0  ;;  %v1673_v27 = vpop.xlane.xlu0 %1672 }
 0x5d7   : > { %v3232_v41 = vpop.f32.mrb[30].mxu0  ;;  %v1664_v1 = vpop.xlane.xlu1 %1663 }
 0x5d8   : > { %v1034_v44 = vpop.f32.mrb[31].mxu0  ;;  %v1048_v41 = vpack.c.bf16 %v4306_v50, %v4306_v50 }
 0x5d9   : > { %v1047_v7 = vpack.c.bf16 %v1034_v44, %v1031_v25 }
 0x5dc   : > { %v1667_v6 = vpop.xlane.xlu0 %1666 }
 0x5dd   : > { %v3259_v42 = vpop.f32.mrb[32].mxu0  ;;  %3542 = vrcp.f32 %v1667_v6 }
 0x5de   : > { %v1310_v55 = vpop.f32.mrb[33].mxu0  ;;  %v1682_v20 = vpop.xlane.xlu1 %1681  ;;  %3544 = vrcp.f32 %v1664_v1 }
 0x5df   : > { %v3260_v11 = vpop.f32.mrb[34].mxu0  ;;  %3546 = vrcp.f32 %v1673_v27 }
 0x5e0   : > { %v1341_v31 = vpack.c.bf16 %v3260_v11, %v3259_v42  ;;  %v1313_v3 = vpop.f32.mrb[35].mxu0  ;;  %v1679_v5 = vpop.xlane.xlu0 %1678 }
 0x5e1   : > { %v1340_v34 = vpack.c.bf16 %v1313_v3, %v1310_v55 }
 0x5e2   : > { %v1676_v60 = vpop.xlane.xlu1 %1675 }
 0x5e3   : > { %3267 = vmatprep.mubr.msk.bf16.mxu0 %vm787_vm2, %v1340_v34  ;;  %3548 = vrcp.f32 %v1676_v60 }
 0x5e4   : > { %3268 = vmatmul.mubr.msk.bf16.vlgmr.msra.gmra.mrb[40].mxu0 %vm787_vm2, %v1341_v31  ;;  %v1702_v19 = vpop.permute.xlu0 %1701  ;;  %3550 = vrcp.f32 %v1670_v29 }
 0x5e5   : > { %3276 = vmatpush3.bf16.msra.mxu0 %v3427_v28  ;;  %v3263_v46 = vpop.f32.mrb[36].mxu0  ;;  %3552 = vrcp.f32 %v1679_v5 }
 0x5e6   : > { %3301 = vmatprep.subr.bf16.mxu0 %v1702_v19  ;;  %v1326_v45 = vpop.f32.mrb[37].mxu0  ;;  %v1343_v8 = vpack.c.bf16 %v3263_v46, %v3263_v46  ;;  %v1704_v47 = vpop.permute.xlu1 %1703  ;;  %3554 = vrcp.f32 %v1682_v20 }
 0x5e7   : > { %v3264_v21 = vpop.f32.mrb[38].mxu0  ;;  %v3543_v23 = vpop.eup %3542 }
 0x5e8   : > { %v1329_v35 = vpop.f32.mrb[39].mxu0  ;;  %v3545_v59 = vpop.eup %3544  ;;  %v1691_v29 = vmul.f32 %v3543_v23, %v4276_v13  ;;  %v3029_v13 = vld [vmem:[%s4778_s7 + $0xd8] sm:$0x1] }
 0x5e9   : > { %v1342_v12 = vpack.c.bf16 %v1329_v35, %v1326_v45  ;;  %v1690_v42 = vmul.f32 %v3545_v59, %v4268_v49  ;;  %v3547_v55 = vpop.eup %3546 }
 0x5ea   : > { %v1706_v26 = vpop.permute.xlu1 %1705  ;;  %v1693_v49 = vmul.f32 %v3547_v55, %v4270_v62 }
 0x5eb   : > { %3271 = vmatprep.mubr.msk.bf16.mxu0 %vm787_vm2, %v1342_v12  ;;  %v1697_v3 = vpack.c.bf16 %v1691_v29, %v1690_v42 }
 0x5ec   : > { %3272 = vmatmul.mubr.msk.bf16.gmra.mrb[44].mxu0 %vm787_vm2, %v1343_v8 }
 0x5ed   : > { %3277 = vmatprep.mubr.msk.bf16.mxu0 %vm787_vm2, %v1045_v24  ;;  %v3028_v24 = vld [vmem:[%s4778_s7 + $0xd0] sm:$0xff]  ;;  %v3549_v50 = vpop.eup %3548 }
 0x5ee   : > { %v3337_v43 = vpop.f32.mrb[16].mxu1  ;;  %v1708_v27 = vpop.permute.xlu1 %1707  ;;  %v1694_v46 = vmul.f32 %v3549_v50, %v4282_v14 }
 0x5ef   : > { %v1966_v37 = vpop.f32.mrb[17].mxu1  ;;  %v4324_v63 = vadd.f32 %v3337_v43, %v3025_v16  ;;  %v1725_v11 = vand.u32 %v1708_v27, %v3938_v57  ;;  %v3551_v5 = vpop.eup %3550 }
 0x5f0   : > { %v4322_v40 = vadd.f32 %v3023_v32, %v1966_v37  ;;  %v3338_v58 = vpop.f32.mrb[18].mxu1  ;;  %v3553_v20 = vpop.eup %3552  ;;  %v1692_v45 = vmul.f32 %v3551_v5, %v4263_v0  ;;  %v3428_v0 = vld [vmem:[%s4776_s5 + $0x10] sm:$0xff]  }
 0x5f1   : > { %v1969_v10 = vpop.f32.mrb[19].mxu1  ;;  %v4336_v28 = vadd.f32 %v3338_v58, %v3026_v15  ;;  %v2002_v39 = vsel %vm876_vm4, %v4324_v63, -inf  ;;  %v1695_v60 = vmul.f32 %v3553_v20, %v4286_v54  ;;  %v3555_v12 = vpop.eup %3554 }
 0x5f2   : > { %v4326_v38 = vadd.f32 %v3024_v48, %v1969_v10  ;;  %v1996_v36 = vsel %vm876_vm4, %v4322_v40, -inf  ;;  %v1698_v21 = vpack.c.bf16 %v1693_v49, %v1692_v45  ;;  %v1696_v8 = vmul.f32 %v3555_v12, %v4280_v2 }
 0x5f3   : > { %1997 = vmax.xlane.f32.xlu0 %v1996_v36  ;;  %v2005_v1 = vsel %vm876_vm4, %v4336_v28, -inf  ;;  %v1699_v62 = vpack.c.bf16 %v1695_v60, %v1694_v46 }
 0x5f4   : > { %3278 = vmatmul.mubr.msk.bf16.vlgmr.msra.gmra.mrb[40].mxu0 %vm787_vm2, %v1046_v9  ;;  %v1999_v30 = vsel %vm876_vm4, %v4326_v38, -inf  ;;  %v3027_v9 = vld [vmem:[%s4778_s7 + $0xc8] sm:$0xff] }
 0x5f5   : > { %2000 = vmax.xlane.f32.xlu1 %v1999_v30  ;;  %3302 = vmatpush3.bf16.msra.mxu0 %v1702_v19 }
 0x5f6   : > { %3281 = vmatprep.mubr.msk.bf16.mxu0 %vm787_vm2, %v1047_v7  ;;  %3303 = vmatprep.subr.bf16.mxu0 %v1704_v47  ;;  %v3341_v18 = vpop.f32.mrb[20].mxu1 }
 0x5f7   : > { %v1982_v22 = vpop.f32.mrb[21].mxu1  ;;  %2003 = vmax.xlane.f32.xlu0 %v2002_v39  ;;  %v1991_v34 = vadd.f32 %v3341_v18, %v3029_v13 }
 0x5f8   : > { %v3342_v25 = vpop.f32.mrb[22].mxu1  ;;  %v1983_v7 = vadd.f32 %v3027_v9, %v1982_v22 }
 0x5f9   : > { %3304 = vmatpush3.bf16.msra.mxu0 %v1704_v47  ;;  %v1985_v44 = vpop.f32.mrb[23].mxu1  ;;  %v2014_v35 = vsel %vm895_vm5, %v1991_v34, -inf  ;;  %v1700_v47 = vpack.c.bf16 %v1696_v8, %v1696_v8 }
 0x5fa   : > { %v4350_v6 = vadd.f32 %v3028_v24, %v1985_v44  ;;  %3305 = vmatprep.subr.bf16.mxu0 %v1706_v26  ;;  %v2008_v19 = vsel %vm876_vm4, %v1983_v7, -inf }
 0x5fb   : > { %2006 = vmax.xlane.f32.xlu0 %v2005_v1 }
 0x5fc   : > { %3282 = vmatmul.mubr.msk.bf16.gmra.mrb[48].mxu0 %vm787_vm2, %v1048_v41  ;;  %v2011_v31 = vsel %vm876_vm4, %v4350_v6, -inf }
 0x5fd   : > { %2012 = vmax.xlane.f32.xlu1 %v2011_v31  ;;  %3306 = vmatpush3.bf16.msra.mxu0 %v1706_v26 }
 0x5fe   : > { %3307 = vmatprep.subr.bf16.mxu0 %v1725_v11  ;;  %3309 = vmatprep.mubr.msk.bf16.mxu0 %vm876_vm4, %v1697_v3 }
 0x5ff   : > { %2009 = vmax.xlane.f32.xlu0 %v2008_v19 }
 0x601   : > { %3308 = vmatpush3.bf16.msra.mxu0 %v1725_v11 }
 0x602   : > { %3317 = vmatprep.subr.bf16.mxu0 %v3428_v0 }
 0x603   : > { %2015 = vmax.xlane.f32.xlu0 %v2014_v35 }
 0x604   : > { %3310 = vmatmul.mubr.msk.bf16.vlgmr.msra.gmra.mrb[52].mxu0 %vm876_vm4, %v1698_v21 }
 0x605   : > { %3313 = vmatprep.mubr.msk.bf16.mxu0 %vm876_vm4, %v1699_v62  ;;  %3318 = vmatpush3.bf16.msra.mxu0 %v3428_v0 }
 0x60c   : > { %3314 = vmatmul.mubr.msk.bf16.gmra.mrb[56].mxu0 %vm876_vm4, %v1700_v47 }
 0x60e   : > { %2077 = vrot.lane.b32.xlu1 %v3853_v4, %s3648_s20 }
 0x680   : > { %v1998_v14 = vpop.xlane.xlu0 %1997 }
 0x681   : > { %v2017_v54 = vsub.f32 %v4322_v40, %v1998_v14 }
 0x682   : > { %v2001_v32 = vpop.xlane.xlu1 %2000 }
 0x683   : > { %v2024_v2 = vmul.f32 1.442695, %v2017_v54  ;;  %v2018_v37 = vsub.f32 %v4326_v38, %v2001_v32 }
 0x684   : > { %v2004_v43 = vpop.xlane.xlu0 %2003 }
 0x685   : > { %v2019_v16 = vsub.f32 %v4324_v63, %v2004_v43  ;;  %v2026_v26 = vmul.f32 1.442695, %v2018_v37 }
 0x687   : > { %v2028_v48 = vmul.f32 1.442695, %v2019_v16 }
 0x688   : > { %v2007_v58 = vpop.xlane.xlu0 %2006 }
 0x689   : > { %3556 = vpow2.f32 %v2028_v48  ;;  %v2020_v10 = vsub.f32 %v4336_v28, %v2007_v58 }
 0x68a   : > { %v2013_v36 = vpop.xlane.xlu1 %2012  ;;  %3558 = vpow2.f32 %v2024_v2 }
 0x68b   : > { %v2030_v4 = vmul.f32 1.442695, %v2020_v10  ;;  %v2022_v23 = vsub.f32 %v4350_v6, %v2013_v36 }
 0x68c   : > { %v2010_v15 = vpop.xlane.xlu0 %2009 }
 0x68d   : > { %3560 = vpow2.f32 %v2030_v4  ;;  %v2021_v30 = vsub.f32 %v1983_v7, %v2010_v15  ;;  %v2034_v59 = vmul.f32 1.442695, %v2022_v23 }
 0x68e   : > { %v2078_v40 = vpop.permute.xlu1 %2077  ;;  %3562 = vpow2.f32 %v2026_v26 }
 0x68f   : > { %v2032_v63 = vmul.f32 1.442695, %v2021_v30  ;;  %3343 = vmatprep.subr.bf16.mxu0 %v2078_v40 }
 0x690   : > { %v2016_v18 = vpop.xlane.xlu0 %2015 }
 0x691   : > { %3564 = vpow2.f32 %v2032_v63  ;;  %v2023_v38 = vsub.f32 %v1991_v34, %v2016_v18 }
 0x693   : > { %v4383_v39 = vpop.eup %3556  ;;  %v2036_v28 = vmul.f32 1.442695, %v2023_v38 }
 0x694   : > { %v2044_v22 = vsel %vm876_vm4, %v4383_v39, 0.0  ;;  %v4387_v9 = vpop.eup %3558 }
 0x695   : > { %3566 = vpow2.f32 %v2036_v28  ;;  %2045 = vadd.xlane.f32.xlu1 %v2044_v22  ;;  %v2038_v25 = vsel %vm876_vm4, %v4387_v9, 0.0  ;;  %v3429_v28 = vld [vmem:[%s4776_s5 + $0x18] sm:$0xff]  }
 0x696   : > { %3568 = vpow2.f32 %v2034_v59 }
 0x697   : > { %v4389_v24 = vpop.eup %3560 }
 0x698   : > { %v2047_v29 = vsel %vm876_vm4, %v4389_v24, 0.0  ;;  %v4395_v41 = vpop.eup %3562 }
 0x699   : > { %2039 = vadd.xlane.f32.xlu1 %v2038_v25  ;;  %2048 = vadd.xlane.f32.xlu0 %v2047_v29  ;;  %v2041_v44 = vsel %vm876_vm4, %v4395_v41, 0.0 }
 0x69b   : > { %v4397_v27 = vpop.eup %3564 }
 0x69c   : > { %v2050_v7 = vsel %vm876_vm4, %v4397_v27, 0.0 }
 0x69d   : > { %2042 = vadd.xlane.f32.xlu0 %v2041_v44  ;;  %2051 = vadd.xlane.f32.xlu1 %v2050_v7 }
 0x69f   : > { %v4403_v6 = vpop.eup %3566 }
 0x6a0   : > { %v2056_v1 = vsel %vm895_vm5, %v4403_v6, 0.0  ;;  %v4407_v42 = vpop.eup %3568 }
 0x6a1   : > { %2057 = vadd.xlane.f32.xlu0 %v2056_v1  ;;  %v2053_v55 = vsel %vm876_vm4, %v4407_v42, 0.0 }
 0x6a5   : > { %2054 = vadd.xlane.f32.xlu0 %v2053_v55 }
 0x6ae   : > { %2081 = vrot.lane.b32.xlu1 %v3875_v33, %s3648_s20 }
 0x6b2   : > { %2083 = vrot.lane.b32.xlu1 %v3933_v61, %s3648_s20 }
 0x6bb   : > { %2079 = vrot.lane.b32.xlu0 %v3865_v17, %s3648_s20 }
 0x6bf   : > { %v3273_v13 = vpop.f32.mrb[44].mxu0 }
 0x6c0   : > { %v1412_v50 = vpop.f32.mrb[45].mxu0 }
 0x6c1   : > { %v3274_v11 = vpop.f32.mrb[46].mxu0 }
 0x6c2   : > { %v1415_v31 = vpop.f32.mrb[47].mxu0 }
 0x6cf   : > { %v3283_v3 = vpop.f32.mrb[48].mxu0 }
 0x6d0   : > { %v4417_v5 = vadd.f32 %v3283_v3, %v3273_v13  ;;  %v1494_v20 = vpop.f32.mrb[49].mxu0 }
 0x6d1   : > { %v4419_v49 = vadd.f32 %v1494_v20, %v1412_v50  ;;  %v3284_v34 = vpop.f32.mrb[50].mxu0 }
 0x6d2   : > { %v1497_v19 = vpop.f32.mrb[51].mxu0 }
 0x6d3   : > { %v4421_v46 = vadd.f32 %v1497_v19, %v1415_v31 }
 0x6d7   : > { %v3311_v33 = vpop.f32.mrb[52].mxu0 }
 0x6d8   : > { %v1761_v45 = vpop.f32.mrb[53].mxu0 }
 0x6d9   : > { %v3312_v61 = vpop.f32.mrb[54].mxu0 }
 0x6da   : > { %v1792_v60 = vpack.c.bf16 %v3312_v61, %v3311_v33  ;;  %v1764_v21 = vpop.f32.mrb[55].mxu0  ;;  %v3043_v61 = vld [vmem:[%s4777_s6] ss:$0 sm:$0xff] }
 0x6db   : > { %v1791_v17 = vpack.c.bf16 %v1764_v21, %v1761_v45  ;;  %v3626_v21 = vld [vmem:[%s3740_s18] sm:$0xff] }
 0x6dd   : > { %3319 = vmatprep.mubr.msk.bf16.mxu0 %vm787_vm2, %v1791_v17 }
 0x6de   : > { %3320 = vmatmul.mubr.msk.bf16.vlgmr.msra.gmra.mrb[40].mxu0 %vm787_vm2, %v1792_v60 }
 0x6df   : > { %3344 = vmatpush3.bf16.msra.mxu0 %v2078_v40  ;;  %v3315_v35 = vpop.f32.mrb[56].mxu0 }
 0x6e0   : > { %v1777_v12 = vpop.f32.mrb[57].mxu0  ;;  %v1794_v0 = vpack.c.bf16 %v3315_v35, %v3315_v35 }
 0x6e1   : > { %v3316_v62 = vpop.f32.mrb[58].mxu0 }
 0x6e2   : > { %v1780_v8 = vpop.f32.mrb[59].mxu0 }
 0x6e3   : > { %v1793_v47 = vpack.c.bf16 %v1780_v8, %v1777_v12  ;;  %v3627_v12 = vld [vmem:[%s3740_s18 + $0x18] sm:$0xff] }
 0x6e5   : > { %3323 = vmatprep.mubr.msk.bf16.mxu0 %vm787_vm2, %v1793_v47  ;;  %v3628_v47 = vld [vmem:[%s3740_s18 + $0x10] sm:$0xff] }
 0x6e6   : > { %3324 = vmatmul.mubr.msk.bf16.gmra.mrb[60].mxu0 %vm787_vm2, %v1794_v0 }
 0x722   : > { %v2046_v14 = vpop.xlane.xlu1 %2045 }
 0x726   : > { %v2040_v54 = vpop.xlane.xlu1 %2039  ;;  %v2049_v32 = vpop.xlane.xlu0 %2048 }
 0x727   : > { %3570 = vrcp.f32 %v2040_v54  ;;  %v3629_v54 = vld [vmem:[%s3740_s18 + $0x8] sm:$0xff] }
 0x72a   : > { %v2043_v43 = vpop.xlane.xlu0 %2042  ;;  %v2052_v16 = vpop.xlane.xlu1 %2051 }
 0x72b   : > { %3572 = vrcp.f32 %v2043_v43 }
 0x72c   : > { %3574 = vrcp.f32 %v2049_v32 }
 0x72d   : > { %3576 = vrcp.f32 %v2046_v14 }
 0x72e   : > { %v2058_v2 = vpop.xlane.xlu0 %2057  ;;  %3578 = vrcp.f32 %v2052_v16  ;;  %v2082_v37 = vpop.permute.xlu1 %2081 }
 0x731   : > { %v3571_v58 = vpop.eup %3570 }
 0x732   : > { %v2055_v48 = vpop.xlane.xlu0 %2054  ;;  %v2066_v26 = vmul.f32 %v3571_v58, %v4387_v9  ;;  %v2084_v15 = vpop.permute.xlu1 %2083 }
 0x733   : > { %3580 = vrcp.f32 %v2055_v48  ;;  %v2101_v63 = vand.u32 %v2084_v15, %v3938_v57 }
 0x734   : > { %3582 = vrcp.f32 %v2058_v2 }
 0x735   : > { %v3573_v10 = vpop.eup %3572 }
 0x736   : > { %v2080_v36 = vpop.permute.xlu0 %2079  ;;  %v2067_v4 = vmul.f32 %v3573_v10, %v4395_v41  ;;  %v3575_v40 = vpop.eup %3574 }
 0x737   : > { %3345 = vmatprep.subr.bf16.mxu0 %v2080_v36  ;;  %v3577_v23 = vpop.eup %3576  ;;  %v2069_v59 = vmul.f32 %v3575_v40, %v4389_v24  ;;  %v3630_v40 = vld [vmem:[%s3740_s18 + $0x30] sm:$0x1] }
 0x738   : > { %3346 = vmatpush3.bf16.msra.mxu0 %v2080_v36  ;;  %v2073_v30 = vpack.c.bf16 %v2067_v4, %v2066_v26  ;;  %v3579_v18 = vpop.eup %3578  ;;  %v2068_v9 = vmul.f32 %v3577_v23, %v4383_v39 }
 0x739   : > { %3347 = vmatprep.subr.bf16.mxu0 %v2082_v37  ;;  %v2070_v25 = vmul.f32 %v3579_v18, %v4397_v27 }
 0x73a   : > { %3351 = vmatprep.mubr.msk.bf16.mxu0 %vm876_vm4, %v2073_v30  ;;  %v2074_v57 = vpack.c.bf16 %v2069_v59, %v2068_v9 }
 0x73c   : > { %3348 = vmatpush3.bf16.msra.mxu0 %v2082_v37 }
 0x73d   : > { %v3581_v38 = vpop.eup %3580  ;;  %3349 = vmatprep.subr.bf16.mxu0 %v2101_v63 }
 0x73e   : > { %v2071_v22 = vmul.f32 %v3581_v38, %v4407_v42  ;;  %v3583_v29 = vpop.eup %3582 }
 0x73f   : > { %v2072_v24 = vmul.f32 %v3583_v29, %v4403_v6 }
 0x740   : > { %3350 = vmatpush3.bf16.msra.mxu0 %v2101_v63  ;;  %v2075_v41 = vpack.c.bf16 %v2071_v22, %v2070_v25  ;;  %v3631_v63 = vld [vmem:[%s3740_s18 + $0x20] sm:$0xff]  ;;  %v3632_v22 = vld [vmem:[%s3740_s18 + $0x28] sm:$0xff] }
 0x741   : > { %3359 = vmatprep.subr.bf16.mxu0 %v3429_v28  ;;  %v2076_v44 = vpack.c.bf16 %v2072_v24, %v2072_v24 }
 0x743   : > { %3352 = vmatmul.mubr.msk.bf16.vlgmr.msra.gmra.mrb[64].mxu0 %vm876_vm4, %v2074_v57 }
 0x744   : > { %3355 = vmatprep.mubr.msk.bf16.mxu0 %vm876_vm4, %v2075_v41  ;;  %3360 = vmatpush3.bf16.msra.mxu0 %v3429_v28 }
 0x74b   : > { %3356 = vmatmul.mubr.msk.bf16.gmra.mrb[68].mxu0 %vm876_vm4, %v2076_v44 }
 0x7b9   : > { %v3325_v7 = vpop.f32.mrb[60].mxu0 }
 0x7ba   : > { %v1883_v39 = vadd.f32 %v3325_v7, %v4417_v5  ;;  %v1863_v1 = vpop.f32.mrb[61].mxu0 }
 0x7bb   : > { %v1881_v27 = vadd.f32 %v1863_v1, %v4419_v49  ;;  %v3326_v42 = vpop.f32.mrb[62].mxu0 }
 0x7bc   : > { %v1866_v55 = vpop.f32.mrb[63].mxu0 }
 0x7bd   : > { %v1882_v13 = vadd.f32 %v1866_v55, %v4421_v46 }
 0x816   : > { %v3353_v50 = vpop.f32.mrb[64].mxu0 }
 0x817   : > { %v2137_v11 = vpop.f32.mrb[65].mxu0 }
 0x818   : > { %v3354_v31 = vpop.f32.mrb[66].mxu0 }
 0x819   : > { %v2168_v3 = vpack.c.bf16 %v3354_v31, %v3353_v50  ;;  %v2140_v20 = vpop.f32.mrb[67].mxu0 }
 0x81a   : > { %v2167_v6 = vpack.c.bf16 %v2140_v20, %v2137_v11 }
 0x81c   : > { %3361 = vmatprep.mubr.msk.bf16.mxu0 %vm787_vm2, %v2167_v6 }
 0x81d   : > { %3362 = vmatmul.mubr.msk.bf16.vlgmr.msra.gmra.mrb[40].mxu0 %vm787_vm2, %v2168_v3 }
 0x81e   : > { %v3357_v5 = vpop.f32.mrb[68].mxu0 }
 0x81f   : > { %v2153_v34 = vpop.f32.mrb[69].mxu0  ;;  %v2170_v46 = vpack.c.bf16 %v3357_v5, %v3357_v5 }
 0x820   : > { %v3358_v49 = vpop.f32.mrb[70].mxu0 }
 0x821   : > { %v2156_v19 = vpop.f32.mrb[71].mxu0 }
 0x822   : > { %v2169_v33 = vpack.c.bf16 %v2156_v19, %v2153_v34 }
 0x824   : > { %3365 = vmatprep.mubr.msk.bf16.mxu0 %vm787_vm2, %v2169_v33 }
 0x825   : > { %3366 = vmatmul.mubr.msk.bf16.gmra.mrb[72].mxu0 %vm787_vm2, %v2170_v46 }
 0x8f0   : > { %v3363_v45 = vpop.f32.mrb[40].mxu0 }
 0x8f1   : > { %v2223_v60 = vpop.f32.mrb[41].mxu0  ;;  %v2262_v0 = vadd.f32 %v3628_v47, %v3363_v45 }
 0x8f2   : > { %v2260_v17 = vadd.f32 %v3626_v21, %v2223_v60  ;;  %v3364_v35 = vpop.f32.mrb[42].mxu0 }
 0x8f3   : > { %v2263_v62 = vadd.f32 %v3627_v12, %v3364_v35  ;;  %v2226_v8 = vpop.f32.mrb[43].mxu0  ;;  %v4464_v37 = vadd.f32 %v3043_v61, %v2262_v0 }
 0x8f4   : > { %v4455_v14 = vadd.f32 %v3043_v61, %v2260_v17  ;;  %v2261_v32 = vadd.f32 %v3629_v54, %v2226_v8 }
 0x8f5   : > { %v4458_v43 = vadd.f32 %v3043_v61, %v2263_v62  ;;  %v2289_v59 = vsel %vm478_vm0, %v4464_v37, 0.0 }
 0x8f6   : > { %v4460_v16 = vadd.f32 %v3043_v61, %v2261_v32  ;;  %v2283_v2 = vsel %vm478_vm0, %v4455_v14, 0.0 }
 0x8f7   : > { %2284 = vadd.xlane.f32.xlu1 %v2283_v2  ;;  %v2292_v15 = vsel %vm478_vm0, %v4458_v43, 0.0 }
 0x8f8   : > { %v3367_v48 = vpop.f32.mrb[72].mxu0  ;;  %v2286_v58 = vsel %vm478_vm0, %v4460_v16, 0.0 }
 0x8f9   : > { %v2259_v10 = vadd.f32 %v3367_v48, %v1883_v39  ;;  %2287 = vadd.xlane.f32.xlu0 %v2286_v58  ;;  %v2239_v36 = vpop.f32.mrb[73].mxu0  ;;  %v3432_v58 = vld [vmem:[%s4781_s10 + $0x4] ss:$8 sps:$4 sm:$0xff]  }
 0x8fa   : > { %v2257_v26 = vadd.f32 %v2239_v36, %v1881_v27  ;;  %v3368_v4 = vpop.f32.mrb[74].mxu0  ;;  %2476 = vmatprep.subr.bf16.mxu1 %v3432_v58  ;;  %v3435_v36 = vld [vmem:[%s4781_s10 + $0x14] ss:$8 sps:$4 sm:$0xff]  }
 0x8fb   : > { %2293 = vadd.xlane.f32.xlu1 %v2292_v15  ;;  %v2242_v30 = vpop.f32.mrb[75].mxu0  ;;  %v2266_v23 = vadd.f32 %v3630_v40, %v2259_v10  ;;  %v3430_v10 = vld [vmem:[%s4781_s10] ss:$8 sps:$4 sm:$0xff]   ;;  %v3438_v4 = vld [vmem:[%s4781_s10 + $0x24] ss:$8 sps:$4 sm:$0xff]  }
 0x8fc   : > { %v2264_v18 = vadd.f32 %v3631_v63, %v2257_v26  ;;  %v2258_v38 = vadd.f32 %v2242_v30, %v1882_v13  ;;  %2477 = vmatpush1.bf16.msra.mxu1 %v3430_v10  ;;  %v3433_v26 = vld [vmem:[%s4781_s10 + $0x10] ss:$8 sps:$4 sm:$0xff]   ;;  %v3436_v15 = vld [vmem:[%s4781_s10 + $0x20] ss:$8 sps:$4 sm:$0xff]   ;;  %v3441_v30 = vld [vmem:[%s4781_s10 + $0x34] ss:$8 sps:$4 sm:$0xff]  }
 0x8fd   : > { %2290 = vadd.xlane.f32.xlu0 %v2289_v59  ;;  %v4477_v25 = vadd.f32 %v3043_v61, %v2266_v23  ;;  %2478 = vmatprep.subr.bf16.mxu1 %v3435_v36  ;;  %v3439_v40 = vld [vmem:[%s4781_s10 + $0x30] ss:$8 sps:$4 sm:$0xff]  }
 0x8fe   : > { %v4474_v28 = vadd.f32 %v3043_v61, %v2264_v18  ;;  %v2265_v9 = vadd.f32 %v3632_v22, %v2258_v38 }
 0x8ff   : > { %v2301_v24 = vsel %vm497_vm1, %v4477_v25, 0.0 }
 0x900   : > { %v4479_v57 = vadd.f32 %v3043_v61, %v2265_v9  ;;  %v2295_v29 = vsel %vm478_vm0, %v4474_v28, 0.0  ;;  %2479 = vmatpush1.bf16.msra.mxu1 %v3433_v26 }
 0x901   : > { %2296 = vadd.xlane.f32.xlu0 %v2295_v29  ;;  %2480 = vmatprep.subr.bf16.mxu1 %v3438_v4 }
 0x902   : > { %v2298_v41 = vsel %vm478_vm0, %v4479_v57, 0.0 }
 0x903   : > { %2299 = vadd.xlane.f32.xlu1 %v2298_v41 }
 0x904   : > { %2481 = vmatpush1.bf16.msra.mxu1 %v3436_v15 }
 0x905   : > { %2302 = vadd.xlane.f32.xlu0 %v2301_v24  ;;  %2482 = vmatprep.subr.bf16.mxu1 %v3441_v30 }
 0x908   : > { %2483 = vmatpush1.bf16.msra.mxu1 %v3439_v40 }
 0x984   : > { %v2285_v44 = vpop.xlane.xlu1 %2284 }
 0x985   : > { %v2304_v7 = vmul.f32 0.015625, %v2285_v44 }
 0x986   : > { %v2288_v39 = vpop.xlane.xlu0 %2287 }
 0x987   : > { %v4488_v1 = vsub.f32 %v4455_v14, %v2304_v7  ;;  %v2305_v27 = vmul.f32 0.015625, %v2288_v39 }
 0x988   : > { %v2294_v42 = vpop.xlane.xlu1 %2293 }
 0x989   : > { %v4491_v55 = vsub.f32 %v4460_v16, %v2305_v27  ;;  %v2307_v13 = vmul.f32 0.015625, %v2294_v42  ;;  %v2318_v50 = vmul.f32 %v4488_v1, %v4488_v1 }
 0x98a   : > { %v2291_v11 = vpop.xlane.xlu0 %2290 }
 0x98b   : > { %v4496_v31 = vsub.f32 %v4458_v43, %v2307_v13  ;;  %v2306_v3 = vmul.f32 0.015625, %v2291_v11  ;;  %v2325_v20 = vsel %vm478_vm0, %v2318_v50, 0.0  ;;  %v2319_v6 = vmul.f32 %v4491_v55, %v4491_v55 }
 0x98c   : > { %2326 = vadd.xlane.f32.xlu1 %v2325_v20  ;;  %v3044_v20 = vld [vmem:[%s4779_s8] ss:$0 sm:$0xff] }
 0x98d   : > { %v4502_v5 = vsub.f32 %v4464_v37, %v2306_v3  ;;  %v2328_v34 = vsel %vm478_vm0, %v2319_v6, 0.0  ;;  %v2321_v49 = vmul.f32 %v4496_v31, %v4496_v31 }
 0x98e   : > { %2329 = vadd.xlane.f32.xlu0 %v2328_v34  ;;  %v2297_v19 = vpop.xlane.xlu0 %2296 }
 0x98f   : > { %v2308_v33 = vmul.f32 0.015625, %v2297_v19  ;;  %v2320_v46 = vmul.f32 %v4502_v5, %v4502_v5  ;;  %v2334_v21 = vsel %vm478_vm0, %v2321_v49, 0.0 }
 0x990   : > { %v2300_v45 = vpop.xlane.xlu1 %2299 }
 0x991   : > { %v4510_v61 = vsub.f32 %v4474_v28, %v2308_v33  ;;  %v2309_v60 = vmul.f32 0.015625, %v2300_v45  ;;  %v2331_v17 = vsel %vm478_vm0, %v2320_v46, 0.0  ;;  %v3045_v45 = vld [vmem:[%s4780_s9] ss:$0 sm:$0xff] }
 0x992   : > { %2335 = vadd.xlane.f32.xlu0 %v2334_v21  ;;  %v2303_v35 = vpop.xlane.xlu0 %2302  ;;  %2332 = vadd.xlane.f32.xlu1 %v2331_v17 }
 0x993   : > { %v4515_v12 = vsub.f32 %v4479_v57, %v2309_v60  ;;  %v2310_v62 = vmul.f32 0.015625, %v2303_v35  ;;  %v2322_v8 = vmul.f32 %v4510_v61, %v4510_v61 }
 0x995   : > { %v4520_v47 = vsub.f32 %v4477_v25, %v2310_v62  ;;  %v2337_v0 = vsel %vm478_vm0, %v2322_v8, 0.0  ;;  %v2323_v54 = vmul.f32 %v4515_v12, %v4515_v12 }
 0x996   : > { %2338 = vadd.xlane.f32.xlu1 %v2337_v0 }
 0x997   : > { %v2340_v32 = vsel %vm478_vm0, %v2323_v54, 0.0  ;;  %v2324_v2 = vmul.f32 %v4520_v47, %v4520_v47 }
 0x998   : > { %2341 = vadd.xlane.f32.xlu0 %v2340_v32 }
 0x999   : > { %v2343_v48 = vsel %vm497_vm1, %v2324_v2, 0.0 }
 0x99a   : > { %2344 = vadd.xlane.f32.xlu1 %v2343_v48 }
 0xa19   : > { %v2327_v23 = vpop.xlane.xlu1 %2326 }
 0xa1a   : > { %v2346_v63 = vmul.f32 0.015625, %v2327_v23 }
 0xa1b   : > { %v2330_v18 = vpop.xlane.xlu0 %2329 }
 0xa1c   : > { %v2353_v38 = vadd.f32 1e-05, %v2346_v63  ;;  %v2347_v59 = vmul.f32 0.015625, %v2330_v18 }
 0xa1e   : > { %3584 = vrsqrt.f32 %v2353_v38  ;;  %v2354_v22 = vadd.f32 1e-05, %v2347_v59  ;;  %v3442_v38 = vld [vmem:[%s4783_s12 + $0x40] sm:$0xff]   ;;  %v3444_v59 = vld [vmem:[%s4783_s12 + $0x48] sm:$0xff]  }
 0xa1f   : > { %v2336_v9 = vpop.xlane.xlu0 %2335  ;;  %v2333_v29 = vpop.xlane.xlu1 %2332  ;;  %3161 = vmatprep.subr.bf16.mxu1 %v3442_v38 }
 0xa20   : > { %3586 = vrsqrt.f32 %v2354_v22  ;;  %v2349_v41 = vmul.f32 0.015625, %v2336_v9  ;;  %v2348_v24 = vmul.f32 0.015625, %v2333_v29  ;;  %v3446_v22 = vld [vmem:[%s4783_s12 + $0x50] sm:$0xff]   ;;  %v3448_v29 = vld [vmem:[%s4783_s12 + $0x58] sm:$0xff]  }
 0xa21   : > { %v3447_v9 = vld [vmem:[%s4783_s12 + $0x10] sm:$0xff]  }
 0xa22   : > { %v2356_v44 = vadd.f32 1e-05, %v2349_v41  ;;  %v2355_v7 = vadd.f32 1e-05, %v2348_v24  ;;  %v3449_v41 = vld [vmem:[%s4783_s12 + $0x18] sm:$0xff]   ;;  %v3450_v24 = vld [vmem:[%s4783_s12 + $0x60] sm:$0xff]  }
 0xa23   : > { %v2339_v39 = vpop.xlane.xlu1 %2338 }
 0xa24   : > { %3588 = vrsqrt.f32 %v2356_v44  ;;  %v2350_v27 = vmul.f32 0.015625, %v2339_v39  ;;  %v3451_v44 = vld [vmem:[%s4783_s12 + $0x20] sm:$0xff]   ;;  %v3453_v39 = vld [vmem:[%s4783_s12 + $0x28] sm:$0xff]  }
 0xa25   : > { %3590 = vrsqrt.f32 %v2355_v7  ;;  %v2342_v42 = vpop.xlane.xlu0 %2341  ;;  %v3452_v7 = vld [vmem:[%s4783_s12 + $0x68] sm:$0xff]  }
 0xa26   : > { %v2357_v13 = vadd.f32 1e-05, %v2350_v27  ;;  %v2351_v50 = vmul.f32 0.015625, %v2342_v42  ;;  %v3454_v27 = vld [vmem:[%s4783_s12 + $0x70] sm:$0xff]  }
 0xa27   : > { %v2345_v11 = vpop.xlane.xlu1 %2344  ;;  %v3455_v42 = vld [vmem:[%s4783_s12 + $0x30] sm:$0xff]  }
 0xa28   : > { %v3585_v3 = vpop.eup %3584  ;;  %v2358_v6 = vadd.f32 1e-05, %v2351_v50  ;;  %v2352_v34 = vmul.f32 0.015625, %v2345_v11  ;;  %3592 = vrsqrt.f32 %v2357_v13  ;;  %v3456_v13 = vld [vmem:[%s4783_s12 + $0x78] sm:$0xff]   ;;  %v2412_v11 = vld [vmem:[%s4782_s11] sm:$0x3] }
 0xa29   : > { %v2367_v49 = vmul.f32 %v3585_v3, %v4488_v1  ;;  %v3457_v50 = vld [vmem:[%s4783_s12 + $0x38] sm:$0xff]   ;;  %v4626_v3 = vrot.slane %v2412_v11, %v614_v52 }
 0xa2a   : > { %v3587_v19 = vpop.eup %3586  ;;  %3594 = vrsqrt.f32 %v2358_v6  ;;  %v2359_v60 = vadd.f32 1e-05, %v2352_v34 }
 0xa2b   : > { %v2380_v33 = vmul.f32 %v3044_v20, %v2367_v49  ;;  %v2368_v46 = vmul.f32 %v3587_v19, %v4491_v55 }
 0xa2c   : > { %3596 = vrsqrt.f32 %v2359_v60 }
 0xa2d   : > { %v2381_v21 = vmul.f32 %v3044_v20, %v2368_v46  ;;  %v2393_v62 = vadd.f32 %v3045_v45, %v2380_v33 }
 0xa2e   : > { %v3589_v17 = vpop.eup %3588 }
 0xa2f   : > { %v3591_v35 = vpop.eup %3590  ;;  %v2394_v8 = vadd.f32 %v3045_v45, %v2381_v21  ;;  %v2370_v0 = vmul.f32 %v3589_v17, %v4496_v31 }
 0xa30   : > { %v2369_v1 = vmul.f32 %v3591_v35, %v4502_v5 }
 0xa31   : > { %v2400_v54 = vpack.c.bf16 %v2394_v8, %v2393_v62  ;;  %v2383_v32 = vmul.f32 %v3044_v20, %v2370_v0 }
 0xa32   : > { %v2382_v2 = vmul.f32 %v3044_v20, %v2369_v1  ;;  %v3593_v48 = vpop.eup %3592 }
 0xa33   : > { %3054 = vmatmul.mubr.msk.bf16.vlgmr.msra.gmra.mrb[24].mxu1 %vm478_vm0, %v2400_v54  ;;  %v2396_v36 = vadd.f32 %v3045_v45, %v2383_v32  ;;  %v2371_v26 = vmul.f32 %v3593_v48, %v4510_v61 }
 0xa34   : > { %v3595_v55 = vpop.eup %3594  ;;  %2518 = vmatprep.mubr.bf16.mxu1 %v3641_v56  ;;  %v2395_v10 = vadd.f32 %v3045_v45, %v2382_v2 }
 0xa35   : > { %v2372_v58 = vmul.f32 %v3595_v55, %v4515_v12  ;;  %v2384_v5 = vmul.f32 %v3044_v20, %v2371_v26 }
 0xa36   : > { %v2401_v4 = vpack.c.bf16 %v2396_v36, %v2395_v10  ;;  %v3597_v15 = vpop.eup %3596 }
 0xa37   : > { %v2385_v31 = vmul.f32 %v3044_v20, %v2372_v58  ;;  %v2373_v30 = vmul.f32 %v3597_v15, %v4520_v47  ;;  %v2397_v23 = vadd.f32 %v3045_v45, %v2384_v5  ;;  %v3443_v47 = vld [vmem:[%s4783_s12] sm:$0xff]  }
 0xa38   : > { %3162 = vmatpush3.bf16.msra.mxu1 %v3443_v47 }
 0xa39   : > { %v2398_v40 = vadd.f32 %v3045_v45, %v2385_v31  ;;  %v2386_v18 = vmul.f32 %v3044_v20, %v2373_v30  ;;  %3163 = vmatprep.subr.bf16.mxu1 %v3444_v59  ;;  %v4630_v20 = vrot.slane %v2412_v11, %v618_v53 }
 0xa3b   : > { %3055 = vmatmul.mubr.msk.bf16.gmra.mrb[28].mxu1 %vm478_vm0, %v2401_v4  ;;  %v2402_v63 = vpack.c.bf16 %v2398_v40, %v2397_v23  ;;  %v2399_v12 = vadd.f32 %v3045_v45, %v2386_v18 }
 0xa3c   : > { %2528 = vmatprep.mubr.bf16.mxu1 %v3641_v56 }
 0xa3d   : > { %v2403_v61 = vpack.c.bf16 %v2399_v12, %v2399_v12 }
 0xa43   : > { %3056 = vmatmul.mubr.msk.bf16.gmra.mrb[32].mxu1 %vm478_vm0, %v2402_v63 }
 0xa44   : > { %2538 = vmatprep.mubr.bf16.mxu1 %v3641_v56  ;;  %v3445_v56 = vld [vmem:[%s4783_s12 + $0x8] sm:$0xff]  }
 0xa45   : > { %3164 = vmatpush3.bf16.msra.mxu1 %v3445_v56 }
 0xa46   : > { %3165 = vmatprep.subr.bf16.mxu1 %v3446_v22 }
 0xa49   : > { %3166 = vmatpush3.bf16.msra.mxu1 %v3447_v9 }
 0xa4a   : > { %3167 = vmatprep.subr.bf16.mxu1 %v3448_v29 }
 0xa4b   : > { %3057 = vmatmul.mubr.msk.bf16.gmra.mrb[36].mxu1 %vm478_vm0, %v2403_v61 }
 0xa4d   : > { %3168 = vmatpush3.bf16.msra.mxu1 %v3449_v41 }
 0xa4e   : > { %3169 = vmatprep.subr.bf16.mxu1 %v3450_v24 }
 0xa51   : > { %3170 = vmatpush3.bf16.msra.mxu1 %v3451_v44 }
 0xa52   : > { %3171 = vmatprep.subr.bf16.mxu1 %v3452_v7 }
 0xa55   : > { %3172 = vmatpush3.bf16.msra.mxu1 %v3453_v39 }
 0xa56   : > { %3173 = vmatprep.subr.bf16.mxu1 %v3454_v27 }
 0xa59   : > { %3174 = vmatpush3.bf16.msra.mxu1 %v3455_v42 }
 0xa5a   : > { %3175 = vmatprep.subr.bf16.mxu1 %v3456_v13 }
 0xa5d   : > { %3176 = vmatpush3.bf16.msra.mxu1 %v3457_v50 }
 0xb06   : > { %v2510_v6 = vpop.f32.mrb[24].mxu1 }
 0xb07   : > { %v2511_v34 = vadd.f32 %v2510_v6, %v4626_v3  ;;  %v2512_v49 = vpop.f32.mrb[25].mxu1 }
 0xb08   : > { %v4634_v19 = vadd.f32 %v2512_v49, %v4630_v20  ;;  %v2514_v33 = vpop.f32.mrb[26].mxu1 }
 0xb09   : > { %v2561_v46 = vmul.f32 0.044715, %v2511_v34  ;;  %v4637_v45 = vadd.f32 %v2514_v33, %v4626_v3  ;;  %v2516_v60 = vpop.f32.mrb[27].mxu1  ;;  %v2547_v6 = vmul.f32 0.5, %v2511_v34 }
 0xb0a   : > { %v2562_v52 = vmul.f32 0.044715, %v4634_v19  ;;  %v4641_v21 = vadd.f32 %v2516_v60, %v4630_v20 }
 0xb0b   : > { %v2575_v51 = vmul.f32 %v2561_v46, %v2511_v34  ;;  %v2563_v53 = vmul.f32 0.044715, %v4637_v45 }
 0xb0c   : > { %v2576_v17 = vmul.f32 %v2562_v52, %v4634_v19  ;;  %v2564_v35 = vmul.f32 0.044715, %v4641_v21 }
 0xb0d   : > { %v2589_v62 = vmul.f32 %v2575_v51, %v2511_v34  ;;  %v2577_v8 = vmul.f32 %v2563_v53, %v4637_v45 }
 0xb0e   : > { %v2590_v0 = vmul.f32 %v2576_v17, %v4634_v19  ;;  %v2578_v1 = vmul.f32 %v2564_v35, %v4641_v21  ;;  %v2520_v54 = vpop.f32.mrb[28].mxu1 }
 0xb0f   : > { %v2603_v32 = vadd.f32 %v2589_v62, %v2511_v34  ;;  %v2591_v2 = vmul.f32 %v2577_v8, %v4637_v45  ;;  %v4651_v48 = vadd.f32 %v2520_v54, %v4626_v3  ;;  %v2522_v55 = vpop.f32.mrb[29].mxu1 }
 0xb10   : > { %v2592_v58 = vmul.f32 %v2578_v1, %v4641_v21  ;;  %v4655_v10 = vadd.f32 %v2522_v55, %v4630_v20  ;;  %v2524_v36 = vpop.f32.mrb[30].mxu1  ;;  %v2604_v26 = vadd.f32 %v2590_v0, %v4634_v19 }
 0xb11   : > { %v2617_v4 = vmul.f32 0.7978846, %v2603_v32  ;;  %v2605_v31 = vadd.f32 %v2591_v2, %v4637_v45  ;;  %v2565_v15 = vmul.f32 0.044715, %v4651_v48  ;;  %v4661_v5 = vadd.f32 %v2524_v36, %v4626_v3  ;;  %v2526_v30 = vpop.f32.mrb[31].mxu1 }
 0xb12   : > { %v2566_v40 = vmul.f32 0.044715, %v4655_v10  ;;  %v4665_v23 = vadd.f32 %v2526_v30, %v4630_v20  ;;  %v2606_v63 = vadd.f32 %v2592_v58, %v4641_v21  ;;  %v2618_v18 = vmul.f32 0.7978846, %v2604_v26 }
 0xb13   : > { %3598 = vtanh.f32 %v2617_v4  ;;  %v2619_v12 = vmul.f32 0.7978846, %v2605_v31  ;;  %v2579_v61 = vmul.f32 %v2565_v15, %v4651_v48  ;;  %v2567_v38 = vmul.f32 0.044715, %v4661_v5 }
 0xb14   : > { %v2580_v47 = vmul.f32 %v2566_v40, %v4655_v10  ;;  %v2568_v59 = vmul.f32 0.044715, %v4665_v23  ;;  %v2620_v56 = vmul.f32 0.7978846, %v2606_v63  ;;  %3600 = vtanh.f32 %v2618_v18 }
 0xb15   : > { %3602 = vtanh.f32 %v2619_v12  ;;  %v2593_v22 = vmul.f32 %v2579_v61, %v4651_v48  ;;  %v2581_v9 = vmul.f32 %v2567_v38, %v4661_v5  ;;  %v2549_v2 = vmul.f32 0.5, %v4637_v45 }
 0xb16   : > { %v2594_v29 = vmul.f32 %v2580_v47, %v4655_v10  ;;  %v2582_v41 = vmul.f32 %v2568_v59, %v4665_v23  ;;  %v2530_v24 = vpop.f32.mrb[32].mxu1  ;;  %3604 = vtanh.f32 %v2620_v56  ;;  %v2548_v58 = vmul.f32 0.5, %v4634_v19 }
 0xb17   : > { %v2595_v44 = vmul.f32 %v2581_v9, %v4661_v5  ;;  %v4678_v7 = vadd.f32 %v2530_v24, %v4626_v3  ;;  %v2532_v39 = vpop.f32.mrb[33].mxu1  ;;  %v2607_v11 = vadd.f32 %v2593_v22, %v4651_v48  ;;  %v2550_v47 = vmul.f32 0.5, %v4641_v21 }
 0xb18   : > { %v2596_v27 = vmul.f32 %v2582_v41, %v4665_v23  ;;  %v4682_v42 = vadd.f32 %v2532_v39, %v4630_v20  ;;  %v2534_v13 = vpop.f32.mrb[34].mxu1  ;;  %v2608_v50 = vadd.f32 %v2594_v29, %v4655_v10 }
 0xb19   : > { %v2569_v49 = vmul.f32 0.044715, %v4678_v7  ;;  %v4688_v33 = vadd.f32 %v2534_v13, %v4626_v3  ;;  %v2536_v46 = vpop.f32.mrb[35].mxu1  ;;  %v2609_v60 = vadd.f32 %v2595_v44, %v4661_v5  ;;  %v2621_v62 = vmul.f32 0.7978846, %v2607_v11 }
 0xb1a   : > { %v2570_v52 = vmul.f32 0.044715, %v4682_v42  ;;  %v4693_v51 = vadd.f32 %v2536_v46, %v4630_v20  ;;  %v2610_v53 = vadd.f32 %v2596_v27, %v4665_v23  ;;  %v2622_v17 = vmul.f32 0.7978846, %v2608_v50 }
 0xb1b   : > { %v2583_v35 = vmul.f32 %v2569_v49, %v4678_v7  ;;  %v2571_v34 = vmul.f32 0.044715, %v4688_v33  ;;  %v2623_v8 = vmul.f32 0.7978846, %v2609_v60 }
 0xb1c   : > { %v2584_v0 = vmul.f32 %v2570_v52, %v4682_v42  ;;  %v2572_v1 = vmul.f32 0.044715, %v4693_v51  ;;  %v2624_v54 = vmul.f32 0.7978846, %v2610_v53  ;;  %3606 = vtanh.f32 %v2622_v17 }
 0xb1d   : > { %v3599_v32 = vpop.eup %3598  ;;  %v2585_v55 = vmul.f32 %v2571_v34, %v4688_v33  ;;  %3608 = vtanh.f32 %v2621_v62  ;;  %v2597_v40 = vmul.f32 %v2583_v35, %v4678_v7  ;;  %v2552_v62 = vmul.f32 0.5, %v4655_v10 }
 0xb1e   : > { %v3601_v36 = vpop.eup %3600  ;;  %v2598_v26 = vmul.f32 %v2584_v0, %v4682_v42  ;;  %v2586_v4 = vmul.f32 %v2572_v1, %v4693_v51  ;;  %v2540_v31 = vpop.f32.mrb[36].mxu1  ;;  %v2645_v15 = vadd.f32 1.0, %v3599_v32  ;;  %3610 = vtanh.f32 %v2624_v54 }
 0xb1f   : > { %v3603_v30 = vpop.eup %3602  ;;  %v4707_v63 = vadd.f32 %v2540_v31, %v4626_v3  ;;  %v2542_v45 = vpop.f32.mrb[37].mxu1  ;;  %v2646_v18 = vadd.f32 1.0, %v3601_v36  ;;  %3612 = vtanh.f32 %v2623_v8  ;;  %v2599_v56 = vmul.f32 %v2585_v55, %v4688_v33 }
 0xb20   : > { %v3605_v12 = vpop.eup %3604  ;;  %v2600_v19 = vmul.f32 %v2586_v4, %v4693_v51  ;;  %v4711_v61 = vadd.f32 %v2542_v45, %v4630_v20  ;;  %v2544_v38 = vpop.f32.mrb[38].mxu1  ;;  %v2647_v59 = vadd.f32 1.0, %v3603_v30  ;;  %v2659_v29 = vmul.f32 %v2645_v15, %v2547_v6 }
 0xb21   : > { %v2573_v22 = vmul.f32 0.044715, %v4707_v63  ;;  %v2545_v9 = vpop.f32.mrb[39].mxu1  ;;  %v2648_v3 = vadd.f32 1.0, %v3605_v12  ;;  %v2612_v44 = vadd.f32 %v2598_v26, %v4682_v42  ;;  %v2660_v27 = vmul.f32 %v2646_v18, %v2548_v58 }
 0xb22   : > { %v2574_v41 = vmul.f32 0.044715, %v4711_v61  ;;  %v2661_v24 = vmul.f32 %v2647_v59, %v2549_v2  ;;  %v2614_v39 = vadd.f32 %v2600_v19, %v4693_v51  ;;  %v2611_v21 = vadd.f32 %v2597_v40, %v4678_v7 }
 0xb23   : > { %v2587_v20 = vmul.f32 %v2573_v22, %v4707_v63  ;;  %v2662_v13 = vmul.f32 %v2648_v3, %v2550_v47  ;;  %v2626_v49 = vmul.f32 0.7978846, %v2612_v44  ;;  %v2613_v6 = vadd.f32 %v2599_v56, %v4688_v33 }
 0xb24   : > { %v2588_v50 = vmul.f32 %v2574_v41, %v4711_v61  ;;  %v2673_v11 = vpack.c.bf16 %v2661_v24, %v2659_v29  ;;  %v2628_v46 = vmul.f32 0.7978846, %v2614_v39  ;;  %v2625_v52 = vmul.f32 0.7978846, %v2611_v21 }
 0xb25   : > { %v2674_v60 = vpack.c.bf16 %v2662_v13, %v2660_v27  ;;  %3614 = vtanh.f32 %v2626_v49  ;;  %v2601_v35 = vmul.f32 %v2587_v20, %v4707_v63  ;;  %v2627_v0 = vmul.f32 0.7978846, %v2613_v6 }
 0xb26   : > { %v3607_v53 = vpop.eup %3606  ;;  %v2602_v17 = vmul.f32 %v2588_v50, %v4711_v61  ;;  %3616 = vtanh.f32 %v2628_v46  ;;  %v2554_v58 = vmul.f32 0.5, %v4665_v23  ;;  %v2551_v26 = vmul.f32 0.5, %v4651_v48 }
 0xb27   : > { %v3609_v34 = vpop.eup %3608  ;;  %2848 = vmatprep.mubr.bf16.mxu1 %v2674_v60  ;;  %v2650_v8 = vadd.f32 1.0, %v3607_v53  ;;  %3618 = vtanh.f32 %v2625_v52  ;;  %v2615_v2 = vadd.f32 %v2601_v35, %v4707_v63  ;;  %v2553_v10 = vmul.f32 0.5, %v4661_v5  ;;  %v3058_v52 = vld [vmem:[%s4784_s13] ss:$0 sm:$0xff] }
 0xb28   : > { %v3611_v1 = vpop.eup %3610  ;;  %2849 = vmatmul.mubr.bf16.vlgmr.msra.gmra.mrb[40].mxu1 %v2673_v11  ;;  %v2649_v54 = vadd.f32 1.0, %v3609_v34  ;;  %v2616_v32 = vadd.f32 %v2602_v17, %v4711_v61  ;;  %3620 = vtanh.f32 %v2627_v0  ;;  %v2556_v59 = vmul.f32 0.5, %v4682_v42 }
 0xb29   : > { %v3613_v55 = vpop.eup %3612  ;;  %v2652_v36 = vadd.f32 1.0, %v3611_v1  ;;  %v2629_v15 = vmul.f32 0.7978846, %v2615_v2  ;;  %v2664_v30 = vmul.f32 %v2650_v8, %v2552_v62  ;;  %v2558_v5 = vmul.f32 0.5, %v4693_v51 }
 0xb2a   : > { %v2651_v4 = vadd.f32 1.0, %v3613_v55  ;;  %v2630_v31 = vmul.f32 0.7978846, %v2616_v32  ;;  %v2663_v45 = vmul.f32 %v2649_v54, %v2551_v26  ;;  %v2555_v9 = vmul.f32 0.5, %v4678_v7 }
 0xb2b   : > { %v2666_v40 = vmul.f32 %v2652_v36, %v2554_v58  ;;  %v2557_v24 = vmul.f32 0.5, %v4688_v33  ;;  %v2560_v50 = vmul.f32 0.5, %v4711_v61  ;;  %v2559_v7 = vmul.f32 0.5, %v4707_v63 }
 0xb2c   : > { %v2665_v18 = vmul.f32 %v2651_v4, %v2553_v10  ;;  %3622 = vtanh.f32 %v2630_v31 }
 0xb2d   : > { %v2676_v12 = vpack.c.bf16 %v2666_v40, %v2664_v30  ;;  %3624 = vtanh.f32 %v2629_v15 }
 0xb2e   : > { %v2675_v19 = vpack.c.bf16 %v2665_v18, %v2663_v45 }
 0xb2f   : > { %2856 = vmatprep.mubr.bf16.mxu1 %v2676_v12  ;;  %v3615_v38 = vpop.eup %3614 }
 0xb30   : > { %2857 = vmatmul.mubr.bf16.gmra.mrb[44].mxu1 %v2675_v19  ;;  %v3617_v23 = vpop.eup %3616  ;;  %v2654_v47 = vadd.f32 1.0, %v3615_v38 }
 0xb31   : > { %v3619_v48 = vpop.eup %3618  ;;  %v2656_v56 = vadd.f32 1.0, %v3617_v23 }
 0xb32   : > { %v3621_v22 = vpop.eup %3620  ;;  %v2653_v3 = vadd.f32 1.0, %v3619_v48  ;;  %v2668_v29 = vmul.f32 %v2654_v47, %v2556_v59 }
 0xb33   : > { %v2670_v41 = vmul.f32 %v2656_v56, %v2558_v5  ;;  %v2655_v44 = vadd.f32 1.0, %v3621_v22 }
 0xb34   : > { %v2667_v27 = vmul.f32 %v2653_v3, %v2555_v9 }
 0xb35   : > { %v2678_v20 = vpack.c.bf16 %v2670_v41, %v2668_v29  ;;  %v2669_v13 = vmul.f32 %v2655_v44, %v2557_v24 }
 0xb36   : > { %v3623_v39 = vpop.eup %3622 }
 0xb37   : > { %v3625_v21 = vpop.eup %3624  ;;  %v2658_v42 = vadd.f32 1.0, %v3623_v39  ;;  %2864 = vmatprep.mubr.bf16.mxu1 %v2678_v20  ;;  %v2677_v51 = vpack.c.bf16 %v2669_v13, %v2667_v27 }
 0xb38   : > { %v2657_v11 = vadd.f32 1.0, %v3625_v21 }
 0xb39   : > { %v2672_v49 = vmul.f32 %v2658_v42, %v2560_v50  ;;  %2865 = vmatmul.mubr.bf16.gmra.mrb[48].mxu1 %v2677_v51 }
 0xb3a   : > { %v2671_v60 = vmul.f32 %v2657_v11, %v2559_v7 }
 0xb3b   : > { %v2680_v46 = vpack.c.bf16 %v2672_v49, %v2672_v49 }
 0xb3c   : > { %v2679_v33 = vpack.c.bf16 %v2671_v60, %v2671_v60 }
 0xb3d   : > { %2872 = vmatprep.mubr.bf16.mxu1 %v2680_v46 }
 0xb41   : > { %2873 = vmatmul.mubr.bf16.gmra.mrb[52].mxu1 %v2679_v33 }
 0xbfb   : > { %v3177_v6 = vpop.f32.mrb[40].mxu1 }
 0xbfc   : > { %v3178_v61 = vpop.f32.mrb[41].mxu1 }
 0xbfd   : > { %v3179_v53 = vadd.f32 %v3178_v61, %v3177_v6  ;;  %v3180_v17 = vpop.f32.mrb[42].mxu1 }
 0xbfe   : > { %v3181_v35 = vpop.f32.mrb[43].mxu1 }
 0xbff   : > { %v2851_v34 = vadd.f32 %v3179_v53, %v3058_v52  ;;  %v3182_v62 = vadd.f32 %v3181_v35, %v3180_v17 }
 0xc01   : > { %v2880_v63 = vadd.f32 %v2851_v34, %v4455_v14  ;;  %v2854_v8 = vadd.f32 %v3182_v62, %v3058_v52 }
 0xc03   : > { %2887 = vst.msk [vmem:[%s4745_s17] sm:$0xff] %vm478_vm0, %v2880_v63  ;;  %v2881_v0 = vadd.f32 %v2854_v8, %v4460_v16  ;;  %v3183_v1 = vpop.f32.mrb[44].mxu1 }
 0xc04   : > { %v3184_v54 = vpop.f32.mrb[45].mxu1 }
 0xc05   : > { %2888 = vst.msk [vmem:[%s4745_s17 + $0x8] sm:$0xff] %vm478_vm0, %v2881_v0  ;;  %v3185_v32 = vadd.f32 %v3184_v54, %v3183_v1  ;;  %v3186_v2 = vpop.f32.mrb[46].mxu1 }
 0xc06   : > { %v3187_v55 = vpop.f32.mrb[47].mxu1 }
 0xc07   : > { %v2859_v58 = vadd.f32 %v3185_v32, %v3058_v52  ;;  %v3188_v36 = vadd.f32 %v3187_v55, %v3186_v2 }
 0xc09   : > { %v2882_v26 = vadd.f32 %v2859_v58, %v4464_v37  ;;  %v2862_v10 = vadd.f32 %v3188_v36, %v3058_v52 }
 0xc0b   : > { %2889 = vst.msk [vmem:[%s4745_s17 + $0x10] sm:$0xff] %vm478_vm0, %v2882_v26  ;;  %v2883_v14 = vadd.f32 %v2862_v10, %v4458_v43 }
 0xc0c   : > { %v3189_v16 = vpop.f32.mrb[48].mxu1 }
 0xc0d   : > { %2890 = vst.msk [vmem:[%s4745_s17 + $0x18] sm:$0xff] %vm478_vm0, %v2883_v14  ;;  %v3190_v4 = vpop.f32.mrb[49].mxu1 }
 0xc0e   : > { %v3191_v31 = vadd.f32 %v3190_v4, %v3189_v16  ;;  %v3192_v15 = vpop.f32.mrb[50].mxu1 }
 0xc0f   : > { %v3193_v30 = vpop.f32.mrb[51].mxu1 }
 0xc10   : > { %v2867_v40 = vadd.f32 %v3191_v31, %v3058_v52  ;;  %v3194_v45 = vadd.f32 %v3193_v30, %v3192_v15 }
 0xc12   : > { %v2884_v18 = vadd.f32 %v2867_v40, %v4474_v28  ;;  %v2870_v12 = vadd.f32 %v3194_v45, %v3058_v52 }
 0xc14   : > { %2891 = vst.msk [vmem:[%s4745_s17 + $0x20] sm:$0xff] %vm478_vm0, %v2884_v18  ;;  %v2885_v37 = vadd.f32 %v2870_v12, %v4479_v57  ;;  %v3195_v19 = vpop.f32.mrb[52].mxu1 }
 0xc15   : > { %v3196_v38 = vpop.f32.mrb[53].mxu1 }
 0xc16   : > { %2892 = vst.msk [vmem:[%s4745_s17 + $0x28] sm:$0xff] %vm478_vm0, %v2885_v37  ;;  %v3197_v43 = vadd.f32 %v3196_v38, %v3195_v19  ;;  %v3198_v23 = vpop.f32.mrb[54].mxu1 }
 0xc17   : > { %v3199_v47 = vpop.f32.mrb[55].mxu1 }
 0xc18   : > { %v2875_v48 = vadd.f32 %v3197_v43, %v3058_v52 }
 0xc1a   : > { %v2886_v59 = vadd.f32 %v2875_v48, %v4477_v25 }
 0xc1c   : > { %2893 = vst.msk [vmem:[%s4745_s17 + $0x30] sm:$0x1] %vm497_vm1, %v2886_v59 }
 0xc1d PF: > { %s24_s29 = sadd.s32 1, %s3639_s29  }
 0xc1e   : > { %p21_p4 = scmp.ge.s32.totalorder %s24_s29, 4  }
 0xc20   :  { %23 = sbr.rel (!%p21_p4) target bundleno = 1 (0x1), region = 109 }

</bundles_post_ra>
